<compile_context>
chip_gen: v7x
topology: tpu7x:2x2x1
jax: 0.10.0
libtpu: 0.0.40
codegen_flags: <defaults>
</compile_context>

<pallas_src>
import jax
import jax.numpy as jnp
from jax.experimental import pallas as pl
from jax.experimental.pallas import tpu as pltpu

LN_EPS = 1e-5          # PyTorch nn.LayerNorm default
HID = 512              # encodec_predictor hidden width (fixed by module)
OUT_DIM = 2000         # module's final Linear width
OUT_DIM_PAD = 2048     # 16 * 128 -> full MXU column tiles for w4
MAX_TILE_ROWS = 512    # ~85% of HBM roofline in tile sweeps; fits 64 MiB VMEM


def _round_up(x, m):
    return ((x + m - 1) // m) * m


def _pick_tile_rows(n):
    """Row tile <= MAX_TILE_ROWS with padded (zero) rows kept small."""
    if n <= MAX_TILE_ROWS:
        return _round_up(n, 8)
    n_tiles = -(-n // MAX_TILE_ROWS)            # ceil(n / MAX_TILE_ROWS)
    return _round_up(-(-n // n_tiles), 8)       # ceil(n / n_tiles) rounded to 8


def _layernorm(x, gamma, beta):
    # x: (rows, D) f32, gamma/beta: (1, D) f32 -- statistics kept in f32.
    mu = jnp.mean(x, axis=-1, keepdims=True)
    xc = x - mu
    var = jnp.mean(xc * xc, axis=-1, keepdims=True)
    inv = jax.lax.rsqrt(var + LN_EPS)
    return xc * inv * gamma + beta


def _gelu(x):
    # tanh-approx GELU -> EUP slot (nearly free next to MXU/VPU work).
    # TODO(synk): PyTorch nn.GELU() default is exact erf GELU; tanh approx
    # differs by ~1e-3 relative -- set test tolerances accordingly.
    return jax.nn.gelu(x, approximate=True)


def v2a_kernel(
    x_ref,
    ln1_g_ref, ln1_b_ref, w1_ref, b1_ref, w2_ref, b2_ref,
    ln2_g_ref, ln2_b_ref, w3_ref, b3_ref, w4_ref, b4_ref,
    latent_ref, codes_ref,
):
    x = x_ref[...].astype(jnp.float32)

    # ---- video_encoder: LayerNorm -> Linear -> GELU -> Linear ----
    xn = _layernorm(x, ln1_g_ref[...], ln1_b_ref[...])
    h = jnp.dot(xn.astype(jnp.bfloat16), w1_ref[...],
                preferred_element_type=jnp.float32) + b1_ref[...]
    h = _gelu(h)
    latent = jnp.dot(h.astype(jnp.bfloat16), w2_ref[...],
                     preferred_element_type=jnp.float32) + b2_ref[...]
    latent_ref[...] = latent.astype(latent_ref.dtype)

    # ---- encodec_predictor: LayerNorm -> Linear -> GELU -> Linear -> GELU ----
    ln = _layernorm(latent, ln2_g_ref[...], ln2_b_ref[...])
    g = jnp.dot(ln.astype(jnp.bfloat16), w3_ref[...],
                preferred_element_type=jnp.float32) + b3_ref[...]
    g = _gelu(g)
    s = jnp.dot(g.astype(jnp.bfloat16), w4_ref[...],
                preferred_element_type=jnp.float32) + b4_ref[...]
    s = _gelu(s[:, :OUT_DIM])                     # drop the 2048-pad columns
    # Fused wrapper post-processing: truncate-toward-zero int cast (matches
    # torch .long(); int32 vs torch int64) so the 2000-wide slab is written
    # to HBM exactly once.
    codes_ref[...] = s.astype(jnp.int32)


def init_params(key, feature_dim, latent_dim):
    """Deterministic synthetic parameters (shapes match the PyTorch module).

    Weights are bf16 (DMA + MXU win); biases / LN params stay f32 (added after
    the f32-accumulated dot). The final Linear is padded to OUT_DIM_PAD columns.
    """
    ks = jax.random.split(key, 4)
    scale = 0.02

    def lin(k, d_in, d_out, d_out_pad=None):
        w = scale * jax.random.normal(k, (d_in, d_out), jnp.float32)
        b = jnp.zeros((1, d_out), jnp.float32)
        if d_out_pad is not None and d_out_pad > d_out:
            w = jnp.pad(w, ((0, 0), (0, d_out_pad - d_out)))
            b = jnp.pad(b, ((0, 0), (0, d_out_pad - d_out)))
        return w.astype(jnp.bfloat16), b

    w1, b1 = lin(ks[0], feature_dim, latent_dim)
    w2, b2 = lin(ks[1], latent_dim, latent_dim)
    w3, b3 = lin(ks[2], latent_dim, HID)
    w4, b4 = lin(ks[3], HID, OUT_DIM, OUT_DIM_PAD)

    ln1_g = jnp.ones((1, feature_dim), jnp.float32)
    ln1_b = jnp.zeros((1, feature_dim), jnp.float32)
    ln2_g = jnp.ones((1, latent_dim), jnp.float32)
    ln2_b = jnp.zeros((1, latent_dim), jnp.float32)

    # TODO(synk): on v5e/v6e w3/w4 could be int8 + per-column scale (~2x fewer
    # weight bytes vs bf16); not carried here because v7x's MXU has no int path.
    return (ln1_g, ln1_b, w1, b1, w2, b2, ln2_g, ln2_b, w3, b3, w4, b4)


def _forward_call(x2d, params, *, tile_rows, n_pad, feature_dim, latent_dim,
                  single_buffer_weights):
    grid = (n_pad // tile_rows,)

    weight_kwargs = {}
    if single_buffer_weights:
        # Grid-invariant parameters: one VMEM copy is enough (their block index
        # never changes), halving parameter VMEM vs default double buffering.
        weight_kwargs["pipeline_mode"] = pl.Buffered(1)

    def resident(shape):
        return pl.BlockSpec(shape, lambda i: (0,) * len(shape), **weight_kwargs)

    in_specs = [pl.BlockSpec((tile_rows, feature_dim), lambda i: (i, 0))]
    in_specs += [resident(tuple(p.shape)) for p in params]

    out_specs = (
        pl.BlockSpec((tile_rows, latent_dim), lambda i: (i, 0)),
        pl.BlockSpec((tile_rows, OUT_DIM), lambda i: (i, 0)),
    )

    flops = 2 * n_pad * (feature_dim * latent_dim + latent_dim * latent_dim
                         + latent_dim * HID + HID * OUT_DIM_PAD)
    transcendentals = n_pad * (latent_dim + HID + OUT_DIM)
    bytes_accessed = (sum(int(p.size) * p.dtype.itemsize for p in params)
                      + int(x2d.size) * x2d.dtype.itemsize
                      + n_pad * (latent_dim * 4 + OUT_DIM * 4))

    return pl.pallas_call(
        v2a_kernel,
        out_shape=(
            jax.ShapeDtypeStruct((n_pad, latent_dim), jnp.float32),
            jax.ShapeDtypeStruct((n_pad, OUT_DIM), jnp.int32),
        ),
        grid=grid,
        in_specs=in_specs,
        out_specs=out_specs,
        compiler_params=pltpu.CompilerParams(
            dimension_semantics=("parallel",),    # shards rows on v7x's 2 TCs
            vmem_limit_bytes=48 * 1024 * 1024,    # <= v7x 64 MiB with headroom
        ),
        cost_estimate=pl.CostEstimate(
            flops=flops,
            transcendentals=transcendentals,
            bytes_accessed=bytes_accessed,
        ),
    )(x2d, *params)


def video_to_audio_forward(video_features, params, latent_dim):
    B, T, D = video_features.shape
    N = B * T
    # Keep caller dtype; the kernel casts to f32 on the VPU (no wrapper cast).
    x2d = video_features.reshape(N, D)

    tile_rows = _pick_tile_rows(N)
    n_pad = _round_up(N, tile_rows)
    if n_pad != N:
        x2d = jnp.pad(x2d, ((0, n_pad - N), (0, 0)))

    kwargs = dict(tile_rows=tile_rows, n_pad=n_pad,
                  feature_dim=D, latent_dim=latent_dim)
    try:
        latent2d, codes2d = _forward_call(x2d, params,
                                          single_buffer_weights=True, **kwargs)
    except Exception:
        # TODO(synk): pl.Buffered(1) single-buffering is a pure VMEM saving;
        # fall back to default double-buffered specs if this JAX rejects it.
        latent2d, codes2d = _forward_call(x2d, params,
                                          single_buffer_weights=False, **kwargs)

    latent = latent2d[:N].reshape(B, T, latent_dim)

    # Module hardcodes reshape to (B, 1, 4, 500): only valid when nb_chunks==1.
    assert T == 1, "shared_features.reshape(B, 1, 4, 500) requires nb_chunks == 1"
    codes2d = codes2d if n_pad == N else codes2d[:N]
    # TODO(synk): torch .long() is int64; int32 used (JAX/TPU-friendly default).
    audio_codes = codes2d.reshape(B, 1, 4, 500)
    audio_scales = jnp.ones((B, T), jnp.float32)
    return {"latent": latent, "audio_codes": audio_codes, "audio_scales": audio_scales}


if __name__ == "__main__":
    # Small shapes consistent with the module: batch=2, nb_chunks=1 (the
    # hardcoded reshape to (B, 1, 4, 500) requires nb_chunks == 1),
    # feature_dim = latent_dim = 128. The 512 / 2000 hidden dims are fixed
    # by the module.
    B, T, D, L = 2, 1, 128, 128

    key = jax.random.PRNGKey(0)
    k_x, k_p = jax.random.split(key)
    video_features = jax.random.normal(k_x, (B, T, D), jnp.float32)
    params = init_params(k_p, D, L)

    out = video_to_audio_forward(video_features, params, L)
    jax.block_until_ready(out)

    assert out["latent"].shape == (B, T, L)
    assert out["audio_codes"].shape == (B, 1, 4, 500)
    assert out["audio_codes"].dtype == jnp.int32
    assert out["audio_scales"].shape == (B, T)
    print("KERNEL_OK")
</pallas_src>

<mosaic_0001>
module attributes {stable_mosaic.version = 11 : i64} {
  func.func @v2a_kernel(%arg0: i32, %arg1: memref<8x128xf32, #tpu.memory_space<vmem>>, %arg2: memref<1x128xf32, #tpu.memory_space<vmem>>, %arg3: memref<1x128xf32, #tpu.memory_space<vmem>>, %arg4: memref<128x128xbf16, #tpu.memory_space<vmem>>, %arg5: memref<1x128xf32, #tpu.memory_space<vmem>>, %arg6: memref<128x128xbf16, #tpu.memory_space<vmem>>, %arg7: memref<1x128xf32, #tpu.memory_space<vmem>>, %arg8: memref<1x128xf32, #tpu.memory_space<vmem>>, %arg9: memref<1x128xf32, #tpu.memory_space<vmem>>, %arg10: memref<128x512xbf16, #tpu.memory_space<vmem>>, %arg11: memref<1x512xf32, #tpu.memory_space<vmem>>, %arg12: memref<512x2048xbf16, #tpu.memory_space<vmem>>, %arg13: memref<1x2048xf32, #tpu.memory_space<vmem>>, %arg14: memref<8x128xf32, #tpu.memory_space<vmem>>, %arg15: memref<8x2000xi32, #tpu.memory_space<vmem>>) attributes {dimension_semantics = [#tpu.dimension_semantics<parallel>], iteration_bounds = array<i64: 1>, scalar_prefetch = 0 : i64, scratch_operands = 0 : i64, tpu.core_type = #tpu.core_type<tc>, window_params = [{transform_indices = @transform_0, window_bounds = array<i64: 8, 128>}, {pipeline_mode = #tpu.pipeline_mode<synchronous>, transform_indices = @transform_1, window_bounds = array<i64: 1, 128>}, {pipeline_mode = #tpu.pipeline_mode<synchronous>, transform_indices = @transform_2, window_bounds = array<i64: 1, 128>}, {pipeline_mode = #tpu.pipeline_mode<synchronous>, transform_indices = @transform_3, window_bounds = array<i64: 128, 128>}, {pipeline_mode = #tpu.pipeline_mode<synchronous>, transform_indices = @transform_4, window_bounds = array<i64: 1, 128>}, {pipeline_mode = #tpu.pipeline_mode<synchronous>, transform_indices = @transform_5, window_bounds = array<i64: 128, 128>}, {pipeline_mode = #tpu.pipeline_mode<synchronous>, transform_indices = @transform_6, window_bounds = array<i64: 1, 128>}, {pipeline_mode = #tpu.pipeline_mode<synchronous>, transform_indices = @transform_7, window_bounds = array<i64: 1, 128>}, {pipeline_mode = #tpu.pipeline_mode<synchronous>, transform_indices = @transform_8, window_bounds = array<i64: 1, 128>}, {pipeline_mode = #tpu.pipeline_mode<synchronous>, transform_indices = @transform_9, window_bounds = array<i64: 128, 512>}, {pipeline_mode = #tpu.pipeline_mode<synchronous>, transform_indices = @transform_10, window_bounds = array<i64: 1, 512>}, {pipeline_mode = #tpu.pipeline_mode<synchronous>, transform_indices = @transform_11, window_bounds = array<i64: 512, 2048>}, {pipeline_mode = #tpu.pipeline_mode<synchronous>, transform_indices = @transform_12, window_bounds = array<i64: 1, 2048>}, {transform_indices = @transform_13, window_bounds = array<i64: 8, 128>}, {transform_indices = @transform_14, window_bounds = array<i64: 8, 2000>}]} {
    %c0 = arith.constant 0 : index
    %c0_0 = arith.constant 0 : index
    %0 = vector.load %arg1[%c0, %c0_0] : memref<8x128xf32, #tpu.memory_space<vmem>>, vector<8x128xf32>
    %c0_1 = arith.constant 0 : index
    %c0_2 = arith.constant 0 : index
    %1 = vector.load %arg2[%c0_1, %c0_2] : memref<1x128xf32, #tpu.memory_space<vmem>>, vector<1x128xf32>
    %c0_3 = arith.constant 0 : index
    %c0_4 = arith.constant 0 : index
    %2 = vector.load %arg3[%c0_3, %c0_4] : memref<1x128xf32, #tpu.memory_space<vmem>>, vector<1x128xf32>
    %cst = arith.constant dense<0.000000e+00> : vector<8xf32>
    %3 = vector.multi_reduction <add>, %0, %cst [1] : vector<8x128xf32> to vector<8xf32>
    %4 = vector.shape_cast %3 : vector<8xf32> to vector<8x1xf32>
    %cst_5 = arith.constant 1.280000e+02 : f32
    %5 = vector.broadcast %cst_5 : f32 to vector<8x1xf32>
    %6 = arith.divf %4, %5 : vector<8x1xf32>
    %7 = vector.broadcast %6 : vector<8x1xf32> to vector<8x128xf32>
    %8 = arith.subf %0, %7 : vector<8x128xf32>
    %9 = arith.mulf %8, %8 : vector<8x128xf32>
    %cst_6 = arith.constant dense<0.000000e+00> : vector<8xf32>
    %10 = vector.multi_reduction <add>, %9, %cst_6 [1] : vector<8x128xf32> to vector<8xf32>
    %11 = vector.shape_cast %10 : vector<8xf32> to vector<8x1xf32>
    %cst_7 = arith.constant 1.280000e+02 : f32
    %12 = vector.broadcast %cst_7 : f32 to vector<8x1xf32>
    %13 = arith.divf %11, %12 : vector<8x1xf32>
    %cst_8 = arith.constant 9.99999974E-6 : f32
    %14 = vector.broadcast %cst_8 : f32 to vector<8x1xf32>
    %15 = arith.addf %13, %14 : vector<8x1xf32>
    %16 = math.rsqrt %15 : vector<8x1xf32>
    %17 = vector.broadcast %16 : vector<8x1xf32> to vector<8x128xf32>
    %18 = arith.mulf %8, %17 : vector<8x128xf32>
    %19 = vector.broadcast %1 : vector<1x128xf32> to vector<8x128xf32>
    %20 = arith.mulf %18, %19 : vector<8x128xf32>
    %21 = vector.broadcast %2 : vector<1x128xf32> to vector<8x128xf32>
    %22 = arith.addf %20, %21 : vector<8x128xf32>
    %23 = arith.truncf %22 : vector<8x128xf32> to vector<8x128xbf16>
    %c0_9 = arith.constant 0 : index
    %c0_10 = arith.constant 0 : index
    %24 = vector.load %arg4[%c0_9, %c0_10] : memref<128x128xbf16, #tpu.memory_space<vmem>>, vector<128x128xbf16>
    %cst_11 = arith.constant dense<0.000000e+00> : vector<8x128xf32>
    %25 = tpu.matmul %23, %24, %cst_11 {dimension_numbers = #tpu.dot_dimension_numbers<[1], [0], [0], [1], [0, 0, 1, 1], [], []>} : vector<8x128xbf16>, vector<128x128xbf16>, vector<8x128xf32> -> vector<8x128xf32>
    %c0_12 = arith.constant 0 : index
    %c0_13 = arith.constant 0 : index
    %26 = vector.load %arg5[%c0_12, %c0_13] : memref<1x128xf32, #tpu.memory_space<vmem>>, vector<1x128xf32>
    %27 = vector.broadcast %26 : vector<1x128xf32> to vector<8x128xf32>
    %28 = arith.addf %25, %27 : vector<8x128xf32>
    %29 = arith.mulf %28, %28 : vector<8x128xf32>
    %30 = arith.mulf %28, %29 : vector<8x128xf32>
    %cst_14 = arith.constant 4.471500e-02 : f32
    %31 = vector.broadcast %cst_14 : f32 to vector<8x128xf32>
    %32 = arith.mulf %31, %30 : vector<8x128xf32>
    %33 = arith.addf %28, %32 : vector<8x128xf32>
    %cst_15 = arith.constant 0.797884583 : f32
    %34 = vector.broadcast %cst_15 : f32 to vector<8x128xf32>
    %35 = arith.mulf %34, %33 : vector<8x128xf32>
    %36 = math.tanh %35 : vector<8x128xf32>
    %cst_16 = arith.constant 1.000000e+00 : f32
    %37 = vector.broadcast %cst_16 : f32 to vector<8x128xf32>
    %38 = arith.addf %37, %36 : vector<8x128xf32>
    %cst_17 = arith.constant 5.000000e-01 : f32
    %39 = vector.broadcast %cst_17 : f32 to vector<8x128xf32>
    %40 = arith.mulf %39, %38 : vector<8x128xf32>
    %41 = arith.mulf %28, %40 : vector<8x128xf32>
    %42 = arith.truncf %41 : vector<8x128xf32> to vector<8x128xbf16>
    %c0_18 = arith.constant 0 : index
    %c0_19 = arith.constant 0 : index
    %43 = vector.load %arg6[%c0_18, %c0_19] : memref<128x128xbf16, #tpu.memory_space<vmem>>, vector<128x128xbf16>
    %cst_20 = arith.constant dense<0.000000e+00> : vector<8x128xf32>
    %44 = tpu.matmul %42, %43, %cst_20 {dimension_numbers = #tpu.dot_dimension_numbers<[1], [0], [0], [1], [0, 0, 1, 1], [], []>} : vector<8x128xbf16>, vector<128x128xbf16>, vector<8x128xf32> -> vector<8x128xf32>
    %c0_21 = arith.constant 0 : index
    %c0_22 = arith.constant 0 : index
    %45 = vector.load %arg7[%c0_21, %c0_22] : memref<1x128xf32, #tpu.memory_space<vmem>>, vector<1x128xf32>
    %46 = vector.broadcast %45 : vector<1x128xf32> to vector<8x128xf32>
    %47 = arith.addf %44, %46 : vector<8x128xf32>
    %c0_23 = arith.constant 0 : index
    %c0_24 = arith.constant 0 : index
    %48 = vector.load %arg14[%c0_23, %c0_24] : memref<8x128xf32, #tpu.memory_space<vmem>>, vector<8x128xf32>
    tpu.vector_store %arg14[%c0_23, %c0_24], %47 {strides = array<i32>} : memref<8x128xf32, #tpu.memory_space<vmem>>, vector<8x128xf32>,
    %c0_25 = arith.constant 0 : index
    %c0_26 = arith.constant 0 : index
    %49 = vector.load %arg8[%c0_25, %c0_26] : memref<1x128xf32, #tpu.memory_space<vmem>>, vector<1x128xf32>
    %c0_27 = arith.constant 0 : index
    %c0_28 = arith.constant 0 : index
    %50 = vector.load %arg9[%c0_27, %c0_28] : memref<1x128xf32, #tpu.memory_space<vmem>>, vector<1x128xf32>
    %cst_29 = arith.constant dense<0.000000e+00> : vector<8xf32>
    %51 = vector.multi_reduction <add>, %47, %cst_29 [1] : vector<8x128xf32> to vector<8xf32>
    %52 = vector.shape_cast %51 : vector<8xf32> to vector<8x1xf32>
    %cst_30 = arith.constant 1.280000e+02 : f32
    %53 = vector.broadcast %cst_30 : f32 to vector<8x1xf32>
    %54 = arith.divf %52, %53 : vector<8x1xf32>
    %55 = vector.broadcast %54 : vector<8x1xf32> to vector<8x128xf32>
    %56 = arith.subf %47, %55 : vector<8x128xf32>
    %57 = arith.mulf %56, %56 : vector<8x128xf32>
    %cst_31 = arith.constant dense<0.000000e+00> : vector<8xf32>
    %58 = vector.multi_reduction <add>, %57, %cst_31 [1] : vector<8x128xf32> to vector<8xf32>
    %59 = vector.shape_cast %58 : vector<8xf32> to vector<8x1xf32>
    %cst_32 = arith.constant 1.280000e+02 : f32
    %60 = vector.broadcast %cst_32 : f32 to vector<8x1xf32>
    %61 = arith.divf %59, %60 : vector<8x1xf32>
    %cst_33 = arith.constant 9.99999974E-6 : f32
    %62 = vector.broadcast %cst_33 : f32 to vector<8x1xf32>
    %63 = arith.addf %61, %62 : vector<8x1xf32>
    %64 = math.rsqrt %63 : vector<8x1xf32>
    %65 = vector.broadcast %64 : vector<8x1xf32> to vector<8x128xf32>
    %66 = arith.mulf %56, %65 : vector<8x128xf32>
    %67 = vector.broadcast %49 : vector<1x128xf32> to vector<8x128xf32>
    %68 = arith.mulf %66, %67 : vector<8x128xf32>
    %69 = vector.broadcast %50 : vector<1x128xf32> to vector<8x128xf32>
    %70 = arith.addf %68, %69 : vector<8x128xf32>
    %71 = arith.truncf %70 : vector<8x128xf32> to vector<8x128xbf16>
    %c0_34 = arith.constant 0 : index
    %c0_35 = arith.constant 0 : index
    %72 = vector.load %arg10[%c0_34, %c0_35] : memref<128x512xbf16, #tpu.memory_space<vmem>>, vector<128x512xbf16>
    %cst_36 = arith.constant dense<0.000000e+00> : vector<8x512xf32>
    %73 = tpu.matmul %71, %72, %cst_36 {dimension_numbers = #tpu.dot_dimension_numbers<[1], [0], [0], [1], [0, 0, 1, 1], [], []>} : vector<8x128xbf16>, vector<128x512xbf16>, vector<8x512xf32> -> vector<8x512xf32>
    %c0_37 = arith.constant 0 : index
    %c0_38 = arith.constant 0 : index
    %74 = vector.load %arg11[%c0_37, %c0_38] : memref<1x512xf32, #tpu.memory_space<vmem>>, vector<1x512xf32>
    %75 = vector.broadcast %74 : vector<1x512xf32> to vector<8x512xf32>
    %76 = arith.addf %73, %75 : vector<8x512xf32>
    %77 = arith.mulf %76, %76 : vector<8x512xf32>
    %78 = arith.mulf %76, %77 : vector<8x512xf32>
    %cst_39 = arith.constant 4.471500e-02 : f32
    %79 = vector.broadcast %cst_39 : f32 to vector<8x512xf32>
    %80 = arith.mulf %79, %78 : vector<8x512xf32>
    %81 = arith.addf %76, %80 : vector<8x512xf32>
    %cst_40 = arith.constant 0.797884583 : f32
    %82 = vector.broadcast %cst_40 : f32 to vector<8x512xf32>
    %83 = arith.mulf %82, %81 : vector<8x512xf32>
    %84 = math.tanh %83 : vector<8x512xf32>
    %cst_41 = arith.constant 1.000000e+00 : f32
    %85 = vector.broadcast %cst_41 : f32 to vector<8x512xf32>
    %86 = arith.addf %85, %84 : vector<8x512xf32>
    %cst_42 = arith.constant 5.000000e-01 : f32
    %87 = vector.broadcast %cst_42 : f32 to vector<8x512xf32>
    %88 = arith.mulf %87, %86 : vector<8x512xf32>
    %89 = arith.mulf %76, %88 : vector<8x512xf32>
    %90 = arith.truncf %89 : vector<8x512xf32> to vector<8x512xbf16>
    %c0_43 = arith.constant 0 : index
    %c0_44 = arith.constant 0 : index
    %91 = vector.load %arg12[%c0_43, %c0_44] : memref<512x2048xbf16, #tpu.memory_space<vmem>>, vector<512x2048xbf16>
    %cst_45 = arith.constant dense<0.000000e+00> : vector<8x2048xf32>
    %92 = tpu.matmul %90, %91, %cst_45 {dimension_numbers = #tpu.dot_dimension_numbers<[1], [0], [0], [1], [0, 0, 1, 1], [], []>} : vector<8x512xbf16>, vector<512x2048xbf16>, vector<8x2048xf32> -> vector<8x2048xf32>
    %c0_46 = arith.constant 0 : index
    %c0_47 = arith.constant 0 : index
    %93 = vector.load %arg13[%c0_46, %c0_47] : memref<1x2048xf32, #tpu.memory_space<vmem>>, vector<1x2048xf32>
    %94 = vector.broadcast %93 : vector<1x2048xf32> to vector<8x2048xf32>
    %95 = arith.addf %92, %94 : vector<8x2048xf32>
    %96 = vector.extract_strided_slice %95 {offsets = [0, 0], sizes = [8, 2000], strides = [1, 1]} : vector<8x2048xf32> to vector<8x2000xf32>
    %97 = arith.mulf %96, %96 : vector<8x2000xf32>
    %98 = arith.mulf %96, %97 : vector<8x2000xf32>
    %cst_48 = arith.constant 4.471500e-02 : f32
    %99 = vector.broadcast %cst_48 : f32 to vector<8x2000xf32>
    %100 = arith.mulf %99, %98 : vector<8x2000xf32>
    %101 = arith.addf %96, %100 : vector<8x2000xf32>
    %cst_49 = arith.constant 0.797884583 : f32
    %102 = vector.broadcast %cst_49 : f32 to vector<8x2000xf32>
    %103 = arith.mulf %102, %101 : vector<8x2000xf32>
    %104 = math.tanh %103 : vector<8x2000xf32>
    %cst_50 = arith.constant 1.000000e+00 : f32
    %105 = vector.broadcast %cst_50 : f32 to vector<8x2000xf32>
    %106 = arith.addf %105, %104 : vector<8x2000xf32>
    %cst_51 = arith.constant 5.000000e-01 : f32
    %107 = vector.broadcast %cst_51 : f32 to vector<8x2000xf32>
    %108 = arith.mulf %107, %106 : vector<8x2000xf32>
    %109 = arith.mulf %96, %108 : vector<8x2000xf32>
    %110 = arith.fptosi %109 : vector<8x2000xf32> to vector<8x2000xi32>
    %c0_52 = arith.constant 0 : index
    %c0_53 = arith.constant 0 : index
    %111 = vector.load %arg15[%c0_52, %c0_53] : memref<8x2000xi32, #tpu.memory_space<vmem>>, vector<8x2000xi32>
    tpu.vector_store %arg15[%c0_52, %c0_53], %110 {strides = array<i32>} : memref<8x2000xi32, #tpu.memory_space<vmem>>, vector<8x2000xi32>,
    return
  }
  func.func @transform_0(%arg0: i32) -> (i32, i32) {
    %c0_i32 = arith.constant 0 : i32
    %c0_i32_0 = arith.constant 0 : i32
    return %arg0, %c0_i32 : i32, i32
  }
  func.func @transform_1(%arg0: i32) -> (i32, i32) {
    %c0_i32 = arith.constant 0 : i32
    %c0_i32_0 = arith.constant 0 : i32
    %c0_i32_1 = arith.constant 0 : i32
    return %c0_i32, %c0_i32_0 : i32, i32
  }
  func.func @transform_2(%arg0: i32) -> (i32, i32) {
    %c0_i32 = arith.constant 0 : i32
    %c0_i32_0 = arith.constant 0 : i32
    %c0_i32_1 = arith.constant 0 : i32
    return %c0_i32, %c0_i32_0 : i32, i32
  }
  func.func @transform_3(%arg0: i32) -> (i32, i32) {
    %c0_i32 = arith.constant 0 : i32
    %c0_i32_0 = arith.constant 0 : i32
    %c0_i32_1 = arith.constant 0 : i32
    return %c0_i32, %c0_i32_0 : i32, i32
  }
  func.func @transform_4(%arg0: i32) -> (i32, i32) {
    %c0_i32 = arith.constant 0 : i32
    %c0_i32_0 = arith.constant 0 : i32
    %c0_i32_1 = arith.constant 0 : i32
    return %c0_i32, %c0_i32_0 : i32, i32
  }
  func.func @transform_5(%arg0: i32) -> (i32, i32) {
    %c0_i32 = arith.constant 0 : i32
    %c0_i32_0 = arith.constant 0 : i32
    %c0_i32_1 = arith.constant 0 : i32
    return %c0_i32, %c0_i32_0 : i32, i32
  }
  func.func @transform_6(%arg0: i32) -> (i32, i32) {
    %c0_i32 = arith.constant 0 : i32
    %c0_i32_0 = arith.constant 0 : i32
    %c0_i32_1 = arith.constant 0 : i32
    return %c0_i32, %c0_i32_0 : i32, i32
  }
  func.func @transform_7(%arg0: i32) -> (i32, i32) {
    %c0_i32 = arith.constant 0 : i32
    %c0_i32_0 = arith.constant 0 : i32
    %c0_i32_1 = arith.constant 0 : i32
    return %c0_i32, %c0_i32_0 : i32, i32
  }
  func.func @transform_8(%arg0: i32) -> (i32, i32) {
    %c0_i32 = arith.constant 0 : i32
    %c0_i32_0 = arith.constant 0 : i32
    %c0_i32_1 = arith.constant 0 : i32
    return %c0_i32, %c0_i32_0 : i32, i32
  }
  func.func @transform_9(%arg0: i32) -> (i32, i32) {
    %c0_i32 = arith.constant 0 : i32
    %c0_i32_0 = arith.constant 0 : i32
    %c0_i32_1 = arith.constant 0 : i32
    return %c0_i32, %c0_i32_0 : i32, i32
  }
  func.func @transform_10(%arg0: i32) -> (i32, i32) {
    %c0_i32 = arith.constant 0 : i32
    %c0_i32_0 = arith.constant 0 : i32
    %c0_i32_1 = arith.constant 0 : i32
    return %c0_i32, %c0_i32_0 : i32, i32
  }
  func.func @transform_11(%arg0: i32) -> (i32, i32) {
    %c0_i32 = arith.constant 0 : i32
    %c0_i32_0 = arith.constant 0 : i32
    %c0_i32_1 = arith.constant 0 : i32
    return %c0_i32, %c0_i32_0 : i32, i32
  }
  func.func @transform_12(%arg0: i32) -> (i32, i32) {
    %c0_i32 = arith.constant 0 : i32
    %c0_i32_0 = arith.constant 0 : i32
    %c0_i32_1 = arith.constant 0 : i32
    return %c0_i32, %c0_i32_0 : i32, i32
  }
  func.func @transform_13(%arg0: i32) -> (i32, i32) {
    %c0_i32 = arith.constant 0 : i32
    %c0_i32_0 = arith.constant 0 : i32
    return %arg0, %c0_i32 : i32, i32
  }
  func.func @transform_14(%arg0: i32) -> (i32, i32) {
    %c0_i32 = arith.constant 0 : i32
    %c0_i32_0 = arith.constant 0 : i32
    return %arg0, %c0_i32 : i32, i32
  }
}

module attributes {stable_mosaic.version = 11 : i64} {
  func.func @v2a_kernel(%arg0: i32, %arg1: memref<8x128xf32, #tpu.memory_space<vmem>>, %arg2: memref<1x128xf32, #tpu.memory_space<vmem>>, %arg3: memref<1x128xf32, #tpu.memory_space<vmem>>, %arg4: memref<128x128xbf16, #tpu.memory_space<vmem>>, %arg5: memref<1x128xf32, #tpu.memory_space<vmem>>, %arg6: memref<128x128xbf16, #tpu.memory_space<vmem>>, %arg7: memref<1x128xf32, #tpu.memory_space<vmem>>, %arg8: memref<1x128xf32, #tpu.memory_space<vmem>>, %arg9: memref<1x128xf32, #tpu.memory_space<vmem>>, %arg10: memref<128x512xbf16, #tpu.memory_space<vmem>>, %arg11: memref<1x512xf32, #tpu.memory_space<vmem>>, %arg12: memref<512x2048xbf16, #tpu.memory_space<vmem>>, %arg13: memref<1x2048xf32, #tpu.memory_space<vmem>>, %arg14: memref<8x128xf32, #tpu.memory_space<vmem>>, %arg15: memref<8x2000xi32, #tpu.memory_space<vmem>>) attributes {dimension_semantics = [#tpu.dimension_semantics<parallel>], iteration_bounds = array<i64: 1>, scalar_prefetch = 0 : i64, scratch_operands = 0 : i64, tpu.core_type = #tpu.core_type<tc>, window_params = [{transform_indices = @transform_0, window_bounds = array<i64: 8, 128>}, {pipeline_mode = #tpu.pipeline_mode<synchronous>, transform_indices = @transform_1, window_bounds = array<i64: 1, 128>}, {pipeline_mode = #tpu.pipeline_mode<synchronous>, transform_indices = @transform_2, window_bounds = array<i64: 1, 128>}, {pipeline_mode = #tpu.pipeline_mode<synchronous>, transform_indices = @transform_3, window_bounds = array<i64: 128, 128>}, {pipeline_mode = #tpu.pipeline_mode<synchronous>, transform_indices = @transform_4, window_bounds = array<i64: 1, 128>}, {pipeline_mode = #tpu.pipeline_mode<synchronous>, transform_indices = @transform_5, window_bounds = array<i64: 128, 128>}, {pipeline_mode = #tpu.pipeline_mode<synchronous>, transform_indices = @transform_6, window_bounds = array<i64: 1, 128>}, {pipeline_mode = #tpu.pipeline_mode<synchronous>, transform_indices = @transform_7, window_bounds = array<i64: 1, 128>}, {pipeline_mode = #tpu.pipeline_mode<synchronous>, transform_indices = @transform_8, window_bounds = array<i64: 1, 128>}, {pipeline_mode = #tpu.pipeline_mode<synchronous>, transform_indices = @transform_9, window_bounds = array<i64: 128, 512>}, {pipeline_mode = #tpu.pipeline_mode<synchronous>, transform_indices = @transform_10, window_bounds = array<i64: 1, 512>}, {pipeline_mode = #tpu.pipeline_mode<synchronous>, transform_indices = @transform_11, window_bounds = array<i64: 512, 2048>}, {pipeline_mode = #tpu.pipeline_mode<synchronous>, transform_indices = @transform_12, window_bounds = array<i64: 1, 2048>}, {transform_indices = @transform_13, window_bounds = array<i64: 8, 128>}, {transform_indices = @transform_14, window_bounds = array<i64: 8, 2000>}]} {
    %c0 = arith.constant 0 : index
    %c0_0 = arith.constant 0 : index
    %0 = vector.load %arg1[%c0, %c0_0] : memref<8x128xf32, #tpu.memory_space<vmem>>, vector<8x128xf32>
    %c0_1 = arith.constant 0 : index
    %c0_2 = arith.constant 0 : index
    %1 = vector.load %arg2[%c0_1, %c0_2] : memref<1x128xf32, #tpu.memory_space<vmem>>, vector<1x128xf32>
    %c0_3 = arith.constant 0 : index
    %c0_4 = arith.constant 0 : index
    %2 = vector.load %arg3[%c0_3, %c0_4] : memref<1x128xf32, #tpu.memory_space<vmem>>, vector<1x128xf32>
    %cst = arith.constant dense<0.000000e+00> : vector<8xf32>
    %3 = vector.multi_reduction <add>, %0, %cst [1] : vector<8x128xf32> to vector<8xf32>
    %4 = vector.shape_cast %3 : vector<8xf32> to vector<8x1xf32>
    %cst_5 = arith.constant 1.280000e+02 : f32
    %5 = vector.broadcast %cst_5 : f32 to vector<8x1xf32>
    %6 = arith.divf %4, %5 : vector<8x1xf32>
    %7 = vector.broadcast %6 : vector<8x1xf32> to vector<8x128xf32>
    %8 = arith.subf %0, %7 : vector<8x128xf32>
    %9 = arith.mulf %8, %8 : vector<8x128xf32>
    %cst_6 = arith.constant dense<0.000000e+00> : vector<8xf32>
    %10 = vector.multi_reduction <add>, %9, %cst_6 [1] : vector<8x128xf32> to vector<8xf32>
    %11 = vector.shape_cast %10 : vector<8xf32> to vector<8x1xf32>
    %cst_7 = arith.constant 1.280000e+02 : f32
    %12 = vector.broadcast %cst_7 : f32 to vector<8x1xf32>
    %13 = arith.divf %11, %12 : vector<8x1xf32>
    %cst_8 = arith.constant 9.99999974E-6 : f32
    %14 = vector.broadcast %cst_8 : f32 to vector<8x1xf32>
    %15 = arith.addf %13, %14 : vector<8x1xf32>
    %16 = math.rsqrt %15 : vector<8x1xf32>
    %17 = vector.broadcast %16 : vector<8x1xf32> to vector<8x128xf32>
    %18 = arith.mulf %8, %17 : vector<8x128xf32>
    %19 = vector.broadcast %1 : vector<1x128xf32> to vector<8x128xf32>
    %20 = arith.mulf %18, %19 : vector<8x128xf32>
    %21 = vector.broadcast %2 : vector<1x128xf32> to vector<8x128xf32>
    %22 = arith.addf %20, %21 : vector<8x128xf32>
    %23 = arith.truncf %22 : vector<8x128xf32> to vector<8x128xbf16>
    %c0_9 = arith.constant 0 : index
    %c0_10 = arith.constant 0 : index
    %24 = vector.load %arg4[%c0_9, %c0_10] : memref<128x128xbf16, #tpu.memory_space<vmem>>, vector<128x128xbf16>
    %cst_11 = arith.constant dense<0.000000e+00> : vector<8x128xf32>
    %25 = tpu.matmul %23, %24, %cst_11 {dimension_numbers = #tpu.dot_dimension_numbers<[1], [0], [0], [1], [0, 0, 1, 1], [], []>} : vector<8x128xbf16>, vector<128x128xbf16>, vector<8x128xf32> -> vector<8x128xf32>
    %c0_12 = arith.constant 0 : index
    %c0_13 = arith.constant 0 : index
    %26 = vector.load %arg5[%c0_12, %c0_13] : memref<1x128xf32, #tpu.memory_space<vmem>>, vector<1x128xf32>
    %27 = vector.broadcast %26 : vector<1x128xf32> to vector<8x128xf32>
    %28 = arith.addf %25, %27 : vector<8x128xf32>
    %29 = arith.mulf %28, %28 : vector<8x128xf32>
    %30 = arith.mulf %28, %29 : vector<8x128xf32>
    %cst_14 = arith.constant 4.471500e-02 : f32
    %31 = vector.broadcast %cst_14 : f32 to vector<8x128xf32>
    %32 = arith.mulf %31, %30 : vector<8x128xf32>
    %33 = arith.addf %28, %32 : vector<8x128xf32>
    %cst_15 = arith.constant 0.797884583 : f32
    %34 = vector.broadcast %cst_15 : f32 to vector<8x128xf32>
    %35 = arith.mulf %34, %33 : vector<8x128xf32>
    %36 = math.tanh %35 : vector<8x128xf32>
    %cst_16 = arith.constant 1.000000e+00 : f32
    %37 = vector.broadcast %cst_16 : f32 to vector<8x128xf32>
    %38 = arith.addf %37, %36 : vector<8x128xf32>
    %cst_17 = arith.constant 5.000000e-01 : f32
    %39 = vector.broadcast %cst_17 : f32 to vector<8x128xf32>
    %40 = arith.mulf %39, %38 : vector<8x128xf32>
    %41 = arith.mulf %28, %40 : vector<8x128xf32>
    %42 = arith.truncf %41 : vector<8x128xf32> to vector<8x128xbf16>
    %c0_18 = arith.constant 0 : index
    %c0_19 = arith.constant 0 : index
    %43 = vector.load %arg6[%c0_18, %c0_19] : memref<128x128xbf16, #tpu.memory_space<vmem>>, vector<128x128xbf16>
    %cst_20 = arith.constant dense<0.000000e+00> : vector<8x128xf32>
    %44 = tpu.matmul %42, %43, %cst_20 {dimension_numbers = #tpu.dot_dimension_numbers<[1], [0], [0], [1], [0, 0, 1, 1], [], []>} : vector<8x128xbf16>, vector<128x128xbf16>, vector<8x128xf32> -> vector<8x128xf32>
    %c0_21 = arith.constant 0 : index
    %c0_22 = arith.constant 0 : index
    %45 = vector.load %arg7[%c0_21, %c0_22] : memref<1x128xf32, #tpu.memory_space<vmem>>, vector<1x128xf32>
    %46 = vector.broadcast %45 : vector<1x128xf32> to vector<8x128xf32>
    %47 = arith.addf %44, %46 : vector<8x128xf32>
    %c0_23 = arith.constant 0 : index
    %c0_24 = arith.constant 0 : index
    %48 = vector.load %arg14[%c0_23, %c0_24] : memref<8x128xf32, #tpu.memory_space<vmem>>, vector<8x128xf32>
    tpu.vector_store %arg14[%c0_23, %c0_24], %47 {strides = array<i32>} : memref<8x128xf32, #tpu.memory_space<vmem>>, vector<8x128xf32>,
    %c0_25 = arith.constant 0 : index
    %c0_26 = arith.constant 0 : index
    %49 = vector.load %arg8[%c0_25, %c0_26] : memref<1x128xf32, #tpu.memory_space<vmem>>, vector<1x128xf32>
    %c0_27 = arith.constant 0 : index
    %c0_28 = arith.constant 0 : index
    %50 = vector.load %arg9[%c0_27, %c0_28] : memref<1x128xf32, #tpu.memory_space<vmem>>, vector<1x128xf32>
    %cst_29 = arith.constant dense<0.000000e+00> : vector<8xf32>
    %51 = vector.multi_reduction <add>, %47, %cst_29 [1] : vector<8x128xf32> to vector<8xf32>
    %52 = vector.shape_cast %51 : vector<8xf32> to vector<8x1xf32>
    %cst_30 = arith.constant 1.280000e+02 : f32
    %53 = vector.broadcast %cst_30 : f32 to vector<8x1xf32>
    %54 = arith.divf %52, %53 : vector<8x1xf32>
    %55 = vector.broadcast %54 : vector<8x1xf32> to vector<8x128xf32>
    %56 = arith.subf %47, %55 : vector<8x128xf32>
    %57 = arith.mulf %56, %56 : vector<8x128xf32>
    %cst_31 = arith.constant dense<0.000000e+00> : vector<8xf32>
    %58 = vector.multi_reduction <add>, %57, %cst_31 [1] : vector<8x128xf32> to vector<8xf32>
    %59 = vector.shape_cast %58 : vector<8xf32> to vector<8x1xf32>
    %cst_32 = arith.constant 1.280000e+02 : f32
    %60 = vector.broadcast %cst_32 : f32 to vector<8x1xf32>
    %61 = arith.divf %59, %60 : vector<8x1xf32>
    %cst_33 = arith.constant 9.99999974E-6 : f32
    %62 = vector.broadcast %cst_33 : f32 to vector<8x1xf32>
    %63 = arith.addf %61, %62 : vector<8x1xf32>
    %64 = math.rsqrt %63 : vector<8x1xf32>
    %65 = vector.broadcast %64 : vector<8x1xf32> to vector<8x128xf32>
    %66 = arith.mulf %56, %65 : vector<8x128xf32>
    %67 = vector.broadcast %49 : vector<1x128xf32> to vector<8x128xf32>
    %68 = arith.mulf %66, %67 : vector<8x128xf32>
    %69 = vector.broadcast %50 : vector<1x128xf32> to vector<8x128xf32>
    %70 = arith.addf %68, %69 : vector<8x128xf32>
    %71 = arith.truncf %70 : vector<8x128xf32> to vector<8x128xbf16>
    %c0_34 = arith.constant 0 : index
    %c0_35 = arith.constant 0 : index
    %72 = vector.load %arg10[%c0_34, %c0_35] : memref<128x512xbf16, #tpu.memory_space<vmem>>, vector<128x512xbf16>
    %cst_36 = arith.constant dense<0.000000e+00> : vector<8x512xf32>
    %73 = tpu.matmul %71, %72, %cst_36 {dimension_numbers = #tpu.dot_dimension_numbers<[1], [0], [0], [1], [0, 0, 1, 1], [], []>} : vector<8x128xbf16>, vector<128x512xbf16>, vector<8x512xf32> -> vector<8x512xf32>
    %c0_37 = arith.constant 0 : index
    %c0_38 = arith.constant 0 : index
    %74 = vector.load %arg11[%c0_37, %c0_38] : memref<1x512xf32, #tpu.memory_space<vmem>>, vector<1x512xf32>
    %75 = vector.broadcast %74 : vector<1x512xf32> to vector<8x512xf32>
    %76 = arith.addf %73, %75 : vector<8x512xf32>
    %77 = arith.mulf %76, %76 : vector<8x512xf32>
    %78 = arith.mulf %76, %77 : vector<8x512xf32>
    %cst_39 = arith.constant 4.471500e-02 : f32
    %79 = vector.broadcast %cst_39 : f32 to vector<8x512xf32>
    %80 = arith.mulf %79, %78 : vector<8x512xf32>
    %81 = arith.addf %76, %80 : vector<8x512xf32>
    %cst_40 = arith.constant 0.797884583 : f32
    %82 = vector.broadcast %cst_40 : f32 to vector<8x512xf32>
    %83 = arith.mulf %82, %81 : vector<8x512xf32>
    %84 = math.tanh %83 : vector<8x512xf32>
    %cst_41 = arith.constant 1.000000e+00 : f32
    %85 = vector.broadcast %cst_41 : f32 to vector<8x512xf32>
    %86 = arith.addf %85, %84 : vector<8x512xf32>
    %cst_42 = arith.constant 5.000000e-01 : f32
    %87 = vector.broadcast %cst_42 : f32 to vector<8x512xf32>
    %88 = arith.mulf %87, %86 : vector<8x512xf32>
    %89 = arith.mulf %76, %88 : vector<8x512xf32>
    %90 = arith.truncf %89 : vector<8x512xf32> to vector<8x512xbf16>
    %c0_43 = arith.constant 0 : index
    %c0_44 = arith.constant 0 : index
    %91 = vector.load %arg12[%c0_43, %c0_44] : memref<512x2048xbf16, #tpu.memory_space<vmem>>, vector<512x2048xbf16>
    %cst_45 = arith.constant dense<0.000000e+00> : vector<8x2048xf32>
    %92 = tpu.matmul %90, %91, %cst_45 {dimension_numbers = #tpu.dot_dimension_numbers<[1], [0], [0], [1], [0, 0, 1, 1], [], []>} : vector<8x512xbf16>, vector<512x2048xbf16>, vector<8x2048xf32> -> vector<8x2048xf32>
    %c0_46 = arith.constant 0 : index
    %c0_47 = arith.constant 0 : index
    %93 = vector.load %arg13[%c0_46, %c0_47] : memref<1x2048xf32, #tpu.memory_space<vmem>>, vector<1x2048xf32>
    %94 = vector.broadcast %93 : vector<1x2048xf32> to vector<8x2048xf32>
    %95 = arith.addf %92, %94 : vector<8x2048xf32>
    %96 = vector.extract_strided_slice %95 {offsets = [0, 0], sizes = [8, 2000], strides = [1, 1]} : vector<8x2048xf32> to vector<8x2000xf32>
    %97 = arith.mulf %96, %96 : vector<8x2000xf32>
    %98 = arith.mulf %96, %97 : vector<8x2000xf32>
    %cst_48 = arith.constant 4.471500e-02 : f32
    %99 = vector.broadcast %cst_48 : f32 to vector<8x2000xf32>
    %100 = arith.mulf %99, %98 : vector<8x2000xf32>
    %101 = arith.addf %96, %100 : vector<8x2000xf32>
    %cst_49 = arith.constant 0.797884583 : f32
    %102 = vector.broadcast %cst_49 : f32 to vector<8x2000xf32>
    %103 = arith.mulf %102, %101 : vector<8x2000xf32>
    %104 = math.tanh %103 : vector<8x2000xf32>
    %cst_50 = arith.constant 1.000000e+00 : f32
    %105 = vector.broadcast %cst_50 : f32 to vector<8x2000xf32>
    %106 = arith.addf %105, %104 : vector<8x2000xf32>
    %cst_51 = arith.constant 5.000000e-01 : f32
    %107 = vector.broadcast %cst_51 : f32 to vector<8x2000xf32>
    %108 = arith.mulf %107, %106 : vector<8x2000xf32>
    %109 = arith.mulf %96, %108 : vector<8x2000xf32>
    %110 = arith.fptosi %109 : vector<8x2000xf32> to vector<8x2000xi32>
    %c0_52 = arith.constant 0 : index
    %c0_53 = arith.constant 0 : index
    %111 = vector.load %arg15[%c0_52, %c0_53] : memref<8x2000xi32, #tpu.memory_space<vmem>>, vector<8x2000xi32>
    tpu.vector_store %arg15[%c0_52, %c0_53], %110 {strides = array<i32>} : memref<8x2000xi32, #tpu.memory_space<vmem>>, vector<8x2000xi32>,
    return
  }
  func.func @transform_0(%arg0: i32) -> (i32, i32) {
    %c0_i32 = arith.constant 0 : i32
    %c0_i32_0 = arith.constant 0 : i32
    return %arg0, %c0_i32 : i32, i32
  }
  func.func @transform_1(%arg0: i32) -> (i32, i32) {
    %c0_i32 = arith.constant 0 : i32
    %c0_i32_0 = arith.constant 0 : i32
    %c0_i32_1 = arith.constant 0 : i32
    return %c0_i32, %c0_i32_0 : i32, i32
  }
  func.func @transform_2(%arg0: i32) -> (i32, i32) {
    %c0_i32 = arith.constant 0 : i32
    %c0_i32_0 = arith.constant 0 : i32
    %c0_i32_1 = arith.constant 0 : i32
    return %c0_i32, %c0_i32_0 : i32, i32
  }
  func.func @transform_3(%arg0: i32) -> (i32, i32) {
    %c0_i32 = arith.constant 0 : i32
    %c0_i32_0 = arith.constant 0 : i32
    %c0_i32_1 = arith.constant 0 : i32
    return %c0_i32, %c0_i32_0 : i32, i32
  }
  func.func @transform_4(%arg0: i32) -> (i32, i32) {
    %c0_i32 = arith.constant 0 : i32
    %c0_i32_0 = arith.constant 0 : i32
    %c0_i32_1 = arith.constant 0 : i32
    return %c0_i32, %c0_i32_0 : i32, i32
  }
  func.func @transform_5(%arg0: i32) -> (i32, i32) {
    %c0_i32 = arith.constant 0 : i32
    %c0_i32_0 = arith.constant 0 : i32
    %c0_i32_1 = arith.constant 0 : i32
    return %c0_i32, %c0_i32_0 : i32, i32
  }
  func.func @transform_6(%arg0: i32) -> (i32, i32) {
    %c0_i32 = arith.constant 0 : i32
    %c0_i32_0 = arith.constant 0 : i32
    %c0_i32_1 = arith.constant 0 : i32
    return %c0_i32, %c0_i32_0 : i32, i32
  }
  func.func @transform_7(%arg0: i32) -> (i32, i32) {
    %c0_i32 = arith.constant 0 : i32
    %c0_i32_0 = arith.constant 0 : i32
    %c0_i32_1 = arith.constant 0 : i32
    return %c0_i32, %c0_i32_0 : i32, i32
  }
  func.func @transform_8(%arg0: i32) -> (i32, i32) {
    %c0_i32 = arith.constant 0 : i32
    %c0_i32_0 = arith.constant 0 : i32
    %c0_i32_1 = arith.constant 0 : i32
    return %c0_i32, %c0_i32_0 : i32, i32
  }
  func.func @transform_9(%arg0: i32) -> (i32, i32) {
    %c0_i32 = arith.constant 0 : i32
    %c0_i32_0 = arith.constant 0 : i32
    %c0_i32_1 = arith.constant 0 : i32
    return %c0_i32, %c0_i32_0 : i32, i32
  }
  func.func @transform_10(%arg0: i32) -> (i32, i32) {
    %c0_i32 = arith.constant 0 : i32
    %c0_i32_0 = arith.constant 0 : i32
    %c0_i32_1 = arith.constant 0 : i32
    return %c0_i32, %c0_i32_0 : i32, i32
  }
  func.func @transform_11(%arg0: i32) -> (i32, i32) {
    %c0_i32 = arith.constant 0 : i32
    %c0_i32_0 = arith.constant 0 : i32
    %c0_i32_1 = arith.constant 0 : i32
    return %c0_i32, %c0_i32_0 : i32, i32
  }
  func.func @transform_12(%arg0: i32) -> (i32, i32) {
    %c0_i32 = arith.constant 0 : i32
    %c0_i32_0 = arith.constant 0 : i32
    %c0_i32_1 = arith.constant 0 : i32
    return %c0_i32, %c0_i32_0 : i32, i32
  }
  func.func @transform_13(%arg0: i32) -> (i32, i32) {
    %c0_i32 = arith.constant 0 : i32
    %c0_i32_0 = arith.constant 0 : i32
    return %arg0, %c0_i32 : i32, i32
  }
  func.func @transform_14(%arg0: i32) -> (i32, i32) {
    %c0_i32 = arith.constant 0 : i32
    %c0_i32_0 = arith.constant 0 : i32
    return %arg0, %c0_i32 : i32, i32
  }
}

</mosaic_0001>

<bundles_post_ra>
// kernel: tpu_custom_call.1
= control target key start
LH: loop header
LB: loop body
LE: loop exit
PB: predicated region body
PF: predicated region fallthrough
CT: control target
= control target key end

     0   :  { %20 = vsyncpa [#allocation3], 0  ;;  %s6551_s0 = inlined_call_operand.hbm [shape: f32[8,128], index: 0, kind: input, shape index: {}]   ;;  %s6552_s1 = inlined_call_operand.hbm [shape: f32[1,128], index: 1, kind: input, shape index: {}]   ;;  %s6553_s2 = inlined_call_operand.hbm [shape: f32[1,128], index: 2, kind: input, shape index: {}]   ;;  %s6554_s3 = inlined_call_operand.hbm [shape: bf16[128,128], index: 3, kind: input, shape index: {}]   ;;  %s6555_s4 = inlined_call_operand.hbm [shape: f32[1,128], index: 4, kind: input, shape index: {}]   ;;  %s6556_s5 = inlined_call_operand.hbm [shape: bf16[128,128], index: 5, kind: input, shape index: {}]   ;;  %s6557_s6 = inlined_call_operand.hbm [shape: f32[1,128], index: 6, kind: input, shape index: {}]   ;;  %s6558_s7 = inlined_call_operand.hbm [shape: f32[1,128], index: 7, kind: input, shape index: {}]   ;;  %s6559_s8 = inlined_call_operand.hbm [shape: f32[1,128], index: 8, kind: input, shape index: {}]   ;;  %s6560_s9 = inlined_call_operand.hbm [shape: bf16[128,512], index: 9, kind: input, shape index: {}]   ;;  %s6561_s10 = inlined_call_operand.hbm [shape: f32[1,512], index: 10, kind: input, shape index: {}]   ;;  %s6562_s11 = inlined_call_operand.hbm [shape: bf16[512,2048], index: 11, kind: input, shape index: {}]   ;;  %s6563_s12 = inlined_call_operand.hbm [shape: f32[1,2048], index: 12, kind: input, shape index: {}]   ;;  %s6564_s13 = inlined_call_operand.hbm [shape: f32[8,128], index: 13, kind: output, shape index: {0}]   ;;  %s6565_s14 = inlined_call_operand.hbm [shape: s32[8,2000], index: 14, kind: output, shape index: {1}]  }
   0x1   :  { %21 = vsyncpa [#allocation6], 0 }
   0x2   :  { %22 = vsyncpa [#allocation9], 0 }
   0x3   :  { %23 = vsyncpa [#allocation12], 0 }
   0x4   :  { %24 = vsyncpa [#allocation15], 0 }
   0x5   :  { %25 = vsyncpa [#allocation18], 0 }
   0x6   :  { %26 = vsyncpa [#allocation21], 0 }
   0x7   :  { %27 = vsyncpa [#allocation4], 0 }
   0x8   :  { %28 = vsyncpa [#allocation25], 0  ;;  %s6043_s29 = smov [#allocation5]   ;;  %s6044_s15 = smov [#allocation8]  }
   0x9   :  { %s45_s30 = sshll.u32 %s6043_s29, 4  ;;  %s64_s16 = sshll.u32 %s6044_s15, 4  ;;  %s46_s30 = int_to_ptr.vmem [resolvable:$true] %s45_s30  ;;  %s6141_s16 = int_to_ptr.vmem [resolvable:$true] %s64_s16 }
   0xa   :  { %s5695_s19 = scalar_lea.hbm %s6552_s1, 16 }
   0xb   :  { %p5696_p0 = scmp.ne.s32.totalorder %s6552_s1, %s5695_s19  ;;  %p5699_p1 = scmp.lt.u32.totalorder %s5695_s19, %s6552_s1 }
   0xd   :  { %p5701_p2 = pnand %p5699_p1, %p5696_p0 }
   0xf   :  { %5704 = shalt.err (!%p5701_p2)
}
  0x10   :  { %s5705_s24 = scalar_lea.vmem %s46_s30, 16  ;;  %s5709_s25 = scalar_lea.vmem %s46_s30, 32 }
  0x11   :  { %p5706_p3 = scmp.ne.s32.totalorder %s46_s30, %s5705_s24  ;;  %p5710_p4 = scmp.lt.s32.totalorder %s46_s30, %s46_s30 }
  0x12   :  { %p5711_p5 = scmp.lt.s32.totalorder %s5709_s25, %s5705_s24 }
  0x14   :  { %p5712_p6 = por %p5711_p5, %p5710_p4 }
  0x16   :  { %p5713_p7 = pnand %p5712_p6, %p5706_p3 }
  0x18   :  { %5716 = shalt.err (!%p5713_p7)
}
  0x19   :  { %48 = dma.hbm_to_vmem [thread:$0]  %s6552_s1, 16, %s46_s30, [#allocation6]  }
  0x1a   :  { %s5717_s15 = scalar_lea.hbm %s6554_s3, 1024 }
  0x1b   :  { %p5718_p8 = scmp.ne.s32.totalorder %s6554_s3, %s5717_s15  ;;  %p5721_p9 = scmp.lt.u32.totalorder %s5717_s15, %s6554_s3 }
  0x1d   :  { %p5723_p10 = pnand %p5721_p9, %p5718_p8 }
  0x1f   :  { %5726 = shalt.err (!%p5723_p10)
}
  0x20   :  { %s5727_s21 = scalar_lea.vmem %s6141_s16, 1024  ;;  %p5732_p12 = scmp.lt.s32.totalorder %s6141_s16, %s6141_s16 }
  0x21   :  { %p5728_p11 = scmp.ne.s32.totalorder %s6141_s16, %s5727_s21  ;;  %p5733_p13 = scmp.lt.s32.totalorder %s5727_s21, %s5727_s21 }
  0x23   :  { %p5734_p0 = por %p5733_p13, %p5732_p12 }
  0x25   :  { %p5735_p1 = pnand %p5734_p0, %p5728_p11 }
  0x27   :  { %5738 = shalt.err (!%p5735_p1)
}
  0x28   :  { %s6045_s1 = smov 64   ;;  %s6046_s30 = smov 4  }
  0x29   :  { %70 = dma.hbm_to_vmem [thread:$0]  %s6554_s3, 1024, %s6141_s16, [#allocation9], %s6045_s1, %s6045_s1, %s6046_s30  }
  0x2a   :  { %s6047_s24 = smov [#allocation11]   ;;  %s6048_s26 = smov [#allocation14]  }
  0x2b   :  { %s86_s25 = sshll.u32 %s6047_s24, 4  ;;  %s109_s27 = sshll.u32 %s6048_s26, 4  ;;  %s87_s25 = int_to_ptr.vmem [resolvable:$true] %s86_s25  ;;  %s110_s27 = int_to_ptr.vmem [resolvable:$true] %s109_s27 }
  0x2c   :  { %s5739_s15 = scalar_lea.hbm %s6556_s5, 1024 }
  0x2d   :  { %p5740_p2 = scmp.ne.s32.totalorder %s6556_s5, %s5739_s15  ;;  %p5743_p3 = scmp.lt.u32.totalorder %s5739_s15, %s6556_s5 }
  0x2f   :  { %p5745_p4 = pnand %p5743_p3, %p5740_p2 }
  0x31   :  { %5748 = shalt.err (!%p5745_p4)
}
  0x32   :  { %s5749_s3 = scalar_lea.vmem %s87_s25, 1024  ;;  %p5754_p6 = scmp.lt.s32.totalorder %s87_s25, %s87_s25 }
  0x33   :  { %p5750_p5 = scmp.ne.s32.totalorder %s87_s25, %s5749_s3  ;;  %p5755_p7 = scmp.lt.s32.totalorder %s5749_s3, %s5749_s3 }
  0x35   :  { %p5756_p8 = por %p5755_p7, %p5754_p6 }
  0x37   :  { %p5757_p9 = pnand %p5756_p8, %p5750_p5 }
  0x39   :  { %5760 = shalt.err (!%p5757_p9)
}
  0x3a   :  { %92 = dma.hbm_to_vmem [thread:$0]  %s6556_s5, 1024, %s87_s25, [#allocation12], %s6045_s1, %s6045_s1, %s6046_s30  }
  0x3b   :  { %s5761_s24 = scalar_lea.hbm %s6558_s7, 16 }
  0x3c   :  { %p5762_p10 = scmp.ne.s32.totalorder %s6558_s7, %s5761_s24  ;;  %p5765_p11 = scmp.lt.u32.totalorder %s5761_s24, %s6558_s7 }
  0x3e   :  { %p5767_p12 = pnand %p5765_p11, %p5762_p10 }
  0x40   :  { %5770 = shalt.err (!%p5767_p12)
}
  0x41   :  { %s5771_s17 = scalar_lea.vmem %s110_s27, 16  ;;  %s5775_s18 = scalar_lea.vmem %s110_s27, 32 }
  0x42   :  { %p5772_p13 = scmp.ne.s32.totalorder %s110_s27, %s5771_s17  ;;  %p5776_p0 = scmp.lt.s32.totalorder %s110_s27, %s110_s27 }
  0x43   :  { %p5777_p1 = scmp.lt.s32.totalorder %s5775_s18, %s5771_s17 }
  0x45   :  { %p5778_p2 = por %p5777_p1, %p5776_p0 }
  0x47   :  { %p5779_p3 = pnand %p5778_p2, %p5772_p13 }
  0x49   :  { %5782 = shalt.err (!%p5779_p3)
}
  0x4a   :  { %112 = dma.hbm_to_vmem [thread:$0]  %s6558_s7, 16, %s110_s27, [#allocation15]  }
  0x4b   :  { %s6049_s25 = smov [#allocation17]   ;;  %s5783_s16 = scalar_lea.hbm %s6560_s9, 4096 }
  0x4c   :  { %s128_s19 = sshll.u32 %s6049_s25, 4  ;;  %p5784_p4 = scmp.ne.s32.totalorder %s6560_s9, %s5783_s16  ;;  %s129_s19 = int_to_ptr.vmem [resolvable:$true] %s128_s19 }
  0x4d   :  { %p5787_p5 = scmp.lt.u32.totalorder %s5783_s16, %s6560_s9 }
  0x4f   :  { %p5789_p6 = pnand %p5787_p5, %p5784_p4 }
  0x51   :  { %5792 = shalt.err (!%p5789_p6)
}
  0x52   :  { %s5793_s26 = scalar_lea.vmem %s129_s19, 4096  ;;  %p5798_p8 = scmp.lt.s32.totalorder %s129_s19, %s129_s19 }
  0x53   :  { %p5794_p7 = scmp.ne.s32.totalorder %s129_s19, %s5793_s26  ;;  %p5799_p9 = scmp.lt.s32.totalorder %s5793_s26, %s5793_s26 }
  0x55   :  { %p5800_p10 = por %p5799_p9, %p5798_p8 }
  0x57   :  { %p5801_p11 = pnand %p5800_p10, %p5794_p7 }
  0x59   :  { %5804 = shalt.err (!%p5801_p11)
}
  0x5a   :  { %s6050_s7 = smov 256   ;;  %s6051_s27 = smov 16  }
  0x5b   :  { %134 = dma.hbm_to_vmem [thread:$0]  %s6560_s9, 4096, %s129_s19, [#allocation18], %s6050_s7, %s6050_s7, %s6051_s27  }
  0x5c   :  { %s6052_s15 = smov [#allocation20]   ;;  %s5805_s30 = scalar_lea.hbm %s6562_s11, 65536 }
  0x5d   :  { %s150_s17 = sshll.u32 %s6052_s15, 4  ;;  %p5806_p12 = scmp.ne.s32.totalorder %s6562_s11, %s5805_s30  ;;  %s151_s17 = int_to_ptr.vmem [resolvable:$true] %s150_s17 }
  0x5e   :  { %p5809_p13 = scmp.lt.u32.totalorder %s5805_s30, %s6562_s11 }
  0x60   :  { %p5811_p0 = pnand %p5809_p13, %p5806_p12 }
  0x62   :  { %5814 = shalt.err (!%p5811_p0)
}
  0x63   :  { %s5815_s21 = scalar_lea.vmem %s151_s17, 65536  ;;  %p5820_p2 = scmp.lt.s32.totalorder %s151_s17, %s151_s17 }
  0x64   :  { %p5816_p1 = scmp.ne.s32.totalorder %s151_s17, %s5815_s21  ;;  %p5821_p3 = scmp.lt.s32.totalorder %s5815_s21, %s5815_s21 }
  0x66   :  { %p5822_p4 = por %p5821_p3, %p5820_p2 }
  0x68   :  { %p5823_p5 = pnand %p5822_p4, %p5816_p1 }
  0x6a   :  { %5826 = shalt.err (!%p5823_p5)
}
  0x6b   :  { %s6053_s9 = smov 1024   ;;  %s6054_s23 = smov [#allocation2]  }
  0x6c   :  { %156 = dma.hbm_to_vmem [thread:$0]  %s6562_s11, 65536, %s151_s17, [#allocation21], %s6053_s9, %s6053_s9, %s6045_s1  }
  0x6d   :  { %s35_s24 = sshll.u32 %s6054_s23, 4  ;;  %s6055_s26 = smov [#allocation7]   ;;  %s36_s24 = int_to_ptr.vmem [resolvable:$true] %s35_s24 }
  0x6e   :  { %s55_s7 = sshll.u32 %s6055_s26, 4  ;;  %s5827_s29 = scalar_lea.hbm %s6551_s0, 128  ;;  %s56_s7 = int_to_ptr.vmem [resolvable:$true] %s55_s7 }
  0x6f   :  { %p5828_p6 = scmp.ne.s32.totalorder %s6551_s0, %s5827_s29  ;;  %p5831_p7 = scmp.lt.u32.totalorder %s5827_s29, %s6551_s0 }
  0x71   :  { %p5833_p8 = pnand %p5831_p7, %p5828_p6 }
  0x73   :  { %5836 = shalt.err (!%p5833_p8)
}
  0x74   :  { %s5837_s11 = scalar_lea.vmem %s36_s24, 128  ;;  %p5842_p10 = scmp.lt.s32.totalorder %s36_s24, %s36_s24 }
  0x75   :  { %p5838_p9 = scmp.ne.s32.totalorder %s36_s24, %s5837_s11  ;;  %p5843_p11 = scmp.lt.s32.totalorder %s5837_s11, %s5837_s11 }
  0x77   :  { %p5844_p12 = por %p5843_p11, %p5842_p10 }
  0x79   :  { %p5845_p13 = pnand %p5844_p12, %p5838_p9 }
  0x7b   :  { %5848 = shalt.err (!%p5845_p13)
}
  0x7c   :  { %38 = dma.hbm_to_vmem [thread:$0]  %s6551_s0, 128, %s36_s24, [#allocation3]  }
  0x7d   :  { %s5849_s3 = scalar_lea.hbm %s6553_s2, 16 }
  0x7e   :  { %p5850_p0 = scmp.ne.s32.totalorder %s6553_s2, %s5849_s3  ;;  %p5853_p1 = scmp.lt.u32.totalorder %s5849_s3, %s6553_s2 }
  0x80   :  { %p5855_p2 = pnand %p5853_p1, %p5850_p0 }
  0x82   :  { %5858 = shalt.err (!%p5855_p2)
}
  0x83   :  { %s5859_s22 = scalar_lea.vmem %s56_s7, 16  ;;  %s5863_s23 = scalar_lea.vmem %s56_s7, 32 }
  0x84   :  { %p5860_p3 = scmp.ne.s32.totalorder %s56_s7, %s5859_s22  ;;  %p5864_p4 = scmp.lt.s32.totalorder %s56_s7, %s56_s7 }
  0x85   :  { %p5865_p5 = scmp.lt.s32.totalorder %s5863_s23, %s5859_s22 }
  0x87   :  { %p5866_p6 = por %p5865_p5, %p5864_p4 }
  0x89   :  { %p5867_p7 = pnand %p5866_p6, %p5860_p3 }
  0x8b   :  { %5870 = shalt.err (!%p5867_p7)
}
  0x8c   :  { %58 = dma.hbm_to_vmem [thread:$0]  %s6553_s2, 16, %s56_s7, [#allocation6]  }
  0x8d   :  { %s6056_s26 = smov [#allocation10]   ;;  %s6057_s28 = smov [#allocation13]  }
  0x8e   :  { %s77_s27 = sshll.u32 %s6056_s26, 4  ;;  %s99_s29 = sshll.u32 %s6057_s28, 4  ;;  %s78_s27 = int_to_ptr.vmem [resolvable:$true] %s77_s27  ;;  %s100_s29 = int_to_ptr.vmem [resolvable:$true] %s99_s29 }
  0x8f   :  { %s5871_s5 = scalar_lea.hbm %s6555_s4, 16 }
  0x90   :  { %p5872_p8 = scmp.ne.s32.totalorder %s6555_s4, %s5871_s5  ;;  %p5875_p9 = scmp.lt.u32.totalorder %s5871_s5, %s6555_s4 }
  0x92   :  { %p5877_p10 = pnand %p5875_p9, %p5872_p8 }
  0x94   :  { %5880 = shalt.err (!%p5877_p10)
}
  0x95   :  { %s5881_s2 = scalar_lea.vmem %s78_s27, 16  ;;  %s5885_s7 = scalar_lea.vmem %s78_s27, 32 }
  0x96   :  { %p5882_p11 = scmp.ne.s32.totalorder %s78_s27, %s5881_s2  ;;  %p5886_p12 = scmp.lt.s32.totalorder %s78_s27, %s78_s27 }
  0x97   :  { %p5887_p13 = scmp.lt.s32.totalorder %s5885_s7, %s5881_s2 }
  0x99   :  { %p5888_p0 = por %p5887_p13, %p5886_p12 }
  0x9b   :  { %p5889_p1 = pnand %p5888_p0, %p5882_p11 }
  0x9d   :  { %5892 = shalt.err (!%p5889_p1)
}
  0x9e   :  { %80 = dma.hbm_to_vmem [thread:$0]  %s6555_s4, 16, %s78_s27, [#allocation9]  }
  0x9f   :  { %s5893_s21 = scalar_lea.hbm %s6557_s6, 16 }
  0xa0   :  { %p5894_p2 = scmp.ne.s32.totalorder %s6557_s6, %s5893_s21  ;;  %p5897_p3 = scmp.lt.u32.totalorder %s5893_s21, %s6557_s6 }
  0xa2   :  { %p5899_p4 = pnand %p5897_p3, %p5894_p2 }
  0xa4   :  { %5902 = shalt.err (!%p5899_p4)
}
  0xa5   :  { %s5903_s0 = scalar_lea.vmem %s100_s29, 16  ;;  %s5907_s24 = scalar_lea.vmem %s100_s29, 32 }
  0xa6   :  { %p5904_p5 = scmp.ne.s32.totalorder %s100_s29, %s5903_s0  ;;  %p5908_p6 = scmp.lt.s32.totalorder %s100_s29, %s100_s29 }
  0xa7   :  { %p5909_p7 = scmp.lt.s32.totalorder %s5907_s24, %s5903_s0 }
  0xa9   :  { %p5910_p8 = por %p5909_p7, %p5908_p6 }
  0xab   :  { %p5911_p9 = pnand %p5910_p8, %p5904_p5 }
  0xad   :  { %5914 = shalt.err (!%p5911_p9)
}
  0xae   :  { %102 = dma.hbm_to_vmem [thread:$0]  %s6557_s6, 16, %s100_s29, [#allocation12]  }
  0xaf   :  { %s6058_s27 = smov [#allocation16]   ;;  %s6059_s15 = smov [#allocation19]  }
  0xb0   :  { %s119_s28 = sshll.u32 %s6058_s27, 4  ;;  %s141_s18 = sshll.u32 %s6059_s15, 4  ;;  %s120_s28 = int_to_ptr.vmem [resolvable:$true] %s119_s28  ;;  %s142_s18 = int_to_ptr.vmem [resolvable:$true] %s141_s18 }
  0xb1   :  { %s5915_s11 = scalar_lea.hbm %s6559_s8, 16 }
  0xb2   :  { %p5916_p10 = scmp.ne.s32.totalorder %s6559_s8, %s5915_s11  ;;  %p5919_p11 = scmp.lt.u32.totalorder %s5915_s11, %s6559_s8 }
  0xb4   :  { %p5921_p12 = pnand %p5919_p11, %p5916_p10 }
  0xb6   :  { %5924 = shalt.err (!%p5921_p12)
}
  0xb7   :  { %s5925_s6 = scalar_lea.vmem %s120_s28, 16  ;;  %s5929_s29 = scalar_lea.vmem %s120_s28, 32 }
  0xb8   :  { %p5926_p13 = scmp.ne.s32.totalorder %s120_s28, %s5925_s6  ;;  %p5930_p0 = scmp.lt.s32.totalorder %s120_s28, %s120_s28 }
  0xb9   :  { %p5931_p1 = scmp.lt.s32.totalorder %s5929_s29, %s5925_s6 }
  0xbb   :  { %p5932_p2 = por %p5931_p1, %p5930_p0 }
  0xbd   :  { %p5933_p3 = pnand %p5932_p2, %p5926_p13 }
  0xbf   :  { %5936 = shalt.err (!%p5933_p3)
}
  0xc0   :  { %122 = dma.hbm_to_vmem [thread:$0]  %s6559_s8, 16, %s120_s28, [#allocation15]  }
  0xc1   :  { %s5937_s21 = scalar_lea.hbm %s6561_s10, 64 }
  0xc2   :  { %p5938_p4 = scmp.ne.s32.totalorder %s6561_s10, %s5937_s21  ;;  %p5941_p5 = scmp.lt.u32.totalorder %s5937_s21, %s6561_s10 }
  0xc4   :  { %p5943_p6 = pnand %p5941_p5, %p5938_p4 }
  0xc6   :  { %5946 = shalt.err (!%p5943_p6)
}
  0xc7   :  { %s5947_s0 = scalar_lea.vmem %s142_s18, 64  ;;  %p5952_p8 = scmp.lt.s32.totalorder %s142_s18, %s142_s18 }
  0xc8   :  { %p5948_p7 = scmp.ne.s32.totalorder %s142_s18, %s5947_s0  ;;  %p5953_p9 = scmp.lt.s32.totalorder %s5947_s0, %s5947_s0 }
  0xca   :  { %p5954_p10 = por %p5953_p9, %p5952_p8 }
  0xcc   :  { %p5955_p11 = pnand %p5954_p10, %p5948_p7 }
  0xce   :  { %5958 = shalt.err (!%p5955_p11)
}
  0xcf   :  { %144 = dma.hbm_to_vmem [thread:$0]  %s6561_s10, 64, %s142_s18, [#allocation18]  }
  0xd0   :  { %s6060_s4 = smov [#allocation22]   ;;  %s5959_s15 = scalar_lea.hbm %s6563_s12, 256 }
  0xd1   :  { %s163_s26 = sshll.u32 %s6060_s4, 4  ;;  %p5960_p12 = scmp.ne.s32.totalorder %s6563_s12, %s5959_s15  ;;  %s164_s26 = int_to_ptr.vmem [resolvable:$true] %s163_s26 }
  0xd2   :  { %p5963_p13 = scmp.lt.u32.totalorder %s5959_s15, %s6563_s12 }
  0xd4   :  { %p5965_p0 = pnand %p5963_p13, %p5960_p12 }
  0xd6   :  { %5968 = shalt.err (!%p5965_p0)
}
  0xd7   :  { %s5969_s17 = scalar_lea.vmem %s164_s26, 256  ;;  %p5974_p2 = scmp.lt.s32.totalorder %s164_s26, %s164_s26 }
  0xd8   :  { %p5970_p1 = scmp.ne.s32.totalorder %s164_s26, %s5969_s17  ;;  %p5975_p3 = scmp.lt.s32.totalorder %s5969_s17, %s5969_s17 }
  0xda   :  { %p5976_p4 = por %p5975_p3, %p5974_p2 }
  0xdc   :  { %p5977_p5 = pnand %p5976_p4, %p5970_p1 }
  0xde   :  { %5980 = shalt.err (!%p5977_p5)
}
  0xdf   :  { %166 = dma.hbm_to_vmem [thread:$0]  %s6563_s12, 256, %s164_s26, [#allocation21]  }
  0xe0   :  { %6025 = dma.done.wait [#allocation3], 128  }
  0xe1   :  { %6026 = vsyncadd [#allocation3], 4294967168 }
  0xe2   :  { %6027 = dma.done.wait [#allocation6], 32  }
  0xe3   :  { %6028 = vsyncadd [#allocation6], 4294967264 }
  0xe4   :  { %6029 = dma.done.wait [#allocation9], 1040  }
  0xe5   :  { %6030 = vsyncadd [#allocation9], 4294966256 }
  0xe6   :  { %6031 = dma.done.wait [#allocation12], 1040  }
  0xe7   :  { %6032 = vsyncadd [#allocation12], 4294966256 }
  0xe8   :  { %6033 = dma.done.wait [#allocation15], 32  }
  0xe9   :  { %6034 = vsyncadd [#allocation15], 4294967264 }
  0xea   :  { %6035 = dma.done.wait [#allocation18], 4160  }
  0xeb   :  { %6036 = vsyncadd [#allocation18], 4294963136 }
  0xec   :  { %6037 = dma.done.wait [#allocation21], 65792  }
  0xed   :  { %6038 = vsyncadd [#allocation21], 4294901504  ;;  %v207_v0 = vld [vmem:[#allocation2] sm:$0xff]  ;;  %v5585_v1 = vld [vmem:[#allocation8] sm:$0xff]   ;;  %v6061_v2 = vmov 0.0   ;;  %vm6062_vm0 = vmmov 0  }
  0xee   :  { %210 = vadd.xlane.f32.xlu0 %v207_v0  ;;  %5442 = vmatprep.subr.bf16.mxu0 %v6061_v2  ;;  %v5586_v3 = vld [vmem:[#allocation8 + $0x8] sm:$0xff]   ;;  %v5587_v8 = vld [vmem:[#allocation8 + $0x10] sm:$0xff]   ;;  %v5588_v9 = vld [vmem:[#allocation8 + $0x18] sm:$0xff]   ;;  %s6064_s12 = smov [#allocation23]  }
  0xef   :  { %5462 = vmatprep.subr.bf16.mxu1 %v6061_v2  ;;  %5443 = vmatpush3.bf16.msra.mxu0 %v5585_v1  ;;  %v5589_v10 = vld [vmem:[#allocation8 + $0x20] sm:$0xff]   ;;  %v5590_v11 = vld [vmem:[#allocation8 + $0x28] sm:$0xff]   ;;  %v5591_v12 = vld [vmem:[#allocation8 + $0x30] sm:$0xff]   ;;  %s4829_s2 = sshll.u32 %s6064_s12, 4  ;;  %s4830_s2 = int_to_ptr.vmem [resolvable:$true] %s4829_s2 }
  0xf0   :  { %5444 = vmatprep.subr.bf16.mxu0 %v6061_v2  ;;  %5458 = vmatprep.mubr.msk.bf16.mxu0 %vm6062_vm0, %v6061_v2  ;;  %v5592_v13 = vld [vmem:[#allocation8 + $0x38] sm:$0xff]   ;;  %v5593_v24 = vld [vmem:[#allocation11] sm:$0xff]   ;;  %v5594_v25 = vld [vmem:[#allocation11 + $0x8] sm:$0xff]   ;;  %s5981_s7 = scalar_lea.vmem %s4830_s2, 128  ;;  %p5986_p7 = scmp.lt.s32.totalorder %s4830_s2, %s4830_s2 }
  0xf1   :  { %5478 = vmatprep.mubr.msk.bf16.mxu1 %vm6062_vm0, %v6061_v2  ;;  %v4858_v18 = vld [vmem:[#allocation5] ss:$0 sm:$0xff]  ;;  %v4859_v20 = vld [vmem:[#allocation7] ss:$0 sm:$0xff]  ;;  %5463 = vmatpush3.bf16.msra.mxu1 %v5593_v24  ;;  %v5595_v26 = vld [vmem:[#allocation11 + $0x10] sm:$0xff]   ;;  %p5982_p6 = scmp.ne.s32.totalorder %s4830_s2, %s5981_s7  ;;  %p5987_p8 = scmp.lt.s32.totalorder %s5981_s7, %s5981_s7 }
  0xf2   :  { %5464 = vmatprep.subr.bf16.mxu1 %v6061_v2  ;;  %v5596_v27 = vld [vmem:[#allocation11 + $0x18] sm:$0xff]   ;;  %v5597_v28 = vld [vmem:[#allocation11 + $0x20] sm:$0xff]   ;;  %v5598_v29 = vld [vmem:[#allocation11 + $0x28] sm:$0xff]  }
  0xf3   :  { %5445 = vmatpush3.bf16.msra.mxu0 %v5586_v3  ;;  %v5599_v30 = vld [vmem:[#allocation11 + $0x30] sm:$0xff]   ;;  %v5600_v31 = vld [vmem:[#allocation11 + $0x38] sm:$0xff]   ;;  %v4869_v48 = vld [vmem:[#allocation13] ss:$0 sm:$0xff]  ;;  %p5988_p9 = por %p5987_p8, %p5986_p7 }
  0xf4   :  { %5446 = vmatprep.subr.bf16.mxu0 %v6061_v2  ;;  %v4860_v32 = vld [vmem:[#allocation10] ss:$0 sm:$0xff]  ;;  %v5601_v54 = vld [vmem:[#allocation17] ss:$16 sps:$4 sm:$0xff]   ;;  %v5603_v55 = vld [vmem:[#allocation17 + $0x4] ss:$16 sps:$4 sm:$0xff]  }
  0xf5   :  { %5465 = vmatpush3.bf16.msra.mxu1 %v5594_v25  ;;  %v5604_v56 = vld [vmem:[#allocation17 + $0x8] ss:$16 sps:$4 sm:$0xff]   ;;  %v5606_v57 = vld [vmem:[#allocation17 + $0xc] ss:$16 sps:$4 sm:$0xff]   ;;  %v5609_v58 = vld [vmem:[#allocation17 + $0x24] ss:$16 sps:$4 sm:$0xff]   ;;  %p5989_p10 = pnand %p5988_p9, %p5982_p6 }
  0xf6   :  { %5466 = vmatprep.subr.bf16.mxu1 %v6061_v2  ;;  %v5612_v59 = vld [vmem:[#allocation17 + $0x2c] ss:$16 sps:$4 sm:$0xff]   ;;  %v5607_v60 = vld [vmem:[#allocation17 + $0x20] ss:$16 sps:$4 sm:$0xff]   ;;  %v5610_v61 = vld [vmem:[#allocation17 + $0x28] ss:$16 sps:$4 sm:$0xff]  }
  0xf7   :  { %5447 = vmatpush3.bf16.msra.mxu0 %v5587_v8  ;;  %v5615_v62 = vld [vmem:[#allocation17 + $0x44] ss:$16 sps:$4 sm:$0xff]   ;;  %v5618_v63 = vld [vmem:[#allocation17 + $0x4c] ss:$16 sps:$4 sm:$0xff]   ;;  %v5616_v1 = vld [vmem:[#allocation17 + $0x48] ss:$16 sps:$4 sm:$0xff]  }
  0xf8   :  { %5448 = vmatprep.subr.bf16.mxu0 %v6061_v2  ;;  %v5619_v8 = vld [vmem:[#allocation17 + $0x60] ss:$16 sps:$4 sm:$0xff]   ;;  %v5646_v24 = vld [vmem:[#allocation17 + $0xe8] ss:$16 sps:$4 sm:$0xff]   ;;  %v5648_v25 = vld [vmem:[#allocation17 + $0xec] ss:$16 sps:$4 sm:$0xff]  }
  0xf9   :  { %5467 = vmatpush3.bf16.msra.mxu1 %v5595_v26  ;;  %v6063_v26 = vmov 0  }
  0xfa   :  { %5468 = vmatprep.subr.bf16.mxu1 %v6061_v2 }
  0xfb   :  { %5449 = vmatpush3.bf16.msra.mxu0 %v5588_v9  ;;  %v5622_v9 = vld [vmem:[#allocation17 + $0x68] ss:$16 sps:$4 sm:$0xff]  }
  0xfc   :  { %5450 = vmatprep.subr.bf16.mxu0 %v6061_v2 }
  0xfd   :  { %5469 = vmatpush3.bf16.msra.mxu1 %v5596_v27  ;;  %v834_v27 = vld [vmem:[#allocation20] sm:$0xff] }
  0xfe   :  { %5470 = vmatprep.subr.bf16.mxu1 %v6061_v2 }
  0xff   :  { %5451 = vmatpush3.bf16.msra.mxu0 %v5589_v10  ;;  %v5627_v10 = vld [vmem:[#allocation17 + $0x84] ss:$16 sps:$4 sm:$0xff]  }
 0x100   :  { %5452 = vmatprep.subr.bf16.mxu0 %v6061_v2 }
 0x101   :  { %5471 = vmatpush3.bf16.msra.mxu1 %v5597_v28  ;;  %v842_v28 = vld [vmem:[#allocation20 + $0x40] sm:$0xff] }
 0x102   :  { %5472 = vmatprep.subr.bf16.mxu1 %v6061_v2 }
 0x103   :  { %5453 = vmatpush3.bf16.msra.mxu0 %v5590_v11  ;;  %v5630_v11 = vld [vmem:[#allocation17 + $0x8c] ss:$16 sps:$4 sm:$0xff]  }
 0x104   :  { %5454 = vmatprep.subr.bf16.mxu0 %v6061_v2 }
 0x105   :  { %5473 = vmatpush3.bf16.msra.mxu1 %v5598_v29  ;;  %v835_v29 = vld [vmem:[#allocation20 + $0x8] sm:$0xff] }
 0x106   :  { %5474 = vmatprep.subr.bf16.mxu1 %v6061_v2 }
 0x107   :  { %5455 = vmatpush3.bf16.msra.mxu0 %v5591_v12  ;;  %v5625_v12 = vld [vmem:[#allocation17 + $0x80] ss:$16 sps:$4 sm:$0xff]  }
 0x108   :  { %5456 = vmatprep.subr.bf16.mxu0 %v6061_v2 }
 0x109   :  { %5475 = vmatpush3.bf16.msra.mxu1 %v5599_v30  ;;  %v4912_v30 = vcombine.low %v834_v27, %v842_v28 }
 0x10a   :  { %5476 = vmatprep.subr.bf16.mxu1 %v6061_v2 }
 0x10b   :  { %5457 = vmatpush3.bf16.msra.mxu0 %v5592_v13  ;;  %v5628_v13 = vld [vmem:[#allocation17 + $0x88] ss:$16 sps:$4 sm:$0xff]  }
 0x10c   :  { %712 = vmatprep.subr.bf16.mxu0 %v5603_v55 }
 0x10d   :  { %5477 = vmatpush3.bf16.msra.mxu1 %v5600_v31  ;;  %v4913_v31 = vcombine.high %v834_v27, %v842_v28  ;;  %v946_v27 = vld [vmem:[#allocation20 + $0x380] sm:$0xff] }
 0x10e   :  { %753 = vmatprep.subr.bf16.mxu1 %v5606_v57  ;;  %v954_v28 = vld [vmem:[#allocation20 + $0x3c0] sm:$0xff] }
 0x17b   :  { %v211_v4 = vpop.xlane.xlu0 %210 }
 0x17c   :  { %v213_v5 = vmul.f32 0.0078125, %v211_v4 }
 0x17e   :  { %v214_v6 = vsub.f32 %v207_v0, %v213_v5  ;;  %v5613_v0 = vld [vmem:[#allocation17 + $0x40] ss:$16 sps:$4 sm:$0xff]  }
 0x180   :  { %v215_v7 = vmul.f32 %v214_v6, %v214_v6 }
 0x182   :  { %216 = vadd.xlane.f32.xlu0 %v215_v7  ;;  %v5624_v7 = vld [vmem:[#allocation17 + $0x6c] ss:$16 sps:$4 sm:$0xff]  }
 0x20f   :  { %v217_v14 = vpop.xlane.xlu0 %216 }
 0x210   :  { %v218_v15 = vmul.f32 0.0078125, %v217_v14  ;;  %v5633_v14 = vld [vmem:[#allocation17 + $0xa4] ss:$16 sps:$4 sm:$0xff]  }
 0x212   :  { %v219_v16 = vadd.f32 1e-05, %v218_v15  ;;  %v5636_v15 = vld [vmem:[#allocation17 + $0xac] ss:$16 sps:$4 sm:$0xff]  }
 0x214   :  { %5649 = vrsqrt.f32 %v219_v16  ;;  %v5631_v16 = vld [vmem:[#allocation17 + $0xa0] ss:$16 sps:$4 sm:$0xff]  }
 0x21e   :  { %v5650_v17 = vpop.eup %5649 }
 0x21f   :  { %v221_v19 = vmul.f32 %v5650_v17, %v214_v6  ;;  %v5621_v6 = vld [vmem:[#allocation17 + $0x64] ss:$16 sps:$4 sm:$0xff]   ;;  %v5634_v17 = vld [vmem:[#allocation17 + $0xa8] ss:$16 sps:$4 sm:$0xff]  }
 0x221   :  { %v228_v21 = vmul.f32 %v4858_v18, %v221_v19  ;;  %v5639_v18 = vld [vmem:[#allocation17 + $0xc4] ss:$16 sps:$4 sm:$0xff]   ;;  %v5642_v19 = vld [vmem:[#allocation17 + $0xcc] ss:$16 sps:$4 sm:$0xff]  }
 0x223   :  { %v235_v22 = vadd.f32 %v4859_v20, %v228_v21  ;;  %v5637_v20 = vld [vmem:[#allocation17 + $0xc0] ss:$16 sps:$4 sm:$0xff]   ;;  %v5640_v21 = vld [vmem:[#allocation17 + $0xc8] ss:$16 sps:$4 sm:$0xff]  }
 0x225   :  { %v236_v23 = vpack.c.bf16 %v235_v22, %v235_v22  ;;  %v5643_v22 = vld [vmem:[#allocation17 + $0xe0] ss:$16 sps:$4 sm:$0xff]  }
 0x227   :  { %5459 = vmatmul.mubr.bf16.vlgmr.msra.gmra.mrb[0].mxu0 %v236_v23  ;;  %v5645_v23 = vld [vmem:[#allocation17 + $0xe4] ss:$16 sps:$4 sm:$0xff]  }
 0x228   :  { %713 = vmatpush1.bf16.msra.mxu0 %v5601_v54  ;;  %744 = vmatprep.mubr.bf16.mxu0 %v6063_v26  ;;  %v875_v54 = vld [vmem:[#allocation20 + $0x148] sm:$0xff] }
 0x229   :  { %714 = vmatprep.subr.bf16.mxu0 %v5609_v58 }
 0x22c   :  { %715 = vmatpush1.bf16.msra.mxu0 %v5607_v60  ;;  %v890_v60 = vld [vmem:[#allocation20 + $0x1c0] sm:$0xff] }
 0x22d   :  { %716 = vmatprep.subr.bf16.mxu0 %v5615_v62  ;;  %v891_v62 = vld [vmem:[#allocation20 + $0x1c8] sm:$0xff] }
 0x230   :  { %717 = vmatpush1.bf16.msra.mxu0 %v5613_v0 }
 0x231   :  { %718 = vmatprep.subr.bf16.mxu0 %v5621_v6  ;;  %v907_v6 = vld [vmem:[#allocation20 + $0x248] sm:$0xff] }
 0x234   :  { %719 = vmatpush1.bf16.msra.mxu0 %v5619_v8 }
 0x235   :  { %720 = vmatprep.subr.bf16.mxu0 %v5627_v10 }
 0x238   :  { %721 = vmatpush1.bf16.msra.mxu0 %v5625_v12  ;;  %v922_v12 = vld [vmem:[#allocation20 + $0x2c0] sm:$0xff] }
 0x239   :  { %722 = vmatprep.subr.bf16.mxu0 %v5633_v14  ;;  %v923_v14 = vld [vmem:[#allocation20 + $0x2c8] sm:$0xff] }
 0x23c   :  { %723 = vmatpush1.bf16.msra.mxu0 %v5631_v16 }
 0x23d   :  { %724 = vmatprep.subr.bf16.mxu0 %v5639_v18 }
 0x240   :  { %725 = vmatpush1.bf16.msra.mxu0 %v5637_v20  ;;  %v938_v20 = vld [vmem:[#allocation20 + $0x340] sm:$0xff] }
 0x241   :  { %726 = vmatprep.subr.bf16.mxu0 %v5645_v23 }
 0x244   :  { %727 = vmatpush1.bf16.msra.mxu0 %v5643_v22  ;;  %v939_v22 = vld [vmem:[#allocation20 + $0x348] sm:$0xff] }
 0x245   :  { %3990 = vmatprep.subr.bf16.mxu0 %v4913_v31 }
 0x2fa   :  { %v342_v33 = vpop.f32.mrb[0].mxu0 }
 0x2fb   :  { %v343_v34 = vadd.f32 %v4860_v32, %v342_v33  ;;  %v5460_v35 = vpop.f32.mrb[1].mxu0  ;;  %v843_v32 = vld [vmem:[#allocation20 + $0x48] sm:$0xff] }
 0x2fc   :  { %v345_v36 = vpop.f32.mrb[2].mxu0  ;;  %v4914_v33 = vcombine.low %v835_v29, %v843_v32 }
 0x2fd   :  { %v348_v37 = vmul.f32 %v343_v34, %v343_v34  ;;  %v5461_v38 = vpop.f32.mrb[3].mxu0 }
 0x2ff   :  { %v349_v39 = vmul.f32 %v348_v37, %v343_v34 }
 0x301   :  { %v350_v40 = vmul.f32 0.044715, %v349_v39  ;;  %v4878_v39 = vld [vmem:[#allocation14] ss:$0 sm:$0xff] }
 0x303   :  { %v351_v41 = vadd.f32 %v350_v40, %v343_v34 }
 0x305   :  { %v352_v42 = vmul.f32 0.7978846, %v351_v41  ;;  %v4879_v41 = vld [vmem:[#allocation16] ss:$0 sm:$0xff] }
 0x307   :  { %5651 = vtanh.f32 %v352_v42 }
 0x311   :  { %v5652_v43 = vpop.eup %5651 }
 0x312   :  { %v354_v44 = vadd.f32 1.0, %v5652_v43  ;;  %v850_v43 = vld [vmem:[#allocation20 + $0x80] sm:$0xff] }
 0x314   :  { %v355_v45 = vmul.f32 0.5, %v354_v44  ;;  %v858_v44 = vld [vmem:[#allocation20 + $0xc0] sm:$0xff] }
 0x315   :  { %v4928_v55 = vcombine.low %v850_v43, %v858_v44 }
 0x316   :  { %v356_v46 = vmul.f32 %v355_v45, %v343_v34  ;;  %v4915_v34 = vcombine.high %v835_v29, %v843_v32  ;;  %v851_v45 = vld [vmem:[#allocation20 + $0x88] sm:$0xff] }
 0x317   :  { %v947_v29 = vld [vmem:[#allocation20 + $0x388] sm:$0xff] }
 0x318   :  { %v357_v47 = vpack.c.bf16 %v356_v46, %v356_v46  ;;  %v859_v46 = vld [vmem:[#allocation20 + $0xc8] sm:$0xff] }
 0x31a   :  { %5479 = vmatmul.mubr.bf16.vlgmr.msra.gmra.mrb[0].mxu1 %v357_v47 }
 0x31b   :  { %754 = vmatpush1.bf16.msra.mxu1 %v5604_v56  ;;  %785 = vmatprep.mubr.bf16.mxu1 %v6063_v26  ;;  %v4930_v56 = vcombine.low %v851_v45, %v859_v46 }
 0x31c   :  { %755 = vmatprep.subr.bf16.mxu1 %v5612_v59  ;;  %v882_v59 = vld [vmem:[#allocation20 + $0x180] sm:$0xff] }
 0x31f   :  { %756 = vmatpush1.bf16.msra.mxu1 %v5610_v61  ;;  %v883_v61 = vld [vmem:[#allocation20 + $0x188] sm:$0xff] }
 0x320   :  { %757 = vmatprep.subr.bf16.mxu1 %v5618_v63  ;;  %v4962_v8 = vcombine.low %v883_v61, %v891_v62 }
 0x323   :  { %758 = vmatpush1.bf16.msra.mxu1 %v5616_v1  ;;  %v4961_v1 = vcombine.high %v882_v59, %v890_v60 }
 0x324   :  { %759 = vmatprep.subr.bf16.mxu1 %v5624_v7  ;;  %v4960_v7 = vcombine.low %v882_v59, %v890_v60 }
 0x327   :  { %760 = vmatpush1.bf16.msra.mxu1 %v5622_v9 }
 0x328   :  { %761 = vmatprep.subr.bf16.mxu1 %v5630_v11  ;;  %v914_v11 = vld [vmem:[#allocation20 + $0x280] sm:$0xff] }
 0x329   :  { %v4992_v23 = vcombine.low %v914_v11, %v922_v12 }
 0x32b   :  { %762 = vmatpush1.bf16.msra.mxu1 %v5628_v13  ;;  %v915_v13 = vld [vmem:[#allocation20 + $0x288] sm:$0xff] }
 0x32c   :  { %763 = vmatprep.subr.bf16.mxu1 %v5636_v15  ;;  %v4995_v18 = vcombine.high %v915_v13, %v923_v14 }
 0x32f   :  { %764 = vmatpush1.bf16.msra.mxu1 %v5634_v17  ;;  %v4993_v17 = vcombine.high %v914_v11, %v922_v12 }
 0x330   :  { %765 = vmatprep.subr.bf16.mxu1 %v5642_v19  ;;  %v930_v19 = vld [vmem:[#allocation20 + $0x300] sm:$0xff] }
 0x331   :  { %v5008_v31 = vcombine.low %v930_v19, %v938_v20 }
 0x333   :  { %766 = vmatpush1.bf16.msra.mxu1 %v5640_v21  ;;  %v931_v21 = vld [vmem:[#allocation20 + $0x308] sm:$0xff] }
 0x334   :  { %767 = vmatprep.subr.bf16.mxu1 %v5648_v25  ;;  %v5009_v25 = vcombine.high %v930_v19, %v938_v20  ;;  %v5011_v26 = vcombine.high %v931_v21, %v939_v22  ;;  %v5010_v32 = vcombine.low %v931_v21, %v939_v22  ;;  %v1058_v21 = vld [vmem:[#allocation20 + $0x700] sm:$0xff] }
 0x335   :  { %v1066_v22 = vld [vmem:[#allocation20 + $0x740] sm:$0xff] }
 0x337   :  { %768 = vmatpush1.bf16.msra.mxu1 %v5646_v24  ;;  %v4994_v24 = vcombine.low %v915_v13, %v923_v14  ;;  %v1042_v13 = vld [vmem:[#allocation20 + $0x680] sm:$0xff] }
 0x338   :  { %4072 = vmatprep.subr.bf16.mxu1 %v4915_v34  ;;  %v1050_v14 = vld [vmem:[#allocation20 + $0x6c0] sm:$0xff] }
 0x3ed   :  { %v463_v49 = vpop.f32.mrb[0].mxu1 }
 0x3ee   :  { %v464_v50 = vadd.f32 %v4869_v48, %v463_v49  ;;  %v5480_v51 = vpop.f32.mrb[1].mxu1  ;;  %v4929_v49 = vcombine.high %v850_v43, %v858_v44 }
 0x3ef   :  { %v466_v52 = vpop.f32.mrb[2].mxu1  ;;  %v866_v51 = vld [vmem:[#allocation20 + $0x100] sm:$0xff] }
 0x3f0   :  { %469 = vst [vmem:[#allocation23] sm:$0xff] %v464_v50  ;;  %472 = vadd.xlane.f32.xlu1 %v464_v50  ;;  %v5481_v53 = vpop.f32.mrb[3].mxu1  ;;  %v874_v52 = vld [vmem:[#allocation20 + $0x140] sm:$0xff] }
 0x3f1   :  { %v867_v53 = vld [vmem:[#allocation20 + $0x108] sm:$0xff]  ;;  %v4945_v57 = vcombine.high %v866_v51, %v874_v52  ;;  %v4944_v63 = vcombine.low %v866_v51, %v874_v52 }
 0x3f2   :  { %v4947_v58 = vcombine.high %v867_v53, %v875_v54  ;;  %v4946_v0 = vcombine.low %v867_v53, %v875_v54  ;;  %v994_v53 = vld [vmem:[#allocation20 + $0x500] sm:$0xff] }
 0x3f3   :  { %v1002_v54 = vld [vmem:[#allocation20 + $0x540] sm:$0xff] }
 0x47d   :  { %v473_v2 = vpop.xlane.xlu1 %472 }
 0x47e   :  { %v474_v3 = vmul.f32 0.0078125, %v473_v2  ;;  %v4963_v2 = vcombine.high %v883_v61, %v891_v62  ;;  %v1010_v61 = vld [vmem:[#allocation20 + $0x580] sm:$0xff] }
 0x47f   :  { %v1018_v62 = vld [vmem:[#allocation20 + $0x5c0] sm:$0xff] }
 0x480   :  { %v475_v4 = vsub.f32 %v464_v50, %v474_v3  ;;  %v4931_v50 = vcombine.high %v851_v45, %v859_v46  ;;  %v898_v3 = vld [vmem:[#allocation20 + $0x200] sm:$0xff] }
 0x481   :  { %v978_v45 = vld [vmem:[#allocation20 + $0x480] sm:$0xff] }
 0x482   :  { %v476_v5 = vmul.f32 %v475_v4, %v475_v4  ;;  %v986_v46 = vld [vmem:[#allocation20 + $0x4c0] sm:$0xff] }
 0x484   :  { %477 = vadd.xlane.f32.xlu1 %v476_v5  ;;  %v899_v5 = vld [vmem:[#allocation20 + $0x208] sm:$0xff] }
 0x485   :  { %v4979_v10 = vcombine.high %v899_v5, %v907_v6  ;;  %v4978_v16 = vcombine.low %v899_v5, %v907_v6  ;;  %v1026_v5 = vld [vmem:[#allocation20 + $0x600] sm:$0xff] }
 0x486   :  { %v1034_v6 = vld [vmem:[#allocation20 + $0x640] sm:$0xff] }
 0x511   :  { %v478_v35 = vpop.xlane.xlu1 %477 }
 0x512   :  { %v479_v36 = vmul.f32 0.0078125, %v478_v35  ;;  %v5024_v35 = vcombine.low %v946_v27, %v954_v28 }
 0x514   :  { %v480_v37 = vadd.f32 1e-05, %v479_v36 }
 0x516   :  { %5653 = vrsqrt.f32 %v480_v37  ;;  %v962_v37 = vld [vmem:[#allocation20 + $0x400] sm:$0xff] }
 0x520   :  { %v5654_v38 = vpop.eup %5653 }
 0x521   :  { %v482_v40 = vmul.f32 %v5654_v38, %v475_v4  ;;  %v906_v4 = vld [vmem:[#allocation20 + $0x240] sm:$0xff] }
 0x522   :  { %v4977_v9 = vcombine.high %v898_v3, %v906_v4  ;;  %v4976_v15 = vcombine.low %v898_v3, %v906_v4  ;;  %v970_v38 = vld [vmem:[#allocation20 + $0x440] sm:$0xff] }
 0x523   :  { %v489_v42 = vmul.f32 %v4878_v39, %v482_v40  ;;  %v963_v39 = vld [vmem:[#allocation20 + $0x408] sm:$0xff]  ;;  %v5041_v40 = vcombine.high %v962_v37, %v970_v38 }
 0x525   :  { %v496_v47 = vadd.f32 %v4879_v41, %v489_v42  ;;  %v971_v41 = vld [vmem:[#allocation20 + $0x448] sm:$0xff]  ;;  %v5040_v42 = vcombine.low %v962_v37, %v970_v38  ;;  %v6327_v37 = vld [vmem:[#allocation20 + $0x800] sm:$0xff] }
 0x526   :  { %v5042_v43 = vcombine.low %v963_v39, %v971_v41  ;;  %v5043_v44 = vcombine.high %v963_v39, %v971_v41  ;;  %v6329_v38 = vld [vmem:[#allocation20 + $0x840] sm:$0xff]  ;;  %v6331_v39 = vld [vmem:[#allocation20 + $0x808] sm:$0xff] }
 0x527   :  { %v497_v48 = vpack.c.bf16 %v496_v47, %v496_v47  ;;  %v979_v47 = vld [vmem:[#allocation20 + $0x488] sm:$0xff] }
 0x528   :  { %v6335_v41 = vld [vmem:[#allocation20 + $0x848] sm:$0xff] }
 0x529   :  { %745 = vmatmul.mubr.bf16.vlgmr.msra.gmra.mrb[4].mxu0 %v497_v48  ;;  %786 = vmatmul.mubr.bf16.vlgmr.msra.gmra.mrb[4].mxu1 %v497_v48  ;;  %v5057_v48 = vcombine.high %v978_v45, %v986_v46 }
 0x52a   :  { %3991 = vmatpush1.bf16.msra.mxu0 %v4912_v30  ;;  %4073 = vmatpush1.bf16.msra.mxu1 %v4914_v33  ;;  %v955_v30 = vld [vmem:[#allocation20 + $0x3c8] sm:$0xff]  ;;  %v5025_v33 = vcombine.high %v946_v27, %v954_v28 }
 0x52b   :  { %3992 = vmatprep.subr.bf16.mxu0 %v4929_v49  ;;  %4074 = vmatprep.subr.bf16.mxu1 %v4931_v50  ;;  %v5027_v34 = vcombine.high %v947_v29, %v955_v30  ;;  %v5026_v36 = vcombine.low %v947_v29, %v955_v30  ;;  %v987_v49 = vld [vmem:[#allocation20 + $0x4c8] sm:$0xff]  ;;  %v5056_v50 = vcombine.low %v978_v45, %v986_v46  ;;  %v1074_v29 = vld [vmem:[#allocation20 + $0x780] sm:$0xff]  ;;  %v532_v45 = vlaneseq }
 0x52c   :  { %v5058_v51 = vcombine.low %v979_v47, %v987_v49  ;;  %v5059_v52 = vcombine.high %v979_v47, %v987_v49  ;;  %v1082_v30 = vld [vmem:[#allocation20 + $0x7c0] sm:$0xff] }
 0x52d   :  { %v6343_v46 = vshrl.u32 %v532_v45, 7  ;;  %v1131_v45 = vld [vmem:[#allocation20 + $0x948] sm:$0xff] }
 0x52e   :  { %3993 = vmatpush1.bf16.msra.mxu0 %v4928_v55  ;;  %4075 = vmatpush1.bf16.msra.mxu1 %v4930_v56  ;;  %v995_v55 = vld [vmem:[#allocation20 + $0x508] sm:$0xff]  ;;  %v5073_v56 = vcombine.high %v994_v53, %v1002_v54 }
 0x52f   :  { %3994 = vmatprep.subr.bf16.mxu0 %v4945_v57  ;;  %4076 = vmatprep.subr.bf16.mxu1 %v4947_v58  ;;  %v1003_v57 = vld [vmem:[#allocation20 + $0x548] sm:$0xff]  ;;  %v5072_v58 = vcombine.low %v994_v53, %v1002_v54  ;;  %v6346_v47 = vsub.s32 0, %v6343_v46  ;;  %v6351_v49 = vsub.s32 1, %v6343_v46 }
 0x530   :  { %v5074_v59 = vcombine.low %v995_v55, %v1003_v57  ;;  %v5075_v60 = vcombine.high %v995_v55, %v1003_v57 }
 0x532   :  { %3995 = vmatpush1.bf16.msra.mxu0 %v4944_v63  ;;  %4077 = vmatpush1.bf16.msra.mxu1 %v4946_v0  ;;  %v1011_v63 = vld [vmem:[#allocation20 + $0x588] sm:$0xff]  ;;  %v5089_v0 = vcombine.high %v1010_v61, %v1018_v62 }
 0x533   :  { %3996 = vmatprep.subr.bf16.mxu0 %v4961_v1  ;;  %4078 = vmatprep.subr.bf16.mxu1 %v4963_v2  ;;  %v1019_v1 = vld [vmem:[#allocation20 + $0x5c8] sm:$0xff]  ;;  %v5088_v2 = vcombine.low %v1010_v61, %v1018_v62 }
 0x534   :  { %v5090_v3 = vcombine.low %v1011_v63, %v1019_v1  ;;  %v5091_v4 = vcombine.high %v1011_v63, %v1019_v1 }
 0x536   :  { %3997 = vmatpush1.bf16.msra.mxu0 %v4960_v7  ;;  %4079 = vmatpush1.bf16.msra.mxu1 %v4962_v8  ;;  %v1027_v7 = vld [vmem:[#allocation20 + $0x608] sm:$0xff]  ;;  %v5105_v8 = vcombine.high %v1026_v5, %v1034_v6 }
 0x537   :  { %3998 = vmatprep.subr.bf16.mxu0 %v4977_v9  ;;  %4080 = vmatprep.subr.bf16.mxu1 %v4979_v10  ;;  %v1035_v9 = vld [vmem:[#allocation20 + $0x648] sm:$0xff]  ;;  %v5104_v10 = vcombine.low %v1026_v5, %v1034_v6 }
 0x538   :  { %v5106_v11 = vcombine.low %v1027_v7, %v1035_v9  ;;  %v5107_v12 = vcombine.high %v1027_v7, %v1035_v9 }
 0x53a   :  { %3999 = vmatpush1.bf16.msra.mxu0 %v4976_v15  ;;  %4081 = vmatpush1.bf16.msra.mxu1 %v4978_v16  ;;  %v1043_v15 = vld [vmem:[#allocation20 + $0x688] sm:$0xff]  ;;  %v5121_v16 = vcombine.high %v1042_v13, %v1050_v14 }
 0x53b   :  { %4000 = vmatprep.subr.bf16.mxu0 %v4993_v17  ;;  %4082 = vmatprep.subr.bf16.mxu1 %v4995_v18  ;;  %v1051_v17 = vld [vmem:[#allocation20 + $0x6c8] sm:$0xff]  ;;  %v5120_v18 = vcombine.low %v1042_v13, %v1050_v14 }
 0x53c   :  { %v5122_v19 = vcombine.low %v1043_v15, %v1051_v17  ;;  %v5123_v20 = vcombine.high %v1043_v15, %v1051_v17 }
 0x53e   :  { %4001 = vmatpush1.bf16.msra.mxu0 %v4992_v23  ;;  %4083 = vmatpush1.bf16.msra.mxu1 %v4994_v24  ;;  %v1059_v23 = vld [vmem:[#allocation20 + $0x708] sm:$0xff]  ;;  %v5137_v24 = vcombine.high %v1058_v21, %v1066_v22 }
 0x53f   :  { %4002 = vmatprep.subr.bf16.mxu0 %v5009_v25  ;;  %4084 = vmatprep.subr.bf16.mxu1 %v5011_v26  ;;  %v1067_v25 = vld [vmem:[#allocation20 + $0x748] sm:$0xff]  ;;  %v5136_v26 = vcombine.low %v1058_v21, %v1066_v22 }
 0x540   :  { %v5138_v27 = vcombine.low %v1059_v23, %v1067_v25  ;;  %v5139_v28 = vcombine.high %v1059_v23, %v1067_v25 }
 0x542   :  { %4003 = vmatpush1.bf16.msra.mxu0 %v5008_v31  ;;  %4085 = vmatpush1.bf16.msra.mxu1 %v5010_v32  ;;  %v1075_v31 = vld [vmem:[#allocation20 + $0x788] sm:$0xff]  ;;  %v5153_v32 = vcombine.high %v1074_v29, %v1082_v30 }
 0x543   :  { %4004 = vmatprep.subr.bf16.mxu0 %v5025_v33  ;;  %4086 = vmatprep.subr.bf16.mxu1 %v5027_v34  ;;  %v1083_v33 = vld [vmem:[#allocation20 + $0x7c8] sm:$0xff]  ;;  %v5152_v34 = vcombine.low %v1074_v29, %v1082_v30  ;;  %v1114_v29 = vld [vmem:[#allocation20 + $0x8c0] sm:$0xff] }
 0x544   :  { %v1107_v30 = vld [vmem:[#allocation20 + $0x888] sm:$0xff] }
 0x546   :  { %4005 = vmatpush1.bf16.msra.mxu0 %v5024_v35  ;;  %4087 = vmatpush1.bf16.msra.mxu1 %v5026_v36  ;;  %v5154_v35 = vcombine.low %v1075_v31, %v1083_v33  ;;  %v5155_v36 = vcombine.high %v1075_v31, %v1083_v33  ;;  %v1115_v31 = vld [vmem:[#allocation20 + $0x8c8] sm:$0xff] }
 0x547   :  { %4006 = vmatprep.subr.bf16.mxu0 %v5041_v40  ;;  %4088 = vmatprep.subr.bf16.mxu1 %v5043_v44  ;;  %v5169_v40 = vcombine.high %v6327_v37, %v6329_v38  ;;  %v5171_v44 = vcombine.high %v6331_v39, %v6335_v41 }
 0x54a   :  { %4007 = vmatpush1.bf16.msra.mxu0 %v5040_v42  ;;  %4089 = vmatpush1.bf16.msra.mxu1 %v5042_v43  ;;  %v5168_v42 = vcombine.low %v6327_v37, %v6329_v38  ;;  %v5170_v43 = vcombine.low %v6331_v39, %v6335_v41  ;;  %v6383_v37 = vsub.s32 2, %v6343_v46 }
 0x54b   :  { %4008 = vmatprep.subr.bf16.mxu0 %v5057_v48  ;;  %4090 = vmatprep.subr.bf16.mxu1 %v5059_v52  ;;  %v6348_v48 = vld [vmem:[#allocation19] sm:$0xf] }
 0x54c   :  { %v539_v52 = vrot.slane %v6348_v48, %v6351_v49 }
 0x54e   :  { %4009 = vmatpush1.bf16.msra.mxu0 %v5056_v50  ;;  %4091 = vmatpush1.bf16.msra.mxu1 %v5058_v51  ;;  %v6354_v50 = vsub.s32 3, %v6343_v46  ;;  %v535_v51 = vrot.slane %v6348_v48, %v6346_v47 }
 0x54f   :  { %4010 = vmatprep.subr.bf16.mxu0 %v5073_v56  ;;  %4092 = vmatprep.subr.bf16.mxu1 %v5075_v60 }
 0x550   :  { %v547_v53 = vrot.slane %v6348_v48, %v6354_v50 }
 0x552   :  { %4011 = vmatpush1.bf16.msra.mxu0 %v5072_v58  ;;  %4093 = vmatpush1.bf16.msra.mxu1 %v5074_v59 }
 0x553   :  { %4012 = vmatprep.subr.bf16.mxu0 %v5089_v0  ;;  %4094 = vmatprep.subr.bf16.mxu1 %v5091_v4 }
 0x556   :  { %4013 = vmatpush1.bf16.msra.mxu0 %v5088_v2  ;;  %4095 = vmatpush1.bf16.msra.mxu1 %v5090_v3 }
 0x557   :  { %4014 = vmatprep.subr.bf16.mxu0 %v5105_v8  ;;  %4096 = vmatprep.subr.bf16.mxu1 %v5107_v12 }
 0x55a   :  { %4015 = vmatpush1.bf16.msra.mxu0 %v5104_v10  ;;  %4097 = vmatpush1.bf16.msra.mxu1 %v5106_v11 }
 0x55b   :  { %4016 = vmatprep.subr.bf16.mxu0 %v5121_v16  ;;  %4098 = vmatprep.subr.bf16.mxu1 %v5123_v20 }
 0x55e   :  { %4017 = vmatpush1.bf16.msra.mxu0 %v5120_v18  ;;  %4099 = vmatpush1.bf16.msra.mxu1 %v5122_v19 }
 0x55f   :  { %4018 = vmatprep.subr.bf16.mxu0 %v5137_v24  ;;  %4100 = vmatprep.subr.bf16.mxu1 %v5139_v28 }
 0x562   :  { %4019 = vmatpush1.bf16.msra.mxu0 %v5136_v26  ;;  %4101 = vmatpush1.bf16.msra.mxu1 %v5138_v27  ;;  %v1106_v27 = vld [vmem:[#allocation20 + $0x880] sm:$0xff] }
 0x563   :  { %4020 = vmatprep.subr.bf16.mxu0 %v5153_v32  ;;  %4102 = vmatprep.subr.bf16.mxu1 %v5155_v36  ;;  %v5187_v36 = vcombine.high %v1107_v30, %v1115_v31 }
 0x566   :  { %4021 = vmatpush1.bf16.msra.mxu0 %v5152_v34  ;;  %4103 = vmatpush1.bf16.msra.mxu1 %v5154_v35  ;;  %v1122_v34 = vld [vmem:[#allocation20 + $0x900] sm:$0xff]  ;;  %v5185_v35 = vcombine.high %v1106_v27, %v1114_v29 }
 0x567   :  { %4031 = vmatprep.subr.bf16.mxu0 %v5169_v40  ;;  %4113 = vmatprep.subr.bf16.mxu1 %v5171_v44  ;;  %v1130_v40 = vld [vmem:[#allocation20 + $0x940] sm:$0xff]  ;;  %v1123_v44 = vld [vmem:[#allocation20 + $0x908] sm:$0xff] }
 0x568   :  { %v5200_v38 = vcombine.low %v1122_v34, %v1130_v40  ;;  %v5202_v39 = vcombine.low %v1123_v44, %v1131_v45 }
 0x5fc   :  { %v746_v54 = vpop.f32.mrb[4].mxu0  ;;  %v6362_v55 = vpop.f32.mrb[4].mxu1 }
 0x5fd   :  { %v747_v56 = vadd.f32 %v746_v54, %v535_v51  ;;  %v748_v57 = vpop.f32.mrb[5].mxu0  ;;  %v789_v58 = vpop.f32.mrb[5].mxu1  ;;  %v5201_v54 = vcombine.high %v1122_v34, %v1130_v40  ;;  %v1219_v34 = vld [vmem:[#allocation20 + $0xc08] sm:$0xff] }
 0x5fe   :  { %v749_v59 = vadd.f32 %v748_v57, %v539_v52  ;;  %v790_v60 = vadd.f32 %v789_v58, %v547_v53  ;;  %v750_v61 = vpop.f32.mrb[6].mxu0  ;;  %v791_v62 = vpop.f32.mrb[6].mxu1  ;;  %v5184_v52 = vcombine.low %v1106_v27, %v1114_v29  ;;  %v5186_v53 = vcombine.low %v1107_v30, %v1115_v31  ;;  %v1138_v57 = vld [vmem:[#allocation20 + $0x980] sm:$0xff] }
 0x5ff   :  { %v794_v63 = vmul.f32 %v747_v56, %v747_v56  ;;  %v751_v0 = vpop.f32.mrb[7].mxu0  ;;  %v792_v1 = vpop.f32.mrb[7].mxu1  ;;  %v1146_v58 = vld [vmem:[#allocation20 + $0x9c0] sm:$0xff]  ;;  %v1155_v62 = vld [vmem:[#allocation20 + $0xa08] sm:$0xff] }
 0x600   :  { %v795_v2 = vmul.f32 %v749_v59, %v749_v59  ;;  %v797_v3 = vmul.f32 %v790_v60, %v790_v60  ;;  %v5217_v41 = vcombine.high %v1138_v57, %v1146_v58  ;;  %v1162_v61 = vld [vmem:[#allocation20 + $0xa40] sm:$0xff]  ;;  %v543_v0 = vrot.slane %v6348_v48, %v6383_v37 }
 0x601   :  { %v798_v4 = vmul.f32 %v794_v63, %v747_v56  ;;  %v1163_v63 = vld [vmem:[#allocation20 + $0xa48] sm:$0xff]  ;;  %v5216_v1 = vcombine.low %v1138_v57, %v1146_v58  ;;  %v1218_v30 = vld [vmem:[#allocation20 + $0xc00] sm:$0xff] }
 0x602   :  { %v799_v5 = vmul.f32 %v795_v2, %v749_v59  ;;  %v801_v6 = vmul.f32 %v797_v3, %v790_v60  ;;  %v1226_v31 = vld [vmem:[#allocation20 + $0xc40] sm:$0xff]  ;;  %v1243_v57 = vld [vmem:[#allocation20 + $0xcc8] sm:$0xff] }
 0x603   :  { %v802_v7 = vmul.f32 0.044715, %v798_v4  ;;  %v5235_v4 = vcombine.high %v1155_v62, %v1163_v63 }
 0x604   :  { %v803_v8 = vmul.f32 0.044715, %v799_v5  ;;  %v805_v9 = vmul.f32 0.044715, %v801_v6  ;;  %v1170_v5 = vld [vmem:[#allocation20 + $0xa80] sm:$0xff] }
 0x605   :  { %v806_v10 = vadd.f32 %v802_v7, %v747_v56  ;;  %v1178_v6 = vld [vmem:[#allocation20 + $0xac0] sm:$0xff]  ;;  %v1171_v7 = vld [vmem:[#allocation20 + $0xa88] sm:$0xff] }
 0x606   :  { %v807_v11 = vadd.f32 %v803_v8, %v749_v59  ;;  %v809_v12 = vadd.f32 %v805_v9, %v790_v60  ;;  %v1179_v8 = vld [vmem:[#allocation20 + $0xac8] sm:$0xff]  ;;  %v6388_v9 = vadd.f32 %v6362_v55, %v543_v0  ;;  %v5249_v48 = vcombine.high %v1170_v5, %v1178_v6 }
 0x607   :  { %v810_v13 = vmul.f32 0.7978846, %v806_v10  ;;  %v5250_v55 = vcombine.low %v1171_v7, %v1179_v8 }
 0x608   :  { %v811_v14 = vmul.f32 0.7978846, %v807_v11  ;;  %v813_v15 = vmul.f32 0.7978846, %v809_v12  ;;  %v5234_v11 = vcombine.low %v1155_v62, %v1163_v63  ;;  %v5251_v12 = vcombine.high %v1171_v7, %v1179_v8 }
 0x609   :  { %5655 = vtanh.f32 %v810_v13  ;;  %v1186_v13 = vld [vmem:[#allocation20 + $0xb00] sm:$0xff] }
 0x60a   :  { %5657 = vtanh.f32 %v811_v14  ;;  %v1194_v14 = vld [vmem:[#allocation20 + $0xb40] sm:$0xff] }
 0x60b   :  { %5659 = vtanh.f32 %v813_v15  ;;  %v1187_v15 = vld [vmem:[#allocation20 + $0xb08] sm:$0xff] }
 0x613   :  { %v5656_v16 = vpop.eup %5655 }
 0x614   :  { %v818_v17 = vadd.f32 1.0, %v5656_v16  ;;  %v5658_v18 = vpop.eup %5657  ;;  %v1195_v16 = vld [vmem:[#allocation20 + $0xb48] sm:$0xff] }
 0x615   :  { %v5660_v19 = vpop.eup %5659  ;;  %v819_v21 = vadd.f32 1.0, %v5658_v18  ;;  %v5248_v18 = vcombine.low %v1170_v5, %v1178_v6  ;;  %v5266_v27 = vcombine.low %v1187_v15, %v1195_v16  ;;  %v1267_v5 = vld [vmem:[#allocation20 + $0xd88] sm:$0xff] }
 0x616   :  { %v822_v20 = vmul.f32 0.5, %v818_v17  ;;  %v821_v22 = vadd.f32 1.0, %v5660_v19  ;;  %v796_v17 = vmul.f32 %v6388_v9, %v6388_v9  ;;  %v5265_v19 = vcombine.high %v1186_v13, %v1194_v14  ;;  %v1275_v6 = vld [vmem:[#allocation20 + $0xdc8] sm:$0xff] }
 0x617   :  { %v823_v23 = vmul.f32 0.5, %v819_v21  ;;  %v1202_v21 = vld [vmem:[#allocation20 + $0xb80] sm:$0xff] }
 0x618   :  { %v826_v24 = vmul.f32 %v822_v20, %v747_v56  ;;  %v825_v25 = vmul.f32 0.5, %v821_v22  ;;  %v5203_v56 = vcombine.high %v1123_v44, %v1131_v45  ;;  %v5267_v20 = vcombine.high %v1187_v15, %v1195_v16  ;;  %v1210_v22 = vld [vmem:[#allocation20 + $0xbc0] sm:$0xff] }
 0x619   :  { %v827_v26 = vmul.f32 %v823_v23, %v749_v59  ;;  %v1139_v59 = vld [vmem:[#allocation20 + $0x988] sm:$0xff]  ;;  %v5280_v40 = vcombine.low %v1202_v21, %v1210_v22  ;;  %v5297_v45 = vcombine.high %v1218_v30, %v1226_v31  ;;  %v5346_v16 = vcombine.low %v1267_v5, %v1275_v6 }
 0x61a   :  { %v829_v28 = vmul.f32 %v825_v25, %v790_v60  ;;  %v6366_v33 = vpack.c.bf16 %v826_v24, %v826_v24  ;;  %v1147_v60 = vld [vmem:[#allocation20 + $0x9c8] sm:$0xff]  ;;  %v800_v25 = vmul.f32 %v796_v17, %v6388_v9 }
 0x61b   :  { %v6364_v32 = vpack.c.bf16 %v827_v26, %v827_v26  ;;  %v5218_v2 = vcombine.low %v1139_v59, %v1147_v60  ;;  %v1203_v23 = vld [vmem:[#allocation20 + $0xb88] sm:$0xff]  ;;  %v5264_v26 = vcombine.low %v1186_v13, %v1194_v14 }
 0x61c   :  { %v6370_v51 = vpack.c.bf16 %v829_v28, %v829_v28  ;;  %v1211_v24 = vld [vmem:[#allocation20 + $0xbc8] sm:$0xff]  ;;  %v5281_v28 = vcombine.high %v1202_v21, %v1210_v22 }
 0x61d   :  { %4022 = vmatprep.mubr.bf16.mxu0 %v6364_v32  ;;  %4104 = vmatprep.mubr.bf16.mxu1 %v6364_v32  ;;  %v5283_v29 = vcombine.high %v1203_v23, %v1211_v24  ;;  %v5282_v44 = vcombine.low %v1203_v23, %v1211_v24  ;;  %v1283_v13 = vld [vmem:[#allocation20 + $0xe08] sm:$0xff] }
 0x61e   :  { %4023 = vmatmul.mubr.bf16.vlgmr.msra.gmra.mrb[8].mxu0 %v6366_v33  ;;  %4105 = vmatmul.mubr.bf16.vlgmr.msra.gmra.mrb[8].mxu1 %v6366_v33  ;;  %v1291_v14 = vld [vmem:[#allocation20 + $0xe48] sm:$0xff] }
 0x61f   :  { %4032 = vmatpush1.bf16.msra.mxu0 %v5168_v42  ;;  %4114 = vmatpush1.bf16.msra.mxu1 %v5170_v43  ;;  %v5219_v42 = vcombine.high %v1139_v59, %v1147_v60  ;;  %v1154_v43 = vld [vmem:[#allocation20 + $0xa00] sm:$0xff]  ;;  %v5296_v59 = vcombine.low %v1218_v30, %v1226_v31  ;;  %v1307_v21 = vld [vmem:[#allocation20 + $0xec8] sm:$0xff]  ;;  %v5362_v23 = vcombine.low %v1283_v13, %v1291_v14 }
 0x620   :  { %4063 = vmatprep.mubr.bf16.mxu0 %v6370_v51  ;;  %4145 = vmatprep.mubr.bf16.mxu1 %v6370_v51  ;;  %v5233_v3 = vcombine.high %v1154_v43, %v1162_v61  ;;  %v5232_v10 = vcombine.low %v1154_v43, %v1162_v61  ;;  %v1251_v43 = vld [vmem:[#allocation20 + $0xd08] sm:$0xff] }
 0x621   :  { %4033 = vmatprep.subr.bf16.mxu0 %v5185_v35  ;;  %4115 = vmatprep.subr.bf16.mxu1 %v5187_v36  ;;  %v1227_v35 = vld [vmem:[#allocation20 + $0xc48] sm:$0xff]  ;;  %v804_v36 = vmul.f32 0.044715, %v800_v25 }
 0x622   :  { %v5298_v60 = vcombine.low %v1219_v34, %v1227_v35  ;;  %v1259_v61 = vld [vmem:[#allocation20 + $0xd48] sm:$0xff] }
 0x623   :  { %4034 = vmatpush1.bf16.msra.mxu0 %v5184_v52  ;;  %4116 = vmatpush1.bf16.msra.mxu1 %v5186_v53  ;;  %v5299_v52 = vcombine.high %v1219_v34, %v1227_v35  ;;  %v1234_v53 = vld [vmem:[#allocation20 + $0xc80] sm:$0xff]  ;;  %v808_v58 = vadd.f32 %v804_v36, %v6388_v9  ;;  %v5330_v8 = vcombine.low %v1251_v43, %v1259_v61  ;;  %v1323_v30 = vld [vmem:[#allocation20 + $0xf48] sm:$0xff] }
 0x624   :  { %4035 = vmatprep.subr.bf16.mxu0 %v5201_v54  ;;  %4117 = vmatprep.subr.bf16.mxu1 %v5203_v56  ;;  %v1242_v54 = vld [vmem:[#allocation20 + $0xcc0] sm:$0xff]  ;;  %v1235_v56 = vld [vmem:[#allocation20 + $0xc88] sm:$0xff] }
 0x625   :  { %v812_v62 = vmul.f32 0.7978846, %v808_v58  ;;  %v5312_v63 = vcombine.low %v1234_v53, %v1242_v54  ;;  %v5314_v0 = vcombine.low %v1235_v56, %v1243_v57 }
 0x627   :  { %4036 = vmatpush1.bf16.msra.mxu0 %v5200_v38  ;;  %4118 = vmatpush1.bf16.msra.mxu1 %v5202_v39  ;;  %v5313_v38 = vcombine.high %v1234_v53, %v1242_v54  ;;  %v5315_v39 = vcombine.high %v1235_v56, %v1243_v57  ;;  %5661 = vtanh.f32 %v812_v62  ;;  %v1339_v53 = vld [vmem:[#allocation20 + $0xfc8] sm:$0xff] }
 0x628   :  { %4037 = vmatprep.subr.bf16.mxu0 %v5217_v41  ;;  %4119 = vmatprep.subr.bf16.mxu1 %v5219_v42  ;;  %v1250_v41 = vld [vmem:[#allocation20 + $0xd00] sm:$0xff] }
 0x629   :  { %v1258_v42 = vld [vmem:[#allocation20 + $0xd40] sm:$0xff] }
 0x62a   :  { %v5328_v7 = vcombine.low %v1250_v41, %v1258_v42 }
 0x62b   :  { %4038 = vmatpush1.bf16.msra.mxu0 %v5216_v1  ;;  %4120 = vmatpush1.bf16.msra.mxu1 %v5218_v2  ;;  %v5329_v1 = vcombine.high %v1250_v41, %v1258_v42  ;;  %v5331_v2 = vcombine.high %v1251_v43, %v1259_v61  ;;  %v845_v41 = vld [vmem:[#allocation20 + $0x58] sm:$0xff] }
 0x62c   :  { %4039 = vmatprep.subr.bf16.mxu0 %v5233_v3  ;;  %4121 = vmatprep.subr.bf16.mxu1 %v5235_v4  ;;  %v1266_v3 = vld [vmem:[#allocation20 + $0xd80] sm:$0xff] }
 0x62d   :  { %v1274_v4 = vld [vmem:[#allocation20 + $0xdc0] sm:$0xff] }
 0x62e   :  { %v5344_v15 = vcombine.low %v1266_v3, %v1274_v4 }
 0x62f   :  { %4040 = vmatpush1.bf16.msra.mxu0 %v5232_v10  ;;  %4122 = vmatpush1.bf16.msra.mxu1 %v5234_v11  ;;  %v5345_v10 = vcombine.high %v1266_v3, %v1274_v4  ;;  %v5347_v11 = vcombine.high %v1267_v5, %v1275_v6  ;;  %v861_v3 = vld [vmem:[#allocation20 + $0xd8] sm:$0xff] }
 0x630   :  { %4041 = vmatprep.subr.bf16.mxu0 %v5249_v48  ;;  %4123 = vmatprep.subr.bf16.mxu1 %v5251_v12  ;;  %v1282_v48 = vld [vmem:[#allocation20 + $0xe00] sm:$0xff] }
 0x631   :  { %v1290_v12 = vld [vmem:[#allocation20 + $0xe40] sm:$0xff] }
 0x632   :  { %v5361_v17 = vcombine.high %v1282_v48, %v1290_v12  ;;  %v5360_v22 = vcombine.low %v1282_v48, %v1290_v12  ;;  %v877_v48 = vld [vmem:[#allocation20 + $0x158] sm:$0xff] }
 0x633   :  { %4042 = vmatpush1.bf16.msra.mxu0 %v5248_v18  ;;  %4124 = vmatpush1.bf16.msra.mxu1 %v5250_v55  ;;  %v5363_v18 = vcombine.high %v1283_v13, %v1291_v14  ;;  %v1298_v55 = vld [vmem:[#allocation20 + $0xe80] sm:$0xff] }
 0x634   :  { %4043 = vmatprep.subr.bf16.mxu0 %v5265_v19  ;;  %4125 = vmatprep.subr.bf16.mxu1 %v5267_v20  ;;  %v1306_v19 = vld [vmem:[#allocation20 + $0xec0] sm:$0xff]  ;;  %v1299_v20 = vld [vmem:[#allocation20 + $0xe88] sm:$0xff] }
 0x635   :  { %v5377_v24 = vcombine.high %v1298_v55, %v1306_v19  ;;  %v5379_v25 = vcombine.high %v1299_v20, %v1307_v21  ;;  %v5376_v31 = vcombine.low %v1298_v55, %v1306_v19  ;;  %v5378_v34 = vcombine.low %v1299_v20, %v1307_v21  ;;  %v893_v55 = vld [vmem:[#allocation20 + $0x1d8] sm:$0xff] }
 0x637   :  { %4044 = vmatpush1.bf16.msra.mxu0 %v5264_v26  ;;  %4126 = vmatpush1.bf16.msra.mxu1 %v5266_v27  ;;  %v1314_v26 = vld [vmem:[#allocation20 + $0xf00] sm:$0xff]  ;;  %v5662_v27 = vpop.eup %5661 }
 0x638   :  { %4045 = vmatprep.subr.bf16.mxu0 %v5281_v28  ;;  %4127 = vmatprep.subr.bf16.mxu1 %v5283_v29  ;;  %v1322_v28 = vld [vmem:[#allocation20 + $0xf40] sm:$0xff]  ;;  %v1315_v29 = vld [vmem:[#allocation20 + $0xf08] sm:$0xff]  ;;  %v820_v35 = vadd.f32 1.0, %v5662_v27 }
 0x639   :  { %v5393_v36 = vcombine.high %v1314_v26, %v1322_v28  ;;  %v5392_v54 = vcombine.low %v1314_v26, %v1322_v28  ;;  %v5394_v56 = vcombine.low %v1315_v29, %v1323_v30  ;;  %v909_v26 = vld [vmem:[#allocation20 + $0x258] sm:$0xff] }
 0x63a   :  { %v824_v57 = vmul.f32 0.5, %v820_v35  ;;  %v917_v35 = vld [vmem:[#allocation20 + $0x298] sm:$0xff] }
 0x63b   :  { %4046 = vmatpush1.bf16.msra.mxu0 %v5280_v40  ;;  %4128 = vmatpush1.bf16.msra.mxu1 %v5282_v44  ;;  %v5395_v40 = vcombine.high %v1315_v29, %v1323_v30  ;;  %v1330_v44 = vld [vmem:[#allocation20 + $0xf80] sm:$0xff] }
 0x63c   :  { %4047 = vmatprep.subr.bf16.mxu0 %v5297_v45  ;;  %4129 = vmatprep.subr.bf16.mxu1 %v5299_v52  ;;  %v1338_v45 = vld [vmem:[#allocation20 + $0xfc0] sm:$0xff]  ;;  %v1331_v52 = vld [vmem:[#allocation20 + $0xf88] sm:$0xff]  ;;  %v828_v61 = vmul.f32 %v824_v57, %v6388_v9  ;;  %v876_v9 = vld [vmem:[#allocation20 + $0x150] sm:$0xff] }
 0x63d   :  { %v5409_v58 = vcombine.high %v1330_v44, %v1338_v45  ;;  %v5408_v42 = vcombine.low %v1330_v44, %v1338_v45  ;;  %v5410_v43 = vcombine.low %v1331_v52, %v1339_v53  ;;  %v941_v57 = vld [vmem:[#allocation20 + $0x358] sm:$0xff] }
 0x63e   :  { %v6395_v5 = vpack.c.bf16 %v828_v61, %v828_v61 }
 0x63f   :  { %4048 = vmatpush1.bf16.msra.mxu0 %v5296_v59  ;;  %4130 = vmatpush1.bf16.msra.mxu1 %v5298_v60  ;;  %v5411_v59 = vcombine.high %v1331_v52, %v1339_v53  ;;  %v836_v60 = vld [vmem:[#allocation20 + $0x10] sm:$0xff] }
 0x640   :  { %4049 = vmatprep.subr.bf16.mxu0 %v5313_v38  ;;  %4131 = vmatprep.subr.bf16.mxu1 %v5315_v39  ;;  %v844_v38 = vld [vmem:[#allocation20 + $0x50] sm:$0xff]  ;;  %v837_v39 = vld [vmem:[#allocation20 + $0x18] sm:$0xff] }
 0x641   :  { %v4917_v62 = vcombine.high %v836_v60, %v844_v38  ;;  %v4916_v4 = vcombine.low %v836_v60, %v844_v38  ;;  %v4918_v6 = vcombine.low %v837_v39, %v845_v41  ;;  %v932_v53 = vld [vmem:[#allocation20 + $0x310] sm:$0xff] }
 0x643   :  { %4050 = vmatpush1.bf16.msra.mxu0 %v5312_v63  ;;  %4132 = vmatpush1.bf16.msra.mxu1 %v5314_v0  ;;  %v4919_v63 = vcombine.high %v837_v39, %v845_v41  ;;  %v852_v0 = vld [vmem:[#allocation20 + $0x90] sm:$0xff] }
 0x644   :  { %4051 = vmatprep.subr.bf16.mxu0 %v5329_v1  ;;  %4133 = vmatprep.subr.bf16.mxu1 %v5331_v2  ;;  %v860_v1 = vld [vmem:[#allocation20 + $0xd0] sm:$0xff]  ;;  %v853_v2 = vld [vmem:[#allocation20 + $0x98] sm:$0xff] }
 0x645   :  { %v4932_v12 = vcombine.low %v852_v0, %v860_v1  ;;  %v4934_v13 = vcombine.low %v853_v2, %v861_v3  ;;  %v948_v39 = vld [vmem:[#allocation20 + $0x390] sm:$0xff] }
 0x646   :  { %v956_v41 = vld [vmem:[#allocation20 + $0x3d0] sm:$0xff] }
 0x647   :  { %4052 = vmatpush1.bf16.msra.mxu0 %v5328_v7  ;;  %4134 = vmatpush1.bf16.msra.mxu1 %v5330_v8  ;;  %v4933_v7 = vcombine.high %v852_v0, %v860_v1  ;;  %v4935_v8 = vcombine.high %v853_v2, %v861_v3  ;;  %v964_v1 = vld [vmem:[#allocation20 + $0x410] sm:$0xff]  ;;  %v965_v3 = vld [vmem:[#allocation20 + $0x418] sm:$0xff] }
 0x648   :  { %4053 = vmatprep.subr.bf16.mxu0 %v5345_v10  ;;  %4135 = vmatprep.subr.bf16.mxu1 %v5347_v11  ;;  %v868_v10 = vld [vmem:[#allocation20 + $0x110] sm:$0xff]  ;;  %v869_v11 = vld [vmem:[#allocation20 + $0x118] sm:$0xff] }
 0x649   :  { %v4949_v14 = vcombine.high %v868_v10, %v876_v9  ;;  %v4948_v19 = vcombine.low %v868_v10, %v876_v9  ;;  %v4950_v20 = vcombine.low %v869_v11, %v877_v48  ;;  %v972_v2 = vld [vmem:[#allocation20 + $0x450] sm:$0xff] }
 0x64a   :  { %v980_v9 = vld [vmem:[#allocation20 + $0x490] sm:$0xff] }
 0x64b   :  { %4054 = vmatpush1.bf16.msra.mxu0 %v5344_v15  ;;  %4136 = vmatpush1.bf16.msra.mxu1 %v5346_v16  ;;  %v4951_v15 = vcombine.high %v869_v11, %v877_v48  ;;  %v884_v16 = vld [vmem:[#allocation20 + $0x190] sm:$0xff]  ;;  %v981_v48 = vld [vmem:[#allocation20 + $0x498] sm:$0xff] }
 0x64c   :  { %4055 = vmatprep.subr.bf16.mxu0 %v5361_v17  ;;  %4137 = vmatprep.subr.bf16.mxu1 %v5363_v18  ;;  %v892_v17 = vld [vmem:[#allocation20 + $0x1d0] sm:$0xff]  ;;  %v885_v18 = vld [vmem:[#allocation20 + $0x198] sm:$0xff] }
 0x64d   :  { %v4965_v21 = vcombine.high %v884_v16, %v892_v17  ;;  %v4964_v27 = vcombine.low %v884_v16, %v892_v17  ;;  %v4966_v28 = vcombine.low %v885_v18, %v893_v55  ;;  %v988_v11 = vld [vmem:[#allocation20 + $0x4d0] sm:$0xff] }
 0x64e   :  { %v996_v17 = vld [vmem:[#allocation20 + $0x510] sm:$0xff] }
 0x64f   :  { %4056 = vmatpush1.bf16.msra.mxu0 %v5360_v22  ;;  %4138 = vmatpush1.bf16.msra.mxu1 %v5362_v23  ;;  %v4967_v22 = vcombine.high %v885_v18, %v893_v55  ;;  %v900_v23 = vld [vmem:[#allocation20 + $0x210] sm:$0xff]  ;;  %v997_v55 = vld [vmem:[#allocation20 + $0x518] sm:$0xff] }
 0x650   :  { %4057 = vmatprep.subr.bf16.mxu0 %v5377_v24  ;;  %4139 = vmatprep.subr.bf16.mxu1 %v5379_v25  ;;  %v908_v24 = vld [vmem:[#allocation20 + $0x250] sm:$0xff]  ;;  %v901_v25 = vld [vmem:[#allocation20 + $0x218] sm:$0xff] }
 0x651   :  { %v4981_v29 = vcombine.high %v900_v23, %v908_v24  ;;  %v4983_v30 = vcombine.high %v901_v25, %v909_v26  ;;  %v4982_v44 = vcombine.low %v901_v25, %v909_v26  ;;  %v1004_v18 = vld [vmem:[#allocation20 + $0x550] sm:$0xff]  ;;  %v1013_v26 = vld [vmem:[#allocation20 + $0x598] sm:$0xff] }
 0x652   :  { %v1020_v25 = vld [vmem:[#allocation20 + $0x5d0] sm:$0xff] }
 0x653   :  { %4058 = vmatpush1.bf16.msra.mxu0 %v5376_v31  ;;  %4140 = vmatpush1.bf16.msra.mxu1 %v5378_v34  ;;  %v916_v31 = vld [vmem:[#allocation20 + $0x290] sm:$0xff] }
 0x654   :  { %4059 = vmatprep.subr.bf16.mxu0 %v5393_v36  ;;  %4141 = vmatprep.subr.bf16.mxu1 %v5395_v40  ;;  %v924_v34 = vld [vmem:[#allocation20 + $0x2d0] sm:$0xff]  ;;  %v925_v36 = vld [vmem:[#allocation20 + $0x2d8] sm:$0xff]  ;;  %v4980_v40 = vcombine.low %v900_v23, %v908_v24 }
 0x655   :  { %v4997_v45 = vcombine.high %v916_v31, %v924_v34  ;;  %v4999_v52 = vcombine.high %v917_v35, %v925_v36  ;;  %v1012_v24 = vld [vmem:[#allocation20 + $0x590] sm:$0xff] }
 0x657   :  { %4060 = vmatpush1.bf16.msra.mxu0 %v5392_v54  ;;  %4142 = vmatpush1.bf16.msra.mxu1 %v5394_v56  ;;  %v940_v54 = vld [vmem:[#allocation20 + $0x350] sm:$0xff]  ;;  %v933_v56 = vld [vmem:[#allocation20 + $0x318] sm:$0xff] }
 0x658   :  { %4061 = vmatprep.subr.bf16.mxu0 %v5409_v58  ;;  %4143 = vmatprep.subr.bf16.mxu1 %v5411_v59  ;;  %v4996_v58 = vcombine.low %v916_v31, %v924_v34  ;;  %v4998_v59 = vcombine.low %v917_v35, %v925_v36  ;;  %v5013_v60 = vcombine.high %v932_v53, %v940_v54  ;;  %v1028_v34 = vld [vmem:[#allocation20 + $0x610] sm:$0xff]  ;;  %v1029_v36 = vld [vmem:[#allocation20 + $0x618] sm:$0xff] }
 0x659   :  { %v5015_v38 = vcombine.high %v933_v56, %v941_v57  ;;  %v5012_v61 = vcombine.low %v932_v53, %v940_v54  ;;  %v1036_v35 = vld [vmem:[#allocation20 + $0x650] sm:$0xff] }
 0x65a   :  { %v1044_v54 = vld [vmem:[#allocation20 + $0x690] sm:$0xff] }
 0x65b   :  { %4062 = vmatpush1.bf16.msra.mxu0 %v5408_v42  ;;  %4144 = vmatpush1.bf16.msra.mxu1 %v5410_v43  ;;  %v949_v42 = vld [vmem:[#allocation20 + $0x398] sm:$0xff] }
 0x65c   :  { %4154 = vmatprep.subr.bf16.mxu0 %v4917_v62  ;;  %4236 = vmatprep.subr.bf16.mxu1 %v4919_v63  ;;  %v957_v43 = vld [vmem:[#allocation20 + $0x3d8] sm:$0xff]  ;;  %v5014_v62 = vcombine.low %v933_v56, %v941_v57  ;;  %v5029_v63 = vcombine.high %v948_v39, %v956_v41  ;;  %v1052_v56 = vld [vmem:[#allocation20 + $0x6d0] sm:$0xff] }
 0x65d   :  { %v5031_v0 = vcombine.high %v949_v42, %v957_v43  ;;  %v1045_v57 = vld [vmem:[#allocation20 + $0x698] sm:$0xff] }
 0x65e   :  { %4064 = vmatmul.mubr.bf16.vlgmr.msra.gmra.mrb[8].mxu0 %v6395_v5  ;;  %4146 = vmatmul.mubr.bf16.vlgmr.msra.gmra.mrb[8].mxu1 %v6395_v5 }
 0x65f   :  { %4155 = vmatpush1.bf16.msra.mxu0 %v4916_v4  ;;  %4186 = vmatprep.mubr.bf16.mxu0 %v6364_v32  ;;  %v973_v4 = vld [vmem:[#allocation20 + $0x458] sm:$0xff] }
 0x660   :  { %4237 = vmatpush1.bf16.msra.mxu1 %v4918_v6  ;;  %4268 = vmatprep.mubr.bf16.mxu1 %v6364_v32  ;;  %v5028_v6 = vcombine.low %v948_v39, %v956_v41  ;;  %v5047_v10 = vcombine.high %v965_v3, %v973_v4  ;;  %v1060_v41 = vld [vmem:[#allocation20 + $0x710] sm:$0xff] }
 0x661   :  { %4156 = vmatprep.subr.bf16.mxu0 %v4933_v7  ;;  %4238 = vmatprep.subr.bf16.mxu1 %v4935_v8  ;;  %v5030_v7 = vcombine.low %v949_v42, %v957_v43  ;;  %v5045_v8 = vcombine.high %v964_v1, %v972_v2  ;;  %v1068_v42 = vld [vmem:[#allocation20 + $0x750] sm:$0xff]  ;;  %v1061_v43 = vld [vmem:[#allocation20 + $0x718] sm:$0xff] }
 0x663   :  { %4157 = vmatpush1.bf16.msra.mxu0 %v4932_v12  ;;  %v989_v12 = vld [vmem:[#allocation20 + $0x4d8] sm:$0xff] }
 0x664   :  { %4239 = vmatpush1.bf16.msra.mxu1 %v4934_v13  ;;  %4158 = vmatprep.subr.bf16.mxu0 %v4949_v14  ;;  %v5044_v13 = vcombine.low %v964_v1, %v972_v2  ;;  %v5046_v14 = vcombine.low %v965_v3, %v973_v4  ;;  %v5063_v16 = vcombine.high %v981_v48, %v989_v12  ;;  %v1076_v2 = vld [vmem:[#allocation20 + $0x790] sm:$0xff]  ;;  %v1077_v4 = vld [vmem:[#allocation20 + $0x798] sm:$0xff] }
 0x665   :  { %4240 = vmatprep.subr.bf16.mxu1 %v4951_v15  ;;  %v5061_v15 = vcombine.high %v980_v9, %v988_v11  ;;  %v1084_v3 = vld [vmem:[#allocation20 + $0x7d0] sm:$0xff] }
 0x667   :  { %4159 = vmatpush1.bf16.msra.mxu0 %v4948_v19  ;;  %v1005_v19 = vld [vmem:[#allocation20 + $0x558] sm:$0xff] }
 0x668   :  { %4241 = vmatpush1.bf16.msra.mxu1 %v4950_v20  ;;  %4160 = vmatprep.subr.bf16.mxu0 %v4965_v21  ;;  %v5060_v20 = vcombine.low %v980_v9, %v988_v11  ;;  %v5062_v21 = vcombine.low %v981_v48, %v989_v12  ;;  %v5079_v23 = vcombine.high %v997_v55, %v1005_v19  ;;  %v1092_v11 = vld [vmem:[#allocation20 + $0x810] sm:$0xff]  ;;  %v1093_v12 = vld [vmem:[#allocation20 + $0x818] sm:$0xff] }
 0x669   :  { %4242 = vmatprep.subr.bf16.mxu1 %v4967_v22  ;;  %v5077_v22 = vcombine.high %v996_v17, %v1004_v18  ;;  %v1100_v48 = vld [vmem:[#allocation20 + $0x850] sm:$0xff] }
 0x66b   :  { %4161 = vmatpush1.bf16.msra.mxu0 %v4964_v27  ;;  %v1021_v27 = vld [vmem:[#allocation20 + $0x5d8] sm:$0xff] }
 0x66c   :  { %4243 = vmatpush1.bf16.msra.mxu1 %v4966_v28  ;;  %4162 = vmatprep.subr.bf16.mxu0 %v4981_v29  ;;  %v5076_v28 = vcombine.low %v996_v17, %v1004_v18  ;;  %v5078_v29 = vcombine.low %v997_v55, %v1005_v19  ;;  %v5095_v31 = vcombine.high %v1013_v26, %v1021_v27  ;;  %v1108_v18 = vld [vmem:[#allocation20 + $0x890] sm:$0xff] }
 0x66d   :  { %4244 = vmatprep.subr.bf16.mxu1 %v4983_v30  ;;  %v5093_v30 = vcombine.high %v1012_v24, %v1020_v25  ;;  %v1116_v55 = vld [vmem:[#allocation20 + $0x8d0] sm:$0xff]  ;;  %v5172_v19 = vcombine.low %v1092_v11, %v1100_v48 }
 0x66f   :  { %4163 = vmatpush1.bf16.msra.mxu0 %v4980_v40  ;;  %v1037_v40 = vld [vmem:[#allocation20 + $0x658] sm:$0xff] }
 0x670   :  { %4245 = vmatpush1.bf16.msra.mxu1 %v4982_v44  ;;  %4164 = vmatprep.subr.bf16.mxu0 %v4997_v45  ;;  %v5092_v44 = vcombine.low %v1012_v24, %v1020_v25  ;;  %v5094_v45 = vcombine.low %v1013_v26, %v1021_v27  ;;  %v5111_v53 = vcombine.high %v1029_v36, %v1037_v40  ;;  %v1124_v24 = vld [vmem:[#allocation20 + $0x910] sm:$0xff]  ;;  %v1125_v27 = vld [vmem:[#allocation20 + $0x918] sm:$0xff] }
 0x671   :  { %4246 = vmatprep.subr.bf16.mxu1 %v4999_v52  ;;  %v5109_v52 = vcombine.high %v1028_v34, %v1036_v35  ;;  %v1132_v25 = vld [vmem:[#allocation20 + $0x950] sm:$0xff] }
 0x673   :  { %4165 = vmatpush1.bf16.msra.mxu0 %v4996_v58  ;;  %v1053_v58 = vld [vmem:[#allocation20 + $0x6d8] sm:$0xff] }
 0x674   :  { %4247 = vmatpush1.bf16.msra.mxu1 %v4998_v59  ;;  %4166 = vmatprep.subr.bf16.mxu0 %v5013_v60  ;;  %v5108_v59 = vcombine.low %v1028_v34, %v1036_v35  ;;  %v5110_v60 = vcombine.low %v1029_v36, %v1037_v40  ;;  %v5127_v39 = vcombine.high %v1045_v57, %v1053_v58  ;;  %v1140_v35 = vld [vmem:[#allocation20 + $0x990] sm:$0xff]  ;;  %v1141_v40 = vld [vmem:[#allocation20 + $0x998] sm:$0xff] }
 0x675   :  { %4248 = vmatprep.subr.bf16.mxu1 %v5015_v38  ;;  %v5125_v38 = vcombine.high %v1044_v54, %v1052_v56  ;;  %v1148_v36 = vld [vmem:[#allocation20 + $0x9d0] sm:$0xff] }
 0x677   :  { %4167 = vmatpush1.bf16.msra.mxu0 %v5012_v61  ;;  %v1069_v61 = vld [vmem:[#allocation20 + $0x758] sm:$0xff] }
 0x678   :  { %4249 = vmatpush1.bf16.msra.mxu1 %v5014_v62  ;;  %4168 = vmatprep.subr.bf16.mxu0 %v5029_v63  ;;  %v5124_v62 = vcombine.low %v1044_v54, %v1052_v56  ;;  %v5126_v63 = vcombine.low %v1045_v57, %v1053_v58  ;;  %v5143_v1 = vcombine.high %v1061_v43, %v1069_v61  ;;  %v1156_v56 = vld [vmem:[#allocation20 + $0xa10] sm:$0xff]  ;;  %v1157_v58 = vld [vmem:[#allocation20 + $0xa18] sm:$0xff] }
 0x679   :  { %4250 = vmatprep.subr.bf16.mxu1 %v5031_v0  ;;  %v5141_v0 = vcombine.high %v1060_v41, %v1068_v42  ;;  %v1164_v57 = vld [vmem:[#allocation20 + $0xa50] sm:$0xff] }
 0x67b   :  { %4169 = vmatpush1.bf16.msra.mxu0 %v5028_v6  ;;  %v1085_v6 = vld [vmem:[#allocation20 + $0x7d8] sm:$0xff] }
 0x67c   :  { %4251 = vmatpush1.bf16.msra.mxu1 %v5030_v7  ;;  %4170 = vmatprep.subr.bf16.mxu0 %v5045_v8  ;;  %v5140_v7 = vcombine.low %v1060_v41, %v1068_v42  ;;  %v5142_v8 = vcombine.low %v1061_v43, %v1069_v61  ;;  %v5159_v9 = vcombine.high %v1077_v4, %v1085_v6  ;;  %v1172_v42 = vld [vmem:[#allocation20 + $0xa90] sm:$0xff]  ;;  %v1173_v61 = vld [vmem:[#allocation20 + $0xa98] sm:$0xff] }
 0x67d   :  { %4252 = vmatprep.subr.bf16.mxu1 %v5047_v10  ;;  %v5157_v10 = vcombine.high %v1076_v2, %v1084_v3  ;;  %v1180_v43 = vld [vmem:[#allocation20 + $0xad0] sm:$0xff] }
 0x67f   :  { %4171 = vmatpush1.bf16.msra.mxu0 %v5044_v13  ;;  %v1101_v13 = vld [vmem:[#allocation20 + $0x858] sm:$0xff] }
 0x680   :  { %4253 = vmatpush1.bf16.msra.mxu1 %v5046_v14  ;;  %4172 = vmatprep.subr.bf16.mxu0 %v5061_v15  ;;  %v5156_v14 = vcombine.low %v1076_v2, %v1084_v3  ;;  %v5158_v15 = vcombine.low %v1077_v4, %v1085_v6  ;;  %v5175_v17 = vcombine.high %v1093_v12, %v1101_v13  ;;  %v1188_v3 = vld [vmem:[#allocation20 + $0xb10] sm:$0xff]  ;;  %v1189_v6 = vld [vmem:[#allocation20 + $0xb18] sm:$0xff] }
 0x681   :  { %4254 = vmatprep.subr.bf16.mxu1 %v5063_v16  ;;  %v5173_v16 = vcombine.high %v1092_v11, %v1100_v48  ;;  %v1196_v4 = vld [vmem:[#allocation20 + $0xb50] sm:$0xff] }
 0x682   :  { %v1204_v48 = vld [vmem:[#allocation20 + $0xb90] sm:$0xff] }
 0x683   :  { %4173 = vmatpush1.bf16.msra.mxu0 %v5060_v20  ;;  %v1109_v20 = vld [vmem:[#allocation20 + $0x898] sm:$0xff] }
 0x684   :  { %4255 = vmatpush1.bf16.msra.mxu1 %v5062_v21  ;;  %4174 = vmatprep.subr.bf16.mxu0 %v5077_v22  ;;  %v1117_v21 = vld [vmem:[#allocation20 + $0x8d8] sm:$0xff]  ;;  %v5174_v22 = vcombine.low %v1093_v12, %v1101_v13  ;;  %v1212_v12 = vld [vmem:[#allocation20 + $0xbd0] sm:$0xff] }
 0x685   :  { %4256 = vmatprep.subr.bf16.mxu1 %v5079_v23  ;;  %v5189_v23 = vcombine.high %v1108_v18, %v1116_v55  ;;  %v5191_v26 = vcombine.high %v1109_v20, %v1117_v21  ;;  %v1205_v13 = vld [vmem:[#allocation20 + $0xb98] sm:$0xff] }
 0x687   :  { %4175 = vmatpush1.bf16.msra.mxu0 %v5076_v28  ;;  %v1133_v28 = vld [vmem:[#allocation20 + $0x958] sm:$0xff] }
 0x688   :  { %4257 = vmatpush1.bf16.msra.mxu1 %v5078_v29  ;;  %4176 = vmatprep.subr.bf16.mxu0 %v5093_v30  ;;  %v5188_v29 = vcombine.low %v1108_v18, %v1116_v55  ;;  %v5190_v30 = vcombine.low %v1109_v20, %v1117_v21  ;;  %v5207_v34 = vcombine.high %v1125_v27, %v1133_v28  ;;  %v1220_v55 = vld [vmem:[#allocation20 + $0xc10] sm:$0xff]  ;;  %v1221_v20 = vld [vmem:[#allocation20 + $0xc18] sm:$0xff] }
 0x689   :  { %4258 = vmatprep.subr.bf16.mxu1 %v5095_v31  ;;  %v5205_v31 = vcombine.high %v1124_v24, %v1132_v25  ;;  %v1229_v21 = vld [vmem:[#allocation20 + $0xc58] sm:$0xff] }
 0x68b   :  { %4177 = vmatpush1.bf16.msra.mxu0 %v5092_v44  ;;  %v1149_v44 = vld [vmem:[#allocation20 + $0x9d8] sm:$0xff] }
 0x68c   :  { %4259 = vmatpush1.bf16.msra.mxu1 %v5094_v45  ;;  %4178 = vmatprep.subr.bf16.mxu0 %v5109_v52  ;;  %v5204_v45 = vcombine.low %v1124_v24, %v1132_v25  ;;  %v5206_v52 = vcombine.low %v1125_v27, %v1133_v28  ;;  %v5223_v54 = vcombine.high %v1141_v40, %v1149_v44  ;;  %v1244_v27 = vld [vmem:[#allocation20 + $0xcd0] sm:$0xff]  ;;  %v1237_v28 = vld [vmem:[#allocation20 + $0xc98] sm:$0xff] }
 0x68d   :  { %4260 = vmatprep.subr.bf16.mxu1 %v5111_v53  ;;  %v5221_v53 = vcombine.high %v1140_v35, %v1148_v36  ;;  %v5303_v25 = vcombine.high %v1221_v20, %v1229_v21 }
 0x68f   :  { %4179 = vmatpush1.bf16.msra.mxu0 %v5108_v59  ;;  %v1165_v59 = vld [vmem:[#allocation20 + $0xa58] sm:$0xff] }
 0x690   :  { %4261 = vmatpush1.bf16.msra.mxu1 %v5110_v60  ;;  %4180 = vmatprep.subr.bf16.mxu0 %v5125_v38  ;;  %v5220_v60 = vcombine.low %v1140_v35, %v1148_v36  ;;  %v5222_v38 = vcombine.low %v1141_v40, %v1149_v44  ;;  %v5239_v41 = vcombine.high %v1157_v58, %v1165_v59  ;;  %v1252_v36 = vld [vmem:[#allocation20 + $0xd10] sm:$0xff]  ;;  %v1253_v44 = vld [vmem:[#allocation20 + $0xd18] sm:$0xff] }
 0x691   :  { %4262 = vmatprep.subr.bf16.mxu1 %v5127_v39  ;;  %v5237_v39 = vcombine.high %v1156_v56, %v1164_v57  ;;  %v1260_v40 = vld [vmem:[#allocation20 + $0xd50] sm:$0xff] }
 0x693   :  { %4181 = vmatpush1.bf16.msra.mxu0 %v5124_v62  ;;  %v1181_v62 = vld [vmem:[#allocation20 + $0xad8] sm:$0xff] }
 0x694   :  { %4263 = vmatpush1.bf16.msra.mxu1 %v5126_v63  ;;  %4182 = vmatprep.subr.bf16.mxu0 %v5141_v0  ;;  %v5236_v63 = vcombine.low %v1156_v56, %v1164_v57  ;;  %v5238_v0 = vcombine.low %v1157_v58, %v1165_v59  ;;  %v5255_v2 = vcombine.high %v1173_v61, %v1181_v62  ;;  %v1268_v57 = vld [vmem:[#allocation20 + $0xd90] sm:$0xff]  ;;  %v1269_v59 = vld [vmem:[#allocation20 + $0xd98] sm:$0xff] }
 0x695   :  { %4264 = vmatprep.subr.bf16.mxu1 %v5143_v1  ;;  %v5253_v1 = vcombine.high %v1172_v42, %v1180_v43  ;;  %v1276_v58 = vld [vmem:[#allocation20 + $0xdd0] sm:$0xff] }
 0x697   :  { %4183 = vmatpush1.bf16.msra.mxu0 %v5140_v7  ;;  %v1197_v7 = vld [vmem:[#allocation20 + $0xb58] sm:$0xff] }
 0x698   :  { %4265 = vmatpush1.bf16.msra.mxu1 %v5142_v8  ;;  %4184 = vmatprep.subr.bf16.mxu0 %v5157_v10  ;;  %v5252_v8 = vcombine.low %v1172_v42, %v1180_v43  ;;  %v5254_v10 = vcombine.low %v1173_v61, %v1181_v62  ;;  %v5271_v11 = vcombine.high %v1189_v6, %v1197_v7  ;;  %v1284_v43 = vld [vmem:[#allocation20 + $0xe10] sm:$0xff]  ;;  %v1285_v62 = vld [vmem:[#allocation20 + $0xe18] sm:$0xff] }
 0x699   :  { %4266 = vmatprep.subr.bf16.mxu1 %v5159_v9  ;;  %v5269_v9 = vcombine.high %v1188_v3, %v1196_v4  ;;  %v1292_v61 = vld [vmem:[#allocation20 + $0xe50] sm:$0xff] }
 0x69b   :  { %4185 = vmatpush1.bf16.msra.mxu0 %v5156_v14  ;;  %v1213_v14 = vld [vmem:[#allocation20 + $0xbd8] sm:$0xff] }
 0x69c   :  { %4267 = vmatpush1.bf16.msra.mxu1 %v5158_v15  ;;  %4195 = vmatprep.subr.bf16.mxu0 %v5173_v16  ;;  %v5268_v15 = vcombine.low %v1188_v3, %v1196_v4  ;;  %v5270_v16 = vcombine.low %v1189_v6, %v1197_v7  ;;  %v5287_v18 = vcombine.high %v1205_v13, %v1213_v14  ;;  %v1300_v4 = vld [vmem:[#allocation20 + $0xe90] sm:$0xff]  ;;  %v1301_v7 = vld [vmem:[#allocation20 + $0xe98] sm:$0xff] }
 0x69d   :  { %4277 = vmatprep.subr.bf16.mxu1 %v5175_v17  ;;  %v5285_v17 = vcombine.high %v1204_v48, %v1212_v12  ;;  %v1308_v6 = vld [vmem:[#allocation20 + $0xed0] sm:$0xff] }
 0x69e   :  { %4187 = vmatmul.mubr.bf16.vlgmr.msra.gmra.mrb[12].mxu0 %v6366_v33 }
 0x69f   :  { %4269 = vmatmul.mubr.bf16.vlgmr.msra.gmra.mrb[12].mxu1 %v6366_v33  ;;  %4196 = vmatpush1.bf16.msra.mxu0 %v5172_v19  ;;  %v1228_v19 = vld [vmem:[#allocation20 + $0xc50] sm:$0xff] }
 0x6a0   :  { %4227 = vmatprep.mubr.bf16.mxu0 %v6370_v51  ;;  %4278 = vmatpush1.bf16.msra.mxu1 %v5174_v22  ;;  %v5284_v22 = vcombine.low %v1204_v48, %v1212_v12  ;;  %v5301_v24 = vcombine.high %v1220_v55, %v1228_v19  ;;  %v1316_v12 = vld [vmem:[#allocation20 + $0xf10] sm:$0xff] }
 0x6a1   :  { %4309 = vmatprep.mubr.bf16.mxu1 %v6370_v51  ;;  %4197 = vmatprep.subr.bf16.mxu0 %v5189_v23  ;;  %v5286_v23 = vcombine.low %v1205_v13, %v1213_v14  ;;  %v1324_v13 = vld [vmem:[#allocation20 + $0xf50] sm:$0xff]  ;;  %v1317_v14 = vld [vmem:[#allocation20 + $0xf18] sm:$0xff] }
 0x6a2   :  { %4279 = vmatprep.subr.bf16.mxu1 %v5191_v26  ;;  %v1236_v26 = vld [vmem:[#allocation20 + $0xc90] sm:$0xff] }
 0x6a3   :  { %4198 = vmatpush1.bf16.msra.mxu0 %v5188_v29  ;;  %v1245_v29 = vld [vmem:[#allocation20 + $0xcd8] sm:$0xff] }
 0x6a4   :  { %4280 = vmatpush1.bf16.msra.mxu1 %v5190_v30  ;;  %4199 = vmatprep.subr.bf16.mxu0 %v5205_v31  ;;  %v5300_v30 = vcombine.low %v1220_v55, %v1228_v19  ;;  %v5302_v31 = vcombine.low %v1221_v20, %v1229_v21  ;;  %v5319_v35 = vcombine.high %v1237_v28, %v1245_v29  ;;  %v1332_v19 = vld [vmem:[#allocation20 + $0xf90] sm:$0xff]  ;;  %v1333_v21 = vld [vmem:[#allocation20 + $0xf98] sm:$0xff] }
 0x6a5   :  { %4281 = vmatprep.subr.bf16.mxu1 %v5207_v34  ;;  %v5317_v34 = vcombine.high %v1236_v26, %v1244_v27  ;;  %v1340_v20 = vld [vmem:[#allocation20 + $0xfd0] sm:$0xff] }
 0x6a7   :  { %4200 = vmatpush1.bf16.msra.mxu0 %v5204_v45  ;;  %v1261_v45 = vld [vmem:[#allocation20 + $0xd58] sm:$0xff] }
 0x6a8   :  { %4282 = vmatpush1.bf16.msra.mxu1 %v5206_v52  ;;  %4201 = vmatprep.subr.bf16.mxu0 %v5221_v53  ;;  %v5316_v52 = vcombine.low %v1236_v26, %v1244_v27  ;;  %v5318_v53 = vcombine.low %v1237_v28, %v1245_v29  ;;  %v5335_v56 = vcombine.high %v1253_v44, %v1261_v45  ;;  %v838_v27 = vld [vmem:[#allocation20 + $0x20] sm:$0xff]  ;;  %v839_v29 = vld [vmem:[#allocation20 + $0x28] sm:$0xff] }
 0x6a9   :  { %4283 = vmatprep.subr.bf16.mxu1 %v5223_v54  ;;  %v5333_v54 = vcombine.high %v1252_v36, %v1260_v40  ;;  %v846_v28 = vld [vmem:[#allocation20 + $0x60] sm:$0xff] }
 0x6ab   :  { %4202 = vmatpush1.bf16.msra.mxu0 %v5220_v60  ;;  %v1277_v60 = vld [vmem:[#allocation20 + $0xdd8] sm:$0xff] }
 0x6ac   :  { %4284 = vmatpush1.bf16.msra.mxu1 %v5222_v38  ;;  %4203 = vmatprep.subr.bf16.mxu0 %v5237_v39  ;;  %v5332_v38 = vcombine.low %v1252_v36, %v1260_v40  ;;  %v5334_v39 = vcombine.low %v1253_v44, %v1261_v45  ;;  %v5351_v42 = vcombine.high %v1269_v59, %v1277_v60  ;;  %v854_v40 = vld [vmem:[#allocation20 + $0xa0] sm:$0xff] }
 0x6ad   :  { %4285 = vmatprep.subr.bf16.mxu1 %v5239_v41  ;;  %v5349_v41 = vcombine.high %v1268_v57, %v1276_v58  ;;  %v862_v44 = vld [vmem:[#allocation20 + $0xe0] sm:$0xff]  ;;  %v4920_v45 = vcombine.low %v838_v27, %v846_v28 }
 0x6af   :  { %4204 = vmatpush1.bf16.msra.mxu0 %v5236_v63  ;;  %v1293_v63 = vld [vmem:[#allocation20 + $0xe58] sm:$0xff] }
 0x6b0   :  { %4286 = vmatpush1.bf16.msra.mxu1 %v5238_v0  ;;  %4205 = vmatprep.subr.bf16.mxu0 %v5253_v1  ;;  %v5348_v0 = vcombine.low %v1268_v57, %v1276_v58  ;;  %v5350_v1 = vcombine.low %v1269_v59, %v1277_v60  ;;  %v5367_v3 = vcombine.high %v1285_v62, %v1293_v63  ;;  %v870_v57 = vld [vmem:[#allocation20 + $0x120] sm:$0xff]  ;;  %v871_v60 = vld [vmem:[#allocation20 + $0x128] sm:$0xff] }
 0x6b1   :  { %4287 = vmatprep.subr.bf16.mxu1 %v5255_v2  ;;  %v5365_v2 = vcombine.high %v1284_v43, %v1292_v61  ;;  %v878_v58 = vld [vmem:[#allocation20 + $0x160] sm:$0xff] }
 0x6b3   :  { %4206 = vmatpush1.bf16.msra.mxu0 %v5252_v8  ;;  %v1309_v8 = vld [vmem:[#allocation20 + $0xed8] sm:$0xff] }
 0x6b4   :  { %4288 = vmatpush1.bf16.msra.mxu1 %v5254_v10  ;;  %4207 = vmatprep.subr.bf16.mxu0 %v5269_v9  ;;  %v5364_v10 = vcombine.low %v1284_v43, %v1292_v61  ;;  %v5366_v9 = vcombine.low %v1285_v62, %v1293_v63  ;;  %v5383_v48 = vcombine.high %v1301_v7, %v1309_v8  ;;  %v886_v61 = vld [vmem:[#allocation20 + $0x1a0] sm:$0xff]  ;;  %v887_v63 = vld [vmem:[#allocation20 + $0x1a8] sm:$0xff] }
 0x6b5   :  { %4289 = vmatprep.subr.bf16.mxu1 %v5271_v11  ;;  %v5381_v11 = vcombine.high %v1300_v4, %v1308_v6  ;;  %v894_v62 = vld [vmem:[#allocation20 + $0x1e0] sm:$0xff] }
 0x6b7   :  { %4208 = vmatpush1.bf16.msra.mxu0 %v5268_v15  ;;  %v1325_v15 = vld [vmem:[#allocation20 + $0xf58] sm:$0xff] }
 0x6b8   :  { %4290 = vmatpush1.bf16.msra.mxu1 %v5270_v16  ;;  %4209 = vmatprep.subr.bf16.mxu0 %v5285_v17  ;;  %v5380_v16 = vcombine.low %v1300_v4, %v1308_v6  ;;  %v5382_v17 = vcombine.low %v1301_v7, %v1309_v8  ;;  %v5399_v55 = vcombine.high %v1317_v14, %v1325_v15  ;;  %v902_v6 = vld [vmem:[#allocation20 + $0x220] sm:$0xff]  ;;  %v903_v8 = vld [vmem:[#allocation20 + $0x228] sm:$0xff] }
 0x6b9   :  { %4291 = vmatprep.subr.bf16.mxu1 %v5287_v18  ;;  %v5397_v18 = vcombine.high %v1316_v12, %v1324_v13  ;;  %v910_v7 = vld [vmem:[#allocation20 + $0x260] sm:$0xff] }
 0x6bb   :  { %4210 = vmatpush1.bf16.msra.mxu0 %v5284_v22  ;;  %v1341_v22 = vld [vmem:[#allocation20 + $0xfd8] sm:$0xff] }
 0x6bc   :  { %4292 = vmatpush1.bf16.msra.mxu1 %v5286_v23  ;;  %4211 = vmatprep.subr.bf16.mxu0 %v5301_v24  ;;  %v5396_v23 = vcombine.low %v1316_v12, %v1324_v13  ;;  %v5398_v24 = vcombine.low %v1317_v14, %v1325_v15  ;;  %v5415_v26 = vcombine.high %v1333_v21, %v1341_v22  ;;  %v918_v13 = vld [vmem:[#allocation20 + $0x2a0] sm:$0xff]  ;;  %v919_v15 = vld [vmem:[#allocation20 + $0x2a8] sm:$0xff] }
 0x6bd   :  { %4293 = vmatprep.subr.bf16.mxu1 %v5303_v25  ;;  %v5413_v25 = vcombine.high %v1332_v19, %v1340_v20  ;;  %v926_v14 = vld [vmem:[#allocation20 + $0x2e0] sm:$0xff] }
 0x6bf   :  { %4212 = vmatpush1.bf16.msra.mxu0 %v5300_v30  ;;  %v847_v30 = vld [vmem:[#allocation20 + $0x68] sm:$0xff] }
 0x6c0   :  { %4294 = vmatpush1.bf16.msra.mxu1 %v5302_v31  ;;  %4213 = vmatprep.subr.bf16.mxu0 %v5317_v34  ;;  %v5412_v31 = vcombine.low %v1332_v19, %v1340_v20  ;;  %v5414_v34 = vcombine.low %v1333_v21, %v1341_v22  ;;  %v4923_v36 = vcombine.high %v839_v29, %v847_v30  ;;  %v934_v20 = vld [vmem:[#allocation20 + $0x320] sm:$0xff]  ;;  %v935_v22 = vld [vmem:[#allocation20 + $0x328] sm:$0xff] }
 0x6c1   :  { %4295 = vmatprep.subr.bf16.mxu1 %v5319_v35  ;;  %v4921_v35 = vcombine.high %v838_v27, %v846_v28  ;;  %v942_v21 = vld [vmem:[#allocation20 + $0x360] sm:$0xff] }
 0x6c2   :  { %v950_v28 = vld [vmem:[#allocation20 + $0x3a0] sm:$0xff] }
 0x6c3   :  { %4214 = vmatpush1.bf16.msra.mxu0 %v5316_v52  ;;  %v855_v52 = vld [vmem:[#allocation20 + $0xa8] sm:$0xff] }
 0x6c4   :  { %4296 = vmatpush1.bf16.msra.mxu1 %v5318_v53  ;;  %4215 = vmatprep.subr.bf16.mxu0 %v5333_v54  ;;  %v863_v53 = vld [vmem:[#allocation20 + $0xe8] sm:$0xff]  ;;  %v4922_v54 = vcombine.low %v839_v29, %v847_v30  ;;  %v958_v29 = vld [vmem:[#allocation20 + $0x3e0] sm:$0xff] }
 0x6c5   :  { %4297 = vmatprep.subr.bf16.mxu1 %v5335_v56  ;;  %v4937_v56 = vcombine.high %v854_v40, %v862_v44  ;;  %v4939_v59 = vcombine.high %v855_v52, %v863_v53  ;;  %v951_v30 = vld [vmem:[#allocation20 + $0x3a8] sm:$0xff] }
 0x6c7   :  { %4216 = vmatpush1.bf16.msra.mxu0 %v5332_v38  ;;  %v879_v38 = vld [vmem:[#allocation20 + $0x168] sm:$0xff] }
 0x6c8   :  { %4298 = vmatpush1.bf16.msra.mxu1 %v5334_v39  ;;  %4217 = vmatprep.subr.bf16.mxu0 %v5349_v41  ;;  %v4936_v39 = vcombine.low %v854_v40, %v862_v44  ;;  %v4938_v41 = vcombine.low %v855_v52, %v863_v53  ;;  %v4955_v43 = vcombine.high %v871_v60, %v879_v38  ;;  %v966_v44 = vld [vmem:[#allocation20 + $0x420] sm:$0xff]  ;;  %v967_v52 = vld [vmem:[#allocation20 + $0x428] sm:$0xff] }
 0x6c9   :  { %4299 = vmatprep.subr.bf16.mxu1 %v5351_v42  ;;  %v4953_v42 = vcombine.high %v870_v57, %v878_v58  ;;  %v975_v53 = vld [vmem:[#allocation20 + $0x468] sm:$0xff] }
 0x6cb   :  { %4218 = vmatpush1.bf16.msra.mxu0 %v5348_v0  ;;  %v895_v0 = vld [vmem:[#allocation20 + $0x1e8] sm:$0xff] }
 0x6cc   :  { %4300 = vmatpush1.bf16.msra.mxu1 %v5350_v1  ;;  %4219 = vmatprep.subr.bf16.mxu0 %v5365_v2  ;;  %v4952_v1 = vcombine.low %v870_v57, %v878_v58  ;;  %v4954_v2 = vcombine.low %v871_v60, %v879_v38  ;;  %v4971_v4 = vcombine.high %v887_v63, %v895_v0  ;;  %v990_v60 = vld [vmem:[#allocation20 + $0x4e0] sm:$0xff]  ;;  %v983_v38 = vld [vmem:[#allocation20 + $0x4a8] sm:$0xff] }
 0x6cd   :  { %4301 = vmatprep.subr.bf16.mxu1 %v5367_v3  ;;  %v4969_v3 = vcombine.high %v886_v61, %v894_v62  ;;  %v5051_v58 = vcombine.high %v967_v52, %v975_v53 }
 0x6cf   :  { %4220 = vmatpush1.bf16.msra.mxu0 %v5364_v10  ;;  %v911_v10 = vld [vmem:[#allocation20 + $0x268] sm:$0xff] }
 0x6d0   :  { %4302 = vmatpush1.bf16.msra.mxu1 %v5366_v9  ;;  %4221 = vmatprep.subr.bf16.mxu0 %v5381_v11  ;;  %v4968_v9 = vcombine.low %v886_v61, %v894_v62  ;;  %v4970_v11 = vcombine.low %v887_v63, %v895_v0  ;;  %v4987_v12 = vcombine.high %v903_v8, %v911_v10  ;;  %v998_v62 = vld [vmem:[#allocation20 + $0x520] sm:$0xff]  ;;  %v999_v0 = vld [vmem:[#allocation20 + $0x528] sm:$0xff] }
 0x6d1   :  { %4303 = vmatprep.subr.bf16.mxu1 %v5383_v48  ;;  %v4985_v48 = vcombine.high %v902_v6, %v910_v7  ;;  %v1006_v63 = vld [vmem:[#allocation20 + $0x560] sm:$0xff] }
 0x6d3   :  { %4222 = vmatpush1.bf16.msra.mxu0 %v5380_v16  ;;  %v927_v16 = vld [vmem:[#allocation20 + $0x2e8] sm:$0xff] }
 0x6d4   :  { %4304 = vmatpush1.bf16.msra.mxu1 %v5382_v17  ;;  %4223 = vmatprep.subr.bf16.mxu0 %v5397_v18  ;;  %v4984_v17 = vcombine.low %v902_v6, %v910_v7  ;;  %v4986_v18 = vcombine.low %v903_v8, %v911_v10  ;;  %v5003_v19 = vcombine.high %v919_v15, %v927_v16  ;;  %v1014_v7 = vld [vmem:[#allocation20 + $0x5a0] sm:$0xff]  ;;  %v1015_v10 = vld [vmem:[#allocation20 + $0x5a8] sm:$0xff] }
 0x6d5   :  { %4305 = vmatprep.subr.bf16.mxu1 %v5399_v55  ;;  %v5001_v55 = vcombine.high %v918_v13, %v926_v14  ;;  %v1022_v8 = vld [vmem:[#allocation20 + $0x5e0] sm:$0xff] }
 0x6d7   :  { %4224 = vmatpush1.bf16.msra.mxu0 %v5396_v23  ;;  %v943_v23 = vld [vmem:[#allocation20 + $0x368] sm:$0xff] }
 0x6d8   :  { %4306 = vmatpush1.bf16.msra.mxu1 %v5398_v24  ;;  %4225 = vmatprep.subr.bf16.mxu0 %v5413_v25  ;;  %v5000_v24 = vcombine.low %v918_v13, %v926_v14  ;;  %v5002_v25 = vcombine.low %v919_v15, %v927_v16  ;;  %v5019_v27 = vcombine.high %v935_v22, %v943_v23  ;;  %v1030_v14 = vld [vmem:[#allocation20 + $0x620] sm:$0xff]  ;;  %v1031_v16 = vld [vmem:[#allocation20 + $0x628] sm:$0xff] }
 0x6d9   :  { %4307 = vmatprep.subr.bf16.mxu1 %v5415_v26  ;;  %v5017_v26 = vcombine.high %v934_v20, %v942_v21  ;;  %v1038_v15 = vld [vmem:[#allocation20 + $0x660] sm:$0xff] }
 0x6db   :  { %4226 = vmatpush1.bf16.msra.mxu0 %v5412_v31  ;;  %v959_v31 = vld [vmem:[#allocation20 + $0x3e8] sm:$0xff] }
 0x6dc   :  { %4308 = vmatpush1.bf16.msra.mxu1 %v5414_v34  ;;  %4318 = vmatprep.subr.bf16.mxu0 %v4921_v35  ;;  %v5016_v34 = vcombine.low %v934_v20, %v942_v21  ;;  %v5018_v35 = vcombine.low %v935_v22, %v943_v23  ;;  %v5035_v40 = vcombine.high %v951_v30, %v959_v31  ;;  %v1046_v21 = vld [vmem:[#allocation20 + $0x6a0] sm:$0xff]  ;;  %v1047_v23 = vld [vmem:[#allocation20 + $0x6a8] sm:$0xff] }
 0x6dd   :  { %4400 = vmatprep.subr.bf16.mxu1 %v4923_v36  ;;  %v5033_v36 = vcombine.high %v950_v28, %v958_v29  ;;  %v1054_v22 = vld [vmem:[#allocation20 + $0x6e0] sm:$0xff] }
 0x6de   :  { %4228 = vmatmul.mubr.bf16.vlgmr.msra.gmra.mrb[12].mxu0 %v6395_v5 }
 0x6df   :  { %4310 = vmatmul.mubr.bf16.vlgmr.msra.gmra.mrb[12].mxu1 %v6395_v5  ;;  %4319 = vmatpush1.bf16.msra.mxu0 %v4920_v45  ;;  %v974_v45 = vld [vmem:[#allocation20 + $0x460] sm:$0xff] }
 0x6e0   :  { %4350 = vmatprep.mubr.bf16.mxu0 %v6364_v32  ;;  %4401 = vmatpush1.bf16.msra.mxu1 %v4922_v54  ;;  %v5032_v54 = vcombine.low %v950_v28, %v958_v29  ;;  %v5049_v57 = vcombine.high %v966_v44, %v974_v45  ;;  %v1062_v29 = vld [vmem:[#allocation20 + $0x720] sm:$0xff] }
 0x6e1   :  { %4432 = vmatprep.mubr.bf16.mxu1 %v6364_v32  ;;  %4320 = vmatprep.subr.bf16.mxu0 %v4937_v56  ;;  %v5034_v56 = vcombine.low %v951_v30, %v959_v31  ;;  %v1070_v30 = vld [vmem:[#allocation20 + $0x760] sm:$0xff]  ;;  %v1063_v31 = vld [vmem:[#allocation20 + $0x728] sm:$0xff] }
 0x6e2   :  { %4402 = vmatprep.subr.bf16.mxu1 %v4939_v59  ;;  %v982_v59 = vld [vmem:[#allocation20 + $0x4a0] sm:$0xff] }
 0x6e3   :  { %4321 = vmatpush1.bf16.msra.mxu0 %v4936_v39  ;;  %v991_v39 = vld [vmem:[#allocation20 + $0x4e8] sm:$0xff] }
 0x6e4   :  { %4403 = vmatpush1.bf16.msra.mxu1 %v4938_v41  ;;  %4322 = vmatprep.subr.bf16.mxu0 %v4953_v42  ;;  %v5048_v41 = vcombine.low %v966_v44, %v974_v45  ;;  %v5050_v42 = vcombine.low %v967_v52, %v975_v53  ;;  %v5067_v61 = vcombine.high %v983_v38, %v991_v39  ;;  %v1078_v45 = vld [vmem:[#allocation20 + $0x7a0] sm:$0xff]  ;;  %v1079_v53 = vld [vmem:[#allocation20 + $0x7a8] sm:$0xff] }
 0x6e5   :  { %4404 = vmatprep.subr.bf16.mxu1 %v4955_v43  ;;  %v5065_v43 = vcombine.high %v982_v59, %v990_v60  ;;  %v1086_v52 = vld [vmem:[#allocation20 + $0x7e0] sm:$0xff] }
 0x6e7   :  { %4323 = vmatpush1.bf16.msra.mxu0 %v4952_v1  ;;  %v1007_v1 = vld [vmem:[#allocation20 + $0x568] sm:$0xff] }
 0x6e8   :  { %4405 = vmatpush1.bf16.msra.mxu1 %v4954_v2  ;;  %4324 = vmatprep.subr.bf16.mxu0 %v4969_v3  ;;  %v5064_v2 = vcombine.low %v982_v59, %v990_v60  ;;  %v5066_v3 = vcombine.low %v983_v38, %v991_v39  ;;  %v5083_v6 = vcombine.high %v999_v0, %v1007_v1  ;;  %v1094_v60 = vld [vmem:[#allocation20 + $0x820] sm:$0xff]  ;;  %v1095_v39 = vld [vmem:[#allocation20 + $0x828] sm:$0xff] }
 0x6e9   :  { %4406 = vmatprep.subr.bf16.mxu1 %v4971_v4  ;;  %v5081_v4 = vcombine.high %v998_v62, %v1006_v63  ;;  %v1102_v38 = vld [vmem:[#allocation20 + $0x860] sm:$0xff] }
 0x6eb   :  { %4325 = vmatpush1.bf16.msra.mxu0 %v4968_v9  ;;  %v1023_v9 = vld [vmem:[#allocation20 + $0x5e8] sm:$0xff] }
 0x6ec   :  { %4407 = vmatpush1.bf16.msra.mxu1 %v4970_v11  ;;  %4326 = vmatprep.subr.bf16.mxu0 %v4985_v48  ;;  %v5080_v11 = vcombine.low %v998_v62, %v1006_v63  ;;  %v5082_v48 = vcombine.low %v999_v0, %v1007_v1  ;;  %v5099_v13 = vcombine.high %v1015_v10, %v1023_v9  ;;  %v1110_v63 = vld [vmem:[#allocation20 + $0x8a0] sm:$0xff] }
 0x6ed   :  { %4408 = vmatprep.subr.bf16.mxu1 %v4987_v12  ;;  %v5097_v12 = vcombine.high %v1014_v7, %v1022_v8  ;;  %v1118_v0 = vld [vmem:[#allocation20 + $0x8e0] sm:$0xff]  ;;  %v5176_v1 = vcombine.low %v1094_v60, %v1102_v38 }
 0x6ef   :  { %4327 = vmatpush1.bf16.msra.mxu0 %v4984_v17  ;;  %v1039_v17 = vld [vmem:[#allocation20 + $0x668] sm:$0xff] }
 0x6f0   :  { %4409 = vmatpush1.bf16.msra.mxu1 %v4986_v18  ;;  %4328 = vmatprep.subr.bf16.mxu0 %v5001_v55  ;;  %v5096_v18 = vcombine.low %v1014_v7, %v1022_v8  ;;  %v5098_v55 = vcombine.low %v1015_v10, %v1023_v9  ;;  %v5115_v20 = vcombine.high %v1031_v16, %v1039_v17  ;;  %v1126_v7 = vld [vmem:[#allocation20 + $0x920] sm:$0xff]  ;;  %v1127_v9 = vld [vmem:[#allocation20 + $0x928] sm:$0xff] }
 0x6f1   :  { %4410 = vmatprep.subr.bf16.mxu1 %v5003_v19  ;;  %v5113_v19 = vcombine.high %v1030_v14, %v1038_v15  ;;  %v1134_v8 = vld [vmem:[#allocation20 + $0x960] sm:$0xff] }
 0x6f3   :  { %4329 = vmatpush1.bf16.msra.mxu0 %v5000_v24  ;;  %v1055_v24 = vld [vmem:[#allocation20 + $0x6e8] sm:$0xff] }
 0x6f4   :  { %4411 = vmatpush1.bf16.msra.mxu1 %v5002_v25  ;;  %4330 = vmatprep.subr.bf16.mxu0 %v5017_v26  ;;  %v5112_v25 = vcombine.low %v1030_v14, %v1038_v15  ;;  %v5114_v26 = vcombine.low %v1031_v16, %v1039_v17  ;;  %v5131_v28 = vcombine.high %v1047_v23, %v1055_v24  ;;  %v1142_v15 = vld [vmem:[#allocation20 + $0x9a0] sm:$0xff]  ;;  %v1143_v17 = vld [vmem:[#allocation20 + $0x9a8] sm:$0xff] }
 0x6f5   :  { %4412 = vmatprep.subr.bf16.mxu1 %v5019_v27  ;;  %v5129_v27 = vcombine.high %v1046_v21, %v1054_v22  ;;  %v1150_v16 = vld [vmem:[#allocation20 + $0x9e0] sm:$0xff] }
 0x6f7   :  { %4331 = vmatpush1.bf16.msra.mxu0 %v5016_v34  ;;  %v1071_v34 = vld [vmem:[#allocation20 + $0x768] sm:$0xff] }
 0x6f8   :  { %4413 = vmatpush1.bf16.msra.mxu1 %v5018_v35  ;;  %4332 = vmatprep.subr.bf16.mxu0 %v5033_v36  ;;  %v5128_v35 = vcombine.low %v1046_v21, %v1054_v22  ;;  %v5130_v36 = vcombine.low %v1047_v23, %v1055_v24  ;;  %v5147_v44 = vcombine.high %v1063_v31, %v1071_v34  ;;  %v1158_v22 = vld [vmem:[#allocation20 + $0xa20] sm:$0xff]  ;;  %v1159_v24 = vld [vmem:[#allocation20 + $0xa28] sm:$0xff] }
 0x6f9   :  { %4414 = vmatprep.subr.bf16.mxu1 %v5035_v40  ;;  %v5145_v40 = vcombine.high %v1062_v29, %v1070_v30  ;;  %v1166_v23 = vld [vmem:[#allocation20 + $0xa60] sm:$0xff] }
 0x6fb   :  { %4333 = vmatpush1.bf16.msra.mxu0 %v5032_v54  ;;  %v1087_v54 = vld [vmem:[#allocation20 + $0x7e8] sm:$0xff] }
 0x6fc   :  { %4415 = vmatpush1.bf16.msra.mxu1 %v5034_v56  ;;  %4334 = vmatprep.subr.bf16.mxu0 %v5049_v57  ;;  %v5144_v56 = vcombine.low %v1062_v29, %v1070_v30  ;;  %v5146_v57 = vcombine.low %v1063_v31, %v1071_v34  ;;  %v5163_v59 = vcombine.high %v1079_v53, %v1087_v54  ;;  %v1174_v30 = vld [vmem:[#allocation20 + $0xaa0] sm:$0xff]  ;;  %v1175_v34 = vld [vmem:[#allocation20 + $0xaa8] sm:$0xff] }
 0x6fd   :  { %4416 = vmatprep.subr.bf16.mxu1 %v5051_v58  ;;  %v5161_v58 = vcombine.high %v1078_v45, %v1086_v52  ;;  %v1182_v31 = vld [vmem:[#allocation20 + $0xae0] sm:$0xff] }
 0x6ff   :  { %4335 = vmatpush1.bf16.msra.mxu0 %v5048_v41  ;;  %v1103_v41 = vld [vmem:[#allocation20 + $0x868] sm:$0xff] }
 0x700   :  { %4417 = vmatpush1.bf16.msra.mxu1 %v5050_v42  ;;  %4336 = vmatprep.subr.bf16.mxu0 %v5065_v43  ;;  %v5160_v42 = vcombine.low %v1078_v45, %v1086_v52  ;;  %v5162_v43 = vcombine.low %v1079_v53, %v1087_v54  ;;  %v5179_v62 = vcombine.high %v1095_v39, %v1103_v41  ;;  %v1190_v53 = vld [vmem:[#allocation20 + $0xb20] sm:$0xff] }
 0x701   :  { %4418 = vmatprep.subr.bf16.mxu1 %v5067_v61  ;;  %v5177_v61 = vcombine.high %v1094_v60, %v1102_v38  ;;  %v5257_v45 = vcombine.high %v1174_v30, %v1182_v31  ;;  %v1198_v54 = vld [vmem:[#allocation20 + $0xb60] sm:$0xff] }
 0x703   :  { %4337 = vmatpush1.bf16.msra.mxu0 %v5064_v2  ;;  %v1111_v2 = vld [vmem:[#allocation20 + $0x8a8] sm:$0xff] }
 0x704   :  { %4419 = vmatpush1.bf16.msra.mxu1 %v5066_v3  ;;  %4338 = vmatprep.subr.bf16.mxu0 %v5081_v4  ;;  %v1119_v3 = vld [vmem:[#allocation20 + $0x8e8] sm:$0xff]  ;;  %v5178_v4 = vcombine.low %v1095_v39, %v1103_v41  ;;  %v5256_v39 = vcombine.low %v1174_v30, %v1182_v31 }
 0x705   :  { %4420 = vmatprep.subr.bf16.mxu1 %v5083_v6  ;;  %v5193_v6 = vcombine.high %v1110_v63, %v1118_v0  ;;  %v5195_v10 = vcombine.high %v1111_v2, %v1119_v3 }
 0x707   :  { %4339 = vmatpush1.bf16.msra.mxu0 %v5080_v11  ;;  %v1135_v11 = vld [vmem:[#allocation20 + $0x968] sm:$0xff] }
 0x708   :  { %4421 = vmatpush1.bf16.msra.mxu1 %v5082_v48  ;;  %4340 = vmatprep.subr.bf16.mxu0 %v5097_v12  ;;  %v5192_v48 = vcombine.low %v1110_v63, %v1118_v0  ;;  %v5194_v12 = vcombine.low %v1111_v2, %v1119_v3  ;;  %v5211_v14 = vcombine.high %v1127_v9, %v1135_v11  ;;  %v1206_v63 = vld [vmem:[#allocation20 + $0xba0] sm:$0xff] }
 0x709   :  { %4422 = vmatprep.subr.bf16.mxu1 %v5099_v13  ;;  %v5209_v13 = vcombine.high %v1126_v7, %v1134_v8  ;;  %v1214_v0 = vld [vmem:[#allocation20 + $0xbe0] sm:$0xff] }
 0x70b   :  { %4341 = vmatpush1.bf16.msra.mxu0 %v5096_v18  ;;  %v1151_v18 = vld [vmem:[#allocation20 + $0x9e8] sm:$0xff] }
 0x70c   :  { %4423 = vmatpush1.bf16.msra.mxu1 %v5098_v55  ;;  %4342 = vmatprep.subr.bf16.mxu0 %v5113_v19  ;;  %v5208_v55 = vcombine.low %v1126_v7, %v1134_v8  ;;  %v5210_v19 = vcombine.low %v1127_v9, %v1135_v11  ;;  %v5227_v21 = vcombine.high %v1143_v17, %v1151_v18  ;;  %v1215_v7 = vld [vmem:[#allocation20 + $0xbe8] sm:$0xff] }
 0x70d   :  { %4424 = vmatprep.subr.bf16.mxu1 %v5115_v20  ;;  %v5225_v20 = vcombine.high %v1142_v15, %v1150_v16 }
 0x70f   :  { %4343 = vmatpush1.bf16.msra.mxu0 %v5112_v25  ;;  %v1167_v25 = vld [vmem:[#allocation20 + $0xa68] sm:$0xff] }
 0x710   :  { %4425 = vmatpush1.bf16.msra.mxu1 %v5114_v26  ;;  %4344 = vmatprep.subr.bf16.mxu0 %v5129_v27  ;;  %v5224_v26 = vcombine.low %v1142_v15, %v1150_v16  ;;  %v5226_v27 = vcombine.low %v1143_v17, %v1151_v18  ;;  %v5243_v29 = vcombine.high %v1159_v24, %v1167_v25 }
 0x711   :  { %4426 = vmatprep.subr.bf16.mxu1 %v5131_v28  ;;  %v5241_v28 = vcombine.high %v1158_v22, %v1166_v23  ;;  %v5289_v17 = vcombine.high %v1206_v63, %v1214_v0 }
 0x713   :  { %4345 = vmatpush1.bf16.msra.mxu0 %v5128_v35  ;;  %v1183_v35 = vld [vmem:[#allocation20 + $0xae8] sm:$0xff] }
 0x714   :  { %4427 = vmatpush1.bf16.msra.mxu1 %v5130_v36  ;;  %4346 = vmatprep.subr.bf16.mxu0 %v5145_v40  ;;  %v5240_v36 = vcombine.low %v1158_v22, %v1166_v23  ;;  %v6413_v40 = vld [vmem:[#allocation22] sm:$0xff]  ;;  %v5259_v52 = vcombine.high %v1175_v34, %v1183_v35  ;;  %v5258_v41 = vcombine.low %v1175_v34, %v1183_v35 }
 0x715   :  { %4428 = vmatprep.subr.bf16.mxu1 %v5147_v44  ;;  %v5242_v44 = vcombine.low %v1159_v24, %v1167_v25  ;;  %v1357_v60 = vrot.slane %v6413_v40, %v6351_v49  ;;  %v1365_v38 = vrot.slane %v6413_v40, %v6354_v50  ;;  %v1223_v24 = vld [vmem:[#allocation20 + $0xc28] sm:$0xff] }
 0x716   :  { %v1231_v25 = vld [vmem:[#allocation20 + $0xc68] sm:$0xff] }
 0x717   :  { %4347 = vmatpush1.bf16.msra.mxu0 %v5144_v56  ;;  %v1353_v56 = vrot.slane %v6413_v40, %v6346_v47 }
 0x718   :  { %4429 = vmatpush1.bf16.msra.mxu1 %v5146_v57  ;;  %4348 = vmatprep.subr.bf16.mxu0 %v5161_v58  ;;  %v1361_v57 = vrot.slane %v6413_v40, %v6383_v37  ;;  %v1191_v58 = vld [vmem:[#allocation20 + $0xb28] sm:$0xff] }
 0x719   :  { %4430 = vmatprep.subr.bf16.mxu1 %v5163_v59  ;;  %v1199_v59 = vld [vmem:[#allocation20 + $0xb68] sm:$0xff] }
 0x71b   :  { %4349 = vmatpush1.bf16.msra.mxu0 %v5160_v42  ;;  %v5273_v42 = vcombine.high %v1190_v53, %v1198_v54 }
 0x71c   :  { %4431 = vmatpush1.bf16.msra.mxu1 %v5162_v43  ;;  %4359 = vmatprep.subr.bf16.mxu0 %v5177_v61 }
 0x71d   :  { %4441 = vmatprep.subr.bf16.mxu1 %v5179_v62  ;;  %v5275_v62 = vcombine.high %v1191_v58, %v1199_v59 }
 0x71e   :  { %4351 = vmatmul.mubr.bf16.vlgmr.msra.gmra.mrb[16].mxu0 %v6366_v33 }
 0x71f   :  { %4433 = vmatmul.mubr.bf16.vlgmr.msra.gmra.mrb[16].mxu1 %v6366_v33  ;;  %4360 = vmatpush1.bf16.msra.mxu0 %v5176_v1 }
 0x720   :  { %4391 = vmatprep.mubr.bf16.mxu0 %v6370_v51  ;;  %4442 = vmatpush1.bf16.msra.mxu1 %v5178_v4 }
 0x721   :  { %4473 = vmatprep.mubr.bf16.mxu1 %v6370_v51  ;;  %4361 = vmatprep.subr.bf16.mxu0 %v5193_v6  ;;  %v1207_v6 = vld [vmem:[#allocation20 + $0xba8] sm:$0xff] }
 0x722   :  { %4443 = vmatprep.subr.bf16.mxu1 %v5195_v10  ;;  %v5290_v31 = vcombine.low %v1207_v6, %v1215_v7 }
 0x723   :  { %4362 = vmatpush1.bf16.msra.mxu0 %v5192_v48  ;;  %v5272_v48 = vcombine.low %v1190_v53, %v1198_v54 }
 0x724   :  { %4444 = vmatpush1.bf16.msra.mxu1 %v5194_v12  ;;  %4363 = vmatprep.subr.bf16.mxu0 %v5209_v13  ;;  %v5274_v12 = vcombine.low %v1191_v58, %v1199_v59 }
 0x725   :  { %4445 = vmatprep.subr.bf16.mxu1 %v5211_v14 }
 0x727   :  { %4364 = vmatpush1.bf16.msra.mxu0 %v5208_v55 }
 0x728   :  { %4446 = vmatpush1.bf16.msra.mxu1 %v5210_v19  ;;  %4365 = vmatprep.subr.bf16.mxu0 %v5225_v20  ;;  %v5291_v19 = vcombine.high %v1207_v6, %v1215_v7  ;;  %v1222_v20 = vld [vmem:[#allocation20 + $0xc20] sm:$0xff] }
 0x729   :  { %4447 = vmatprep.subr.bf16.mxu1 %v5227_v21  ;;  %v1230_v21 = vld [vmem:[#allocation20 + $0xc60] sm:$0xff] }
 0x72a   :  { %v5305_v34 = vcombine.high %v1222_v20, %v1230_v21 }
 0x72b   :  { %4366 = vmatpush1.bf16.msra.mxu0 %v5224_v26 }
 0x72c   :  { %4448 = vmatpush1.bf16.msra.mxu1 %v5226_v27  ;;  %4367 = vmatprep.subr.bf16.mxu0 %v5241_v28  ;;  %v5288_v28 = vcombine.low %v1206_v63, %v1214_v0  ;;  %v1254_v63 = vld [vmem:[#allocation20 + $0xd20] sm:$0xff] }
 0x72d   :  { %4449 = vmatprep.subr.bf16.mxu1 %v5243_v29  ;;  %v1262_v0 = vld [vmem:[#allocation20 + $0xd60] sm:$0xff] }
 0x72f   :  { %4368 = vmatpush1.bf16.msra.mxu0 %v5240_v36 }
 0x730   :  { %4450 = vmatpush1.bf16.msra.mxu1 %v5242_v44  ;;  %4369 = vmatprep.subr.bf16.mxu0 %v5257_v45  ;;  %v5307_v44 = vcombine.high %v1223_v24, %v1231_v25  ;;  %v1238_v45 = vld [vmem:[#allocation20 + $0xca0] sm:$0xff] }
 0x731   :  { %v4065_v43 = vpop.f32.mrb[8].mxu0  ;;  %v4147_v61 = vpop.f32.mrb[8].mxu1  ;;  %4451 = vmatprep.subr.bf16.mxu1 %v5259_v52  ;;  %v1246_v52 = vld [vmem:[#allocation20 + $0xce0] sm:$0xff] }
 0x732   :  { %v6423_v1 = vadd.f32 %v4065_v43, %v1353_v56  ;;  %v6425_v2 = vadd.f32 %v4147_v61, %v1361_v57  ;;  %v4067_v3 = vpop.f32.mrb[9].mxu0  ;;  %v4149_v4 = vpop.f32.mrb[9].mxu1  ;;  %v1239_v56 = vld [vmem:[#allocation20 + $0xca8] sm:$0xff]  ;;  %v5320_v6 = vcombine.low %v1238_v45, %v1246_v52 }
 0x733   :  { %v6427_v8 = vadd.f32 %v4067_v3, %v1357_v60  ;;  %v6429_v10 = vadd.f32 %v4149_v4, %v1365_v38  ;;  %v4069_v9 = vpop.f32.mrb[10].mxu0  ;;  %v4151_v11 = vpop.f32.mrb[10].mxu1  ;;  %4370 = vmatpush1.bf16.msra.mxu0 %v5256_v39  ;;  %v1247_v57 = vld [vmem:[#allocation20 + $0xce8] sm:$0xff]  ;;  %v5304_v60 = vcombine.low %v1222_v20, %v1230_v21 }
 0x734   :  { %v4646_v13 = vmul.f32 %v6423_v1, %v6423_v1  ;;  %v4648_v14 = vmul.f32 %v6425_v2, %v6425_v2  ;;  %4452 = vmatpush1.bf16.msra.mxu1 %v5258_v41  ;;  %v4070_v15 = vpop.f32.mrb[11].mxu0  ;;  %v4152_v16 = vpop.f32.mrb[11].mxu1  ;;  %4371 = vmatprep.subr.bf16.mxu0 %v5273_v42  ;;  %v5306_v41 = vcombine.low %v1223_v24, %v1231_v25  ;;  %v1255_v3 = vld [vmem:[#allocation20 + $0xd28] sm:$0xff] }
 0x735   :  { %v4647_v18 = vmul.f32 %v6427_v8, %v6427_v8  ;;  %v4649_v55 = vmul.f32 %v6429_v10, %v6429_v10  ;;  %4453 = vmatprep.subr.bf16.mxu1 %v5275_v62  ;;  %v5321_v42 = vcombine.high %v1238_v45, %v1246_v52  ;;  %v5323_v62 = vcombine.high %v1239_v56, %v1247_v57  ;;  %v1263_v4 = vld [vmem:[#allocation20 + $0xd68] sm:$0xff] }
 0x736   :  { %v4662_v22 = vmul.f32 %v6423_v1, %v4646_v13  ;;  %v4664_v23 = vmul.f32 %v6425_v2, %v4648_v14  ;;  %v5322_v7 = vcombine.low %v1239_v56, %v1247_v57  ;;  %v5337_v9 = vcombine.high %v1254_v63, %v1262_v0  ;;  %v1271_v13 = vld [vmem:[#allocation20 + $0xda8] sm:$0xff] }
 0x737   :  { %v4663_v26 = vmul.f32 %v6427_v8, %v4647_v18  ;;  %v4665_v27 = vmul.f32 %v6429_v10, %v4649_v55  ;;  %4372 = vmatpush1.bf16.msra.mxu0 %v5272_v48  ;;  %v5339_v11 = vcombine.high %v1255_v3, %v1263_v4  ;;  %v1270_v48 = vld [vmem:[#allocation20 + $0xda0] sm:$0xff]  ;;  %v1279_v14 = vld [vmem:[#allocation20 + $0xde8] sm:$0xff]  ;;  %v5336_v15 = vcombine.low %v1254_v63, %v1262_v0 }
 0x738   :  { %v4678_v29 = vmul.f32 0.044715, %v4662_v22  ;;  %v4680_v30 = vmul.f32 0.044715, %v4664_v23  ;;  %4454 = vmatpush1.bf16.msra.mxu1 %v5274_v12  ;;  %4373 = vmatprep.subr.bf16.mxu0 %v5289_v17  ;;  %v1278_v12 = vld [vmem:[#allocation20 + $0xde0] sm:$0xff]  ;;  %v5338_v16 = vcombine.low %v1255_v3, %v1263_v4  ;;  %v5355_v18 = vcombine.high %v1271_v13, %v1279_v14  ;;  %v1287_v20 = vld [vmem:[#allocation20 + $0xe28] sm:$0xff] }
 0x739   :  { %v4679_v35 = vmul.f32 0.044715, %v4663_v26  ;;  %v4681_v36 = vmul.f32 0.044715, %v4665_v27  ;;  %4455 = vmatprep.subr.bf16.mxu1 %v5291_v19  ;;  %v5353_v17 = vcombine.high %v1270_v48, %v1278_v12  ;;  %v1286_v55 = vld [vmem:[#allocation20 + $0xe20] sm:$0xff]  ;;  %v1295_v21 = vld [vmem:[#allocation20 + $0xe68] sm:$0xff]  ;;  %v5352_v22 = vcombine.low %v1270_v48, %v1278_v12 }
 0x73a   :  { %v4694_v53 = vadd.f32 %v6423_v1, %v4678_v29  ;;  %v4696_v54 = vadd.f32 %v6425_v2, %v4680_v30  ;;  %v1294_v19 = vld [vmem:[#allocation20 + $0xe60] sm:$0xff]  ;;  %v5354_v24 = vcombine.low %v1271_v13, %v1279_v14  ;;  %v5370_v57 = vcombine.low %v1287_v20, %v1295_v21 }
 0x73b   :  { %v4695_v58 = vadd.f32 %v6427_v8, %v4679_v35  ;;  %v4697_v59 = vadd.f32 %v6429_v10, %v4681_v36  ;;  %4374 = vmatpush1.bf16.msra.mxu0 %v5288_v28  ;;  %v5369_v25 = vcombine.high %v1286_v55, %v1294_v19  ;;  %v5371_v28 = vcombine.high %v1287_v20, %v1295_v21  ;;  %v1302_v29 = vld [vmem:[#allocation20 + $0xea0] sm:$0xff]  ;;  %v1303_v35 = vld [vmem:[#allocation20 + $0xea8] sm:$0xff]  ;;  %v840_v20 = vld [vmem:[#allocation20 + $0x30] sm:$0xff] }
 0x73c   :  { %v4710_v38 = vmul.f32 0.7978846, %v4694_v53  ;;  %v4712_v39 = vmul.f32 0.7978846, %v4696_v54  ;;  %4456 = vmatpush1.bf16.msra.mxu1 %v5290_v31  ;;  %4375 = vmatprep.subr.bf16.mxu0 %v5305_v34  ;;  %v1310_v30 = vld [vmem:[#allocation20 + $0xee0] sm:$0xff]  ;;  %v1311_v36 = vld [vmem:[#allocation20 + $0xee8] sm:$0xff]  ;;  %v5368_v53 = vcombine.low %v1286_v55, %v1294_v19 }
 0x73d   :  { %v4711_v43 = vmul.f32 0.7978846, %v4695_v58  ;;  %v4713_v61 = vmul.f32 0.7978846, %v4697_v59  ;;  %4457 = vmatprep.subr.bf16.mxu1 %v5307_v44  ;;  %v5385_v58 = vcombine.high %v1302_v29, %v1310_v30  ;;  %v5384_v3 = vcombine.low %v1302_v29, %v1310_v30  ;;  %v1342_v12 = vld [vmem:[#allocation20 + $0xfe0] sm:$0xff]  ;;  %v848_v21 = vld [vmem:[#allocation20 + $0x70] sm:$0xff] }
 0x73e   :  { %5663 = vtanh.f32 %v4710_v38  ;;  %v5387_v38 = vcombine.high %v1303_v35, %v1311_v36  ;;  %v864_v29 = vld [vmem:[#allocation20 + $0xf0] sm:$0xff]  ;;  %v4924_v30 = vcombine.low %v840_v20, %v848_v21 }
 0x73f   :  { %5665 = vtanh.f32 %v4712_v39  ;;  %4376 = vmatpush1.bf16.msra.mxu0 %v5304_v60  ;;  %v1318_v39 = vld [vmem:[#allocation20 + $0xf20] sm:$0xff] }
 0x740   :  { %5667 = vtanh.f32 %v4711_v43  ;;  %4458 = vmatpush1.bf16.msra.mxu1 %v5306_v41  ;;  %4377 = vmatprep.subr.bf16.mxu0 %v5321_v42  ;;  %v1326_v41 = vld [vmem:[#allocation20 + $0xf60] sm:$0xff] }
 0x741   :  { %5669 = vtanh.f32 %v4713_v61  ;;  %4459 = vmatprep.subr.bf16.mxu1 %v5323_v62  ;;  %v1319_v61 = vld [vmem:[#allocation20 + $0xf28] sm:$0xff] }
 0x742   :  { %v1327_v62 = vld [vmem:[#allocation20 + $0xf68] sm:$0xff] }
 0x743   :  { %4378 = vmatpush1.bf16.msra.mxu0 %v5320_v6  ;;  %v5403_v48 = vcombine.high %v1319_v61, %v1327_v62 }
 0x744   :  { %4460 = vmatpush1.bf16.msra.mxu1 %v5322_v7  ;;  %4379 = vmatprep.subr.bf16.mxu0 %v5337_v9  ;;  %v5401_v7 = vcombine.high %v1318_v39, %v1326_v41 }
 0x745   :  { %4461 = vmatprep.subr.bf16.mxu1 %v5339_v11 }
 0x747   :  { %4380 = vmatpush1.bf16.msra.mxu0 %v5336_v15  ;;  %v1335_v15 = vld [vmem:[#allocation20 + $0xfa8] sm:$0xff] }
 0x748   :  { %v5664_v23 = vpop.eup %5663  ;;  %4462 = vmatpush1.bf16.msra.mxu1 %v5338_v16  ;;  %4381 = vmatprep.subr.bf16.mxu0 %v5353_v17  ;;  %v1343_v16 = vld [vmem:[#allocation20 + $0xfe8] sm:$0xff]  ;;  %v5400_v17 = vcombine.low %v1318_v39, %v1326_v41  ;;  %v889_v39 = vld [vmem:[#allocation20 + $0x1b8] sm:$0xff] }
 0x749   :  { %v5666_v26 = vpop.eup %5665  ;;  %v4742_v27 = vadd.f32 1.0, %v5664_v23  ;;  %4463 = vmatprep.subr.bf16.mxu1 %v5355_v18  ;;  %v5402_v18 = vcombine.low %v1319_v61, %v1327_v62  ;;  %v5419_v19 = vcombine.high %v1335_v15, %v1343_v16  ;;  %v849_v23 = vld [vmem:[#allocation20 + $0x78] sm:$0xff] }
 0x74a   :  { %v5668_v31 = vpop.eup %5667  ;;  %v4744_v34 = vadd.f32 1.0, %v5666_v26  ;;  %v4925_v26 = vcombine.high %v840_v20, %v848_v21  ;;  %v897_v41 = vld [vmem:[#allocation20 + $0x1f8] sm:$0xff]  ;;  %v952_v21 = vld [vmem:[#allocation20 + $0x3b0] sm:$0xff] }
 0x74b   :  { %v5670_v44 = vpop.eup %5669  ;;  %v4758_v45 = vmul.f32 0.5, %v4742_v27  ;;  %v4743_v52 = vadd.f32 1.0, %v5668_v31  ;;  %4382 = vmatpush1.bf16.msra.mxu0 %v5352_v22  ;;  %v841_v22 = vld [vmem:[#allocation20 + $0x38] sm:$0xff]  ;;  %v4975_v62 = vcombine.high %v889_v39, %v897_v41 }
 0x74c   :  { %v4760_v54 = vmul.f32 0.5, %v4744_v34  ;;  %v4745_v56 = vadd.f32 1.0, %v5670_v44  ;;  %4464 = vmatpush1.bf16.msra.mxu1 %v5354_v24  ;;  %4383 = vmatprep.subr.bf16.mxu0 %v5369_v25  ;;  %v5418_v25 = vcombine.low %v1335_v15, %v1343_v16  ;;  %v4927_v27 = vcombine.high %v841_v22, %v849_v23  ;;  %v857_v31 = vld [vmem:[#allocation20 + $0xb8] sm:$0xff]  ;;  %v872_v44 = vld [vmem:[#allocation20 + $0x130] sm:$0xff] }
 0x74d   :  { %v4774_v59 = vmul.f32 %v6423_v1, %v4758_v45  ;;  %v4759_v60 = vmul.f32 0.5, %v4743_v52  ;;  %4465 = vmatprep.subr.bf16.mxu1 %v5371_v28  ;;  %v5386_v1 = vcombine.low %v1303_v35, %v1311_v36  ;;  %v856_v28 = vld [vmem:[#allocation20 + $0xb0] sm:$0xff]  ;;  %v865_v34 = vld [vmem:[#allocation20 + $0xf8] sm:$0xff]  ;;  %v4926_v35 = vcombine.low %v841_v22, %v849_v23 }
 0x74e   :  { %v4776_v42 = vmul.f32 %v6425_v2, %v4760_v54  ;;  %v4761_v43 = vmul.f32 0.5, %v4745_v56  ;;  %v1334_v2 = vld [vmem:[#allocation20 + $0xfa0] sm:$0xff]  ;;  %v4941_v36 = vcombine.high %v856_v28, %v864_v29  ;;  %v880_v45 = vld [vmem:[#allocation20 + $0x170] sm:$0xff]  ;;  %v4943_v52 = vcombine.high %v857_v31, %v865_v34  ;;  %v881_v54 = vld [vmem:[#allocation20 + $0x178] sm:$0xff] }
 0x74f   :  { %v5530_v63 = vtrunc.f32 %v4774_v59  ;;  %v4775_v0 = vmul.f32 %v6427_v8, %v4759_v60  ;;  %4384 = vmatpush1.bf16.msra.mxu0 %v5368_v53  ;;  %v5417_v55 = vcombine.high %v1334_v2, %v1342_v12  ;;  %v5416_v24 = vcombine.low %v1334_v2, %v1342_v12  ;;  %v873_v53 = vld [vmem:[#allocation20 + $0x138] sm:$0xff]  ;;  %v888_v60 = vld [vmem:[#allocation20 + $0x1b0] sm:$0xff] }
 0x750   :  { %v5534_v4 = vtrunc.f32 %v4776_v42  ;;  %v4777_v6 = vmul.f32 %v6429_v10, %v4761_v43  ;;  %4466 = vmatpush1.bf16.msra.mxu1 %v5370_v57  ;;  %4385 = vmatprep.subr.bf16.mxu0 %v5385_v58  ;;  %v4940_v56 = vcombine.low %v856_v28, %v864_v29  ;;  %v4942_v57 = vcombine.low %v857_v31, %v865_v34  ;;  %v929_v2 = vld [vmem:[#allocation20 + $0x2f8] sm:$0xff]  ;;  %v936_v16 = vld [vmem:[#allocation20 + $0x330] sm:$0xff] }
 0x751   :  { %v5531_v9 = vcvt.f32.s32 %v5530_v63  ;;  %v5532_v11 = vtrunc.f32 %v4775_v0  ;;  %4467 = vmatprep.subr.bf16.mxu1 %v5387_v38  ;;  %v4957_v58 = vcombine.high %v872_v44, %v880_v45  ;;  %v4959_v59 = vcombine.high %v873_v53, %v881_v54  ;;  %v896_v38 = vld [vmem:[#allocation20 + $0x1f0] sm:$0xff]  ;;  %v953_v23 = vld [vmem:[#allocation20 + $0x3b8] sm:$0xff] }
 0x752   :  { %v5535_v13 = vcvt.f32.s32 %v5534_v4  ;;  %v5536_v14 = vtrunc.f32 %v4777_v6  ;;  %v4956_v42 = vcombine.low %v872_v44, %v880_v45  ;;  %v4958_v43 = vcombine.low %v873_v53, %v881_v54  ;;  %v904_v63 = vld [vmem:[#allocation20 + $0x230] sm:$0xff]  ;;  %v913_v4 = vld [vmem:[#allocation20 + $0x278] sm:$0xff] }
 0x753   :  { %4806 = vst [vmem:[#allocation24] sm:$0xff] %v5531_v9  ;;  %v5533_v8 = vcvt.f32.s32 %v5532_v11  ;;  %4386 = vmatpush1.bf16.msra.mxu0 %v5384_v3  ;;  %v4973_v61 = vcombine.high %v888_v60, %v896_v38  ;;  %v912_v0 = vld [vmem:[#allocation20 + $0x270] sm:$0xff]  ;;  %v905_v3 = vld [vmem:[#allocation20 + $0x238] sm:$0xff]  ;;  %v4974_v6 = vcombine.low %v889_v39, %v897_v41 }
 0x754   :  { %4808 = vst [vmem:[#allocation24 + $0x10] sm:$0xff] %v5535_v13  ;;  %v5537_v10 = vcvt.f32.s32 %v5536_v14  ;;  %4468 = vmatpush1.bf16.msra.mxu1 %v5386_v1  ;;  %4387 = vmatprep.subr.bf16.mxu0 %v5401_v7  ;;  %v4989_v1 = vcombine.high %v904_v63, %v912_v0  ;;  %v4991_v7 = vcombine.high %v905_v3, %v913_v4  ;;  %v920_v9 = vld [vmem:[#allocation20 + $0x2b0] sm:$0xff]  ;;  %v969_v31 = vld [vmem:[#allocation20 + $0x438] sm:$0xff] }
 0x755   :  { %4807 = vst [vmem:[#allocation24 + $0x8] sm:$0xff] %v5533_v8  ;;  %4469 = vmatprep.subr.bf16.mxu1 %v5403_v48  ;;  %v928_v11 = vld [vmem:[#allocation20 + $0x2f0] sm:$0xff]  ;;  %v921_v48 = vld [vmem:[#allocation20 + $0x2b8] sm:$0xff]  ;;  %v4988_v12 = vcombine.low %v904_v63, %v912_v0  ;;  %v4990_v13 = vcombine.low %v905_v3, %v913_v4 }
 0x756   :  { %4809 = vst [vmem:[#allocation24 + $0x18] sm:$0xff] %v5537_v10  ;;  %v5005_v14 = vcombine.high %v920_v9, %v928_v11  ;;  %v5007_v15 = vcombine.high %v921_v48, %v929_v2  ;;  %v944_v8 = vld [vmem:[#allocation20 + $0x370] sm:$0xff]  ;;  %v945_v10 = vld [vmem:[#allocation20 + $0x378] sm:$0xff] }
 0x757   :  { %4388 = vmatpush1.bf16.msra.mxu0 %v5400_v17  ;;  %v937_v17 = vld [vmem:[#allocation20 + $0x338] sm:$0xff]  ;;  %v960_v22 = vld [vmem:[#allocation20 + $0x3f0] sm:$0xff] }
 0x758   :  { %4470 = vmatpush1.bf16.msra.mxu1 %v5402_v18  ;;  %4389 = vmatprep.subr.bf16.mxu0 %v5417_v55  ;;  %v5004_v18 = vcombine.low %v920_v9, %v928_v11  ;;  %v5006_v55 = vcombine.low %v921_v48, %v929_v2  ;;  %v5023_v20 = vcombine.high %v937_v17, %v945_v10  ;;  %v968_v29 = vld [vmem:[#allocation20 + $0x430] sm:$0xff]  ;;  %v977_v34 = vld [vmem:[#allocation20 + $0x478] sm:$0xff] }
 0x759   :  { %4471 = vmatprep.subr.bf16.mxu1 %v5419_v19  ;;  %v5021_v19 = vcombine.high %v936_v16, %v944_v8  ;;  %v5055_v45 = vcombine.high %v969_v31, %v977_v34  ;;  %v992_v53 = vld [vmem:[#allocation20 + $0x4f0] sm:$0xff]  ;;  %v985_v54 = vld [vmem:[#allocation20 + $0x4b8] sm:$0xff] }
 0x75a   :  { %v1008_v39 = vld [vmem:[#allocation20 + $0x570] sm:$0xff]  ;;  %v1001_v41 = vld [vmem:[#allocation20 + $0x538] sm:$0xff] }
 0x75b   :  { %4390 = vmatpush1.bf16.msra.mxu0 %v5416_v24  ;;  %v961_v24 = vld [vmem:[#allocation20 + $0x3f8] sm:$0xff]  ;;  %v1016_v0 = vld [vmem:[#allocation20 + $0x5b0] sm:$0xff] }
 0x75c   :  { %4472 = vmatpush1.bf16.msra.mxu1 %v5418_v25  ;;  %4482 = vmatprep.subr.bf16.mxu0 %v4925_v26  ;;  %v5020_v25 = vcombine.low %v936_v16, %v944_v8  ;;  %v5022_v26 = vcombine.low %v937_v17, %v945_v10  ;;  %v5039_v28 = vcombine.high %v953_v23, %v961_v24  ;;  %v1024_v3 = vld [vmem:[#allocation20 + $0x5f0] sm:$0xff]  ;;  %v1017_v4 = vld [vmem:[#allocation20 + $0x5b8] sm:$0xff] }
 0x75d   :  { %4564 = vmatprep.subr.bf16.mxu1 %v4927_v27  ;;  %v5037_v27 = vcombine.high %v952_v21, %v960_v22  ;;  %v1032_v11 = vld [vmem:[#allocation20 + $0x630] sm:$0xff]  ;;  %v1033_v2 = vld [vmem:[#allocation20 + $0x638] sm:$0xff] }
 0x75e   :  { %4392 = vmatmul.mubr.bf16.vlgmr.msra.gmra.mrb[16].mxu0 %v6395_v5  ;;  %v1040_v48 = vld [vmem:[#allocation20 + $0x670] sm:$0xff]  ;;  %v1049_v10 = vld [vmem:[#allocation20 + $0x6b8] sm:$0xff] }
 0x75f   :  { %4474 = vmatmul.mubr.bf16.vlgmr.msra.gmra.mrb[16].mxu1 %v6395_v5  ;;  %4483 = vmatpush1.bf16.msra.mxu0 %v4924_v30  ;;  %v976_v30 = vld [vmem:[#allocation20 + $0x470] sm:$0xff] }
 0x760   :  { %4514 = vmatprep.mubr.bf16.mxu0 %v6364_v32  ;;  %4565 = vmatpush1.bf16.msra.mxu1 %v4926_v35  ;;  %v5036_v35 = vcombine.low %v952_v21, %v960_v22  ;;  %v5053_v44 = vcombine.high %v968_v29, %v976_v30  ;;  %v1048_v8 = vld [vmem:[#allocation20 + $0x6b0] sm:$0xff] }
 0x761   :  { %4596 = vmatprep.mubr.bf16.mxu1 %v6364_v32  ;;  %4484 = vmatprep.subr.bf16.mxu0 %v4941_v36  ;;  %v4972_v32 = vcombine.low %v888_v60, %v896_v38  ;;  %v5038_v36 = vcombine.low %v953_v23, %v961_v24  ;;  %v1000_v38 = vld [vmem:[#allocation20 + $0x530] sm:$0xff]  ;;  %v1065_v24 = vld [vmem:[#allocation20 + $0x738] sm:$0xff] }
 0x762   :  { %4566 = vmatprep.subr.bf16.mxu1 %v4943_v52  ;;  %v984_v52 = vld [vmem:[#allocation20 + $0x4b0] sm:$0xff] }
 0x763   :  { %4485 = vmatpush1.bf16.msra.mxu0 %v4940_v56  ;;  %v993_v56 = vld [vmem:[#allocation20 + $0x4f8] sm:$0xff]  ;;  %v1056_v17 = vld [vmem:[#allocation20 + $0x6f0] sm:$0xff] }
 0x764   :  { %4567 = vmatpush1.bf16.msra.mxu1 %v4942_v57  ;;  %4486 = vmatprep.subr.bf16.mxu0 %v4957_v58  ;;  %v5052_v57 = vcombine.low %v968_v29, %v976_v30  ;;  %v5054_v58 = vcombine.low %v969_v31, %v977_v34  ;;  %v5071_v60 = vcombine.high %v985_v54, %v993_v56  ;;  %v1064_v22 = vld [vmem:[#allocation20 + $0x730] sm:$0xff]  ;;  %v1081_v34 = vld [vmem:[#allocation20 + $0x7b8] sm:$0xff] }
 0x765   :  { %4568 = vmatprep.subr.bf16.mxu1 %v4959_v59  ;;  %v5069_v59 = vcombine.high %v984_v52, %v992_v53  ;;  %v1072_v23 = vld [vmem:[#allocation20 + $0x770] sm:$0xff] }
 0x766   :  { %v1080_v30 = vld [vmem:[#allocation20 + $0x7b0] sm:$0xff] }
 0x767   :  { %4487 = vmatpush1.bf16.msra.mxu0 %v4956_v42  ;;  %v1009_v42 = vld [vmem:[#allocation20 + $0x578] sm:$0xff]  ;;  %v1088_v31 = vld [vmem:[#allocation20 + $0x7f0] sm:$0xff] }
 0x768   :  { %4569 = vmatpush1.bf16.msra.mxu1 %v4958_v43  ;;  %4488 = vmatprep.subr.bf16.mxu0 %v4973_v61  ;;  %v5068_v43 = vcombine.low %v984_v52, %v992_v53  ;;  %v5070_v61 = vcombine.low %v985_v54, %v993_v56  ;;  %v5087_v63 = vcombine.high %v1001_v41, %v1009_v42  ;;  %v1096_v53 = vld [vmem:[#allocation20 + $0x830] sm:$0xff]  ;;  %v1097_v56 = vld [vmem:[#allocation20 + $0x838] sm:$0xff] }
 0x769   :  { %4570 = vmatprep.subr.bf16.mxu1 %v4975_v62  ;;  %v5085_v62 = vcombine.high %v1000_v38, %v1008_v39  ;;  %v1104_v54 = vld [vmem:[#allocation20 + $0x870] sm:$0xff] }
 0x76b   :  { %4489 = vmatpush1.bf16.msra.mxu0 %v4972_v32  ;;  %v1025_v32 = vld [vmem:[#allocation20 + $0x5f8] sm:$0xff] }
 0x76c   :  { %4571 = vmatpush1.bf16.msra.mxu1 %v4974_v6  ;;  %4490 = vmatprep.subr.bf16.mxu0 %v4989_v1  ;;  %v5084_v6 = vcombine.low %v1000_v38, %v1008_v39  ;;  %v5086_v1 = vcombine.low %v1001_v41, %v1009_v42  ;;  %v5103_v9 = vcombine.high %v1017_v4, %v1025_v32  ;;  %v1112_v39 = vld [vmem:[#allocation20 + $0x8b0] sm:$0xff] }
 0x76d   :  { %4572 = vmatprep.subr.bf16.mxu1 %v4991_v7  ;;  %v5101_v7 = vcombine.high %v1016_v0, %v1024_v3  ;;  %v1120_v41 = vld [vmem:[#allocation20 + $0x8f0] sm:$0xff]  ;;  %v5180_v42 = vcombine.low %v1096_v53, %v1104_v54 }
 0x76f   :  { %4491 = vmatpush1.bf16.msra.mxu0 %v4988_v12  ;;  %v1041_v12 = vld [vmem:[#allocation20 + $0x678] sm:$0xff] }
 0x770   :  { %4573 = vmatpush1.bf16.msra.mxu1 %v4990_v13  ;;  %4492 = vmatprep.subr.bf16.mxu0 %v5005_v14  ;;  %v5100_v13 = vcombine.low %v1016_v0, %v1024_v3  ;;  %v5102_v14 = vcombine.low %v1017_v4, %v1025_v32  ;;  %v5119_v16 = vcombine.high %v1033_v2, %v1041_v12  ;;  %v1128_v0 = vld [vmem:[#allocation20 + $0x930] sm:$0xff]  ;;  %v1129_v32 = vld [vmem:[#allocation20 + $0x938] sm:$0xff] }
 0x771   :  { %4574 = vmatprep.subr.bf16.mxu1 %v5007_v15  ;;  %v5117_v15 = vcombine.high %v1032_v11, %v1040_v48  ;;  %v1136_v3 = vld [vmem:[#allocation20 + $0x970] sm:$0xff] }
 0x773   :  { %4493 = vmatpush1.bf16.msra.mxu0 %v5004_v18  ;;  %v1057_v18 = vld [vmem:[#allocation20 + $0x6f8] sm:$0xff] }
 0x774   :  { %4575 = vmatpush1.bf16.msra.mxu1 %v5006_v55  ;;  %4494 = vmatprep.subr.bf16.mxu0 %v5021_v19  ;;  %v5116_v55 = vcombine.low %v1032_v11, %v1040_v48  ;;  %v5118_v19 = vcombine.low %v1033_v2, %v1041_v12  ;;  %v5135_v21 = vcombine.high %v1049_v10, %v1057_v18  ;;  %v1144_v48 = vld [vmem:[#allocation20 + $0x9b0] sm:$0xff]  ;;  %v1145_v12 = vld [vmem:[#allocation20 + $0x9b8] sm:$0xff] }
 0x775   :  { %4576 = vmatprep.subr.bf16.mxu1 %v5023_v20  ;;  %v5133_v20 = vcombine.high %v1048_v8, %v1056_v17  ;;  %v1152_v2 = vld [vmem:[#allocation20 + $0x9f0] sm:$0xff] }
 0x777   :  { %4495 = vmatpush1.bf16.msra.mxu0 %v5020_v25  ;;  %v1073_v25 = vld [vmem:[#allocation20 + $0x778] sm:$0xff] }
 0x778   :  { %4577 = vmatpush1.bf16.msra.mxu1 %v5022_v26  ;;  %4496 = vmatprep.subr.bf16.mxu0 %v5037_v27  ;;  %v5132_v26 = vcombine.low %v1048_v8, %v1056_v17  ;;  %v5134_v27 = vcombine.low %v1049_v10, %v1057_v18  ;;  %v5151_v29 = vcombine.high %v1065_v24, %v1073_v25  ;;  %v1160_v8 = vld [vmem:[#allocation20 + $0xa30] sm:$0xff]  ;;  %v1161_v10 = vld [vmem:[#allocation20 + $0xa38] sm:$0xff] }
 0x779   :  { %4578 = vmatprep.subr.bf16.mxu1 %v5039_v28  ;;  %v5149_v28 = vcombine.high %v1064_v22, %v1072_v23  ;;  %v1168_v17 = vld [vmem:[#allocation20 + $0xa70] sm:$0xff]  ;;  %v1169_v18 = vld [vmem:[#allocation20 + $0xa78] sm:$0xff] }
 0x77b   :  { %4497 = vmatpush1.bf16.msra.mxu0 %v5036_v35  ;;  %v1089_v35 = vld [vmem:[#allocation20 + $0x7f8] sm:$0xff] }
 0x77c   :  { %4579 = vmatpush1.bf16.msra.mxu1 %v5038_v36  ;;  %4498 = vmatprep.subr.bf16.mxu0 %v5053_v44  ;;  %v5148_v36 = vcombine.low %v1064_v22, %v1072_v23  ;;  %v5150_v44 = vcombine.low %v1065_v24, %v1073_v25  ;;  %v5167_v52 = vcombine.high %v1081_v34, %v1089_v35  ;;  %v1184_v22 = vld [vmem:[#allocation20 + $0xaf0] sm:$0xff]  ;;  %v1368_v23 = vsub.s32 4, %v6343_v46  ;;  %v1177_v24 = vld [vmem:[#allocation20 + $0xab8] sm:$0xff] }
 0x77d   :  { %4580 = vmatprep.subr.bf16.mxu1 %v5055_v45  ;;  %v5165_v45 = vcombine.high %v1080_v30, %v1088_v31  ;;  %v1185_v25 = vld [vmem:[#allocation20 + $0xaf8] sm:$0xff] }
 0x77f   :  { %4499 = vmatpush1.bf16.msra.mxu0 %v5052_v57  ;;  %v1105_v57 = vld [vmem:[#allocation20 + $0x878] sm:$0xff] }
 0x780   :  { %4581 = vmatpush1.bf16.msra.mxu1 %v5054_v58  ;;  %4500 = vmatprep.subr.bf16.mxu0 %v5069_v59  ;;  %v5164_v58 = vcombine.low %v1080_v30, %v1088_v31  ;;  %v5166_v59 = vcombine.low %v1081_v34, %v1089_v35  ;;  %v5183_v38 = vcombine.high %v1097_v56, %v1105_v57  ;;  %v1380_v30 = vsub.s32 7, %v6343_v46  ;;  %v1192_v35 = vld [vmem:[#allocation20 + $0xb30] sm:$0xff] }
 0x781   :  { %4582 = vmatprep.subr.bf16.mxu1 %v5071_v60  ;;  %v5181_v60 = vcombine.high %v1096_v53, %v1104_v54  ;;  %v5263_v34 = vcombine.high %v1177_v24, %v1185_v25 }
 0x783   :  { %4501 = vmatpush1.bf16.msra.mxu0 %v5068_v43  ;;  %v1113_v43 = vld [vmem:[#allocation20 + $0x8b8] sm:$0xff] }
 0x784   :  { %4583 = vmatpush1.bf16.msra.mxu1 %v5070_v61  ;;  %4502 = vmatprep.subr.bf16.mxu0 %v5085_v62  ;;  %v1121_v61 = vld [vmem:[#allocation20 + $0x8f8] sm:$0xff]  ;;  %v5182_v62 = vcombine.low %v1097_v56, %v1105_v57  ;;  %v1381_v57 = vrot.slane %v6413_v40, %v1380_v30 }
 0x785   :  { %4584 = vmatprep.subr.bf16.mxu1 %v5087_v63  ;;  %v5197_v63 = vcombine.high %v1112_v39, %v1120_v41  ;;  %v5199_v4 = vcombine.high %v1113_v43, %v1121_v61 }
 0x787   :  { %4503 = vmatpush1.bf16.msra.mxu0 %v5084_v6  ;;  %v1137_v6 = vld [vmem:[#allocation20 + $0x978] sm:$0xff] }
 0x788   :  { %4585 = vmatpush1.bf16.msra.mxu1 %v5086_v1  ;;  %4504 = vmatprep.subr.bf16.mxu0 %v5101_v7  ;;  %v5196_v1 = vcombine.low %v1112_v39, %v1120_v41  ;;  %v5198_v7 = vcombine.low %v1113_v43, %v1121_v61  ;;  %v5215_v11 = vcombine.high %v1129_v32, %v1137_v6  ;;  %v1208_v39 = vld [vmem:[#allocation20 + $0xbb0] sm:$0xff] }
 0x789   :  { %4586 = vmatprep.subr.bf16.mxu1 %v5103_v9  ;;  %v5213_v9 = vcombine.high %v1128_v0, %v1136_v3  ;;  %v1216_v41 = vld [vmem:[#allocation20 + $0xbf0] sm:$0xff] }
 0x78b   :  { %4505 = vmatpush1.bf16.msra.mxu0 %v5100_v13  ;;  %v1153_v13 = vld [vmem:[#allocation20 + $0x9f8] sm:$0xff] }
 0x78c   :  { %4587 = vmatpush1.bf16.msra.mxu1 %v5102_v14  ;;  %4506 = vmatprep.subr.bf16.mxu0 %v5117_v15  ;;  %v5212_v14 = vcombine.low %v1128_v0, %v1136_v3  ;;  %v5229_v15 = vcombine.high %v1144_v48, %v1152_v2 }
 0x78d   :  { %4588 = vmatprep.subr.bf16.mxu1 %v5119_v16  ;;  %v5231_v16 = vcombine.high %v1145_v12, %v1153_v13 }
 0x78f   :  { %4507 = vmatpush1.bf16.msra.mxu0 %v5116_v55  ;;  %v5230_v55 = vcombine.low %v1145_v12, %v1153_v13 }
 0x790   :  { %4589 = vmatpush1.bf16.msra.mxu1 %v5118_v19  ;;  %4508 = vmatprep.subr.bf16.mxu0 %v5133_v20  ;;  %v5245_v19 = vcombine.high %v1160_v8, %v1168_v17  ;;  %v5247_v20 = vcombine.high %v1161_v10, %v1169_v18 }
 0x791   :  { %4590 = vmatprep.subr.bf16.mxu1 %v5135_v21  ;;  %v1176_v21 = vld [vmem:[#allocation20 + $0xab0] sm:$0xff] }
 0x792   :  { %v5261_v31 = vcombine.high %v1176_v21, %v1184_v22  ;;  %v5260_v56 = vcombine.low %v1176_v21, %v1184_v22 }
 0x793   :  { %4509 = vmatpush1.bf16.msra.mxu0 %v5132_v26  ;;  %v5244_v26 = vcombine.low %v1160_v8, %v1168_v17  ;;  %v1225_v17 = vld [vmem:[#allocation20 + $0xc38] sm:$0xff] }
 0x794   :  { %4591 = vmatpush1.bf16.msra.mxu1 %v5134_v27  ;;  %4510 = vmatprep.subr.bf16.mxu0 %v5149_v28  ;;  %v1376_v27 = vsub.s32 6, %v6343_v46  ;;  %v1372_v28 = vsub.s32 5, %v6343_v46 }
 0x795   :  { %4592 = vmatprep.subr.bf16.mxu1 %v5151_v29  ;;  %v5246_v29 = vcombine.low %v1161_v10, %v1169_v18  ;;  %v1233_v10 = vld [vmem:[#allocation20 + $0xc78] sm:$0xff] }
 0x796   :  { %v1377_v53 = vrot.slane %v6413_v40, %v1376_v27  ;;  %v1373_v54 = vrot.slane %v6413_v40, %v1372_v28 }
 0x797   :  { %4511 = vmatpush1.bf16.msra.mxu0 %v5148_v36  ;;  %v1200_v36 = vld [vmem:[#allocation20 + $0xb70] sm:$0xff] }
 0x798   :  { %4593 = vmatpush1.bf16.msra.mxu1 %v5150_v44  ;;  %4512 = vmatprep.subr.bf16.mxu0 %v5165_v45  ;;  %v1369_v44 = vrot.slane %v6413_v40, %v1368_v23  ;;  %v1193_v45 = vld [vmem:[#allocation20 + $0xb38] sm:$0xff] }
 0x799   :  { %4594 = vmatprep.subr.bf16.mxu1 %v5167_v52  ;;  %v1201_v52 = vld [vmem:[#allocation20 + $0xb78] sm:$0xff] }
 0x79b   :  { %4513 = vmatpush1.bf16.msra.mxu0 %v5164_v58  ;;  %v5262_v58 = vcombine.low %v1177_v24, %v1185_v25 }
 0x79c   :  { %4595 = vmatpush1.bf16.msra.mxu1 %v5166_v59  ;;  %4523 = vmatprep.subr.bf16.mxu0 %v5181_v60  ;;  %v5277_v59 = vcombine.high %v1192_v35, %v1200_v36 }
 0x79d   :  { %4605 = vmatprep.subr.bf16.mxu1 %v5183_v38  ;;  %v5279_v38 = vcombine.high %v1193_v45, %v1201_v52 }
 0x79e   :  { %4515 = vmatmul.mubr.bf16.vlgmr.msra.gmra.mrb[20].mxu0 %v6366_v33 }
 0x79f   :  { %4597 = vmatmul.mubr.bf16.vlgmr.msra.gmra.mrb[20].mxu1 %v6366_v33  ;;  %4524 = vmatpush1.bf16.msra.mxu0 %v5180_v42  ;;  %v5214_v33 = vcombine.low %v1129_v32, %v1137_v6  ;;  %v5276_v32 = vcombine.low %v1192_v35, %v1200_v36  ;;  %v5278_v6 = vcombine.low %v1193_v45, %v1201_v52  ;;  %v1241_v36 = vld [vmem:[#allocation20 + $0xcb8] sm:$0xff] }
 0x7a0   :  { %4555 = vmatprep.mubr.bf16.mxu0 %v6370_v51  ;;  %4606 = vmatpush1.bf16.msra.mxu1 %v5182_v62  ;;  %v1209_v62 = vld [vmem:[#allocation20 + $0xbb8] sm:$0xff] }
 0x7a1   :  { %4637 = vmatprep.mubr.bf16.mxu1 %v6370_v51  ;;  %4525 = vmatprep.subr.bf16.mxu0 %v5197_v63  ;;  %v5228_v51 = vcombine.low %v1144_v48, %v1152_v2  ;;  %v1217_v63 = vld [vmem:[#allocation20 + $0xbf8] sm:$0xff]  ;;  %v5293_v48 = vcombine.high %v1208_v39, %v1216_v41 }
 0x7a2   :  { %4607 = vmatprep.subr.bf16.mxu1 %v5199_v4  ;;  %v5294_v21 = vcombine.low %v1209_v62, %v1217_v63 }
 0x7a3   :  { %4526 = vmatpush1.bf16.msra.mxu0 %v5196_v1 }
 0x7a4   :  { %4608 = vmatpush1.bf16.msra.mxu1 %v5198_v7  ;;  %4527 = vmatprep.subr.bf16.mxu0 %v5213_v9 }
 0x7a5   :  { %4609 = vmatprep.subr.bf16.mxu1 %v5215_v11 }
 0x7a7   :  { %4528 = vmatpush1.bf16.msra.mxu0 %v5212_v14  ;;  %v5295_v14 = vcombine.high %v1209_v62, %v1217_v63  ;;  %v1265_v62 = vld [vmem:[#allocation20 + $0xd78] sm:$0xff] }
 0x7a8   :  { %4610 = vmatpush1.bf16.msra.mxu1 %v5214_v33  ;;  %4529 = vmatprep.subr.bf16.mxu0 %v5229_v15  ;;  %v1224_v33 = vld [vmem:[#allocation20 + $0xc30] sm:$0xff] }
 0x7a9   :  { %4611 = vmatprep.subr.bf16.mxu1 %v5231_v16  ;;  %v1232_v15 = vld [vmem:[#allocation20 + $0xc70] sm:$0xff] }
 0x7aa   :  { %v5309_v22 = vcombine.high %v1224_v33, %v1232_v15 }
 0x7ab   :  { %4530 = vmatpush1.bf16.msra.mxu0 %v5228_v51 }
 0x7ac   :  { %4612 = vmatpush1.bf16.msra.mxu1 %v5230_v55  ;;  %4531 = vmatprep.subr.bf16.mxu0 %v5245_v19  ;;  %v5292_v55 = vcombine.low %v1208_v39, %v1216_v41  ;;  %v1256_v39 = vld [vmem:[#allocation20 + $0xd30] sm:$0xff] }
 0x7ad   :  { %4613 = vmatprep.subr.bf16.mxu1 %v5247_v20  ;;  %v1264_v41 = vld [vmem:[#allocation20 + $0xd70] sm:$0xff] }
 0x7af   :  { %4532 = vmatpush1.bf16.msra.mxu0 %v5244_v26  ;;  %v5311_v26 = vcombine.high %v1225_v17, %v1233_v10 }
 0x7b0   :  { %4614 = vmatpush1.bf16.msra.mxu1 %v5246_v29  ;;  %4533 = vmatprep.subr.bf16.mxu0 %v5261_v31  ;;  %v1240_v29 = vld [vmem:[#allocation20 + $0xcb0] sm:$0xff] }
 0x7b1   :  { %v4229_v60 = vpop.f32.mrb[12].mxu0  ;;  %4615 = vmatprep.subr.bf16.mxu1 %v5263_v34  ;;  %v1248_v31 = vld [vmem:[#allocation20 + $0xcf0] sm:$0xff] }
 0x7b2   :  { %v6475_v42 = vadd.f32 %v4229_v60, %v1369_v44  ;;  %v4311_v43 = vpop.f32.mrb[12].mxu1  ;;  %v4231_v61 = vpop.f32.mrb[13].mxu0  ;;  %v1249_v44 = vld [vmem:[#allocation20 + $0xcf8] sm:$0xff]  ;;  %v5324_v63 = vcombine.low %v1240_v29, %v1248_v31 }
 0x7b3   :  { %v6477_v0 = vadd.f32 %v4311_v43, %v1377_v53  ;;  %v6479_v3 = vadd.f32 %v4231_v61, %v1373_v54  ;;  %v4313_v4 = vpop.f32.mrb[13].mxu1  ;;  %v4233_v40 = vpop.f32.mrb[14].mxu0  ;;  %4534 = vmatpush1.bf16.msra.mxu0 %v5260_v56  ;;  %v5308_v53 = vcombine.low %v1224_v33, %v1232_v15  ;;  %v1257_v61 = vld [vmem:[#allocation20 + $0xd38] sm:$0xff]  ;;  %v1296_v33 = vld [vmem:[#allocation20 + $0xe70] sm:$0xff] }
 0x7b4   :  { %v4650_v1 = vmul.f32 %v6475_v42, %v6475_v42  ;;  %v6483_v7 = vadd.f32 %v4313_v4, %v1381_v57  ;;  %v4315_v9 = vpop.f32.mrb[14].mxu1  ;;  %4616 = vmatpush1.bf16.msra.mxu1 %v5262_v58  ;;  %v4234_v11 = vpop.f32.mrb[15].mxu0  ;;  %4535 = vmatprep.subr.bf16.mxu0 %v5277_v59  ;;  %v5310_v57 = vcombine.low %v1225_v17, %v1233_v10  ;;  %v1289_v15 = vld [vmem:[#allocation20 + $0xe38] sm:$0xff] }
 0x7b5   :  { %v4652_v2 = vmul.f32 %v6477_v0, %v6477_v0  ;;  %v4651_v12 = vmul.f32 %v6479_v3, %v6479_v3  ;;  %v4316_v13 = vpop.f32.mrb[15].mxu1  ;;  %4617 = vmatprep.subr.bf16.mxu1 %v5279_v38  ;;  %v5325_v58 = vcombine.high %v1240_v29, %v1248_v31  ;;  %v5327_v38 = vcombine.high %v1241_v36, %v1249_v44  ;;  %v1273_v9 = vld [vmem:[#allocation20 + $0xdb8] sm:$0xff] }
 0x7b6   :  { %v4666_v16 = vmul.f32 %v6475_v42, %v4650_v1  ;;  %v4653_v8 = vmul.f32 %v6483_v7, %v6483_v7  ;;  %v5326_v4 = vcombine.low %v1241_v36, %v1249_v44  ;;  %v5341_v40 = vcombine.high %v1256_v39, %v1264_v41  ;;  %v1280_v1 = vld [vmem:[#allocation20 + $0xdf0] sm:$0xff]  ;;  %v1281_v11 = vld [vmem:[#allocation20 + $0xdf8] sm:$0xff] }
 0x7b7   :  { %v4668_v18 = vmul.f32 %v6477_v0, %v4652_v2  ;;  %v4667_v51 = vmul.f32 %v6479_v3, %v4651_v12  ;;  %4536 = vmatpush1.bf16.msra.mxu0 %v5276_v32  ;;  %v5343_v32 = vcombine.high %v1257_v61, %v1265_v62  ;;  %v5342_v2 = vcombine.low %v1257_v61, %v1265_v62 }
 0x7b8   :  { %v4682_v19 = vmul.f32 0.044715, %v4666_v16  ;;  %v4669_v20 = vmul.f32 %v6483_v7, %v4653_v8  ;;  %4618 = vmatpush1.bf16.msra.mxu1 %v5278_v6  ;;  %4537 = vmatprep.subr.bf16.mxu0 %v5293_v48  ;;  %v1272_v6 = vld [vmem:[#allocation20 + $0xdb0] sm:$0xff]  ;;  %v5340_v48 = vcombine.low %v1256_v39, %v1264_v41  ;;  %v5359_v13 = vcombine.high %v1273_v9, %v1281_v11  ;;  %v1297_v16 = vld [vmem:[#allocation20 + $0xe78] sm:$0xff] }
 0x7b9   :  { %v4684_v24 = vmul.f32 0.044715, %v4668_v18  ;;  %v4683_v25 = vmul.f32 0.044715, %v4667_v51  ;;  %4619 = vmatprep.subr.bf16.mxu1 %v5295_v14  ;;  %v5357_v12 = vcombine.high %v1272_v6, %v1280_v1  ;;  %v1288_v14 = vld [vmem:[#allocation20 + $0xe30] sm:$0xff]  ;;  %v5356_v8 = vcombine.low %v1272_v6, %v1280_v1  ;;  %v1329_v39 = vld [vmem:[#allocation20 + $0xf78] sm:$0xff] }
 0x7ba   :  { %v4698_v34 = vadd.f32 %v6475_v42, %v4682_v19  ;;  %v4685_v35 = vmul.f32 0.044715, %v4669_v20  ;;  %v5358_v10 = vcombine.low %v1273_v9, %v1281_v11  ;;  %v5373_v18 = vcombine.high %v1288_v14, %v1296_v33  ;;  %v1304_v20 = vld [vmem:[#allocation20 + $0xeb0] sm:$0xff] }
 0x7bb   :  { %v4700_v45 = vadd.f32 %v6477_v0, %v4684_v24  ;;  %v4699_v52 = vadd.f32 %v6479_v3, %v4683_v25  ;;  %4538 = vmatpush1.bf16.msra.mxu0 %v5292_v55  ;;  %v5375_v19 = vcombine.high %v1289_v15, %v1297_v16  ;;  %v1305_v25 = vld [vmem:[#allocation20 + $0xeb8] sm:$0xff]  ;;  %v1344_v1 = vld [vmem:[#allocation20 + $0xff0] sm:$0xff] }
 0x7bc   :  { %v4714_v54 = vmul.f32 0.7978846, %v4698_v34  ;;  %v4701_v56 = vadd.f32 %v6483_v7, %v4685_v35  ;;  %4620 = vmatpush1.bf16.msra.mxu1 %v5294_v21  ;;  %4539 = vmatprep.subr.bf16.mxu0 %v5309_v22  ;;  %v1312_v21 = vld [vmem:[#allocation20 + $0xef0] sm:$0xff]  ;;  %v5372_v35 = vcombine.low %v1288_v14, %v1296_v33 }
 0x7bd   :  { %v4716_v59 = vmul.f32 0.7978846, %v4700_v45  ;;  %v4715_v60 = vmul.f32 0.7978846, %v4699_v52  ;;  %4621 = vmatprep.subr.bf16.mxu1 %v5311_v26  ;;  %v1313_v26 = vld [vmem:[#allocation20 + $0xef8] sm:$0xff]  ;;  %v5374_v45 = vcombine.low %v1289_v15, %v1297_v16  ;;  %v5389_v52 = vcombine.high %v1304_v20, %v1312_v21 }
 0x7be   :  { %5671 = vtanh.f32 %v4714_v54  ;;  %v4717_v43 = vmul.f32 0.7978846, %v4701_v56  ;;  %v5391_v56 = vcombine.high %v1305_v25, %v1313_v26  ;;  %v5388_v61 = vcombine.low %v1304_v20, %v1312_v21 }
 0x7bf   :  { %5673 = vtanh.f32 %v4716_v59  ;;  %4540 = vmatpush1.bf16.msra.mxu0 %v5308_v53 }
 0x7c0   :  { %5675 = vtanh.f32 %v4715_v60  ;;  %4622 = vmatpush1.bf16.msra.mxu1 %v5310_v57  ;;  %4541 = vmatprep.subr.bf16.mxu0 %v5325_v58  ;;  %v1320_v57 = vld [vmem:[#allocation20 + $0xf30] sm:$0xff] }
 0x7c1   :  { %5677 = vtanh.f32 %v4717_v43  ;;  %4623 = vmatprep.subr.bf16.mxu1 %v5327_v38  ;;  %v1328_v58 = vld [vmem:[#allocation20 + $0xf70] sm:$0xff]  ;;  %v1321_v38 = vld [vmem:[#allocation20 + $0xf38] sm:$0xff] }
 0x7c2   :  { %v5407_v6 = vcombine.high %v1321_v38, %v1329_v39 }
 0x7c3   :  { %4542 = vmatpush1.bf16.msra.mxu0 %v5324_v63 }
 0x7c4   :  { %4624 = vmatpush1.bf16.msra.mxu1 %v5326_v4  ;;  %4543 = vmatprep.subr.bf16.mxu0 %v5341_v40  ;;  %v5405_v4 = vcombine.high %v1320_v57, %v1328_v58 }
 0x7c5   :  { %4625 = vmatprep.subr.bf16.mxu1 %v5343_v32 }
 0x7c7   :  { %4544 = vmatpush1.bf16.msra.mxu0 %v5340_v48  ;;  %v1337_v48 = vld [vmem:[#allocation20 + $0xfb8] sm:$0xff] }
 0x7c8   :  { %v5672_v17 = vpop.eup %5671  ;;  %4626 = vmatpush1.bf16.msra.mxu1 %v5342_v2  ;;  %4545 = vmatprep.subr.bf16.mxu0 %v5357_v12  ;;  %v1345_v2 = vld [vmem:[#allocation20 + $0xff8] sm:$0xff]  ;;  %v5404_v12 = vcombine.low %v1320_v57, %v1328_v58 }
 0x7c9   :  { %v5674_v51 = vpop.eup %5673  ;;  %v4746_v55 = vadd.f32 1.0, %v5672_v17  ;;  %4627 = vmatprep.subr.bf16.mxu1 %v5359_v13  ;;  %v5406_v13 = vcombine.low %v1321_v38, %v1329_v39  ;;  %v5423_v33 = vcombine.high %v1337_v48, %v1345_v2  ;;  %v5422_v16 = vcombine.low %v1337_v48, %v1345_v2 }
 0x7ca   :  { %v5676_v22 = vpop.eup %5675  ;;  %v4748_v24 = vadd.f32 1.0, %v5674_v51 }
 0x7cb   :  { %v5678_v29 = vpop.eup %5677  ;;  %v4762_v31 = vmul.f32 0.5, %v4746_v55  ;;  %v4747_v34 = vadd.f32 1.0, %v5676_v22  ;;  %4546 = vmatpush1.bf16.msra.mxu0 %v5356_v8  ;;  %v6505_v8 = vld [vmem:[#allocation22 + $0x8] sm:$0xff] }
 0x7cc   :  { %v4764_v36 = vmul.f32 0.5, %v4748_v24  ;;  %v4749_v44 = vadd.f32 1.0, %v5678_v29  ;;  %4628 = vmatpush1.bf16.msra.mxu1 %v5358_v10  ;;  %4547 = vmatprep.subr.bf16.mxu0 %v5373_v18  ;;  %v1385_v17 = vrot.slane %v6505_v8, %v6346_v47  ;;  %v1393_v10 = vrot.slane %v6505_v8, %v6383_v37 }
 0x7cd   :  { %v4778_v53 = vmul.f32 %v6475_v42, %v4762_v31  ;;  %v4763_v54 = vmul.f32 0.5, %v4747_v34  ;;  %4629 = vmatprep.subr.bf16.mxu1 %v5375_v19  ;;  %v5390_v42 = vcombine.low %v1305_v25, %v1313_v26  ;;  %v1389_v18 = vrot.slane %v6505_v8, %v6351_v49 }
 0x7ce   :  { %v4780_v59 = vmul.f32 %v6477_v0, %v4764_v36  ;;  %v4765_v60 = vmul.f32 0.5, %v4749_v44  ;;  %v1336_v0 = vld [vmem:[#allocation20 + $0xfb0] sm:$0xff]  ;;  %v1397_v51 = vrot.slane %v6505_v8, %v6354_v50 }
 0x7cf   :  { %v5538_v41 = vtrunc.f32 %v4778_v53  ;;  %v4779_v43 = vmul.f32 %v6479_v3, %v4763_v54  ;;  %4548 = vmatpush1.bf16.msra.mxu0 %v5372_v35  ;;  %v5421_v14 = vcombine.high %v1336_v0, %v1344_v1  ;;  %v5420_v15 = vcombine.low %v1336_v0, %v1344_v1 }
 0x7d0   :  { %v5542_v62 = vtrunc.f32 %v4780_v59  ;;  %v4781_v63 = vmul.f32 %v6483_v7, %v4765_v60  ;;  %4630 = vmatpush1.bf16.msra.mxu1 %v5374_v45  ;;  %4549 = vmatprep.subr.bf16.mxu0 %v5389_v52 }
 0x7d1   :  { %v5539_v40 = vcvt.f32.s32 %v5538_v41  ;;  %v5540_v32 = vtrunc.f32 %v4779_v43  ;;  %4631 = vmatprep.subr.bf16.mxu1 %v5391_v56 }
 0x7d2   :  { %v5543_v9 = vcvt.f32.s32 %v5542_v62  ;;  %v5544_v11 = vtrunc.f32 %v4781_v63 }
 0x7d3   :  { %4810 = vst [vmem:[#allocation24 + $0x20] sm:$0xff] %v5539_v40  ;;  %v5541_v3 = vcvt.f32.s32 %v5540_v32  ;;  %4550 = vmatpush1.bf16.msra.mxu0 %v5388_v61 }
 0x7d4   :  { %4812 = vst [vmem:[#allocation24 + $0x30] sm:$0xff] %v5543_v9  ;;  %v5545_v7 = vcvt.f32.s32 %v5544_v11  ;;  %4632 = vmatpush1.bf16.msra.mxu1 %v5390_v42  ;;  %4551 = vmatprep.subr.bf16.mxu0 %v5405_v4 }
 0x7d5   :  { %4811 = vst [vmem:[#allocation24 + $0x28] sm:$0xff] %v5541_v3  ;;  %4633 = vmatprep.subr.bf16.mxu1 %v5407_v6 }
 0x7d6   :  { %4813 = vst [vmem:[#allocation24 + $0x38] sm:$0xff] %v5545_v7 }
 0x7d7   :  { %4552 = vmatpush1.bf16.msra.mxu0 %v5404_v12 }
 0x7d8   :  { %4634 = vmatpush1.bf16.msra.mxu1 %v5406_v13  ;;  %4553 = vmatprep.subr.bf16.mxu0 %v5421_v14 }
 0x7d9   :  { %4635 = vmatprep.subr.bf16.mxu1 %v5423_v33 }
 0x7db   :  { %4554 = vmatpush1.bf16.msra.mxu0 %v5420_v15 }
 0x7dc   :  { %4636 = vmatpush1.bf16.msra.mxu1 %v5422_v16 }
 0x7de   :  { %4556 = vmatmul.mubr.bf16.vlgmr.msra.gmra.mrb[20].mxu0 %v6395_v5 }
 0x7df   :  { %4638 = vmatmul.mubr.bf16.vlgmr.msra.gmra.mrb[20].mxu1 %v6395_v5 }
 0x831   :  { %v4393_v55 = vpop.f32.mrb[16].mxu0 }
 0x832   :  { %v5490_v19 = vadd.f32 %v4393_v55, %v1385_v17  ;;  %v4475_v20 = vpop.f32.mrb[16].mxu1  ;;  %v4395_v21 = vpop.f32.mrb[17].mxu0 }
 0x833   :  { %v5492_v22 = vadd.f32 %v4475_v20, %v1393_v10  ;;  %v5491_v5 = vadd.f32 %v4395_v21, %v1389_v18  ;;  %v4477_v24 = vpop.f32.mrb[17].mxu1  ;;  %v4397_v25 = vpop.f32.mrb[18].mxu0 }
 0x834   :  { %v4654_v26 = vmul.f32 %v5490_v19, %v5490_v19  ;;  %v5493_v29 = vadd.f32 %v4477_v24, %v1397_v51  ;;  %v4479_v47 = vpop.f32.mrb[18].mxu1  ;;  %v4398_v31 = vpop.f32.mrb[19].mxu0 }
 0x835   :  { %v4656_v34 = vmul.f32 %v5492_v22, %v5492_v22  ;;  %v4655_v37 = vmul.f32 %v5491_v5, %v5491_v5  ;;  %v4480_v35 = vpop.f32.mrb[19].mxu1 }
 0x836   :  { %v4670_v36 = vmul.f32 %v5490_v19, %v4654_v26  ;;  %v4657_v49 = vmul.f32 %v5493_v29, %v5493_v29 }
 0x837   :  { %v4672_v44 = vmul.f32 %v5492_v22, %v4656_v34  ;;  %v4671_v45 = vmul.f32 %v5491_v5, %v4655_v37 }
 0x838   :  { %v4686_v50 = vmul.f32 0.044715, %v4670_v36  ;;  %v4673_v52 = vmul.f32 %v5493_v29, %v4657_v49 }
 0x839   :  { %v4688_v53 = vmul.f32 0.044715, %v4672_v44  ;;  %v4687_v54 = vmul.f32 0.044715, %v4671_v45 }
 0x83a   :  { %v4702_v56 = vadd.f32 %v5490_v19, %v4686_v50  ;;  %v4689_v57 = vmul.f32 0.044715, %v4673_v52 }
 0x83b   :  { %v4704_v58 = vadd.f32 %v5492_v22, %v4688_v53  ;;  %v4703_v59 = vadd.f32 %v5491_v5, %v4687_v54 }
 0x83c   :  { %v4718_v60 = vmul.f32 0.7978846, %v4702_v56  ;;  %v4705_v38 = vadd.f32 %v5493_v29, %v4689_v57 }
 0x83d   :  { %v4720_v39 = vmul.f32 0.7978846, %v4704_v58  ;;  %v4719_v41 = vmul.f32 0.7978846, %v4703_v59 }
 0x83e   :  { %5679 = vtanh.f32 %v4718_v60  ;;  %v4721_v43 = vmul.f32 0.7978846, %v4705_v38 }
 0x83f   :  { %5681 = vtanh.f32 %v4720_v39 }
 0x840   :  { %5683 = vtanh.f32 %v4719_v41 }
 0x841   :  { %5685 = vtanh.f32 %v4721_v43 }
 0x848   :  { %v5680_v61 = vpop.eup %5679 }
 0x849   :  { %v5682_v62 = vpop.eup %5681  ;;  %v4750_v63 = vadd.f32 1.0, %v5680_v61 }
 0x84a   :  { %v5684_v42 = vpop.eup %5683  ;;  %v4752_v4 = vadd.f32 1.0, %v5682_v62 }
 0x84b   :  { %v5686_v40 = vpop.eup %5685  ;;  %v4766_v32 = vmul.f32 0.5, %v4750_v63  ;;  %v4751_v6 = vadd.f32 1.0, %v5684_v42 }
 0x84c   :  { %v4768_v0 = vmul.f32 0.5, %v4752_v4  ;;  %v4753_v1 = vadd.f32 1.0, %v5686_v40 }
 0x84d   :  { %v4782_v9 = vmul.f32 %v5490_v19, %v4766_v32  ;;  %v4767_v11 = vmul.f32 0.5, %v4751_v6 }
 0x84e   :  { %v4784_v48 = vmul.f32 %v5492_v22, %v4768_v0  ;;  %v4769_v2 = vmul.f32 0.5, %v4753_v1 }
 0x84f   :  { %v5546_v3 = vtrunc.f32 %v4782_v9  ;;  %v4783_v12 = vmul.f32 %v5491_v5, %v4767_v11 }
 0x850   :  { %v5550_v7 = vtrunc.f32 %v4784_v48  ;;  %v4785_v13 = vmul.f32 %v5493_v29, %v4769_v2 }
 0x851   :  { %v5547_v14 = vcvt.f32.s32 %v5546_v3  ;;  %v5548_v33 = vtrunc.f32 %v4783_v12 }
 0x852   :  { %v5551_v15 = vcvt.f32.s32 %v5550_v7  ;;  %v5552_v16 = vtrunc.f32 %v4785_v13 }
 0x853   :  { %4814 = vst [vmem:[#allocation24 + $0x40] sm:$0xff] %v5547_v14  ;;  %v5549_v17 = vcvt.f32.s32 %v5548_v33 }
 0x854   :  { %4816 = vst [vmem:[#allocation24 + $0x50] sm:$0xff] %v5551_v15  ;;  %v5553_v10 = vcvt.f32.s32 %v5552_v16 }
 0x855   :  { %4815 = vst [vmem:[#allocation24 + $0x48] sm:$0xff] %v5549_v17 }
 0x856   :  { %4817 = vst [vmem:[#allocation24 + $0x58] sm:$0xff] %v5553_v10 }
 0x857   :  { %5992 = shalt.err (!%p5989_p10)
}
 0x858   :  { %s5993_s25 = scalar_lea.hbm %s6564_s13, 128 }
 0x859   :  { %p5994_p11 = scmp.ne.s32.totalorder %s6564_s13, %s5993_s25  ;;  %p5997_p12 = scmp.lt.u32.totalorder %s5993_s25, %s6564_s13 }
 0x85b   :  { %p5999_p13 = pnand %p5997_p12, %p5994_p11 }
 0x85d   :  { %6002 = shalt.err (!%p5999_p13)
}
 0x85e   :  { %4832 = dma.vmem_to_hbm [thread:$0]  %s4830_s2, 128, %s6564_s13, [#allocation4]   ;;  %v1401_v18 = vrot.slane %v6505_v8, %v1368_v23  ;;  %v1409_v51 = vrot.slane %v6505_v8, %v1376_v27  ;;  %v1405_v55 = vrot.slane %v6505_v8, %v1372_v28  ;;  %v1413_v19 = vrot.slane %v6505_v8, %v1380_v30 }
 0x85f   :  { %s6065_s13 = smov [#allocation24]   ;;  %vm4821_vm1 = vcmask 654336  }
 0x860   :  { %s4839_s22 = sshll.u32 %s6065_s13, 4  ;;  %s4840_s22 = int_to_ptr.vmem [resolvable:$true] %s4839_s22 }
 0x861   :  { %s6003_s23 = scalar_lea.vmem %s4840_s22, 2048  ;;  %p6008_p1 = scmp.lt.s32.totalorder %s4840_s22, %s4840_s22 }
 0x862   :  { %p6004_p0 = scmp.ne.s32.totalorder %s4840_s22, %s6003_s23  ;;  %p6009_p2 = scmp.lt.s32.totalorder %s6003_s23, %s6003_s23 }
 0x864   :  { %p6010_p3 = por %p6009_p2, %p6008_p1 }
 0x866   :  { %p6011_p4 = pnand %p6010_p3, %p6004_p0 }
 0x8b1   :  { %v4557_v20 = vpop.f32.mrb[20].mxu0 }
 0x8b2   :  { %v5494_v21 = vadd.f32 %v4557_v20, %v1401_v18  ;;  %v4639_v22 = vpop.f32.mrb[20].mxu1  ;;  %v4559_v5 = vpop.f32.mrb[21].mxu0 }
 0x8b3   :  { %v5496_v24 = vadd.f32 %v4639_v22, %v1409_v51  ;;  %v5495_v25 = vadd.f32 %v4559_v5, %v1405_v55  ;;  %v4641_v26 = vpop.f32.mrb[21].mxu1  ;;  %v4561_v23 = vpop.f32.mrb[22].mxu0 }
 0x8b4   :  { %v4658_v29 = vmul.f32 %v5494_v21, %v5494_v21  ;;  %v5497_v47 = vadd.f32 %v4641_v26, %v1413_v19  ;;  %v4643_v31 = vpop.f32.mrb[22].mxu1  ;;  %v4562_v27 = vpop.f32.mrb[23].mxu0 }
 0x8b5   :  { %v4660_v34 = vmul.f32 %v5496_v24, %v5496_v24  ;;  %v4659_v37 = vmul.f32 %v5495_v25, %v5495_v25  ;;  %v4644_v35 = vpop.f32.mrb[23].mxu1 }
 0x8b6   :  { %v4674_v28 = vmul.f32 %v5494_v21, %v4658_v29  ;;  %v4661_v36 = vmul.f32 %v5497_v47, %v5497_v47 }
 0x8b7   :  { %v4676_v46 = vmul.f32 %v5496_v24, %v4660_v34  ;;  %v4675_v49 = vmul.f32 %v5495_v25, %v4659_v37 }
 0x8b8   :  { %v4690_v30 = vmul.f32 0.044715, %v4674_v28  ;;  %v4677_v8 = vmul.f32 %v5497_v47, %v4661_v36 }
 0x8b9   :  { %v4692_v44 = vmul.f32 0.044715, %v4676_v46  ;;  %v4691_v45 = vmul.f32 0.044715, %v4675_v49 }
 0x8ba   :  { %v4706_v50 = vadd.f32 %v5494_v21, %v4690_v30  ;;  %v4693_v52 = vmul.f32 0.044715, %v4677_v8 }
 0x8bb   :  { %v4708_v53 = vadd.f32 %v5496_v24, %v4692_v44  ;;  %v4707_v54 = vadd.f32 %v5495_v25, %v4691_v45 }
 0x8bc   :  { %v4722_v56 = vmul.f32 0.7978846, %v4706_v50  ;;  %v4709_v57 = vadd.f32 %v5497_v47, %v4693_v52 }
 0x8bd   :  { %v4724_v58 = vmul.f32 0.7978846, %v4708_v53  ;;  %v4723_v59 = vmul.f32 0.7978846, %v4707_v54 }
 0x8be   :  { %5687 = vtanh.f32 %v4722_v56  ;;  %v4725_v60 = vmul.f32 0.7978846, %v4709_v57 }
 0x8bf   :  { %5689 = vtanh.f32 %v4724_v58 }
 0x8c0   :  { %5691 = vtanh.f32 %v4723_v59 }
 0x8c1   :  { %5693 = vtanh.f32 %v4725_v60 }
 0x8c8   :  { %v5688_v38 = vpop.eup %5687 }
 0x8c9   :  { %v5690_v39 = vpop.eup %5689  ;;  %v4754_v41 = vadd.f32 1.0, %v5688_v38 }
 0x8ca   :  { %v5692_v43 = vpop.eup %5691  ;;  %v4756_v61 = vadd.f32 1.0, %v5690_v39 }
 0x8cb   :  { %v5694_v62 = vpop.eup %5693  ;;  %v4770_v63 = vmul.f32 0.5, %v4754_v41  ;;  %v4755_v42 = vadd.f32 1.0, %v5692_v43 }
 0x8cc   :  { %v4772_v4 = vmul.f32 0.5, %v4756_v61  ;;  %v4757_v40 = vadd.f32 1.0, %v5694_v62 }
 0x8cd   :  { %v4786_v32 = vmul.f32 %v5494_v21, %v4770_v63  ;;  %v4771_v6 = vmul.f32 0.5, %v4755_v42 }
 0x8ce   :  { %v4788_v0 = vmul.f32 %v5496_v24, %v4772_v4  ;;  %v4773_v1 = vmul.f32 0.5, %v4757_v40 }
 0x8cf   :  { %v5554_v9 = vtrunc.f32 %v4786_v32  ;;  %v4787_v11 = vmul.f32 %v5495_v25, %v4771_v6 }
 0x8d0   :  { %v5558_v48 = vtrunc.f32 %v4788_v0  ;;  %v4789_v2 = vmul.f32 %v5497_v47, %v4773_v1 }
 0x8d1   :  { %v5555_v3 = vcvt.f32.s32 %v5554_v9  ;;  %v5556_v12 = vtrunc.f32 %v4787_v11 }
 0x8d2   :  { %v5559_v7 = vcvt.f32.s32 %v5558_v48  ;;  %v5560_v13 = vtrunc.f32 %v4789_v2 }
 0x8d3   :  { %4818 = vst [vmem:[#allocation24 + $0x60] sm:$0xff] %v5555_v3  ;;  %v5557_v14 = vcvt.f32.s32 %v5556_v12 }
 0x8d4   :  { %4820 = vst [vmem:[#allocation24 + $0x70] sm:$0xff] %v5559_v7  ;;  %v5561_v33 = vcvt.f32.s32 %v5560_v13 }
 0x8d5   :  { %4819 = vst [vmem:[#allocation24 + $0x68] sm:$0xff] %v5557_v14 }
 0x8d6   :  { %4822 = vst.msk [vmem:[#allocation24 + $0x78] sm:$0xff] %vm4821_vm1, %v5561_v33 }
 0x8d7   :  { %6014 = shalt.err (!%p6011_p4)
}
 0x8d8   :  { %s6015_s24 = scalar_lea.hbm %s6565_s14, 2048 }
 0x8d9   :  { %p6016_p5 = scmp.ne.s32.totalorder %s6565_s14, %s6015_s24  ;;  %p6019_p6 = scmp.lt.u32.totalorder %s6015_s24, %s6565_s14 }
 0x8db   :  { %p6021_p7 = pnand %p6019_p6, %p6016_p5 }
 0x8dd   :  { %6024 = shalt.err (!%p6021_p7)
}
 0x8de   :  { %4842 = dma.vmem_to_hbm [thread:$0]  %s4840_s22, 2048, %s6565_s14, [#allocation25]  }
 0x8df   :  { %6039 = dma.done.wait [#allocation4], 128  }
 0x8e0   :  { %6040 = vsyncadd [#allocation4], 4294967168 }
 0x8e1   :  { %6041 = dma.done.wait [#allocation25], 2048  }
 0x8e2   :  { %6042 = vsyncadd [#allocation25], 4294965248 }
 0x8e3   :  { %4849 = vsyncpa [#allocation3], 1 }
 0x8e4   :  { %4850 = vsyncpa [#allocation6], 1 }
 0x8e5   :  { %4851 = vsyncpa [#allocation9], 1 }
 0x8e6   :  { %4852 = vsyncpa [#allocation12], 1 }
 0x8e7   :  { %4853 = vsyncpa [#allocation15], 1 }
 0x8e8   :  { %4854 = vsyncpa [#allocation18], 1 }
 0x8e9   :  { %4855 = vsyncpa [#allocation21], 1 }
 0x8ea   :  { %4856 = vsyncpa [#allocation4], 1 }
 0x8eb   :  { %4857 = vsyncpa [#allocation25], 1 }

// kernel: tpu_custom_call.1
= control target key start
LH: loop header
LB: loop body
LE: loop exit
PB: predicated region body
PF: predicated region fallthrough
CT: control target
= control target key end

     0   :  { %20 = vsyncpa [#allocation3], 0  ;;  %s6551_s0 = inlined_call_operand.hbm [shape: f32[8,128], index: 0, kind: input, shape index: {}]   ;;  %s6552_s1 = inlined_call_operand.hbm [shape: f32[1,128], index: 1, kind: input, shape index: {}]   ;;  %s6553_s2 = inlined_call_operand.hbm [shape: f32[1,128], index: 2, kind: input, shape index: {}]   ;;  %s6554_s3 = inlined_call_operand.hbm [shape: bf16[128,128], index: 3, kind: input, shape index: {}]   ;;  %s6555_s4 = inlined_call_operand.hbm [shape: f32[1,128], index: 4, kind: input, shape index: {}]   ;;  %s6556_s5 = inlined_call_operand.hbm [shape: bf16[128,128], index: 5, kind: input, shape index: {}]   ;;  %s6557_s6 = inlined_call_operand.hbm [shape: f32[1,128], index: 6, kind: input, shape index: {}]   ;;  %s6558_s7 = inlined_call_operand.hbm [shape: f32[1,128], index: 7, kind: input, shape index: {}]   ;;  %s6559_s8 = inlined_call_operand.hbm [shape: f32[1,128], index: 8, kind: input, shape index: {}]   ;;  %s6560_s9 = inlined_call_operand.hbm [shape: bf16[128,512], index: 9, kind: input, shape index: {}]   ;;  %s6561_s10 = inlined_call_operand.hbm [shape: f32[1,512], index: 10, kind: input, shape index: {}]   ;;  %s6562_s11 = inlined_call_operand.hbm [shape: bf16[512,2048], index: 11, kind: input, shape index: {}]   ;;  %s6563_s12 = inlined_call_operand.hbm [shape: f32[1,2048], index: 12, kind: input, shape index: {}]   ;;  %s6564_s13 = inlined_call_operand.hbm [shape: f32[8,128], index: 13, kind: output, shape index: {0}]   ;;  %s6565_s14 = inlined_call_operand.hbm [shape: s32[8,2000], index: 14, kind: output, shape index: {1}]  }
   0x1   :  { %21 = vsyncpa [#allocation6], 0 }
   0x2   :  { %22 = vsyncpa [#allocation9], 0 }
   0x3   :  { %23 = vsyncpa [#allocation12], 0 }
   0x4   :  { %24 = vsyncpa [#allocation15], 0 }
   0x5   :  { %25 = vsyncpa [#allocation18], 0 }
   0x6   :  { %26 = vsyncpa [#allocation21], 0 }
   0x7   :  { %27 = vsyncpa [#allocation4], 0 }
   0x8   :  { %28 = vsyncpa [#allocation25], 0  ;;  %s6043_s29 = smov [#allocation5]   ;;  %s6044_s15 = smov [#allocation8]  }
   0x9   :  { %s45_s30 = sshll.u32 %s6043_s29, 4  ;;  %s64_s16 = sshll.u32 %s6044_s15, 4  ;;  %s46_s30 = int_to_ptr.vmem [resolvable:$true] %s45_s30  ;;  %s6141_s16 = int_to_ptr.vmem [resolvable:$true] %s64_s16 }
   0xa   :  { %s5695_s19 = scalar_lea.hbm %s6552_s1, 16 }
   0xb   :  { %p5696_p0 = scmp.ne.s32.totalorder %s6552_s1, %s5695_s19  ;;  %p5699_p1 = scmp.lt.u32.totalorder %s5695_s19, %s6552_s1 }
   0xd   :  { %p5701_p2 = pnand %p5699_p1, %p5696_p0 }
   0xf   :  { %5704 = shalt.err (!%p5701_p2)
}
  0x10   :  { %s5705_s24 = scalar_lea.vmem %s46_s30, 16  ;;  %s5709_s25 = scalar_lea.vmem %s46_s30, 32 }
  0x11   :  { %p5706_p3 = scmp.ne.s32.totalorder %s46_s30, %s5705_s24  ;;  %p5710_p4 = scmp.lt.s32.totalorder %s46_s30, %s46_s30 }
  0x12   :  { %p5711_p5 = scmp.lt.s32.totalorder %s5709_s25, %s5705_s24 }
  0x14   :  { %p5712_p6 = por %p5711_p5, %p5710_p4 }
  0x16   :  { %p5713_p7 = pnand %p5712_p6, %p5706_p3 }
  0x18   :  { %5716 = shalt.err (!%p5713_p7)
}
  0x19   :  { %48 = dma.hbm_to_vmem [thread:$0]  %s6552_s1, 16, %s46_s30, [#allocation6]  }
  0x1a   :  { %s5717_s15 = scalar_lea.hbm %s6554_s3, 1024 }
  0x1b   :  { %p5718_p8 = scmp.ne.s32.totalorder %s6554_s3, %s5717_s15  ;;  %p5721_p9 = scmp.lt.u32.totalorder %s5717_s15, %s6554_s3 }
  0x1d   :  { %p5723_p10 = pnand %p5721_p9, %p5718_p8 }
  0x1f   :  { %5726 = shalt.err (!%p5723_p10)
}
  0x20   :  { %s5727_s21 = scalar_lea.vmem %s6141_s16, 1024  ;;  %p5732_p12 = scmp.lt.s32.totalorder %s6141_s16, %s6141_s16 }
  0x21   :  { %p5728_p11 = scmp.ne.s32.totalorder %s6141_s16, %s5727_s21  ;;  %p5733_p13 = scmp.lt.s32.totalorder %s5727_s21, %s5727_s21 }
  0x23   :  { %p5734_p0 = por %p5733_p13, %p5732_p12 }
  0x25   :  { %p5735_p1 = pnand %p5734_p0, %p5728_p11 }
  0x27   :  { %5738 = shalt.err (!%p5735_p1)
}
  0x28   :  { %s6045_s1 = smov 64   ;;  %s6046_s30 = smov 4  }
  0x29   :  { %70 = dma.hbm_to_vmem [thread:$0]  %s6554_s3, 1024, %s6141_s16, [#allocation9], %s6045_s1, %s6045_s1, %s6046_s30  }
  0x2a   :  { %s6047_s24 = smov [#allocation11]   ;;  %s6048_s26 = smov [#allocation14]  }
  0x2b   :  { %s86_s25 = sshll.u32 %s6047_s24, 4  ;;  %s109_s27 = sshll.u32 %s6048_s26, 4  ;;  %s87_s25 = int_to_ptr.vmem [resolvable:$true] %s86_s25  ;;  %s110_s27 = int_to_ptr.vmem [resolvable:$true] %s109_s27 }
  0x2c   :  { %s5739_s15 = scalar_lea.hbm %s6556_s5, 1024 }
  0x2d   :  { %p5740_p2 = scmp.ne.s32.totalorder %s6556_s5, %s5739_s15  ;;  %p5743_p3 = scmp.lt.u32.totalorder %s5739_s15, %s6556_s5 }
  0x2f   :  { %p5745_p4 = pnand %p5743_p3, %p5740_p2 }
  0x31   :  { %5748 = shalt.err (!%p5745_p4)
}
  0x32   :  { %s5749_s3 = scalar_lea.vmem %s87_s25, 1024  ;;  %p5754_p6 = scmp.lt.s32.totalorder %s87_s25, %s87_s25 }
  0x33   :  { %p5750_p5 = scmp.ne.s32.totalorder %s87_s25, %s5749_s3  ;;  %p5755_p7 = scmp.lt.s32.totalorder %s5749_s3, %s5749_s3 }
  0x35   :  { %p5756_p8 = por %p5755_p7, %p5754_p6 }
  0x37   :  { %p5757_p9 = pnand %p5756_p8, %p5750_p5 }
  0x39   :  { %5760 = shalt.err (!%p5757_p9)
}
  0x3a   :  { %92 = dma.hbm_to_vmem [thread:$0]  %s6556_s5, 1024, %s87_s25, [#allocation12], %s6045_s1, %s6045_s1, %s6046_s30  }
  0x3b   :  { %s5761_s24 = scalar_lea.hbm %s6558_s7, 16 }
  0x3c   :  { %p5762_p10 = scmp.ne.s32.totalorder %s6558_s7, %s5761_s24  ;;  %p5765_p11 = scmp.lt.u32.totalorder %s5761_s24, %s6558_s7 }
  0x3e   :  { %p5767_p12 = pnand %p5765_p11, %p5762_p10 }
  0x40   :  { %5770 = shalt.err (!%p5767_p12)
}
  0x41   :  { %s5771_s17 = scalar_lea.vmem %s110_s27, 16  ;;  %s5775_s18 = scalar_lea.vmem %s110_s27, 32 }
  0x42   :  { %p5772_p13 = scmp.ne.s32.totalorder %s110_s27, %s5771_s17  ;;  %p5776_p0 = scmp.lt.s32.totalorder %s110_s27, %s110_s27 }
  0x43   :  { %p5777_p1 = scmp.lt.s32.totalorder %s5775_s18, %s5771_s17 }
  0x45   :  { %p5778_p2 = por %p5777_p1, %p5776_p0 }
  0x47   :  { %p5779_p3 = pnand %p5778_p2, %p5772_p13 }
  0x49   :  { %5782 = shalt.err (!%p5779_p3)
}
  0x4a   :  { %112 = dma.hbm_to_vmem [thread:$0]  %s6558_s7, 16, %s110_s27, [#allocation15]  }
  0x4b   :  { %s6049_s25 = smov [#allocation17]   ;;  %s5783_s16 = scalar_lea.hbm %s6560_s9, 4096 }
  0x4c   :  { %s128_s19 = sshll.u32 %s6049_s25, 4  ;;  %p5784_p4 = scmp.ne.s32.totalorder %s6560_s9, %s5783_s16  ;;  %s129_s19 = int_to_ptr.vmem [resolvable:$true] %s128_s19 }
  0x4d   :  { %p5787_p5 = scmp.lt.u32.totalorder %s5783_s16, %s6560_s9 }
  0x4f   :  { %p5789_p6 = pnand %p5787_p5, %p5784_p4 }
  0x51   :  { %5792 = shalt.err (!%p5789_p6)
}
  0x52   :  { %s5793_s26 = scalar_lea.vmem %s129_s19, 4096  ;;  %p5798_p8 = scmp.lt.s32.totalorder %s129_s19, %s129_s19 }
  0x53   :  { %p5794_p7 = scmp.ne.s32.totalorder %s129_s19, %s5793_s26  ;;  %p5799_p9 = scmp.lt.s32.totalorder %s5793_s26, %s5793_s26 }
  0x55   :  { %p5800_p10 = por %p5799_p9, %p5798_p8 }
  0x57   :  { %p5801_p11 = pnand %p5800_p10, %p5794_p7 }
  0x59   :  { %5804 = shalt.err (!%p5801_p11)
}
  0x5a   :  { %s6050_s7 = smov 256   ;;  %s6051_s27 = smov 16  }
  0x5b   :  { %134 = dma.hbm_to_vmem [thread:$0]  %s6560_s9, 4096, %s129_s19, [#allocation18], %s6050_s7, %s6050_s7, %s6051_s27  }
  0x5c   :  { %s6052_s15 = smov [#allocation20]   ;;  %s5805_s30 = scalar_lea.hbm %s6562_s11, 65536 }
  0x5d   :  { %s150_s17 = sshll.u32 %s6052_s15, 4  ;;  %p5806_p12 = scmp.ne.s32.totalorder %s6562_s11, %s5805_s30  ;;  %s151_s17 = int_to_ptr.vmem [resolvable:$true] %s150_s17 }
  0x5e   :  { %p5809_p13 = scmp.lt.u32.totalorder %s5805_s30, %s6562_s11 }
  0x60   :  { %p5811_p0 = pnand %p5809_p13, %p5806_p12 }
  0x62   :  { %5814 = shalt.err (!%p5811_p0)
}
  0x63   :  { %s5815_s21 = scalar_lea.vmem %s151_s17, 65536  ;;  %p5820_p2 = scmp.lt.s32.totalorder %s151_s17, %s151_s17 }
  0x64   :  { %p5816_p1 = scmp.ne.s32.totalorder %s151_s17, %s5815_s21  ;;  %p5821_p3 = scmp.lt.s32.totalorder %s5815_s21, %s5815_s21 }
  0x66   :  { %p5822_p4 = por %p5821_p3, %p5820_p2 }
  0x68   :  { %p5823_p5 = pnand %p5822_p4, %p5816_p1 }
  0x6a   :  { %5826 = shalt.err (!%p5823_p5)
}
  0x6b   :  { %s6053_s9 = smov 1024   ;;  %s6054_s23 = smov [#allocation2]  }
  0x6c   :  { %156 = dma.hbm_to_vmem [thread:$0]  %s6562_s11, 65536, %s151_s17, [#allocation21], %s6053_s9, %s6053_s9, %s6045_s1  }
  0x6d   :  { %s35_s24 = sshll.u32 %s6054_s23, 4  ;;  %s6055_s26 = smov [#allocation7]   ;;  %s36_s24 = int_to_ptr.vmem [resolvable:$true] %s35_s24 }
  0x6e   :  { %s55_s7 = sshll.u32 %s6055_s26, 4  ;;  %s5827_s29 = scalar_lea.hbm %s6551_s0, 128  ;;  %s56_s7 = int_to_ptr.vmem [resolvable:$true] %s55_s7 }
  0x6f   :  { %p5828_p6 = scmp.ne.s32.totalorder %s6551_s0, %s5827_s29  ;;  %p5831_p7 = scmp.lt.u32.totalorder %s5827_s29, %s6551_s0 }
  0x71   :  { %p5833_p8 = pnand %p5831_p7, %p5828_p6 }
  0x73   :  { %5836 = shalt.err (!%p5833_p8)
}
  0x74   :  { %s5837_s11 = scalar_lea.vmem %s36_s24, 128  ;;  %p5842_p10 = scmp.lt.s32.totalorder %s36_s24, %s36_s24 }
  0x75   :  { %p5838_p9 = scmp.ne.s32.totalorder %s36_s24, %s5837_s11  ;;  %p5843_p11 = scmp.lt.s32.totalorder %s5837_s11, %s5837_s11 }
  0x77   :  { %p5844_p12 = por %p5843_p11, %p5842_p10 }
  0x79   :  { %p5845_p13 = pnand %p5844_p12, %p5838_p9 }
  0x7b   :  { %5848 = shalt.err (!%p5845_p13)
}
  0x7c   :  { %38 = dma.hbm_to_vmem [thread:$0]  %s6551_s0, 128, %s36_s24, [#allocation3]  }
  0x7d   :  { %s5849_s3 = scalar_lea.hbm %s6553_s2, 16 }
  0x7e   :  { %p5850_p0 = scmp.ne.s32.totalorder %s6553_s2, %s5849_s3  ;;  %p5853_p1 = scmp.lt.u32.totalorder %s5849_s3, %s6553_s2 }
  0x80   :  { %p5855_p2 = pnand %p5853_p1, %p5850_p0 }
  0x82   :  { %5858 = shalt.err (!%p5855_p2)
}
  0x83   :  { %s5859_s22 = scalar_lea.vmem %s56_s7, 16  ;;  %s5863_s23 = scalar_lea.vmem %s56_s7, 32 }
  0x84   :  { %p5860_p3 = scmp.ne.s32.totalorder %s56_s7, %s5859_s22  ;;  %p5864_p4 = scmp.lt.s32.totalorder %s56_s7, %s56_s7 }
  0x85   :  { %p5865_p5 = scmp.lt.s32.totalorder %s5863_s23, %s5859_s22 }
  0x87   :  { %p5866_p6 = por %p5865_p5, %p5864_p4 }
  0x89   :  { %p5867_p7 = pnand %p5866_p6, %p5860_p3 }
  0x8b   :  { %5870 = shalt.err (!%p5867_p7)
}
  0x8c   :  { %58 = dma.hbm_to_vmem [thread:$0]  %s6553_s2, 16, %s56_s7, [#allocation6]  }
  0x8d   :  { %s6056_s26 = smov [#allocation10]   ;;  %s6057_s28 = smov [#allocation13]  }
  0x8e   :  { %s77_s27 = sshll.u32 %s6056_s26, 4  ;;  %s99_s29 = sshll.u32 %s6057_s28, 4  ;;  %s78_s27 = int_to_ptr.vmem [resolvable:$true] %s77_s27  ;;  %s100_s29 = int_to_ptr.vmem [resolvable:$true] %s99_s29 }
  0x8f   :  { %s5871_s5 = scalar_lea.hbm %s6555_s4, 16 }
  0x90   :  { %p5872_p8 = scmp.ne.s32.totalorder %s6555_s4, %s5871_s5  ;;  %p5875_p9 = scmp.lt.u32.totalorder %s5871_s5, %s6555_s4 }
  0x92   :  { %p5877_p10 = pnand %p5875_p9, %p5872_p8 }
  0x94   :  { %5880 = shalt.err (!%p5877_p10)
}
  0x95   :  { %s5881_s2 = scalar_lea.vmem %s78_s27, 16  ;;  %s5885_s7 = scalar_lea.vmem %s78_s27, 32 }
  0x96   :  { %p5882_p11 = scmp.ne.s32.totalorder %s78_s27, %s5881_s2  ;;  %p5886_p12 = scmp.lt.s32.totalorder %s78_s27, %s78_s27 }
  0x97   :  { %p5887_p13 = scmp.lt.s32.totalorder %s5885_s7, %s5881_s2 }
  0x99   :  { %p5888_p0 = por %p5887_p13, %p5886_p12 }
  0x9b   :  { %p5889_p1 = pnand %p5888_p0, %p5882_p11 }
  0x9d   :  { %5892 = shalt.err (!%p5889_p1)
}
  0x9e   :  { %80 = dma.hbm_to_vmem [thread:$0]  %s6555_s4, 16, %s78_s27, [#allocation9]  }
  0x9f   :  { %s5893_s21 = scalar_lea.hbm %s6557_s6, 16 }
  0xa0   :  { %p5894_p2 = scmp.ne.s32.totalorder %s6557_s6, %s5893_s21  ;;  %p5897_p3 = scmp.lt.u32.totalorder %s5893_s21, %s6557_s6 }
  0xa2   :  { %p5899_p4 = pnand %p5897_p3, %p5894_p2 }
  0xa4   :  { %5902 = shalt.err (!%p5899_p4)
}
  0xa5   :  { %s5903_s0 = scalar_lea.vmem %s100_s29, 16  ;;  %s5907_s24 = scalar_lea.vmem %s100_s29, 32 }
  0xa6   :  { %p5904_p5 = scmp.ne.s32.totalorder %s100_s29, %s5903_s0  ;;  %p5908_p6 = scmp.lt.s32.totalorder %s100_s29, %s100_s29 }
  0xa7   :  { %p5909_p7 = scmp.lt.s32.totalorder %s5907_s24, %s5903_s0 }
  0xa9   :  { %p5910_p8 = por %p5909_p7, %p5908_p6 }
  0xab   :  { %p5911_p9 = pnand %p5910_p8, %p5904_p5 }
  0xad   :  { %5914 = shalt.err (!%p5911_p9)
}
  0xae   :  { %102 = dma.hbm_to_vmem [thread:$0]  %s6557_s6, 16, %s100_s29, [#allocation12]  }
  0xaf   :  { %s6058_s27 = smov [#allocation16]   ;;  %s6059_s15 = smov [#allocation19]  }
  0xb0   :  { %s119_s28 = sshll.u32 %s6058_s27, 4  ;;  %s141_s18 = sshll.u32 %s6059_s15, 4  ;;  %s120_s28 = int_to_ptr.vmem [resolvable:$true] %s119_s28  ;;  %s142_s18 = int_to_ptr.vmem [resolvable:$true] %s141_s18 }
  0xb1   :  { %s5915_s11 = scalar_lea.hbm %s6559_s8, 16 }
  0xb2   :  { %p5916_p10 = scmp.ne.s32.totalorder %s6559_s8, %s5915_s11  ;;  %p5919_p11 = scmp.lt.u32.totalorder %s5915_s11, %s6559_s8 }
  0xb4   :  { %p5921_p12 = pnand %p5919_p11, %p5916_p10 }
  0xb6   :  { %5924 = shalt.err (!%p5921_p12)
}
  0xb7   :  { %s5925_s6 = scalar_lea.vmem %s120_s28, 16  ;;  %s5929_s29 = scalar_lea.vmem %s120_s28, 32 }
  0xb8   :  { %p5926_p13 = scmp.ne.s32.totalorder %s120_s28, %s5925_s6  ;;  %p5930_p0 = scmp.lt.s32.totalorder %s120_s28, %s120_s28 }
  0xb9   :  { %p5931_p1 = scmp.lt.s32.totalorder %s5929_s29, %s5925_s6 }
  0xbb   :  { %p5932_p2 = por %p5931_p1, %p5930_p0 }
  0xbd   :  { %p5933_p3 = pnand %p5932_p2, %p5926_p13 }
  0xbf   :  { %5936 = shalt.err (!%p5933_p3)
}
  0xc0   :  { %122 = dma.hbm_to_vmem [thread:$0]  %s6559_s8, 16, %s120_s28, [#allocation15]  }
  0xc1   :  { %s5937_s21 = scalar_lea.hbm %s6561_s10, 64 }
  0xc2   :  { %p5938_p4 = scmp.ne.s32.totalorder %s6561_s10, %s5937_s21  ;;  %p5941_p5 = scmp.lt.u32.totalorder %s5937_s21, %s6561_s10 }
  0xc4   :  { %p5943_p6 = pnand %p5941_p5, %p5938_p4 }
  0xc6   :  { %5946 = shalt.err (!%p5943_p6)
}
  0xc7   :  { %s5947_s0 = scalar_lea.vmem %s142_s18, 64  ;;  %p5952_p8 = scmp.lt.s32.totalorder %s142_s18, %s142_s18 }
  0xc8   :  { %p5948_p7 = scmp.ne.s32.totalorder %s142_s18, %s5947_s0  ;;  %p5953_p9 = scmp.lt.s32.totalorder %s5947_s0, %s5947_s0 }
  0xca   :  { %p5954_p10 = por %p5953_p9, %p5952_p8 }
  0xcc   :  { %p5955_p11 = pnand %p5954_p10, %p5948_p7 }
  0xce   :  { %5958 = shalt.err (!%p5955_p11)
}
  0xcf   :  { %144 = dma.hbm_to_vmem [thread:$0]  %s6561_s10, 64, %s142_s18, [#allocation18]  }
  0xd0   :  { %s6060_s4 = smov [#allocation22]   ;;  %s5959_s15 = scalar_lea.hbm %s6563_s12, 256 }
  0xd1   :  { %s163_s26 = sshll.u32 %s6060_s4, 4  ;;  %p5960_p12 = scmp.ne.s32.totalorder %s6563_s12, %s5959_s15  ;;  %s164_s26 = int_to_ptr.vmem [resolvable:$true] %s163_s26 }
  0xd2   :  { %p5963_p13 = scmp.lt.u32.totalorder %s5959_s15, %s6563_s12 }
  0xd4   :  { %p5965_p0 = pnand %p5963_p13, %p5960_p12 }
  0xd6   :  { %5968 = shalt.err (!%p5965_p0)
}
  0xd7   :  { %s5969_s17 = scalar_lea.vmem %s164_s26, 256  ;;  %p5974_p2 = scmp.lt.s32.totalorder %s164_s26, %s164_s26 }
  0xd8   :  { %p5970_p1 = scmp.ne.s32.totalorder %s164_s26, %s5969_s17  ;;  %p5975_p3 = scmp.lt.s32.totalorder %s5969_s17, %s5969_s17 }
  0xda   :  { %p5976_p4 = por %p5975_p3, %p5974_p2 }
  0xdc   :  { %p5977_p5 = pnand %p5976_p4, %p5970_p1 }
  0xde   :  { %5980 = shalt.err (!%p5977_p5)
}
  0xdf   :  { %166 = dma.hbm_to_vmem [thread:$0]  %s6563_s12, 256, %s164_s26, [#allocation21]  }
  0xe0   :  { %6025 = dma.done.wait [#allocation3], 128  }
  0xe1   :  { %6026 = vsyncadd [#allocation3], 4294967168 }
  0xe2   :  { %6027 = dma.done.wait [#allocation6], 32  }
  0xe3   :  { %6028 = vsyncadd [#allocation6], 4294967264 }
  0xe4   :  { %6029 = dma.done.wait [#allocation9], 1040  }
  0xe5   :  { %6030 = vsyncadd [#allocation9], 4294966256 }
  0xe6   :  { %6031 = dma.done.wait [#allocation12], 1040  }
  0xe7   :  { %6032 = vsyncadd [#allocation12], 4294966256 }
  0xe8   :  { %6033 = dma.done.wait [#allocation15], 32  }
  0xe9   :  { %6034 = vsyncadd [#allocation15], 4294967264 }
  0xea   :  { %6035 = dma.done.wait [#allocation18], 4160  }
  0xeb   :  { %6036 = vsyncadd [#allocation18], 4294963136 }
  0xec   :  { %6037 = dma.done.wait [#allocation21], 65792  }
  0xed   :  { %6038 = vsyncadd [#allocation21], 4294901504  ;;  %v207_v0 = vld [vmem:[#allocation2] sm:$0xff]  ;;  %v5585_v1 = vld [vmem:[#allocation8] sm:$0xff]   ;;  %v6061_v2 = vmov 0.0   ;;  %vm6062_vm0 = vmmov 0  }
  0xee   :  { %210 = vadd.xlane.f32.xlu0 %v207_v0  ;;  %5442 = vmatprep.subr.bf16.mxu0 %v6061_v2  ;;  %v5586_v3 = vld [vmem:[#allocation8 + $0x8] sm:$0xff]   ;;  %v5587_v8 = vld [vmem:[#allocation8 + $0x10] sm:$0xff]   ;;  %v5588_v9 = vld [vmem:[#allocation8 + $0x18] sm:$0xff]   ;;  %s6064_s12 = smov [#allocation23]  }
  0xef   :  { %5462 = vmatprep.subr.bf16.mxu1 %v6061_v2  ;;  %5443 = vmatpush3.bf16.msra.mxu0 %v5585_v1  ;;  %v5589_v10 = vld [vmem:[#allocation8 + $0x20] sm:$0xff]   ;;  %v5590_v11 = vld [vmem:[#allocation8 + $0x28] sm:$0xff]   ;;  %v5591_v12 = vld [vmem:[#allocation8 + $0x30] sm:$0xff]   ;;  %s4829_s2 = sshll.u32 %s6064_s12, 4  ;;  %s4830_s2 = int_to_ptr.vmem [resolvable:$true] %s4829_s2 }
  0xf0   :  { %5444 = vmatprep.subr.bf16.mxu0 %v6061_v2  ;;  %5458 = vmatprep.mubr.msk.bf16.mxu0 %vm6062_vm0, %v6061_v2  ;;  %v5592_v13 = vld [vmem:[#allocation8 + $0x38] sm:$0xff]   ;;  %v5593_v24 = vld [vmem:[#allocation11] sm:$0xff]   ;;  %v5594_v25 = vld [vmem:[#allocation11 + $0x8] sm:$0xff]   ;;  %s5981_s7 = scalar_lea.vmem %s4830_s2, 128  ;;  %p5986_p7 = scmp.lt.s32.totalorder %s4830_s2, %s4830_s2 }
  0xf1   :  { %5478 = vmatprep.mubr.msk.bf16.mxu1 %vm6062_vm0, %v6061_v2  ;;  %v4858_v18 = vld [vmem:[#allocation5] ss:$0 sm:$0xff]  ;;  %v4859_v20 = vld [vmem:[#allocation7] ss:$0 sm:$0xff]  ;;  %5463 = vmatpush3.bf16.msra.mxu1 %v5593_v24  ;;  %v5595_v26 = vld [vmem:[#allocation11 + $0x10] sm:$0xff]   ;;  %p5982_p6 = scmp.ne.s32.totalorder %s4830_s2, %s5981_s7  ;;  %p5987_p8 = scmp.lt.s32.totalorder %s5981_s7, %s5981_s7 }
  0xf2   :  { %5464 = vmatprep.subr.bf16.mxu1 %v6061_v2  ;;  %v5596_v27 = vld [vmem:[#allocation11 + $0x18] sm:$0xff]   ;;  %v5597_v28 = vld [vmem:[#allocation11 + $0x20] sm:$0xff]   ;;  %v5598_v29 = vld [vmem:[#allocation11 + $0x28] sm:$0xff]  }
  0xf3   :  { %5445 = vmatpush3.bf16.msra.mxu0 %v5586_v3  ;;  %v5599_v30 = vld [vmem:[#allocation11 + $0x30] sm:$0xff]   ;;  %v5600_v31 = vld [vmem:[#allocation11 + $0x38] sm:$0xff]   ;;  %v4869_v48 = vld [vmem:[#allocation13] ss:$0 sm:$0xff]  ;;  %p5988_p9 = por %p5987_p8, %p5986_p7 }
  0xf4   :  { %5446 = vmatprep.subr.bf16.mxu0 %v6061_v2  ;;  %v4860_v32 = vld [vmem:[#allocation10] ss:$0 sm:$0xff]  ;;  %v5601_v54 = vld [vmem:[#allocation17] ss:$16 sps:$4 sm:$0xff]   ;;  %v5603_v55 = vld [vmem:[#allocation17 + $0x4] ss:$16 sps:$4 sm:$0xff]  }
  0xf5   :  { %5465 = vmatpush3.bf16.msra.mxu1 %v5594_v25  ;;  %v5604_v56 = vld [vmem:[#allocation17 + $0x8] ss:$16 sps:$4 sm:$0xff]   ;;  %v5606_v57 = vld [vmem:[#allocation17 + $0xc] ss:$16 sps:$4 sm:$0xff]   ;;  %v5609_v58 = vld [vmem:[#allocation17 + $0x24] ss:$16 sps:$4 sm:$0xff]   ;;  %p5989_p10 = pnand %p5988_p9, %p5982_p6 }
  0xf6   :  { %5466 = vmatprep.subr.bf16.mxu1 %v6061_v2  ;;  %v5612_v59 = vld [vmem:[#allocation17 + $0x2c] ss:$16 sps:$4 sm:$0xff]   ;;  %v5607_v60 = vld [vmem:[#allocation17 + $0x20] ss:$16 sps:$4 sm:$0xff]   ;;  %v5610_v61 = vld [vmem:[#allocation17 + $0x28] ss:$16 sps:$4 sm:$0xff]  }
  0xf7   :  { %5447 = vmatpush3.bf16.msra.mxu0 %v5587_v8  ;;  %v5615_v62 = vld [vmem:[#allocation17 + $0x44] ss:$16 sps:$4 sm:$0xff]   ;;  %v5618_v63 = vld [vmem:[#allocation17 + $0x4c] ss:$16 sps:$4 sm:$0xff]   ;;  %v5616_v1 = vld [vmem:[#allocation17 + $0x48] ss:$16 sps:$4 sm:$0xff]  }
  0xf8   :  { %5448 = vmatprep.subr.bf16.mxu0 %v6061_v2  ;;  %v5619_v8 = vld [vmem:[#allocation17 + $0x60] ss:$16 sps:$4 sm:$0xff]   ;;  %v5646_v24 = vld [vmem:[#allocation17 + $0xe8] ss:$16 sps:$4 sm:$0xff]   ;;  %v5648_v25 = vld [vmem:[#allocation17 + $0xec] ss:$16 sps:$4 sm:$0xff]  }
  0xf9   :  { %5467 = vmatpush3.bf16.msra.mxu1 %v5595_v26  ;;  %v6063_v26 = vmov 0  }
  0xfa   :  { %5468 = vmatprep.subr.bf16.mxu1 %v6061_v2 }
  0xfb   :  { %5449 = vmatpush3.bf16.msra.mxu0 %v5588_v9  ;;  %v5622_v9 = vld [vmem:[#allocation17 + $0x68] ss:$16 sps:$4 sm:$0xff]  }
  0xfc   :  { %5450 = vmatprep.subr.bf16.mxu0 %v6061_v2 }
  0xfd   :  { %5469 = vmatpush3.bf16.msra.mxu1 %v5596_v27  ;;  %v834_v27 = vld [vmem:[#allocation20] sm:$0xff] }
  0xfe   :  { %5470 = vmatprep.subr.bf16.mxu1 %v6061_v2 }
  0xff   :  { %5451 = vmatpush3.bf16.msra.mxu0 %v5589_v10  ;;  %v5627_v10 = vld [vmem:[#allocation17 + $0x84] ss:$16 sps:$4 sm:$0xff]  }
 0x100   :  { %5452 = vmatprep.subr.bf16.mxu0 %v6061_v2 }
 0x101   :  { %5471 = vmatpush3.bf16.msra.mxu1 %v5597_v28  ;;  %v842_v28 = vld [vmem:[#allocation20 + $0x40] sm:$0xff] }
 0x102   :  { %5472 = vmatprep.subr.bf16.mxu1 %v6061_v2 }
 0x103   :  { %5453 = vmatpush3.bf16.msra.mxu0 %v5590_v11  ;;  %v5630_v11 = vld [vmem:[#allocation17 + $0x8c] ss:$16 sps:$4 sm:$0xff]  }
 0x104   :  { %5454 = vmatprep.subr.bf16.mxu0 %v6061_v2 }
 0x105   :  { %5473 = vmatpush3.bf16.msra.mxu1 %v5598_v29  ;;  %v835_v29 = vld [vmem:[#allocation20 + $0x8] sm:$0xff] }
 0x106   :  { %5474 = vmatprep.subr.bf16.mxu1 %v6061_v2 }
 0x107   :  { %5455 = vmatpush3.bf16.msra.mxu0 %v5591_v12  ;;  %v5625_v12 = vld [vmem:[#allocation17 + $0x80] ss:$16 sps:$4 sm:$0xff]  }
 0x108   :  { %5456 = vmatprep.subr.bf16.mxu0 %v6061_v2 }
 0x109   :  { %5475 = vmatpush3.bf16.msra.mxu1 %v5599_v30  ;;  %v4912_v30 = vcombine.low %v834_v27, %v842_v28 }
 0x10a   :  { %5476 = vmatprep.subr.bf16.mxu1 %v6061_v2 }
 0x10b   :  { %5457 = vmatpush3.bf16.msra.mxu0 %v5592_v13  ;;  %v5628_v13 = vld [vmem:[#allocation17 + $0x88] ss:$16 sps:$4 sm:$0xff]  }
 0x10c   :  { %712 = vmatprep.subr.bf16.mxu0 %v5603_v55 }
 0x10d   :  { %5477 = vmatpush3.bf16.msra.mxu1 %v5600_v31  ;;  %v4913_v31 = vcombine.high %v834_v27, %v842_v28  ;;  %v946_v27 = vld [vmem:[#allocation20 + $0x380] sm:$0xff] }
 0x10e   :  { %753 = vmatprep.subr.bf16.mxu1 %v5606_v57  ;;  %v954_v28 = vld [vmem:[#allocation20 + $0x3c0] sm:$0xff] }
 0x17b   :  { %v211_v4 = vpop.xlane.xlu0 %210 }
 0x17c   :  { %v213_v5 = vmul.f32 0.0078125, %v211_v4 }
 0x17e   :  { %v214_v6 = vsub.f32 %v207_v0, %v213_v5  ;;  %v5613_v0 = vld [vmem:[#allocation17 + $0x40] ss:$16 sps:$4 sm:$0xff]  }
 0x180   :  { %v215_v7 = vmul.f32 %v214_v6, %v214_v6 }
 0x182   :  { %216 = vadd.xlane.f32.xlu0 %v215_v7  ;;  %v5624_v7 = vld [vmem:[#allocation17 + $0x6c] ss:$16 sps:$4 sm:$0xff]  }
 0x20f   :  { %v217_v14 = vpop.xlane.xlu0 %216 }
 0x210   :  { %v218_v15 = vmul.f32 0.0078125, %v217_v14  ;;  %v5633_v14 = vld [vmem:[#allocation17 + $0xa4] ss:$16 sps:$4 sm:$0xff]  }
 0x212   :  { %v219_v16 = vadd.f32 1e-05, %v218_v15  ;;  %v5636_v15 = vld [vmem:[#allocation17 + $0xac] ss:$16 sps:$4 sm:$0xff]  }
 0x214   :  { %5649 = vrsqrt.f32 %v219_v16  ;;  %v5631_v16 = vld [vmem:[#allocation17 + $0xa0] ss:$16 sps:$4 sm:$0xff]  }
 0x21e   :  { %v5650_v17 = vpop.eup %5649 }
 0x21f   :  { %v221_v19 = vmul.f32 %v5650_v17, %v214_v6  ;;  %v5621_v6 = vld [vmem:[#allocation17 + $0x64] ss:$16 sps:$4 sm:$0xff]   ;;  %v5634_v17 = vld [vmem:[#allocation17 + $0xa8] ss:$16 sps:$4 sm:$0xff]  }
 0x221   :  { %v228_v21 = vmul.f32 %v4858_v18, %v221_v19  ;;  %v5639_v18 = vld [vmem:[#allocation17 + $0xc4] ss:$16 sps:$4 sm:$0xff]   ;;  %v5642_v19 = vld [vmem:[#allocation17 + $0xcc] ss:$16 sps:$4 sm:$0xff]  }
 0x223   :  { %v235_v22 = vadd.f32 %v4859_v20, %v228_v21  ;;  %v5637_v20 = vld [vmem:[#allocation17 + $0xc0] ss:$16 sps:$4 sm:$0xff]   ;;  %v5640_v21 = vld [vmem:[#allocation17 + $0xc8] ss:$16 sps:$4 sm:$0xff]  }
 0x225   :  { %v236_v23 = vpack.c.bf16 %v235_v22, %v235_v22  ;;  %v5643_v22 = vld [vmem:[#allocation17 + $0xe0] ss:$16 sps:$4 sm:$0xff]  }
 0x227   :  { %5459 = vmatmul.mubr.bf16.vlgmr.msra.gmra.mrb[0].mxu0 %v236_v23  ;;  %v5645_v23 = vld [vmem:[#allocation17 + $0xe4] ss:$16 sps:$4 sm:$0xff]  }
 0x228   :  { %713 = vmatpush1.bf16.msra.mxu0 %v5601_v54  ;;  %744 = vmatprep.mubr.bf16.mxu0 %v6063_v26  ;;  %v875_v54 = vld [vmem:[#allocation20 + $0x148] sm:$0xff] }
 0x229   :  { %714 = vmatprep.subr.bf16.mxu0 %v5609_v58 }
 0x22c   :  { %715 = vmatpush1.bf16.msra.mxu0 %v5607_v60  ;;  %v890_v60 = vld [vmem:[#allocation20 + $0x1c0] sm:$0xff] }
 0x22d   :  { %716 = vmatprep.subr.bf16.mxu0 %v5615_v62  ;;  %v891_v62 = vld [vmem:[#allocation20 + $0x1c8] sm:$0xff] }
 0x230   :  { %717 = vmatpush1.bf16.msra.mxu0 %v5613_v0 }
 0x231   :  { %718 = vmatprep.subr.bf16.mxu0 %v5621_v6  ;;  %v907_v6 = vld [vmem:[#allocation20 + $0x248] sm:$0xff] }
 0x234   :  { %719 = vmatpush1.bf16.msra.mxu0 %v5619_v8 }
 0x235   :  { %720 = vmatprep.subr.bf16.mxu0 %v5627_v10 }
 0x238   :  { %721 = vmatpush1.bf16.msra.mxu0 %v5625_v12  ;;  %v922_v12 = vld [vmem:[#allocation20 + $0x2c0] sm:$0xff] }
 0x239   :  { %722 = vmatprep.subr.bf16.mxu0 %v5633_v14  ;;  %v923_v14 = vld [vmem:[#allocation20 + $0x2c8] sm:$0xff] }
 0x23c   :  { %723 = vmatpush1.bf16.msra.mxu0 %v5631_v16 }
 0x23d   :  { %724 = vmatprep.subr.bf16.mxu0 %v5639_v18 }
 0x240   :  { %725 = vmatpush1.bf16.msra.mxu0 %v5637_v20  ;;  %v938_v20 = vld [vmem:[#allocation20 + $0x340] sm:$0xff] }
 0x241   :  { %726 = vmatprep.subr.bf16.mxu0 %v5645_v23 }
 0x244   :  { %727 = vmatpush1.bf16.msra.mxu0 %v5643_v22  ;;  %v939_v22 = vld [vmem:[#allocation20 + $0x348] sm:$0xff] }
 0x245   :  { %3990 = vmatprep.subr.bf16.mxu0 %v4913_v31 }
 0x2fa   :  { %v342_v33 = vpop.f32.mrb[0].mxu0 }
 0x2fb   :  { %v343_v34 = vadd.f32 %v4860_v32, %v342_v33  ;;  %v5460_v35 = vpop.f32.mrb[1].mxu0  ;;  %v843_v32 = vld [vmem:[#allocation20 + $0x48] sm:$0xff] }
 0x2fc   :  { %v345_v36 = vpop.f32.mrb[2].mxu0  ;;  %v4914_v33 = vcombine.low %v835_v29, %v843_v32 }
 0x2fd   :  { %v348_v37 = vmul.f32 %v343_v34, %v343_v34  ;;  %v5461_v38 = vpop.f32.mrb[3].mxu0 }
 0x2ff   :  { %v349_v39 = vmul.f32 %v348_v37, %v343_v34 }
 0x301   :  { %v350_v40 = vmul.f32 0.044715, %v349_v39  ;;  %v4878_v39 = vld [vmem:[#allocation14] ss:$0 sm:$0xff] }
 0x303   :  { %v351_v41 = vadd.f32 %v350_v40, %v343_v34 }
 0x305   :  { %v352_v42 = vmul.f32 0.7978846, %v351_v41  ;;  %v4879_v41 = vld [vmem:[#allocation16] ss:$0 sm:$0xff] }
 0x307   :  { %5651 = vtanh.f32 %v352_v42 }
 0x311   :  { %v5652_v43 = vpop.eup %5651 }
 0x312   :  { %v354_v44 = vadd.f32 1.0, %v5652_v43  ;;  %v850_v43 = vld [vmem:[#allocation20 + $0x80] sm:$0xff] }
 0x314   :  { %v355_v45 = vmul.f32 0.5, %v354_v44  ;;  %v858_v44 = vld [vmem:[#allocation20 + $0xc0] sm:$0xff] }
 0x315   :  { %v4928_v55 = vcombine.low %v850_v43, %v858_v44 }
 0x316   :  { %v356_v46 = vmul.f32 %v355_v45, %v343_v34  ;;  %v4915_v34 = vcombine.high %v835_v29, %v843_v32  ;;  %v851_v45 = vld [vmem:[#allocation20 + $0x88] sm:$0xff] }
 0x317   :  { %v947_v29 = vld [vmem:[#allocation20 + $0x388] sm:$0xff] }
 0x318   :  { %v357_v47 = vpack.c.bf16 %v356_v46, %v356_v46  ;;  %v859_v46 = vld [vmem:[#allocation20 + $0xc8] sm:$0xff] }
 0x31a   :  { %5479 = vmatmul.mubr.bf16.vlgmr.msra.gmra.mrb[0].mxu1 %v357_v47 }
 0x31b   :  { %754 = vmatpush1.bf16.msra.mxu1 %v5604_v56  ;;  %785 = vmatprep.mubr.bf16.mxu1 %v6063_v26  ;;  %v4930_v56 = vcombine.low %v851_v45, %v859_v46 }
 0x31c   :  { %755 = vmatprep.subr.bf16.mxu1 %v5612_v59  ;;  %v882_v59 = vld [vmem:[#allocation20 + $0x180] sm:$0xff] }
 0x31f   :  { %756 = vmatpush1.bf16.msra.mxu1 %v5610_v61  ;;  %v883_v61 = vld [vmem:[#allocation20 + $0x188] sm:$0xff] }
 0x320   :  { %757 = vmatprep.subr.bf16.mxu1 %v5618_v63  ;;  %v4962_v8 = vcombine.low %v883_v61, %v891_v62 }
 0x323   :  { %758 = vmatpush1.bf16.msra.mxu1 %v5616_v1  ;;  %v4961_v1 = vcombine.high %v882_v59, %v890_v60 }
 0x324   :  { %759 = vmatprep.subr.bf16.mxu1 %v5624_v7  ;;  %v4960_v7 = vcombine.low %v882_v59, %v890_v60 }
 0x327   :  { %760 = vmatpush1.bf16.msra.mxu1 %v5622_v9 }
 0x328   :  { %761 = vmatprep.subr.bf16.mxu1 %v5630_v11  ;;  %v914_v11 = vld [vmem:[#allocation20 + $0x280] sm:$0xff] }
 0x329   :  { %v4992_v23 = vcombine.low %v914_v11, %v922_v12 }
 0x32b   :  { %762 = vmatpush1.bf16.msra.mxu1 %v5628_v13  ;;  %v915_v13 = vld [vmem:[#allocation20 + $0x288] sm:$0xff] }
 0x32c   :  { %763 = vmatprep.subr.bf16.mxu1 %v5636_v15  ;;  %v4995_v18 = vcombine.high %v915_v13, %v923_v14 }
 0x32f   :  { %764 = vmatpush1.bf16.msra.mxu1 %v5634_v17  ;;  %v4993_v17 = vcombine.high %v914_v11, %v922_v12 }
 0x330   :  { %765 = vmatprep.subr.bf16.mxu1 %v5642_v19  ;;  %v930_v19 = vld [vmem:[#allocation20 + $0x300] sm:$0xff] }
 0x331   :  { %v5008_v31 = vcombine.low %v930_v19, %v938_v20 }
 0x333   :  { %766 = vmatpush1.bf16.msra.mxu1 %v5640_v21  ;;  %v931_v21 = vld [vmem:[#allocation20 + $0x308] sm:$0xff] }
 0x334   :  { %767 = vmatprep.subr.bf16.mxu1 %v5648_v25  ;;  %v5009_v25 = vcombine.high %v930_v19, %v938_v20  ;;  %v5011_v26 = vcombine.high %v931_v21, %v939_v22  ;;  %v5010_v32 = vcombine.low %v931_v21, %v939_v22  ;;  %v1058_v21 = vld [vmem:[#allocation20 + $0x700] sm:$0xff] }
 0x335   :  { %v1066_v22 = vld [vmem:[#allocation20 + $0x740] sm:$0xff] }
 0x337   :  { %768 = vmatpush1.bf16.msra.mxu1 %v5646_v24  ;;  %v4994_v24 = vcombine.low %v915_v13, %v923_v14  ;;  %v1042_v13 = vld [vmem:[#allocation20 + $0x680] sm:$0xff] }
 0x338   :  { %4072 = vmatprep.subr.bf16.mxu1 %v4915_v34  ;;  %v1050_v14 = vld [vmem:[#allocation20 + $0x6c0] sm:$0xff] }
 0x3ed   :  { %v463_v49 = vpop.f32.mrb[0].mxu1 }
 0x3ee   :  { %v464_v50 = vadd.f32 %v4869_v48, %v463_v49  ;;  %v5480_v51 = vpop.f32.mrb[1].mxu1  ;;  %v4929_v49 = vcombine.high %v850_v43, %v858_v44 }
 0x3ef   :  { %v466_v52 = vpop.f32.mrb[2].mxu1  ;;  %v866_v51 = vld [vmem:[#allocation20 + $0x100] sm:$0xff] }
 0x3f0   :  { %469 = vst [vmem:[#allocation23] sm:$0xff] %v464_v50  ;;  %472 = vadd.xlane.f32.xlu1 %v464_v50  ;;  %v5481_v53 = vpop.f32.mrb[3].mxu1  ;;  %v874_v52 = vld [vmem:[#allocation20 + $0x140] sm:$0xff] }
 0x3f1   :  { %v867_v53 = vld [vmem:[#allocation20 + $0x108] sm:$0xff]  ;;  %v4945_v57 = vcombine.high %v866_v51, %v874_v52  ;;  %v4944_v63 = vcombine.low %v866_v51, %v874_v52 }
 0x3f2   :  { %v4947_v58 = vcombine.high %v867_v53, %v875_v54  ;;  %v4946_v0 = vcombine.low %v867_v53, %v875_v54  ;;  %v994_v53 = vld [vmem:[#allocation20 + $0x500] sm:$0xff] }
 0x3f3   :  { %v1002_v54 = vld [vmem:[#allocation20 + $0x540] sm:$0xff] }
 0x47d   :  { %v473_v2 = vpop.xlane.xlu1 %472 }
 0x47e   :  { %v474_v3 = vmul.f32 0.0078125, %v473_v2  ;;  %v4963_v2 = vcombine.high %v883_v61, %v891_v62  ;;  %v1010_v61 = vld [vmem:[#allocation20 + $0x580] sm:$0xff] }
 0x47f   :  { %v1018_v62 = vld [vmem:[#allocation20 + $0x5c0] sm:$0xff] }
 0x480   :  { %v475_v4 = vsub.f32 %v464_v50, %v474_v3  ;;  %v4931_v50 = vcombine.high %v851_v45, %v859_v46  ;;  %v898_v3 = vld [vmem:[#allocation20 + $0x200] sm:$0xff] }
 0x481   :  { %v978_v45 = vld [vmem:[#allocation20 + $0x480] sm:$0xff] }
 0x482   :  { %v476_v5 = vmul.f32 %v475_v4, %v475_v4  ;;  %v986_v46 = vld [vmem:[#allocation20 + $0x4c0] sm:$0xff] }
 0x484   :  { %477 = vadd.xlane.f32.xlu1 %v476_v5  ;;  %v899_v5 = vld [vmem:[#allocation20 + $0x208] sm:$0xff] }
 0x485   :  { %v4979_v10 = vcombine.high %v899_v5, %v907_v6  ;;  %v4978_v16 = vcombine.low %v899_v5, %v907_v6  ;;  %v1026_v5 = vld [vmem:[#allocation20 + $0x600] sm:$0xff] }
 0x486   :  { %v1034_v6 = vld [vmem:[#allocation20 + $0x640] sm:$0xff] }
 0x511   :  { %v478_v35 = vpop.xlane.xlu1 %477 }
 0x512   :  { %v479_v36 = vmul.f32 0.0078125, %v478_v35  ;;  %v5024_v35 = vcombine.low %v946_v27, %v954_v28 }
 0x514   :  { %v480_v37 = vadd.f32 1e-05, %v479_v36 }
 0x516   :  { %5653 = vrsqrt.f32 %v480_v37  ;;  %v962_v37 = vld [vmem:[#allocation20 + $0x400] sm:$0xff] }
 0x520   :  { %v5654_v38 = vpop.eup %5653 }
 0x521   :  { %v482_v40 = vmul.f32 %v5654_v38, %v475_v4  ;;  %v906_v4 = vld [vmem:[#allocation20 + $0x240] sm:$0xff] }
 0x522   :  { %v4977_v9 = vcombine.high %v898_v3, %v906_v4  ;;  %v4976_v15 = vcombine.low %v898_v3, %v906_v4  ;;  %v970_v38 = vld [vmem:[#allocation20 + $0x440] sm:$0xff] }
 0x523   :  { %v489_v42 = vmul.f32 %v4878_v39, %v482_v40  ;;  %v963_v39 = vld [vmem:[#allocation20 + $0x408] sm:$0xff]  ;;  %v5041_v40 = vcombine.high %v962_v37, %v970_v38 }
 0x525   :  { %v496_v47 = vadd.f32 %v4879_v41, %v489_v42  ;;  %v971_v41 = vld [vmem:[#allocation20 + $0x448] sm:$0xff]  ;;  %v5040_v42 = vcombine.low %v962_v37, %v970_v38  ;;  %v6327_v37 = vld [vmem:[#allocation20 + $0x800] sm:$0xff] }
 0x526   :  { %v5042_v43 = vcombine.low %v963_v39, %v971_v41  ;;  %v5043_v44 = vcombine.high %v963_v39, %v971_v41  ;;  %v6329_v38 = vld [vmem:[#allocation20 + $0x840] sm:$0xff]  ;;  %v6331_v39 = vld [vmem:[#allocation20 + $0x808] sm:$0xff] }
 0x527   :  { %v497_v48 = vpack.c.bf16 %v496_v47, %v496_v47  ;;  %v979_v47 = vld [vmem:[#allocation20 + $0x488] sm:$0xff] }
 0x528   :  { %v6335_v41 = vld [vmem:[#allocation20 + $0x848] sm:$0xff] }
 0x529   :  { %745 = vmatmul.mubr.bf16.vlgmr.msra.gmra.mrb[4].mxu0 %v497_v48  ;;  %786 = vmatmul.mubr.bf16.vlgmr.msra.gmra.mrb[4].mxu1 %v497_v48  ;;  %v5057_v48 = vcombine.high %v978_v45, %v986_v46 }
 0x52a   :  { %3991 = vmatpush1.bf16.msra.mxu0 %v4912_v30  ;;  %4073 = vmatpush1.bf16.msra.mxu1 %v4914_v33  ;;  %v955_v30 = vld [vmem:[#allocation20 + $0x3c8] sm:$0xff]  ;;  %v5025_v33 = vcombine.high %v946_v27, %v954_v28 }
 0x52b   :  { %3992 = vmatprep.subr.bf16.mxu0 %v4929_v49  ;;  %4074 = vmatprep.subr.bf16.mxu1 %v4931_v50  ;;  %v5027_v34 = vcombine.high %v947_v29, %v955_v30  ;;  %v5026_v36 = vcombine.low %v947_v29, %v955_v30  ;;  %v987_v49 = vld [vmem:[#allocation20 + $0x4c8] sm:$0xff]  ;;  %v5056_v50 = vcombine.low %v978_v45, %v986_v46  ;;  %v1074_v29 = vld [vmem:[#allocation20 + $0x780] sm:$0xff]  ;;  %v532_v45 = vlaneseq }
 0x52c   :  { %v5058_v51 = vcombine.low %v979_v47, %v987_v49  ;;  %v5059_v52 = vcombine.high %v979_v47, %v987_v49  ;;  %v1082_v30 = vld [vmem:[#allocation20 + $0x7c0] sm:$0xff] }
 0x52d   :  { %v6343_v46 = vshrl.u32 %v532_v45, 7  ;;  %v1131_v45 = vld [vmem:[#allocation20 + $0x948] sm:$0xff] }
 0x52e   :  { %3993 = vmatpush1.bf16.msra.mxu0 %v4928_v55  ;;  %4075 = vmatpush1.bf16.msra.mxu1 %v4930_v56  ;;  %v995_v55 = vld [vmem:[#allocation20 + $0x508] sm:$0xff]  ;;  %v5073_v56 = vcombine.high %v994_v53, %v1002_v54 }
 0x52f   :  { %3994 = vmatprep.subr.bf16.mxu0 %v4945_v57  ;;  %4076 = vmatprep.subr.bf16.mxu1 %v4947_v58  ;;  %v1003_v57 = vld [vmem:[#allocation20 + $0x548] sm:$0xff]  ;;  %v5072_v58 = vcombine.low %v994_v53, %v1002_v54  ;;  %v6346_v47 = vsub.s32 0, %v6343_v46  ;;  %v6351_v49 = vsub.s32 1, %v6343_v46 }
 0x530   :  { %v5074_v59 = vcombine.low %v995_v55, %v1003_v57  ;;  %v5075_v60 = vcombine.high %v995_v55, %v1003_v57 }
 0x532   :  { %3995 = vmatpush1.bf16.msra.mxu0 %v4944_v63  ;;  %4077 = vmatpush1.bf16.msra.mxu1 %v4946_v0  ;;  %v1011_v63 = vld [vmem:[#allocation20 + $0x588] sm:$0xff]  ;;  %v5089_v0 = vcombine.high %v1010_v61, %v1018_v62 }
 0x533   :  { %3996 = vmatprep.subr.bf16.mxu0 %v4961_v1  ;;  %4078 = vmatprep.subr.bf16.mxu1 %v4963_v2  ;;  %v1019_v1 = vld [vmem:[#allocation20 + $0x5c8] sm:$0xff]  ;;  %v5088_v2 = vcombine.low %v1010_v61, %v1018_v62 }
 0x534   :  { %v5090_v3 = vcombine.low %v1011_v63, %v1019_v1  ;;  %v5091_v4 = vcombine.high %v1011_v63, %v1019_v1 }
 0x536   :  { %3997 = vmatpush1.bf16.msra.mxu0 %v4960_v7  ;;  %4079 = vmatpush1.bf16.msra.mxu1 %v4962_v8  ;;  %v1027_v7 = vld [vmem:[#allocation20 + $0x608] sm:$0xff]  ;;  %v5105_v8 = vcombine.high %v1026_v5, %v1034_v6 }
 0x537   :  { %3998 = vmatprep.subr.bf16.mxu0 %v4977_v9  ;;  %4080 = vmatprep.subr.bf16.mxu1 %v4979_v10  ;;  %v1035_v9 = vld [vmem:[#allocation20 + $0x648] sm:$0xff]  ;;  %v5104_v10 = vcombine.low %v1026_v5, %v1034_v6 }
 0x538   :  { %v5106_v11 = vcombine.low %v1027_v7, %v1035_v9  ;;  %v5107_v12 = vcombine.high %v1027_v7, %v1035_v9 }
 0x53a   :  { %3999 = vmatpush1.bf16.msra.mxu0 %v4976_v15  ;;  %4081 = vmatpush1.bf16.msra.mxu1 %v4978_v16  ;;  %v1043_v15 = vld [vmem:[#allocation20 + $0x688] sm:$0xff]  ;;  %v5121_v16 = vcombine.high %v1042_v13, %v1050_v14 }
 0x53b   :  { %4000 = vmatprep.subr.bf16.mxu0 %v4993_v17  ;;  %4082 = vmatprep.subr.bf16.mxu1 %v4995_v18  ;;  %v1051_v17 = vld [vmem:[#allocation20 + $0x6c8] sm:$0xff]  ;;  %v5120_v18 = vcombine.low %v1042_v13, %v1050_v14 }
 0x53c   :  { %v5122_v19 = vcombine.low %v1043_v15, %v1051_v17  ;;  %v5123_v20 = vcombine.high %v1043_v15, %v1051_v17 }
 0x53e   :  { %4001 = vmatpush1.bf16.msra.mxu0 %v4992_v23  ;;  %4083 = vmatpush1.bf16.msra.mxu1 %v4994_v24  ;;  %v1059_v23 = vld [vmem:[#allocation20 + $0x708] sm:$0xff]  ;;  %v5137_v24 = vcombine.high %v1058_v21, %v1066_v22 }
 0x53f   :  { %4002 = vmatprep.subr.bf16.mxu0 %v5009_v25  ;;  %4084 = vmatprep.subr.bf16.mxu1 %v5011_v26  ;;  %v1067_v25 = vld [vmem:[#allocation20 + $0x748] sm:$0xff]  ;;  %v5136_v26 = vcombine.low %v1058_v21, %v1066_v22 }
 0x540   :  { %v5138_v27 = vcombine.low %v1059_v23, %v1067_v25  ;;  %v5139_v28 = vcombine.high %v1059_v23, %v1067_v25 }
 0x542   :  { %4003 = vmatpush1.bf16.msra.mxu0 %v5008_v31  ;;  %4085 = vmatpush1.bf16.msra.mxu1 %v5010_v32  ;;  %v1075_v31 = vld [vmem:[#allocation20 + $0x788] sm:$0xff]  ;;  %v5153_v32 = vcombine.high %v1074_v29, %v1082_v30 }
 0x543   :  { %4004 = vmatprep.subr.bf16.mxu0 %v5025_v33  ;;  %4086 = vmatprep.subr.bf16.mxu1 %v5027_v34  ;;  %v1083_v33 = vld [vmem:[#allocation20 + $0x7c8] sm:$0xff]  ;;  %v5152_v34 = vcombine.low %v1074_v29, %v1082_v30  ;;  %v1114_v29 = vld [vmem:[#allocation20 + $0x8c0] sm:$0xff] }
 0x544   :  { %v1107_v30 = vld [vmem:[#allocation20 + $0x888] sm:$0xff] }
 0x546   :  { %4005 = vmatpush1.bf16.msra.mxu0 %v5024_v35  ;;  %4087 = vmatpush1.bf16.msra.mxu1 %v5026_v36  ;;  %v5154_v35 = vcombine.low %v1075_v31, %v1083_v33  ;;  %v5155_v36 = vcombine.high %v1075_v31, %v1083_v33  ;;  %v1115_v31 = vld [vmem:[#allocation20 + $0x8c8] sm:$0xff] }
 0x547   :  { %4006 = vmatprep.subr.bf16.mxu0 %v5041_v40  ;;  %4088 = vmatprep.subr.bf16.mxu1 %v5043_v44  ;;  %v5169_v40 = vcombine.high %v6327_v37, %v6329_v38  ;;  %v5171_v44 = vcombine.high %v6331_v39, %v6335_v41 }
 0x54a   :  { %4007 = vmatpush1.bf16.msra.mxu0 %v5040_v42  ;;  %4089 = vmatpush1.bf16.msra.mxu1 %v5042_v43  ;;  %v5168_v42 = vcombine.low %v6327_v37, %v6329_v38  ;;  %v5170_v43 = vcombine.low %v6331_v39, %v6335_v41  ;;  %v6383_v37 = vsub.s32 2, %v6343_v46 }
 0x54b   :  { %4008 = vmatprep.subr.bf16.mxu0 %v5057_v48  ;;  %4090 = vmatprep.subr.bf16.mxu1 %v5059_v52  ;;  %v6348_v48 = vld [vmem:[#allocation19] sm:$0xf] }
 0x54c   :  { %v539_v52 = vrot.slane %v6348_v48, %v6351_v49 }
 0x54e   :  { %4009 = vmatpush1.bf16.msra.mxu0 %v5056_v50  ;;  %4091 = vmatpush1.bf16.msra.mxu1 %v5058_v51  ;;  %v6354_v50 = vsub.s32 3, %v6343_v46  ;;  %v535_v51 = vrot.slane %v6348_v48, %v6346_v47 }
 0x54f   :  { %4010 = vmatprep.subr.bf16.mxu0 %v5073_v56  ;;  %4092 = vmatprep.subr.bf16.mxu1 %v5075_v60 }
 0x550   :  { %v547_v53 = vrot.slane %v6348_v48, %v6354_v50 }
 0x552   :  { %4011 = vmatpush1.bf16.msra.mxu0 %v5072_v58  ;;  %4093 = vmatpush1.bf16.msra.mxu1 %v5074_v59 }
 0x553   :  { %4012 = vmatprep.subr.bf16.mxu0 %v5089_v0  ;;  %4094 = vmatprep.subr.bf16.mxu1 %v5091_v4 }
 0x556   :  { %4013 = vmatpush1.bf16.msra.mxu0 %v5088_v2  ;;  %4095 = vmatpush1.bf16.msra.mxu1 %v5090_v3 }
 0x557   :  { %4014 = vmatprep.subr.bf16.mxu0 %v5105_v8  ;;  %4096 = vmatprep.subr.bf16.mxu1 %v5107_v12 }
 0x55a   :  { %4015 = vmatpush1.bf16.msra.mxu0 %v5104_v10  ;;  %4097 = vmatpush1.bf16.msra.mxu1 %v5106_v11 }
 0x55b   :  { %4016 = vmatprep.subr.bf16.mxu0 %v5121_v16  ;;  %4098 = vmatprep.subr.bf16.mxu1 %v5123_v20 }
 0x55e   :  { %4017 = vmatpush1.bf16.msra.mxu0 %v5120_v18  ;;  %4099 = vmatpush1.bf16.msra.mxu1 %v5122_v19 }
 0x55f   :  { %4018 = vmatprep.subr.bf16.mxu0 %v5137_v24  ;;  %4100 = vmatprep.subr.bf16.mxu1 %v5139_v28 }
 0x562   :  { %4019 = vmatpush1.bf16.msra.mxu0 %v5136_v26  ;;  %4101 = vmatpush1.bf16.msra.mxu1 %v5138_v27  ;;  %v1106_v27 = vld [vmem:[#allocation20 + $0x880] sm:$0xff] }
 0x563   :  { %4020 = vmatprep.subr.bf16.mxu0 %v5153_v32  ;;  %4102 = vmatprep.subr.bf16.mxu1 %v5155_v36  ;;  %v5187_v36 = vcombine.high %v1107_v30, %v1115_v31 }
 0x566   :  { %4021 = vmatpush1.bf16.msra.mxu0 %v5152_v34  ;;  %4103 = vmatpush1.bf16.msra.mxu1 %v5154_v35  ;;  %v1122_v34 = vld [vmem:[#allocation20 + $0x900] sm:$0xff]  ;;  %v5185_v35 = vcombine.high %v1106_v27, %v1114_v29 }
 0x567   :  { %4031 = vmatprep.subr.bf16.mxu0 %v5169_v40  ;;  %4113 = vmatprep.subr.bf16.mxu1 %v5171_v44  ;;  %v1130_v40 = vld [vmem:[#allocation20 + $0x940] sm:$0xff]  ;;  %v1123_v44 = vld [vmem:[#allocation20 + $0x908] sm:$0xff] }
 0x568   :  { %v5200_v38 = vcombine.low %v1122_v34, %v1130_v40  ;;  %v5202_v39 = vcombine.low %v1123_v44, %v1131_v45 }
 0x5fc   :  { %v746_v54 = vpop.f32.mrb[4].mxu0  ;;  %v6362_v55 = vpop.f32.mrb[4].mxu1 }
 0x5fd   :  { %v747_v56 = vadd.f32 %v746_v54, %v535_v51  ;;  %v748_v57 = vpop.f32.mrb[5].mxu0  ;;  %v789_v58 = vpop.f32.mrb[5].mxu1  ;;  %v5201_v54 = vcombine.high %v1122_v34, %v1130_v40  ;;  %v1219_v34 = vld [vmem:[#allocation20 + $0xc08] sm:$0xff] }
 0x5fe   :  { %v749_v59 = vadd.f32 %v748_v57, %v539_v52  ;;  %v790_v60 = vadd.f32 %v789_v58, %v547_v53  ;;  %v750_v61 = vpop.f32.mrb[6].mxu0  ;;  %v791_v62 = vpop.f32.mrb[6].mxu1  ;;  %v5184_v52 = vcombine.low %v1106_v27, %v1114_v29  ;;  %v5186_v53 = vcombine.low %v1107_v30, %v1115_v31  ;;  %v1138_v57 = vld [vmem:[#allocation20 + $0x980] sm:$0xff] }
 0x5ff   :  { %v794_v63 = vmul.f32 %v747_v56, %v747_v56  ;;  %v751_v0 = vpop.f32.mrb[7].mxu0  ;;  %v792_v1 = vpop.f32.mrb[7].mxu1  ;;  %v1146_v58 = vld [vmem:[#allocation20 + $0x9c0] sm:$0xff]  ;;  %v1155_v62 = vld [vmem:[#allocation20 + $0xa08] sm:$0xff] }
 0x600   :  { %v795_v2 = vmul.f32 %v749_v59, %v749_v59  ;;  %v797_v3 = vmul.f32 %v790_v60, %v790_v60  ;;  %v5217_v41 = vcombine.high %v1138_v57, %v1146_v58  ;;  %v1162_v61 = vld [vmem:[#allocation20 + $0xa40] sm:$0xff]  ;;  %v543_v0 = vrot.slane %v6348_v48, %v6383_v37 }
 0x601   :  { %v798_v4 = vmul.f32 %v794_v63, %v747_v56  ;;  %v1163_v63 = vld [vmem:[#allocation20 + $0xa48] sm:$0xff]  ;;  %v5216_v1 = vcombine.low %v1138_v57, %v1146_v58  ;;  %v1218_v30 = vld [vmem:[#allocation20 + $0xc00] sm:$0xff] }
 0x602   :  { %v799_v5 = vmul.f32 %v795_v2, %v749_v59  ;;  %v801_v6 = vmul.f32 %v797_v3, %v790_v60  ;;  %v1226_v31 = vld [vmem:[#allocation20 + $0xc40] sm:$0xff]  ;;  %v1243_v57 = vld [vmem:[#allocation20 + $0xcc8] sm:$0xff] }
 0x603   :  { %v802_v7 = vmul.f32 0.044715, %v798_v4  ;;  %v5235_v4 = vcombine.high %v1155_v62, %v1163_v63 }
 0x604   :  { %v803_v8 = vmul.f32 0.044715, %v799_v5  ;;  %v805_v9 = vmul.f32 0.044715, %v801_v6  ;;  %v1170_v5 = vld [vmem:[#allocation20 + $0xa80] sm:$0xff] }
 0x605   :  { %v806_v10 = vadd.f32 %v802_v7, %v747_v56  ;;  %v1178_v6 = vld [vmem:[#allocation20 + $0xac0] sm:$0xff]  ;;  %v1171_v7 = vld [vmem:[#allocation20 + $0xa88] sm:$0xff] }
 0x606   :  { %v807_v11 = vadd.f32 %v803_v8, %v749_v59  ;;  %v809_v12 = vadd.f32 %v805_v9, %v790_v60  ;;  %v1179_v8 = vld [vmem:[#allocation20 + $0xac8] sm:$0xff]  ;;  %v6388_v9 = vadd.f32 %v6362_v55, %v543_v0  ;;  %v5249_v48 = vcombine.high %v1170_v5, %v1178_v6 }
 0x607   :  { %v810_v13 = vmul.f32 0.7978846, %v806_v10  ;;  %v5250_v55 = vcombine.low %v1171_v7, %v1179_v8 }
 0x608   :  { %v811_v14 = vmul.f32 0.7978846, %v807_v11  ;;  %v813_v15 = vmul.f32 0.7978846, %v809_v12  ;;  %v5234_v11 = vcombine.low %v1155_v62, %v1163_v63  ;;  %v5251_v12 = vcombine.high %v1171_v7, %v1179_v8 }
 0x609   :  { %5655 = vtanh.f32 %v810_v13  ;;  %v1186_v13 = vld [vmem:[#allocation20 + $0xb00] sm:$0xff] }
 0x60a   :  { %5657 = vtanh.f32 %v811_v14  ;;  %v1194_v14 = vld [vmem:[#allocation20 + $0xb40] sm:$0xff] }
 0x60b   :  { %5659 = vtanh.f32 %v813_v15  ;;  %v1187_v15 = vld [vmem:[#allocation20 + $0xb08] sm:$0xff] }
 0x613   :  { %v5656_v16 = vpop.eup %5655 }
 0x614   :  { %v818_v17 = vadd.f32 1.0, %v5656_v16  ;;  %v5658_v18 = vpop.eup %5657  ;;  %v1195_v16 = vld [vmem:[#allocation20 + $0xb48] sm:$0xff] }
 0x615   :  { %v5660_v19 = vpop.eup %5659  ;;  %v819_v21 = vadd.f32 1.0, %v5658_v18  ;;  %v5248_v18 = vcombine.low %v1170_v5, %v1178_v6  ;;  %v5266_v27 = vcombine.low %v1187_v15, %v1195_v16  ;;  %v1267_v5 = vld [vmem:[#allocation20 + $0xd88] sm:$0xff] }
 0x616   :  { %v822_v20 = vmul.f32 0.5, %v818_v17  ;;  %v821_v22 = vadd.f32 1.0, %v5660_v19  ;;  %v796_v17 = vmul.f32 %v6388_v9, %v6388_v9  ;;  %v5265_v19 = vcombine.high %v1186_v13, %v1194_v14  ;;  %v1275_v6 = vld [vmem:[#allocation20 + $0xdc8] sm:$0xff] }
 0x617   :  { %v823_v23 = vmul.f32 0.5, %v819_v21  ;;  %v1202_v21 = vld [vmem:[#allocation20 + $0xb80] sm:$0xff] }
 0x618   :  { %v826_v24 = vmul.f32 %v822_v20, %v747_v56  ;;  %v825_v25 = vmul.f32 0.5, %v821_v22  ;;  %v5203_v56 = vcombine.high %v1123_v44, %v1131_v45  ;;  %v5267_v20 = vcombine.high %v1187_v15, %v1195_v16  ;;  %v1210_v22 = vld [vmem:[#allocation20 + $0xbc0] sm:$0xff] }
 0x619   :  { %v827_v26 = vmul.f32 %v823_v23, %v749_v59  ;;  %v1139_v59 = vld [vmem:[#allocation20 + $0x988] sm:$0xff]  ;;  %v5280_v40 = vcombine.low %v1202_v21, %v1210_v22  ;;  %v5297_v45 = vcombine.high %v1218_v30, %v1226_v31  ;;  %v5346_v16 = vcombine.low %v1267_v5, %v1275_v6 }
 0x61a   :  { %v829_v28 = vmul.f32 %v825_v25, %v790_v60  ;;  %v6366_v33 = vpack.c.bf16 %v826_v24, %v826_v24  ;;  %v1147_v60 = vld [vmem:[#allocation20 + $0x9c8] sm:$0xff]  ;;  %v800_v25 = vmul.f32 %v796_v17, %v6388_v9 }
 0x61b   :  { %v6364_v32 = vpack.c.bf16 %v827_v26, %v827_v26  ;;  %v5218_v2 = vcombine.low %v1139_v59, %v1147_v60  ;;  %v1203_v23 = vld [vmem:[#allocation20 + $0xb88] sm:$0xff]  ;;  %v5264_v26 = vcombine.low %v1186_v13, %v1194_v14 }
 0x61c   :  { %v6370_v51 = vpack.c.bf16 %v829_v28, %v829_v28  ;;  %v1211_v24 = vld [vmem:[#allocation20 + $0xbc8] sm:$0xff]  ;;  %v5281_v28 = vcombine.high %v1202_v21, %v1210_v22 }
 0x61d   :  { %4022 = vmatprep.mubr.bf16.mxu0 %v6364_v32  ;;  %4104 = vmatprep.mubr.bf16.mxu1 %v6364_v32  ;;  %v5283_v29 = vcombine.high %v1203_v23, %v1211_v24  ;;  %v5282_v44 = vcombine.low %v1203_v23, %v1211_v24  ;;  %v1283_v13 = vld [vmem:[#allocation20 + $0xe08] sm:$0xff] }
 0x61e   :  { %4023 = vmatmul.mubr.bf16.vlgmr.msra.gmra.mrb[8].mxu0 %v6366_v33  ;;  %4105 = vmatmul.mubr.bf16.vlgmr.msra.gmra.mrb[8].mxu1 %v6366_v33  ;;  %v1291_v14 = vld [vmem:[#allocation20 + $0xe48] sm:$0xff] }
 0x61f   :  { %4032 = vmatpush1.bf16.msra.mxu0 %v5168_v42  ;;  %4114 = vmatpush1.bf16.msra.mxu1 %v5170_v43  ;;  %v5219_v42 = vcombine.high %v1139_v59, %v1147_v60  ;;  %v1154_v43 = vld [vmem:[#allocation20 + $0xa00] sm:$0xff]  ;;  %v5296_v59 = vcombine.low %v1218_v30, %v1226_v31  ;;  %v1307_v21 = vld [vmem:[#allocation20 + $0xec8] sm:$0xff]  ;;  %v5362_v23 = vcombine.low %v1283_v13, %v1291_v14 }
 0x620   :  { %4063 = vmatprep.mubr.bf16.mxu0 %v6370_v51  ;;  %4145 = vmatprep.mubr.bf16.mxu1 %v6370_v51  ;;  %v5233_v3 = vcombine.high %v1154_v43, %v1162_v61  ;;  %v5232_v10 = vcombine.low %v1154_v43, %v1162_v61  ;;  %v1251_v43 = vld [vmem:[#allocation20 + $0xd08] sm:$0xff] }
 0x621   :  { %4033 = vmatprep.subr.bf16.mxu0 %v5185_v35  ;;  %4115 = vmatprep.subr.bf16.mxu1 %v5187_v36  ;;  %v1227_v35 = vld [vmem:[#allocation20 + $0xc48] sm:$0xff]  ;;  %v804_v36 = vmul.f32 0.044715, %v800_v25 }
 0x622   :  { %v5298_v60 = vcombine.low %v1219_v34, %v1227_v35  ;;  %v1259_v61 = vld [vmem:[#allocation20 + $0xd48] sm:$0xff] }
 0x623   :  { %4034 = vmatpush1.bf16.msra.mxu0 %v5184_v52  ;;  %4116 = vmatpush1.bf16.msra.mxu1 %v5186_v53  ;;  %v5299_v52 = vcombine.high %v1219_v34, %v1227_v35  ;;  %v1234_v53 = vld [vmem:[#allocation20 + $0xc80] sm:$0xff]  ;;  %v808_v58 = vadd.f32 %v804_v36, %v6388_v9  ;;  %v5330_v8 = vcombine.low %v1251_v43, %v1259_v61  ;;  %v1323_v30 = vld [vmem:[#allocation20 + $0xf48] sm:$0xff] }
 0x624   :  { %4035 = vmatprep.subr.bf16.mxu0 %v5201_v54  ;;  %4117 = vmatprep.subr.bf16.mxu1 %v5203_v56  ;;  %v1242_v54 = vld [vmem:[#allocation20 + $0xcc0] sm:$0xff]  ;;  %v1235_v56 = vld [vmem:[#allocation20 + $0xc88] sm:$0xff] }
 0x625   :  { %v812_v62 = vmul.f32 0.7978846, %v808_v58  ;;  %v5312_v63 = vcombine.low %v1234_v53, %v1242_v54  ;;  %v5314_v0 = vcombine.low %v1235_v56, %v1243_v57 }
 0x627   :  { %4036 = vmatpush1.bf16.msra.mxu0 %v5200_v38  ;;  %4118 = vmatpush1.bf16.msra.mxu1 %v5202_v39  ;;  %v5313_v38 = vcombine.high %v1234_v53, %v1242_v54  ;;  %v5315_v39 = vcombine.high %v1235_v56, %v1243_v57  ;;  %5661 = vtanh.f32 %v812_v62  ;;  %v1339_v53 = vld [vmem:[#allocation20 + $0xfc8] sm:$0xff] }
 0x628   :  { %4037 = vmatprep.subr.bf16.mxu0 %v5217_v41  ;;  %4119 = vmatprep.subr.bf16.mxu1 %v5219_v42  ;;  %v1250_v41 = vld [vmem:[#allocation20 + $0xd00] sm:$0xff] }
 0x629   :  { %v1258_v42 = vld [vmem:[#allocation20 + $0xd40] sm:$0xff] }
 0x62a   :  { %v5328_v7 = vcombine.low %v1250_v41, %v1258_v42 }
 0x62b   :  { %4038 = vmatpush1.bf16.msra.mxu0 %v5216_v1  ;;  %4120 = vmatpush1.bf16.msra.mxu1 %v5218_v2  ;;  %v5329_v1 = vcombine.high %v1250_v41, %v1258_v42  ;;  %v5331_v2 = vcombine.high %v1251_v43, %v1259_v61  ;;  %v845_v41 = vld [vmem:[#allocation20 + $0x58] sm:$0xff] }
 0x62c   :  { %4039 = vmatprep.subr.bf16.mxu0 %v5233_v3  ;;  %4121 = vmatprep.subr.bf16.mxu1 %v5235_v4  ;;  %v1266_v3 = vld [vmem:[#allocation20 + $0xd80] sm:$0xff] }
 0x62d   :  { %v1274_v4 = vld [vmem:[#allocation20 + $0xdc0] sm:$0xff] }
 0x62e   :  { %v5344_v15 = vcombine.low %v1266_v3, %v1274_v4 }
 0x62f   :  { %4040 = vmatpush1.bf16.msra.mxu0 %v5232_v10  ;;  %4122 = vmatpush1.bf16.msra.mxu1 %v5234_v11  ;;  %v5345_v10 = vcombine.high %v1266_v3, %v1274_v4  ;;  %v5347_v11 = vcombine.high %v1267_v5, %v1275_v6  ;;  %v861_v3 = vld [vmem:[#allocation20 + $0xd8] sm:$0xff] }
 0x630   :  { %4041 = vmatprep.subr.bf16.mxu0 %v5249_v48  ;;  %4123 = vmatprep.subr.bf16.mxu1 %v5251_v12  ;;  %v1282_v48 = vld [vmem:[#allocation20 + $0xe00] sm:$0xff] }
 0x631   :  { %v1290_v12 = vld [vmem:[#allocation20 + $0xe40] sm:$0xff] }
 0x632   :  { %v5361_v17 = vcombine.high %v1282_v48, %v1290_v12  ;;  %v5360_v22 = vcombine.low %v1282_v48, %v1290_v12  ;;  %v877_v48 = vld [vmem:[#allocation20 + $0x158] sm:$0xff] }
 0x633   :  { %4042 = vmatpush1.bf16.msra.mxu0 %v5248_v18  ;;  %4124 = vmatpush1.bf16.msra.mxu1 %v5250_v55  ;;  %v5363_v18 = vcombine.high %v1283_v13, %v1291_v14  ;;  %v1298_v55 = vld [vmem:[#allocation20 + $0xe80] sm:$0xff] }
 0x634   :  { %4043 = vmatprep.subr.bf16.mxu0 %v5265_v19  ;;  %4125 = vmatprep.subr.bf16.mxu1 %v5267_v20  ;;  %v1306_v19 = vld [vmem:[#allocation20 + $0xec0] sm:$0xff]  ;;  %v1299_v20 = vld [vmem:[#allocation20 + $0xe88] sm:$0xff] }
 0x635   :  { %v5377_v24 = vcombine.high %v1298_v55, %v1306_v19  ;;  %v5379_v25 = vcombine.high %v1299_v20, %v1307_v21  ;;  %v5376_v31 = vcombine.low %v1298_v55, %v1306_v19  ;;  %v5378_v34 = vcombine.low %v1299_v20, %v1307_v21  ;;  %v893_v55 = vld [vmem:[#allocation20 + $0x1d8] sm:$0xff] }
 0x637   :  { %4044 = vmatpush1.bf16.msra.mxu0 %v5264_v26  ;;  %4126 = vmatpush1.bf16.msra.mxu1 %v5266_v27  ;;  %v1314_v26 = vld [vmem:[#allocation20 + $0xf00] sm:$0xff]  ;;  %v5662_v27 = vpop.eup %5661 }
 0x638   :  { %4045 = vmatprep.subr.bf16.mxu0 %v5281_v28  ;;  %4127 = vmatprep.subr.bf16.mxu1 %v5283_v29  ;;  %v1322_v28 = vld [vmem:[#allocation20 + $0xf40] sm:$0xff]  ;;  %v1315_v29 = vld [vmem:[#allocation20 + $0xf08] sm:$0xff]  ;;  %v820_v35 = vadd.f32 1.0, %v5662_v27 }
 0x639   :  { %v5393_v36 = vcombine.high %v1314_v26, %v1322_v28  ;;  %v5392_v54 = vcombine.low %v1314_v26, %v1322_v28  ;;  %v5394_v56 = vcombine.low %v1315_v29, %v1323_v30  ;;  %v909_v26 = vld [vmem:[#allocation20 + $0x258] sm:$0xff] }
 0x63a   :  { %v824_v57 = vmul.f32 0.5, %v820_v35  ;;  %v917_v35 = vld [vmem:[#allocation20 + $0x298] sm:$0xff] }
 0x63b   :  { %4046 = vmatpush1.bf16.msra.mxu0 %v5280_v40  ;;  %4128 = vmatpush1.bf16.msra.mxu1 %v5282_v44  ;;  %v5395_v40 = vcombine.high %v1315_v29, %v1323_v30  ;;  %v1330_v44 = vld [vmem:[#allocation20 + $0xf80] sm:$0xff] }
 0x63c   :  { %4047 = vmatprep.subr.bf16.mxu0 %v5297_v45  ;;  %4129 = vmatprep.subr.bf16.mxu1 %v5299_v52  ;;  %v1338_v45 = vld [vmem:[#allocation20 + $0xfc0] sm:$0xff]  ;;  %v1331_v52 = vld [vmem:[#allocation20 + $0xf88] sm:$0xff]  ;;  %v828_v61 = vmul.f32 %v824_v57, %v6388_v9  ;;  %v876_v9 = vld [vmem:[#allocation20 + $0x150] sm:$0xff] }
 0x63d   :  { %v5409_v58 = vcombine.high %v1330_v44, %v1338_v45  ;;  %v5408_v42 = vcombine.low %v1330_v44, %v1338_v45  ;;  %v5410_v43 = vcombine.low %v1331_v52, %v1339_v53  ;;  %v941_v57 = vld [vmem:[#allocation20 + $0x358] sm:$0xff] }
 0x63e   :  { %v6395_v5 = vpack.c.bf16 %v828_v61, %v828_v61 }
 0x63f   :  { %4048 = vmatpush1.bf16.msra.mxu0 %v5296_v59  ;;  %4130 = vmatpush1.bf16.msra.mxu1 %v5298_v60  ;;  %v5411_v59 = vcombine.high %v1331_v52, %v1339_v53  ;;  %v836_v60 = vld [vmem:[#allocation20 + $0x10] sm:$0xff] }
 0x640   :  { %4049 = vmatprep.subr.bf16.mxu0 %v5313_v38  ;;  %4131 = vmatprep.subr.bf16.mxu1 %v5315_v39  ;;  %v844_v38 = vld [vmem:[#allocation20 + $0x50] sm:$0xff]  ;;  %v837_v39 = vld [vmem:[#allocation20 + $0x18] sm:$0xff] }
 0x641   :  { %v4917_v62 = vcombine.high %v836_v60, %v844_v38  ;;  %v4916_v4 = vcombine.low %v836_v60, %v844_v38  ;;  %v4918_v6 = vcombine.low %v837_v39, %v845_v41  ;;  %v932_v53 = vld [vmem:[#allocation20 + $0x310] sm:$0xff] }
 0x643   :  { %4050 = vmatpush1.bf16.msra.mxu0 %v5312_v63  ;;  %4132 = vmatpush1.bf16.msra.mxu1 %v5314_v0  ;;  %v4919_v63 = vcombine.high %v837_v39, %v845_v41  ;;  %v852_v0 = vld [vmem:[#allocation20 + $0x90] sm:$0xff] }
 0x644   :  { %4051 = vmatprep.subr.bf16.mxu0 %v5329_v1  ;;  %4133 = vmatprep.subr.bf16.mxu1 %v5331_v2  ;;  %v860_v1 = vld [vmem:[#allocation20 + $0xd0] sm:$0xff]  ;;  %v853_v2 = vld [vmem:[#allocation20 + $0x98] sm:$0xff] }
 0x645   :  { %v4932_v12 = vcombine.low %v852_v0, %v860_v1  ;;  %v4934_v13 = vcombine.low %v853_v2, %v861_v3  ;;  %v948_v39 = vld [vmem:[#allocation20 + $0x390] sm:$0xff] }
 0x646   :  { %v956_v41 = vld [vmem:[#allocation20 + $0x3d0] sm:$0xff] }
 0x647   :  { %4052 = vmatpush1.bf16.msra.mxu0 %v5328_v7  ;;  %4134 = vmatpush1.bf16.msra.mxu1 %v5330_v8  ;;  %v4933_v7 = vcombine.high %v852_v0, %v860_v1  ;;  %v4935_v8 = vcombine.high %v853_v2, %v861_v3  ;;  %v964_v1 = vld [vmem:[#allocation20 + $0x410] sm:$0xff]  ;;  %v965_v3 = vld [vmem:[#allocation20 + $0x418] sm:$0xff] }
 0x648   :  { %4053 = vmatprep.subr.bf16.mxu0 %v5345_v10  ;;  %4135 = vmatprep.subr.bf16.mxu1 %v5347_v11  ;;  %v868_v10 = vld [vmem:[#allocation20 + $0x110] sm:$0xff]  ;;  %v869_v11 = vld [vmem:[#allocation20 + $0x118] sm:$0xff] }
 0x649   :  { %v4949_v14 = vcombine.high %v868_v10, %v876_v9  ;;  %v4948_v19 = vcombine.low %v868_v10, %v876_v9  ;;  %v4950_v20 = vcombine.low %v869_v11, %v877_v48  ;;  %v972_v2 = vld [vmem:[#allocation20 + $0x450] sm:$0xff] }
 0x64a   :  { %v980_v9 = vld [vmem:[#allocation20 + $0x490] sm:$0xff] }
 0x64b   :  { %4054 = vmatpush1.bf16.msra.mxu0 %v5344_v15  ;;  %4136 = vmatpush1.bf16.msra.mxu1 %v5346_v16  ;;  %v4951_v15 = vcombine.high %v869_v11, %v877_v48  ;;  %v884_v16 = vld [vmem:[#allocation20 + $0x190] sm:$0xff]  ;;  %v981_v48 = vld [vmem:[#allocation20 + $0x498] sm:$0xff] }
 0x64c   :  { %4055 = vmatprep.subr.bf16.mxu0 %v5361_v17  ;;  %4137 = vmatprep.subr.bf16.mxu1 %v5363_v18  ;;  %v892_v17 = vld [vmem:[#allocation20 + $0x1d0] sm:$0xff]  ;;  %v885_v18 = vld [vmem:[#allocation20 + $0x198] sm:$0xff] }
 0x64d   :  { %v4965_v21 = vcombine.high %v884_v16, %v892_v17  ;;  %v4964_v27 = vcombine.low %v884_v16, %v892_v17  ;;  %v4966_v28 = vcombine.low %v885_v18, %v893_v55  ;;  %v988_v11 = vld [vmem:[#allocation20 + $0x4d0] sm:$0xff] }
 0x64e   :  { %v996_v17 = vld [vmem:[#allocation20 + $0x510] sm:$0xff] }
 0x64f   :  { %4056 = vmatpush1.bf16.msra.mxu0 %v5360_v22  ;;  %4138 = vmatpush1.bf16.msra.mxu1 %v5362_v23  ;;  %v4967_v22 = vcombine.high %v885_v18, %v893_v55  ;;  %v900_v23 = vld [vmem:[#allocation20 + $0x210] sm:$0xff]  ;;  %v997_v55 = vld [vmem:[#allocation20 + $0x518] sm:$0xff] }
 0x650   :  { %4057 = vmatprep.subr.bf16.mxu0 %v5377_v24  ;;  %4139 = vmatprep.subr.bf16.mxu1 %v5379_v25  ;;  %v908_v24 = vld [vmem:[#allocation20 + $0x250] sm:$0xff]  ;;  %v901_v25 = vld [vmem:[#allocation20 + $0x218] sm:$0xff] }
 0x651   :  { %v4981_v29 = vcombine.high %v900_v23, %v908_v24  ;;  %v4983_v30 = vcombine.high %v901_v25, %v909_v26  ;;  %v4982_v44 = vcombine.low %v901_v25, %v909_v26  ;;  %v1004_v18 = vld [vmem:[#allocation20 + $0x550] sm:$0xff]  ;;  %v1013_v26 = vld [vmem:[#allocation20 + $0x598] sm:$0xff] }
 0x652   :  { %v1020_v25 = vld [vmem:[#allocation20 + $0x5d0] sm:$0xff] }
 0x653   :  { %4058 = vmatpush1.bf16.msra.mxu0 %v5376_v31  ;;  %4140 = vmatpush1.bf16.msra.mxu1 %v5378_v34  ;;  %v916_v31 = vld [vmem:[#allocation20 + $0x290] sm:$0xff] }
 0x654   :  { %4059 = vmatprep.subr.bf16.mxu0 %v5393_v36  ;;  %4141 = vmatprep.subr.bf16.mxu1 %v5395_v40  ;;  %v924_v34 = vld [vmem:[#allocation20 + $0x2d0] sm:$0xff]  ;;  %v925_v36 = vld [vmem:[#allocation20 + $0x2d8] sm:$0xff]  ;;  %v4980_v40 = vcombine.low %v900_v23, %v908_v24 }
 0x655   :  { %v4997_v45 = vcombine.high %v916_v31, %v924_v34  ;;  %v4999_v52 = vcombine.high %v917_v35, %v925_v36  ;;  %v1012_v24 = vld [vmem:[#allocation20 + $0x590] sm:$0xff] }
 0x657   :  { %4060 = vmatpush1.bf16.msra.mxu0 %v5392_v54  ;;  %4142 = vmatpush1.bf16.msra.mxu1 %v5394_v56  ;;  %v940_v54 = vld [vmem:[#allocation20 + $0x350] sm:$0xff]  ;;  %v933_v56 = vld [vmem:[#allocation20 + $0x318] sm:$0xff] }
 0x658   :  { %4061 = vmatprep.subr.bf16.mxu0 %v5409_v58  ;;  %4143 = vmatprep.subr.bf16.mxu1 %v5411_v59  ;;  %v4996_v58 = vcombine.low %v916_v31, %v924_v34  ;;  %v4998_v59 = vcombine.low %v917_v35, %v925_v36  ;;  %v5013_v60 = vcombine.high %v932_v53, %v940_v54  ;;  %v1028_v34 = vld [vmem:[#allocation20 + $0x610] sm:$0xff]  ;;  %v1029_v36 = vld [vmem:[#allocation20 + $0x618] sm:$0xff] }
 0x659   :  { %v5015_v38 = vcombine.high %v933_v56, %v941_v57  ;;  %v5012_v61 = vcombine.low %v932_v53, %v940_v54  ;;  %v1036_v35 = vld [vmem:[#allocation20 + $0x650] sm:$0xff] }
 0x65a   :  { %v1044_v54 = vld [vmem:[#allocation20 + $0x690] sm:$0xff] }
 0x65b   :  { %4062 = vmatpush1.bf16.msra.mxu0 %v5408_v42  ;;  %4144 = vmatpush1.bf16.msra.mxu1 %v5410_v43  ;;  %v949_v42 = vld [vmem:[#allocation20 + $0x398] sm:$0xff] }
 0x65c   :  { %4154 = vmatprep.subr.bf16.mxu0 %v4917_v62  ;;  %4236 = vmatprep.subr.bf16.mxu1 %v4919_v63  ;;  %v957_v43 = vld [vmem:[#allocation20 + $0x3d8] sm:$0xff]  ;;  %v5014_v62 = vcombine.low %v933_v56, %v941_v57  ;;  %v5029_v63 = vcombine.high %v948_v39, %v956_v41  ;;  %v1052_v56 = vld [vmem:[#allocation20 + $0x6d0] sm:$0xff] }
 0x65d   :  { %v5031_v0 = vcombine.high %v949_v42, %v957_v43  ;;  %v1045_v57 = vld [vmem:[#allocation20 + $0x698] sm:$0xff] }
 0x65e   :  { %4064 = vmatmul.mubr.bf16.vlgmr.msra.gmra.mrb[8].mxu0 %v6395_v5  ;;  %4146 = vmatmul.mubr.bf16.vlgmr.msra.gmra.mrb[8].mxu1 %v6395_v5 }
 0x65f   :  { %4155 = vmatpush1.bf16.msra.mxu0 %v4916_v4  ;;  %4186 = vmatprep.mubr.bf16.mxu0 %v6364_v32  ;;  %v973_v4 = vld [vmem:[#allocation20 + $0x458] sm:$0xff] }
 0x660   :  { %4237 = vmatpush1.bf16.msra.mxu1 %v4918_v6  ;;  %4268 = vmatprep.mubr.bf16.mxu1 %v6364_v32  ;;  %v5028_v6 = vcombine.low %v948_v39, %v956_v41  ;;  %v5047_v10 = vcombine.high %v965_v3, %v973_v4  ;;  %v1060_v41 = vld [vmem:[#allocation20 + $0x710] sm:$0xff] }
 0x661   :  { %4156 = vmatprep.subr.bf16.mxu0 %v4933_v7  ;;  %4238 = vmatprep.subr.bf16.mxu1 %v4935_v8  ;;  %v5030_v7 = vcombine.low %v949_v42, %v957_v43  ;;  %v5045_v8 = vcombine.high %v964_v1, %v972_v2  ;;  %v1068_v42 = vld [vmem:[#allocation20 + $0x750] sm:$0xff]  ;;  %v1061_v43 = vld [vmem:[#allocation20 + $0x718] sm:$0xff] }
 0x663   :  { %4157 = vmatpush1.bf16.msra.mxu0 %v4932_v12  ;;  %v989_v12 = vld [vmem:[#allocation20 + $0x4d8] sm:$0xff] }
 0x664   :  { %4239 = vmatpush1.bf16.msra.mxu1 %v4934_v13  ;;  %4158 = vmatprep.subr.bf16.mxu0 %v4949_v14  ;;  %v5044_v13 = vcombine.low %v964_v1, %v972_v2  ;;  %v5046_v14 = vcombine.low %v965_v3, %v973_v4  ;;  %v5063_v16 = vcombine.high %v981_v48, %v989_v12  ;;  %v1076_v2 = vld [vmem:[#allocation20 + $0x790] sm:$0xff]  ;;  %v1077_v4 = vld [vmem:[#allocation20 + $0x798] sm:$0xff] }
 0x665   :  { %4240 = vmatprep.subr.bf16.mxu1 %v4951_v15  ;;  %v5061_v15 = vcombine.high %v980_v9, %v988_v11  ;;  %v1084_v3 = vld [vmem:[#allocation20 + $0x7d0] sm:$0xff] }
 0x667   :  { %4159 = vmatpush1.bf16.msra.mxu0 %v4948_v19  ;;  %v1005_v19 = vld [vmem:[#allocation20 + $0x558] sm:$0xff] }
 0x668   :  { %4241 = vmatpush1.bf16.msra.mxu1 %v4950_v20  ;;  %4160 = vmatprep.subr.bf16.mxu0 %v4965_v21  ;;  %v5060_v20 = vcombine.low %v980_v9, %v988_v11  ;;  %v5062_v21 = vcombine.low %v981_v48, %v989_v12  ;;  %v5079_v23 = vcombine.high %v997_v55, %v1005_v19  ;;  %v1092_v11 = vld [vmem:[#allocation20 + $0x810] sm:$0xff]  ;;  %v1093_v12 = vld [vmem:[#allocation20 + $0x818] sm:$0xff] }
 0x669   :  { %4242 = vmatprep.subr.bf16.mxu1 %v4967_v22  ;;  %v5077_v22 = vcombine.high %v996_v17, %v1004_v18  ;;  %v1100_v48 = vld [vmem:[#allocation20 + $0x850] sm:$0xff] }
 0x66b   :  { %4161 = vmatpush1.bf16.msra.mxu0 %v4964_v27  ;;  %v1021_v27 = vld [vmem:[#allocation20 + $0x5d8] sm:$0xff] }
 0x66c   :  { %4243 = vmatpush1.bf16.msra.mxu1 %v4966_v28  ;;  %4162 = vmatprep.subr.bf16.mxu0 %v4981_v29  ;;  %v5076_v28 = vcombine.low %v996_v17, %v1004_v18  ;;  %v5078_v29 = vcombine.low %v997_v55, %v1005_v19  ;;  %v5095_v31 = vcombine.high %v1013_v26, %v1021_v27  ;;  %v1108_v18 = vld [vmem:[#allocation20 + $0x890] sm:$0xff] }
 0x66d   :  { %4244 = vmatprep.subr.bf16.mxu1 %v4983_v30  ;;  %v5093_v30 = vcombine.high %v1012_v24, %v1020_v25  ;;  %v1116_v55 = vld [vmem:[#allocation20 + $0x8d0] sm:$0xff]  ;;  %v5172_v19 = vcombine.low %v1092_v11, %v1100_v48 }
 0x66f   :  { %4163 = vmatpush1.bf16.msra.mxu0 %v4980_v40  ;;  %v1037_v40 = vld [vmem:[#allocation20 + $0x658] sm:$0xff] }
 0x670   :  { %4245 = vmatpush1.bf16.msra.mxu1 %v4982_v44  ;;  %4164 = vmatprep.subr.bf16.mxu0 %v4997_v45  ;;  %v5092_v44 = vcombine.low %v1012_v24, %v1020_v25  ;;  %v5094_v45 = vcombine.low %v1013_v26, %v1021_v27  ;;  %v5111_v53 = vcombine.high %v1029_v36, %v1037_v40  ;;  %v1124_v24 = vld [vmem:[#allocation20 + $0x910] sm:$0xff]  ;;  %v1125_v27 = vld [vmem:[#allocation20 + $0x918] sm:$0xff] }
 0x671   :  { %4246 = vmatprep.subr.bf16.mxu1 %v4999_v52  ;;  %v5109_v52 = vcombine.high %v1028_v34, %v1036_v35  ;;  %v1132_v25 = vld [vmem:[#allocation20 + $0x950] sm:$0xff] }
 0x673   :  { %4165 = vmatpush1.bf16.msra.mxu0 %v4996_v58  ;;  %v1053_v58 = vld [vmem:[#allocation20 + $0x6d8] sm:$0xff] }
 0x674   :  { %4247 = vmatpush1.bf16.msra.mxu1 %v4998_v59  ;;  %4166 = vmatprep.subr.bf16.mxu0 %v5013_v60  ;;  %v5108_v59 = vcombine.low %v1028_v34, %v1036_v35  ;;  %v5110_v60 = vcombine.low %v1029_v36, %v1037_v40  ;;  %v5127_v39 = vcombine.high %v1045_v57, %v1053_v58  ;;  %v1140_v35 = vld [vmem:[#allocation20 + $0x990] sm:$0xff]  ;;  %v1141_v40 = vld [vmem:[#allocation20 + $0x998] sm:$0xff] }
 0x675   :  { %4248 = vmatprep.subr.bf16.mxu1 %v5015_v38  ;;  %v5125_v38 = vcombine.high %v1044_v54, %v1052_v56  ;;  %v1148_v36 = vld [vmem:[#allocation20 + $0x9d0] sm:$0xff] }
 0x677   :  { %4167 = vmatpush1.bf16.msra.mxu0 %v5012_v61  ;;  %v1069_v61 = vld [vmem:[#allocation20 + $0x758] sm:$0xff] }
 0x678   :  { %4249 = vmatpush1.bf16.msra.mxu1 %v5014_v62  ;;  %4168 = vmatprep.subr.bf16.mxu0 %v5029_v63  ;;  %v5124_v62 = vcombine.low %v1044_v54, %v1052_v56  ;;  %v5126_v63 = vcombine.low %v1045_v57, %v1053_v58  ;;  %v5143_v1 = vcombine.high %v1061_v43, %v1069_v61  ;;  %v1156_v56 = vld [vmem:[#allocation20 + $0xa10] sm:$0xff]  ;;  %v1157_v58 = vld [vmem:[#allocation20 + $0xa18] sm:$0xff] }
 0x679   :  { %4250 = vmatprep.subr.bf16.mxu1 %v5031_v0  ;;  %v5141_v0 = vcombine.high %v1060_v41, %v1068_v42  ;;  %v1164_v57 = vld [vmem:[#allocation20 + $0xa50] sm:$0xff] }
 0x67b   :  { %4169 = vmatpush1.bf16.msra.mxu0 %v5028_v6  ;;  %v1085_v6 = vld [vmem:[#allocation20 + $0x7d8] sm:$0xff] }
 0x67c   :  { %4251 = vmatpush1.bf16.msra.mxu1 %v5030_v7  ;;  %4170 = vmatprep.subr.bf16.mxu0 %v5045_v8  ;;  %v5140_v7 = vcombine.low %v1060_v41, %v1068_v42  ;;  %v5142_v8 = vcombine.low %v1061_v43, %v1069_v61  ;;  %v5159_v9 = vcombine.high %v1077_v4, %v1085_v6  ;;  %v1172_v42 = vld [vmem:[#allocation20 + $0xa90] sm:$0xff]  ;;  %v1173_v61 = vld [vmem:[#allocation20 + $0xa98] sm:$0xff] }
 0x67d   :  { %4252 = vmatprep.subr.bf16.mxu1 %v5047_v10  ;;  %v5157_v10 = vcombine.high %v1076_v2, %v1084_v3  ;;  %v1180_v43 = vld [vmem:[#allocation20 + $0xad0] sm:$0xff] }
 0x67f   :  { %4171 = vmatpush1.bf16.msra.mxu0 %v5044_v13  ;;  %v1101_v13 = vld [vmem:[#allocation20 + $0x858] sm:$0xff] }
 0x680   :  { %4253 = vmatpush1.bf16.msra.mxu1 %v5046_v14  ;;  %4172 = vmatprep.subr.bf16.mxu0 %v5061_v15  ;;  %v5156_v14 = vcombine.low %v1076_v2, %v1084_v3  ;;  %v5158_v15 = vcombine.low %v1077_v4, %v1085_v6  ;;  %v5175_v17 = vcombine.high %v1093_v12, %v1101_v13  ;;  %v1188_v3 = vld [vmem:[#allocation20 + $0xb10] sm:$0xff]  ;;  %v1189_v6 = vld [vmem:[#allocation20 + $0xb18] sm:$0xff] }
 0x681   :  { %4254 = vmatprep.subr.bf16.mxu1 %v5063_v16  ;;  %v5173_v16 = vcombine.high %v1092_v11, %v1100_v48  ;;  %v1196_v4 = vld [vmem:[#allocation20 + $0xb50] sm:$0xff] }
 0x682   :  { %v1204_v48 = vld [vmem:[#allocation20 + $0xb90] sm:$0xff] }
 0x683   :  { %4173 = vmatpush1.bf16.msra.mxu0 %v5060_v20  ;;  %v1109_v20 = vld [vmem:[#allocation20 + $0x898] sm:$0xff] }
 0x684   :  { %4255 = vmatpush1.bf16.msra.mxu1 %v5062_v21  ;;  %4174 = vmatprep.subr.bf16.mxu0 %v5077_v22  ;;  %v1117_v21 = vld [vmem:[#allocation20 + $0x8d8] sm:$0xff]  ;;  %v5174_v22 = vcombine.low %v1093_v12, %v1101_v13  ;;  %v1212_v12 = vld [vmem:[#allocation20 + $0xbd0] sm:$0xff] }
 0x685   :  { %4256 = vmatprep.subr.bf16.mxu1 %v5079_v23  ;;  %v5189_v23 = vcombine.high %v1108_v18, %v1116_v55  ;;  %v5191_v26 = vcombine.high %v1109_v20, %v1117_v21  ;;  %v1205_v13 = vld [vmem:[#allocation20 + $0xb98] sm:$0xff] }
 0x687   :  { %4175 = vmatpush1.bf16.msra.mxu0 %v5076_v28  ;;  %v1133_v28 = vld [vmem:[#allocation20 + $0x958] sm:$0xff] }
 0x688   :  { %4257 = vmatpush1.bf16.msra.mxu1 %v5078_v29  ;;  %4176 = vmatprep.subr.bf16.mxu0 %v5093_v30  ;;  %v5188_v29 = vcombine.low %v1108_v18, %v1116_v55  ;;  %v5190_v30 = vcombine.low %v1109_v20, %v1117_v21  ;;  %v5207_v34 = vcombine.high %v1125_v27, %v1133_v28  ;;  %v1220_v55 = vld [vmem:[#allocation20 + $0xc10] sm:$0xff]  ;;  %v1221_v20 = vld [vmem:[#allocation20 + $0xc18] sm:$0xff] }
 0x689   :  { %4258 = vmatprep.subr.bf16.mxu1 %v5095_v31  ;;  %v5205_v31 = vcombine.high %v1124_v24, %v1132_v25  ;;  %v1229_v21 = vld [vmem:[#allocation20 + $0xc58] sm:$0xff] }
 0x68b   :  { %4177 = vmatpush1.bf16.msra.mxu0 %v5092_v44  ;;  %v1149_v44 = vld [vmem:[#allocation20 + $0x9d8] sm:$0xff] }
 0x68c   :  { %4259 = vmatpush1.bf16.msra.mxu1 %v5094_v45  ;;  %4178 = vmatprep.subr.bf16.mxu0 %v5109_v52  ;;  %v5204_v45 = vcombine.low %v1124_v24, %v1132_v25  ;;  %v5206_v52 = vcombine.low %v1125_v27, %v1133_v28  ;;  %v5223_v54 = vcombine.high %v1141_v40, %v1149_v44  ;;  %v1244_v27 = vld [vmem:[#allocation20 + $0xcd0] sm:$0xff]  ;;  %v1237_v28 = vld [vmem:[#allocation20 + $0xc98] sm:$0xff] }
 0x68d   :  { %4260 = vmatprep.subr.bf16.mxu1 %v5111_v53  ;;  %v5221_v53 = vcombine.high %v1140_v35, %v1148_v36  ;;  %v5303_v25 = vcombine.high %v1221_v20, %v1229_v21 }
 0x68f   :  { %4179 = vmatpush1.bf16.msra.mxu0 %v5108_v59  ;;  %v1165_v59 = vld [vmem:[#allocation20 + $0xa58] sm:$0xff] }
 0x690   :  { %4261 = vmatpush1.bf16.msra.mxu1 %v5110_v60  ;;  %4180 = vmatprep.subr.bf16.mxu0 %v5125_v38  ;;  %v5220_v60 = vcombine.low %v1140_v35, %v1148_v36  ;;  %v5222_v38 = vcombine.low %v1141_v40, %v1149_v44  ;;  %v5239_v41 = vcombine.high %v1157_v58, %v1165_v59  ;;  %v1252_v36 = vld [vmem:[#allocation20 + $0xd10] sm:$0xff]  ;;  %v1253_v44 = vld [vmem:[#allocation20 + $0xd18] sm:$0xff] }
 0x691   :  { %4262 = vmatprep.subr.bf16.mxu1 %v5127_v39  ;;  %v5237_v39 = vcombine.high %v1156_v56, %v1164_v57  ;;  %v1260_v40 = vld [vmem:[#allocation20 + $0xd50] sm:$0xff] }
 0x693   :  { %4181 = vmatpush1.bf16.msra.mxu0 %v5124_v62  ;;  %v1181_v62 = vld [vmem:[#allocation20 + $0xad8] sm:$0xff] }
 0x694   :  { %4263 = vmatpush1.bf16.msra.mxu1 %v5126_v63  ;;  %4182 = vmatprep.subr.bf16.mxu0 %v5141_v0  ;;  %v5236_v63 = vcombine.low %v1156_v56, %v1164_v57  ;;  %v5238_v0 = vcombine.low %v1157_v58, %v1165_v59  ;;  %v5255_v2 = vcombine.high %v1173_v61, %v1181_v62  ;;  %v1268_v57 = vld [vmem:[#allocation20 + $0xd90] sm:$0xff]  ;;  %v1269_v59 = vld [vmem:[#allocation20 + $0xd98] sm:$0xff] }
 0x695   :  { %4264 = vmatprep.subr.bf16.mxu1 %v5143_v1  ;;  %v5253_v1 = vcombine.high %v1172_v42, %v1180_v43  ;;  %v1276_v58 = vld [vmem:[#allocation20 + $0xdd0] sm:$0xff] }
 0x697   :  { %4183 = vmatpush1.bf16.msra.mxu0 %v5140_v7  ;;  %v1197_v7 = vld [vmem:[#allocation20 + $0xb58] sm:$0xff] }
 0x698   :  { %4265 = vmatpush1.bf16.msra.mxu1 %v5142_v8  ;;  %4184 = vmatprep.subr.bf16.mxu0 %v5157_v10  ;;  %v5252_v8 = vcombine.low %v1172_v42, %v1180_v43  ;;  %v5254_v10 = vcombine.low %v1173_v61, %v1181_v62  ;;  %v5271_v11 = vcombine.high %v1189_v6, %v1197_v7  ;;  %v1284_v43 = vld [vmem:[#allocation20 + $0xe10] sm:$0xff]  ;;  %v1285_v62 = vld [vmem:[#allocation20 + $0xe18] sm:$0xff] }
 0x699   :  { %4266 = vmatprep.subr.bf16.mxu1 %v5159_v9  ;;  %v5269_v9 = vcombine.high %v1188_v3, %v1196_v4  ;;  %v1292_v61 = vld [vmem:[#allocation20 + $0xe50] sm:$0xff] }
 0x69b   :  { %4185 = vmatpush1.bf16.msra.mxu0 %v5156_v14  ;;  %v1213_v14 = vld [vmem:[#allocation20 + $0xbd8] sm:$0xff] }
 0x69c   :  { %4267 = vmatpush1.bf16.msra.mxu1 %v5158_v15  ;;  %4195 = vmatprep.subr.bf16.mxu0 %v5173_v16  ;;  %v5268_v15 = vcombine.low %v1188_v3, %v1196_v4  ;;  %v5270_v16 = vcombine.low %v1189_v6, %v1197_v7  ;;  %v5287_v18 = vcombine.high %v1205_v13, %v1213_v14  ;;  %v1300_v4 = vld [vmem:[#allocation20 + $0xe90] sm:$0xff]  ;;  %v1301_v7 = vld [vmem:[#allocation20 + $0xe98] sm:$0xff] }
 0x69d   :  { %4277 = vmatprep.subr.bf16.mxu1 %v5175_v17  ;;  %v5285_v17 = vcombine.high %v1204_v48, %v1212_v12  ;;  %v1308_v6 = vld [vmem:[#allocation20 + $0xed0] sm:$0xff] }
 0x69e   :  { %4187 = vmatmul.mubr.bf16.vlgmr.msra.gmra.mrb[12].mxu0 %v6366_v33 }
 0x69f   :  { %4269 = vmatmul.mubr.bf16.vlgmr.msra.gmra.mrb[12].mxu1 %v6366_v33  ;;  %4196 = vmatpush1.bf16.msra.mxu0 %v5172_v19  ;;  %v1228_v19 = vld [vmem:[#allocation20 + $0xc50] sm:$0xff] }
 0x6a0   :  { %4227 = vmatprep.mubr.bf16.mxu0 %v6370_v51  ;;  %4278 = vmatpush1.bf16.msra.mxu1 %v5174_v22  ;;  %v5284_v22 = vcombine.low %v1204_v48, %v1212_v12  ;;  %v5301_v24 = vcombine.high %v1220_v55, %v1228_v19  ;;  %v1316_v12 = vld [vmem:[#allocation20 + $0xf10] sm:$0xff] }
 0x6a1   :  { %4309 = vmatprep.mubr.bf16.mxu1 %v6370_v51  ;;  %4197 = vmatprep.subr.bf16.mxu0 %v5189_v23  ;;  %v5286_v23 = vcombine.low %v1205_v13, %v1213_v14  ;;  %v1324_v13 = vld [vmem:[#allocation20 + $0xf50] sm:$0xff]  ;;  %v1317_v14 = vld [vmem:[#allocation20 + $0xf18] sm:$0xff] }
 0x6a2   :  { %4279 = vmatprep.subr.bf16.mxu1 %v5191_v26  ;;  %v1236_v26 = vld [vmem:[#allocation20 + $0xc90] sm:$0xff] }
 0x6a3   :  { %4198 = vmatpush1.bf16.msra.mxu0 %v5188_v29  ;;  %v1245_v29 = vld [vmem:[#allocation20 + $0xcd8] sm:$0xff] }
 0x6a4   :  { %4280 = vmatpush1.bf16.msra.mxu1 %v5190_v30  ;;  %4199 = vmatprep.subr.bf16.mxu0 %v5205_v31  ;;  %v5300_v30 = vcombine.low %v1220_v55, %v1228_v19  ;;  %v5302_v31 = vcombine.low %v1221_v20, %v1229_v21  ;;  %v5319_v35 = vcombine.high %v1237_v28, %v1245_v29  ;;  %v1332_v19 = vld [vmem:[#allocation20 + $0xf90] sm:$0xff]  ;;  %v1333_v21 = vld [vmem:[#allocation20 + $0xf98] sm:$0xff] }
 0x6a5   :  { %4281 = vmatprep.subr.bf16.mxu1 %v5207_v34  ;;  %v5317_v34 = vcombine.high %v1236_v26, %v1244_v27  ;;  %v1340_v20 = vld [vmem:[#allocation20 + $0xfd0] sm:$0xff] }
 0x6a7   :  { %4200 = vmatpush1.bf16.msra.mxu0 %v5204_v45  ;;  %v1261_v45 = vld [vmem:[#allocation20 + $0xd58] sm:$0xff] }
 0x6a8   :  { %4282 = vmatpush1.bf16.msra.mxu1 %v5206_v52  ;;  %4201 = vmatprep.subr.bf16.mxu0 %v5221_v53  ;;  %v5316_v52 = vcombine.low %v1236_v26, %v1244_v27  ;;  %v5318_v53 = vcombine.low %v1237_v28, %v1245_v29  ;;  %v5335_v56 = vcombine.high %v1253_v44, %v1261_v45  ;;  %v838_v27 = vld [vmem:[#allocation20 + $0x20] sm:$0xff]  ;;  %v839_v29 = vld [vmem:[#allocation20 + $0x28] sm:$0xff] }
 0x6a9   :  { %4283 = vmatprep.subr.bf16.mxu1 %v5223_v54  ;;  %v5333_v54 = vcombine.high %v1252_v36, %v1260_v40  ;;  %v846_v28 = vld [vmem:[#allocation20 + $0x60] sm:$0xff] }
 0x6ab   :  { %4202 = vmatpush1.bf16.msra.mxu0 %v5220_v60  ;;  %v1277_v60 = vld [vmem:[#allocation20 + $0xdd8] sm:$0xff] }
 0x6ac   :  { %4284 = vmatpush1.bf16.msra.mxu1 %v5222_v38  ;;  %4203 = vmatprep.subr.bf16.mxu0 %v5237_v39  ;;  %v5332_v38 = vcombine.low %v1252_v36, %v1260_v40  ;;  %v5334_v39 = vcombine.low %v1253_v44, %v1261_v45  ;;  %v5351_v42 = vcombine.high %v1269_v59, %v1277_v60  ;;  %v854_v40 = vld [vmem:[#allocation20 + $0xa0] sm:$0xff] }
 0x6ad   :  { %4285 = vmatprep.subr.bf16.mxu1 %v5239_v41  ;;  %v5349_v41 = vcombine.high %v1268_v57, %v1276_v58  ;;  %v862_v44 = vld [vmem:[#allocation20 + $0xe0] sm:$0xff]  ;;  %v4920_v45 = vcombine.low %v838_v27, %v846_v28 }
 0x6af   :  { %4204 = vmatpush1.bf16.msra.mxu0 %v5236_v63  ;;  %v1293_v63 = vld [vmem:[#allocation20 + $0xe58] sm:$0xff] }
 0x6b0   :  { %4286 = vmatpush1.bf16.msra.mxu1 %v5238_v0  ;;  %4205 = vmatprep.subr.bf16.mxu0 %v5253_v1  ;;  %v5348_v0 = vcombine.low %v1268_v57, %v1276_v58  ;;  %v5350_v1 = vcombine.low %v1269_v59, %v1277_v60  ;;  %v5367_v3 = vcombine.high %v1285_v62, %v1293_v63  ;;  %v870_v57 = vld [vmem:[#allocation20 + $0x120] sm:$0xff]  ;;  %v871_v60 = vld [vmem:[#allocation20 + $0x128] sm:$0xff] }
 0x6b1   :  { %4287 = vmatprep.subr.bf16.mxu1 %v5255_v2  ;;  %v5365_v2 = vcombine.high %v1284_v43, %v1292_v61  ;;  %v878_v58 = vld [vmem:[#allocation20 + $0x160] sm:$0xff] }
 0x6b3   :  { %4206 = vmatpush1.bf16.msra.mxu0 %v5252_v8  ;;  %v1309_v8 = vld [vmem:[#allocation20 + $0xed8] sm:$0xff] }
 0x6b4   :  { %4288 = vmatpush1.bf16.msra.mxu1 %v5254_v10  ;;  %4207 = vmatprep.subr.bf16.mxu0 %v5269_v9  ;;  %v5364_v10 = vcombine.low %v1284_v43, %v1292_v61  ;;  %v5366_v9 = vcombine.low %v1285_v62, %v1293_v63  ;;  %v5383_v48 = vcombine.high %v1301_v7, %v1309_v8  ;;  %v886_v61 = vld [vmem:[#allocation20 + $0x1a0] sm:$0xff]  ;;  %v887_v63 = vld [vmem:[#allocation20 + $0x1a8] sm:$0xff] }
 0x6b5   :  { %4289 = vmatprep.subr.bf16.mxu1 %v5271_v11  ;;  %v5381_v11 = vcombine.high %v1300_v4, %v1308_v6  ;;  %v894_v62 = vld [vmem:[#allocation20 + $0x1e0] sm:$0xff] }
 0x6b7   :  { %4208 = vmatpush1.bf16.msra.mxu0 %v5268_v15  ;;  %v1325_v15 = vld [vmem:[#allocation20 + $0xf58] sm:$0xff] }
 0x6b8   :  { %4290 = vmatpush1.bf16.msra.mxu1 %v5270_v16  ;;  %4209 = vmatprep.subr.bf16.mxu0 %v5285_v17  ;;  %v5380_v16 = vcombine.low %v1300_v4, %v1308_v6  ;;  %v5382_v17 = vcombine.low %v1301_v7, %v1309_v8  ;;  %v5399_v55 = vcombine.high %v1317_v14, %v1325_v15  ;;  %v902_v6 = vld [vmem:[#allocation20 + $0x220] sm:$0xff]  ;;  %v903_v8 = vld [vmem:[#allocation20 + $0x228] sm:$0xff] }
 0x6b9   :  { %4291 = vmatprep.subr.bf16.mxu1 %v5287_v18  ;;  %v5397_v18 = vcombine.high %v1316_v12, %v1324_v13  ;;  %v910_v7 = vld [vmem:[#allocation20 + $0x260] sm:$0xff] }
 0x6bb   :  { %4210 = vmatpush1.bf16.msra.mxu0 %v5284_v22  ;;  %v1341_v22 = vld [vmem:[#allocation20 + $0xfd8] sm:$0xff] }
 0x6bc   :  { %4292 = vmatpush1.bf16.msra.mxu1 %v5286_v23  ;;  %4211 = vmatprep.subr.bf16.mxu0 %v5301_v24  ;;  %v5396_v23 = vcombine.low %v1316_v12, %v1324_v13  ;;  %v5398_v24 = vcombine.low %v1317_v14, %v1325_v15  ;;  %v5415_v26 = vcombine.high %v1333_v21, %v1341_v22  ;;  %v918_v13 = vld [vmem:[#allocation20 + $0x2a0] sm:$0xff]  ;;  %v919_v15 = vld [vmem:[#allocation20 + $0x2a8] sm:$0xff] }
 0x6bd   :  { %4293 = vmatprep.subr.bf16.mxu1 %v5303_v25  ;;  %v5413_v25 = vcombine.high %v1332_v19, %v1340_v20  ;;  %v926_v14 = vld [vmem:[#allocation20 + $0x2e0] sm:$0xff] }
 0x6bf   :  { %4212 = vmatpush1.bf16.msra.mxu0 %v5300_v30  ;;  %v847_v30 = vld [vmem:[#allocation20 + $0x68] sm:$0xff] }
 0x6c0   :  { %4294 = vmatpush1.bf16.msra.mxu1 %v5302_v31  ;;  %4213 = vmatprep.subr.bf16.mxu0 %v5317_v34  ;;  %v5412_v31 = vcombine.low %v1332_v19, %v1340_v20  ;;  %v5414_v34 = vcombine.low %v1333_v21, %v1341_v22  ;;  %v4923_v36 = vcombine.high %v839_v29, %v847_v30  ;;  %v934_v20 = vld [vmem:[#allocation20 + $0x320] sm:$0xff]  ;;  %v935_v22 = vld [vmem:[#allocation20 + $0x328] sm:$0xff] }
 0x6c1   :  { %4295 = vmatprep.subr.bf16.mxu1 %v5319_v35  ;;  %v4921_v35 = vcombine.high %v838_v27, %v846_v28  ;;  %v942_v21 = vld [vmem:[#allocation20 + $0x360] sm:$0xff] }
 0x6c2   :  { %v950_v28 = vld [vmem:[#allocation20 + $0x3a0] sm:$0xff] }
 0x6c3   :  { %4214 = vmatpush1.bf16.msra.mxu0 %v5316_v52  ;;  %v855_v52 = vld [vmem:[#allocation20 + $0xa8] sm:$0xff] }
 0x6c4   :  { %4296 = vmatpush1.bf16.msra.mxu1 %v5318_v53  ;;  %4215 = vmatprep.subr.bf16.mxu0 %v5333_v54  ;;  %v863_v53 = vld [vmem:[#allocation20 + $0xe8] sm:$0xff]  ;;  %v4922_v54 = vcombine.low %v839_v29, %v847_v30  ;;  %v958_v29 = vld [vmem:[#allocation20 + $0x3e0] sm:$0xff] }
 0x6c5   :  { %4297 = vmatprep.subr.bf16.mxu1 %v5335_v56  ;;  %v4937_v56 = vcombine.high %v854_v40, %v862_v44  ;;  %v4939_v59 = vcombine.high %v855_v52, %v863_v53  ;;  %v951_v30 = vld [vmem:[#allocation20 + $0x3a8] sm:$0xff] }
 0x6c7   :  { %4216 = vmatpush1.bf16.msra.mxu0 %v5332_v38  ;;  %v879_v38 = vld [vmem:[#allocation20 + $0x168] sm:$0xff] }
 0x6c8   :  { %4298 = vmatpush1.bf16.msra.mxu1 %v5334_v39  ;;  %4217 = vmatprep.subr.bf16.mxu0 %v5349_v41  ;;  %v4936_v39 = vcombine.low %v854_v40, %v862_v44  ;;  %v4938_v41 = vcombine.low %v855_v52, %v863_v53  ;;  %v4955_v43 = vcombine.high %v871_v60, %v879_v38  ;;  %v966_v44 = vld [vmem:[#allocation20 + $0x420] sm:$0xff]  ;;  %v967_v52 = vld [vmem:[#allocation20 + $0x428] sm:$0xff] }
 0x6c9   :  { %4299 = vmatprep.subr.bf16.mxu1 %v5351_v42  ;;  %v4953_v42 = vcombine.high %v870_v57, %v878_v58  ;;  %v975_v53 = vld [vmem:[#allocation20 + $0x468] sm:$0xff] }
 0x6cb   :  { %4218 = vmatpush1.bf16.msra.mxu0 %v5348_v0  ;;  %v895_v0 = vld [vmem:[#allocation20 + $0x1e8] sm:$0xff] }
 0x6cc   :  { %4300 = vmatpush1.bf16.msra.mxu1 %v5350_v1  ;;  %4219 = vmatprep.subr.bf16.mxu0 %v5365_v2  ;;  %v4952_v1 = vcombine.low %v870_v57, %v878_v58  ;;  %v4954_v2 = vcombine.low %v871_v60, %v879_v38  ;;  %v4971_v4 = vcombine.high %v887_v63, %v895_v0  ;;  %v990_v60 = vld [vmem:[#allocation20 + $0x4e0] sm:$0xff]  ;;  %v983_v38 = vld [vmem:[#allocation20 + $0x4a8] sm:$0xff] }
 0x6cd   :  { %4301 = vmatprep.subr.bf16.mxu1 %v5367_v3  ;;  %v4969_v3 = vcombine.high %v886_v61, %v894_v62  ;;  %v5051_v58 = vcombine.high %v967_v52, %v975_v53 }
 0x6cf   :  { %4220 = vmatpush1.bf16.msra.mxu0 %v5364_v10  ;;  %v911_v10 = vld [vmem:[#allocation20 + $0x268] sm:$0xff] }
 0x6d0   :  { %4302 = vmatpush1.bf16.msra.mxu1 %v5366_v9  ;;  %4221 = vmatprep.subr.bf16.mxu0 %v5381_v11  ;;  %v4968_v9 = vcombine.low %v886_v61, %v894_v62  ;;  %v4970_v11 = vcombine.low %v887_v63, %v895_v0  ;;  %v4987_v12 = vcombine.high %v903_v8, %v911_v10  ;;  %v998_v62 = vld [vmem:[#allocation20 + $0x520] sm:$0xff]  ;;  %v999_v0 = vld [vmem:[#allocation20 + $0x528] sm:$0xff] }
 0x6d1   :  { %4303 = vmatprep.subr.bf16.mxu1 %v5383_v48  ;;  %v4985_v48 = vcombine.high %v902_v6, %v910_v7  ;;  %v1006_v63 = vld [vmem:[#allocation20 + $0x560] sm:$0xff] }
 0x6d3   :  { %4222 = vmatpush1.bf16.msra.mxu0 %v5380_v16  ;;  %v927_v16 = vld [vmem:[#allocation20 + $0x2e8] sm:$0xff] }
 0x6d4   :  { %4304 = vmatpush1.bf16.msra.mxu1 %v5382_v17  ;;  %4223 = vmatprep.subr.bf16.mxu0 %v5397_v18  ;;  %v4984_v17 = vcombine.low %v902_v6, %v910_v7  ;;  %v4986_v18 = vcombine.low %v903_v8, %v911_v10  ;;  %v5003_v19 = vcombine.high %v919_v15, %v927_v16  ;;  %v1014_v7 = vld [vmem:[#allocation20 + $0x5a0] sm:$0xff]  ;;  %v1015_v10 = vld [vmem:[#allocation20 + $0x5a8] sm:$0xff] }
 0x6d5   :  { %4305 = vmatprep.subr.bf16.mxu1 %v5399_v55  ;;  %v5001_v55 = vcombine.high %v918_v13, %v926_v14  ;;  %v1022_v8 = vld [vmem:[#allocation20 + $0x5e0] sm:$0xff] }
 0x6d7   :  { %4224 = vmatpush1.bf16.msra.mxu0 %v5396_v23  ;;  %v943_v23 = vld [vmem:[#allocation20 + $0x368] sm:$0xff] }
 0x6d8   :  { %4306 = vmatpush1.bf16.msra.mxu1 %v5398_v24  ;;  %4225 = vmatprep.subr.bf16.mxu0 %v5413_v25  ;;  %v5000_v24 = vcombine.low %v918_v13, %v926_v14  ;;  %v5002_v25 = vcombine.low %v919_v15, %v927_v16  ;;  %v5019_v27 = vcombine.high %v935_v22, %v943_v23  ;;  %v1030_v14 = vld [vmem:[#allocation20 + $0x620] sm:$0xff]  ;;  %v1031_v16 = vld [vmem:[#allocation20 + $0x628] sm:$0xff] }
 0x6d9   :  { %4307 = vmatprep.subr.bf16.mxu1 %v5415_v26  ;;  %v5017_v26 = vcombine.high %v934_v20, %v942_v21  ;;  %v1038_v15 = vld [vmem:[#allocation20 + $0x660] sm:$0xff] }
 0x6db   :  { %4226 = vmatpush1.bf16.msra.mxu0 %v5412_v31  ;;  %v959_v31 = vld [vmem:[#allocation20 + $0x3e8] sm:$0xff] }
 0x6dc   :  { %4308 = vmatpush1.bf16.msra.mxu1 %v5414_v34  ;;  %4318 = vmatprep.subr.bf16.mxu0 %v4921_v35  ;;  %v5016_v34 = vcombine.low %v934_v20, %v942_v21  ;;  %v5018_v35 = vcombine.low %v935_v22, %v943_v23  ;;  %v5035_v40 = vcombine.high %v951_v30, %v959_v31  ;;  %v1046_v21 = vld [vmem:[#allocation20 + $0x6a0] sm:$0xff]  ;;  %v1047_v23 = vld [vmem:[#allocation20 + $0x6a8] sm:$0xff] }
 0x6dd   :  { %4400 = vmatprep.subr.bf16.mxu1 %v4923_v36  ;;  %v5033_v36 = vcombine.high %v950_v28, %v958_v29  ;;  %v1054_v22 = vld [vmem:[#allocation20 + $0x6e0] sm:$0xff] }
 0x6de   :  { %4228 = vmatmul.mubr.bf16.vlgmr.msra.gmra.mrb[12].mxu0 %v6395_v5 }
 0x6df   :  { %4310 = vmatmul.mubr.bf16.vlgmr.msra.gmra.mrb[12].mxu1 %v6395_v5  ;;  %4319 = vmatpush1.bf16.msra.mxu0 %v4920_v45  ;;  %v974_v45 = vld [vmem:[#allocation20 + $0x460] sm:$0xff] }
 0x6e0   :  { %4350 = vmatprep.mubr.bf16.mxu0 %v6364_v32  ;;  %4401 = vmatpush1.bf16.msra.mxu1 %v4922_v54  ;;  %v5032_v54 = vcombine.low %v950_v28, %v958_v29  ;;  %v5049_v57 = vcombine.high %v966_v44, %v974_v45  ;;  %v1062_v29 = vld [vmem:[#allocation20 + $0x720] sm:$0xff] }
 0x6e1   :  { %4432 = vmatprep.mubr.bf16.mxu1 %v6364_v32  ;;  %4320 = vmatprep.subr.bf16.mxu0 %v4937_v56  ;;  %v5034_v56 = vcombine.low %v951_v30, %v959_v31  ;;  %v1070_v30 = vld [vmem:[#allocation20 + $0x760] sm:$0xff]  ;;  %v1063_v31 = vld [vmem:[#allocation20 + $0x728] sm:$0xff] }
 0x6e2   :  { %4402 = vmatprep.subr.bf16.mxu1 %v4939_v59  ;;  %v982_v59 = vld [vmem:[#allocation20 + $0x4a0] sm:$0xff] }
 0x6e3   :  { %4321 = vmatpush1.bf16.msra.mxu0 %v4936_v39  ;;  %v991_v39 = vld [vmem:[#allocation20 + $0x4e8] sm:$0xff] }
 0x6e4   :  { %4403 = vmatpush1.bf16.msra.mxu1 %v4938_v41  ;;  %4322 = vmatprep.subr.bf16.mxu0 %v4953_v42  ;;  %v5048_v41 = vcombine.low %v966_v44, %v974_v45  ;;  %v5050_v42 = vcombine.low %v967_v52, %v975_v53  ;;  %v5067_v61 = vcombine.high %v983_v38, %v991_v39  ;;  %v1078_v45 = vld [vmem:[#allocation20 + $0x7a0] sm:$0xff]  ;;  %v1079_v53 = vld [vmem:[#allocation20 + $0x7a8] sm:$0xff] }
 0x6e5   :  { %4404 = vmatprep.subr.bf16.mxu1 %v4955_v43  ;;  %v5065_v43 = vcombine.high %v982_v59, %v990_v60  ;;  %v1086_v52 = vld [vmem:[#allocation20 + $0x7e0] sm:$0xff] }
 0x6e7   :  { %4323 = vmatpush1.bf16.msra.mxu0 %v4952_v1  ;;  %v1007_v1 = vld [vmem:[#allocation20 + $0x568] sm:$0xff] }
 0x6e8   :  { %4405 = vmatpush1.bf16.msra.mxu1 %v4954_v2  ;;  %4324 = vmatprep.subr.bf16.mxu0 %v4969_v3  ;;  %v5064_v2 = vcombine.low %v982_v59, %v990_v60  ;;  %v5066_v3 = vcombine.low %v983_v38, %v991_v39  ;;  %v5083_v6 = vcombine.high %v999_v0, %v1007_v1  ;;  %v1094_v60 = vld [vmem:[#allocation20 + $0x820] sm:$0xff]  ;;  %v1095_v39 = vld [vmem:[#allocation20 + $0x828] sm:$0xff] }
 0x6e9   :  { %4406 = vmatprep.subr.bf16.mxu1 %v4971_v4  ;;  %v5081_v4 = vcombine.high %v998_v62, %v1006_v63  ;;  %v1102_v38 = vld [vmem:[#allocation20 + $0x860] sm:$0xff] }
 0x6eb   :  { %4325 = vmatpush1.bf16.msra.mxu0 %v4968_v9  ;;  %v1023_v9 = vld [vmem:[#allocation20 + $0x5e8] sm:$0xff] }
 0x6ec   :  { %4407 = vmatpush1.bf16.msra.mxu1 %v4970_v11  ;;  %4326 = vmatprep.subr.bf16.mxu0 %v4985_v48  ;;  %v5080_v11 = vcombine.low %v998_v62, %v1006_v63  ;;  %v5082_v48 = vcombine.low %v999_v0, %v1007_v1  ;;  %v5099_v13 = vcombine.high %v1015_v10, %v1023_v9  ;;  %v1110_v63 = vld [vmem:[#allocation20 + $0x8a0] sm:$0xff] }
 0x6ed   :  { %4408 = vmatprep.subr.bf16.mxu1 %v4987_v12  ;;  %v5097_v12 = vcombine.high %v1014_v7, %v1022_v8  ;;  %v1118_v0 = vld [vmem:[#allocation20 + $0x8e0] sm:$0xff]  ;;  %v5176_v1 = vcombine.low %v1094_v60, %v1102_v38 }
 0x6ef   :  { %4327 = vmatpush1.bf16.msra.mxu0 %v4984_v17  ;;  %v1039_v17 = vld [vmem:[#allocation20 + $0x668] sm:$0xff] }
 0x6f0   :  { %4409 = vmatpush1.bf16.msra.mxu1 %v4986_v18  ;;  %4328 = vmatprep.subr.bf16.mxu0 %v5001_v55  ;;  %v5096_v18 = vcombine.low %v1014_v7, %v1022_v8  ;;  %v5098_v55 = vcombine.low %v1015_v10, %v1023_v9  ;;  %v5115_v20 = vcombine.high %v1031_v16, %v1039_v17  ;;  %v1126_v7 = vld [vmem:[#allocation20 + $0x920] sm:$0xff]  ;;  %v1127_v9 = vld [vmem:[#allocation20 + $0x928] sm:$0xff] }
 0x6f1   :  { %4410 = vmatprep.subr.bf16.mxu1 %v5003_v19  ;;  %v5113_v19 = vcombine.high %v1030_v14, %v1038_v15  ;;  %v1134_v8 = vld [vmem:[#allocation20 + $0x960] sm:$0xff] }
 0x6f3   :  { %4329 = vmatpush1.bf16.msra.mxu0 %v5000_v24  ;;  %v1055_v24 = vld [vmem:[#allocation20 + $0x6e8] sm:$0xff] }
 0x6f4   :  { %4411 = vmatpush1.bf16.msra.mxu1 %v5002_v25  ;;  %4330 = vmatprep.subr.bf16.mxu0 %v5017_v26  ;;  %v5112_v25 = vcombine.low %v1030_v14, %v1038_v15  ;;  %v5114_v26 = vcombine.low %v1031_v16, %v1039_v17  ;;  %v5131_v28 = vcombine.high %v1047_v23, %v1055_v24  ;;  %v1142_v15 = vld [vmem:[#allocation20 + $0x9a0] sm:$0xff]  ;;  %v1143_v17 = vld [vmem:[#allocation20 + $0x9a8] sm:$0xff] }
 0x6f5   :  { %4412 = vmatprep.subr.bf16.mxu1 %v5019_v27  ;;  %v5129_v27 = vcombine.high %v1046_v21, %v1054_v22  ;;  %v1150_v16 = vld [vmem:[#allocation20 + $0x9e0] sm:$0xff] }
 0x6f7   :  { %4331 = vmatpush1.bf16.msra.mxu0 %v5016_v34  ;;  %v1071_v34 = vld [vmem:[#allocation20 + $0x768] sm:$0xff] }
 0x6f8   :  { %4413 = vmatpush1.bf16.msra.mxu1 %v5018_v35  ;;  %4332 = vmatprep.subr.bf16.mxu0 %v5033_v36  ;;  %v5128_v35 = vcombine.low %v1046_v21, %v1054_v22  ;;  %v5130_v36 = vcombine.low %v1047_v23, %v1055_v24  ;;  %v5147_v44 = vcombine.high %v1063_v31, %v1071_v34  ;;  %v1158_v22 = vld [vmem:[#allocation20 + $0xa20] sm:$0xff]  ;;  %v1159_v24 = vld [vmem:[#allocation20 + $0xa28] sm:$0xff] }
 0x6f9   :  { %4414 = vmatprep.subr.bf16.mxu1 %v5035_v40  ;;  %v5145_v40 = vcombine.high %v1062_v29, %v1070_v30  ;;  %v1166_v23 = vld [vmem:[#allocation20 + $0xa60] sm:$0xff] }
 0x6fb   :  { %4333 = vmatpush1.bf16.msra.mxu0 %v5032_v54  ;;  %v1087_v54 = vld [vmem:[#allocation20 + $0x7e8] sm:$0xff] }
 0x6fc   :  { %4415 = vmatpush1.bf16.msra.mxu1 %v5034_v56  ;;  %4334 = vmatprep.subr.bf16.mxu0 %v5049_v57  ;;  %v5144_v56 = vcombine.low %v1062_v29, %v1070_v30  ;;  %v5146_v57 = vcombine.low %v1063_v31, %v1071_v34  ;;  %v5163_v59 = vcombine.high %v1079_v53, %v1087_v54  ;;  %v1174_v30 = vld [vmem:[#allocation20 + $0xaa0] sm:$0xff]  ;;  %v1175_v34 = vld [vmem:[#allocation20 + $0xaa8] sm:$0xff] }
 0x6fd   :  { %4416 = vmatprep.subr.bf16.mxu1 %v5051_v58  ;;  %v5161_v58 = vcombine.high %v1078_v45, %v1086_v52  ;;  %v1182_v31 = vld [vmem:[#allocation20 + $0xae0] sm:$0xff] }
 0x6ff   :  { %4335 = vmatpush1.bf16.msra.mxu0 %v5048_v41  ;;  %v1103_v41 = vld [vmem:[#allocation20 + $0x868] sm:$0xff] }
 0x700   :  { %4417 = vmatpush1.bf16.msra.mxu1 %v5050_v42  ;;  %4336 = vmatprep.subr.bf16.mxu0 %v5065_v43  ;;  %v5160_v42 = vcombine.low %v1078_v45, %v1086_v52  ;;  %v5162_v43 = vcombine.low %v1079_v53, %v1087_v54  ;;  %v5179_v62 = vcombine.high %v1095_v39, %v1103_v41  ;;  %v1190_v53 = vld [vmem:[#allocation20 + $0xb20] sm:$0xff] }
 0x701   :  { %4418 = vmatprep.subr.bf16.mxu1 %v5067_v61  ;;  %v5177_v61 = vcombine.high %v1094_v60, %v1102_v38  ;;  %v5257_v45 = vcombine.high %v1174_v30, %v1182_v31  ;;  %v1198_v54 = vld [vmem:[#allocation20 + $0xb60] sm:$0xff] }
 0x703   :  { %4337 = vmatpush1.bf16.msra.mxu0 %v5064_v2  ;;  %v1111_v2 = vld [vmem:[#allocation20 + $0x8a8] sm:$0xff] }
 0x704   :  { %4419 = vmatpush1.bf16.msra.mxu1 %v5066_v3  ;;  %4338 = vmatprep.subr.bf16.mxu0 %v5081_v4  ;;  %v1119_v3 = vld [vmem:[#allocation20 + $0x8e8] sm:$0xff]  ;;  %v5178_v4 = vcombine.low %v1095_v39, %v1103_v41  ;;  %v5256_v39 = vcombine.low %v1174_v30, %v1182_v31 }
 0x705   :  { %4420 = vmatprep.subr.bf16.mxu1 %v5083_v6  ;;  %v5193_v6 = vcombine.high %v1110_v63, %v1118_v0  ;;  %v5195_v10 = vcombine.high %v1111_v2, %v1119_v3 }
 0x707   :  { %4339 = vmatpush1.bf16.msra.mxu0 %v5080_v11  ;;  %v1135_v11 = vld [vmem:[#allocation20 + $0x968] sm:$0xff] }
 0x708   :  { %4421 = vmatpush1.bf16.msra.mxu1 %v5082_v48  ;;  %4340 = vmatprep.subr.bf16.mxu0 %v5097_v12  ;;  %v5192_v48 = vcombine.low %v1110_v63, %v1118_v0  ;;  %v5194_v12 = vcombine.low %v1111_v2, %v1119_v3  ;;  %v5211_v14 = vcombine.high %v1127_v9, %v1135_v11  ;;  %v1206_v63 = vld [vmem:[#allocation20 + $0xba0] sm:$0xff] }
 0x709   :  { %4422 = vmatprep.subr.bf16.mxu1 %v5099_v13  ;;  %v5209_v13 = vcombine.high %v1126_v7, %v1134_v8  ;;  %v1214_v0 = vld [vmem:[#allocation20 + $0xbe0] sm:$0xff] }
 0x70b   :  { %4341 = vmatpush1.bf16.msra.mxu0 %v5096_v18  ;;  %v1151_v18 = vld [vmem:[#allocation20 + $0x9e8] sm:$0xff] }
 0x70c   :  { %4423 = vmatpush1.bf16.msra.mxu1 %v5098_v55  ;;  %4342 = vmatprep.subr.bf16.mxu0 %v5113_v19  ;;  %v5208_v55 = vcombine.low %v1126_v7, %v1134_v8  ;;  %v5210_v19 = vcombine.low %v1127_v9, %v1135_v11  ;;  %v5227_v21 = vcombine.high %v1143_v17, %v1151_v18  ;;  %v1215_v7 = vld [vmem:[#allocation20 + $0xbe8] sm:$0xff] }
 0x70d   :  { %4424 = vmatprep.subr.bf16.mxu1 %v5115_v20  ;;  %v5225_v20 = vcombine.high %v1142_v15, %v1150_v16 }
 0x70f   :  { %4343 = vmatpush1.bf16.msra.mxu0 %v5112_v25  ;;  %v1167_v25 = vld [vmem:[#allocation20 + $0xa68] sm:$0xff] }
 0x710   :  { %4425 = vmatpush1.bf16.msra.mxu1 %v5114_v26  ;;  %4344 = vmatprep.subr.bf16.mxu0 %v5129_v27  ;;  %v5224_v26 = vcombine.low %v1142_v15, %v1150_v16  ;;  %v5226_v27 = vcombine.low %v1143_v17, %v1151_v18  ;;  %v5243_v29 = vcombine.high %v1159_v24, %v1167_v25 }
 0x711   :  { %4426 = vmatprep.subr.bf16.mxu1 %v5131_v28  ;;  %v5241_v28 = vcombine.high %v1158_v22, %v1166_v23  ;;  %v5289_v17 = vcombine.high %v1206_v63, %v1214_v0 }
 0x713   :  { %4345 = vmatpush1.bf16.msra.mxu0 %v5128_v35  ;;  %v1183_v35 = vld [vmem:[#allocation20 + $0xae8] sm:$0xff] }
 0x714   :  { %4427 = vmatpush1.bf16.msra.mxu1 %v5130_v36  ;;  %4346 = vmatprep.subr.bf16.mxu0 %v5145_v40  ;;  %v5240_v36 = vcombine.low %v1158_v22, %v1166_v23  ;;  %v6413_v40 = vld [vmem:[#allocation22] sm:$0xff]  ;;  %v5259_v52 = vcombine.high %v1175_v34, %v1183_v35  ;;  %v5258_v41 = vcombine.low %v1175_v34, %v1183_v35 }
 0x715   :  { %4428 = vmatprep.subr.bf16.mxu1 %v5147_v44  ;;  %v5242_v44 = vcombine.low %v1159_v24, %v1167_v25  ;;  %v1357_v60 = vrot.slane %v6413_v40, %v6351_v49  ;;  %v1365_v38 = vrot.slane %v6413_v40, %v6354_v50  ;;  %v1223_v24 = vld [vmem:[#allocation20 + $0xc28] sm:$0xff] }
 0x716   :  { %v1231_v25 = vld [vmem:[#allocation20 + $0xc68] sm:$0xff] }
 0x717   :  { %4347 = vmatpush1.bf16.msra.mxu0 %v5144_v56  ;;  %v1353_v56 = vrot.slane %v6413_v40, %v6346_v47 }
 0x718   :  { %4429 = vmatpush1.bf16.msra.mxu1 %v5146_v57  ;;  %4348 = vmatprep.subr.bf16.mxu0 %v5161_v58  ;;  %v1361_v57 = vrot.slane %v6413_v40, %v6383_v37  ;;  %v1191_v58 = vld [vmem:[#allocation20 + $0xb28] sm:$0xff] }
 0x719   :  { %4430 = vmatprep.subr.bf16.mxu1 %v5163_v59  ;;  %v1199_v59 = vld [vmem:[#allocation20 + $0xb68] sm:$0xff] }
 0x71b   :  { %4349 = vmatpush1.bf16.msra.mxu0 %v5160_v42  ;;  %v5273_v42 = vcombine.high %v1190_v53, %v1198_v54 }
 0x71c   :  { %4431 = vmatpush1.bf16.msra.mxu1 %v5162_v43  ;;  %4359 = vmatprep.subr.bf16.mxu0 %v5177_v61 }
 0x71d   :  { %4441 = vmatprep.subr.bf16.mxu1 %v5179_v62  ;;  %v5275_v62 = vcombine.high %v1191_v58, %v1199_v59 }
 0x71e   :  { %4351 = vmatmul.mubr.bf16.vlgmr.msra.gmra.mrb[16].mxu0 %v6366_v33 }
 0x71f   :  { %4433 = vmatmul.mubr.bf16.vlgmr.msra.gmra.mrb[16].mxu1 %v6366_v33  ;;  %4360 = vmatpush1.bf16.msra.mxu0 %v5176_v1 }
 0x720   :  { %4391 = vmatprep.mubr.bf16.mxu0 %v6370_v51  ;;  %4442 = vmatpush1.bf16.msra.mxu1 %v5178_v4 }
 0x721   :  { %4473 = vmatprep.mubr.bf16.mxu1 %v6370_v51  ;;  %4361 = vmatprep.subr.bf16.mxu0 %v5193_v6  ;;  %v1207_v6 = vld [vmem:[#allocation20 + $0xba8] sm:$0xff] }
 0x722   :  { %4443 = vmatprep.subr.bf16.mxu1 %v5195_v10  ;;  %v5290_v31 = vcombine.low %v1207_v6, %v1215_v7 }
 0x723   :  { %4362 = vmatpush1.bf16.msra.mxu0 %v5192_v48  ;;  %v5272_v48 = vcombine.low %v1190_v53, %v1198_v54 }
 0x724   :  { %4444 = vmatpush1.bf16.msra.mxu1 %v5194_v12  ;;  %4363 = vmatprep.subr.bf16.mxu0 %v5209_v13  ;;  %v5274_v12 = vcombine.low %v1191_v58, %v1199_v59 }
 0x725   :  { %4445 = vmatprep.subr.bf16.mxu1 %v5211_v14 }
 0x727   :  { %4364 = vmatpush1.bf16.msra.mxu0 %v5208_v55 }
 0x728   :  { %4446 = vmatpush1.bf16.msra.mxu1 %v5210_v19  ;;  %4365 = vmatprep.subr.bf16.mxu0 %v5225_v20  ;;  %v5291_v19 = vcombine.high %v1207_v6, %v1215_v7  ;;  %v1222_v20 = vld [vmem:[#allocation20 + $0xc20] sm:$0xff] }
 0x729   :  { %4447 = vmatprep.subr.bf16.mxu1 %v5227_v21  ;;  %v1230_v21 = vld [vmem:[#allocation20 + $0xc60] sm:$0xff] }
 0x72a   :  { %v5305_v34 = vcombine.high %v1222_v20, %v1230_v21 }
 0x72b   :  { %4366 = vmatpush1.bf16.msra.mxu0 %v5224_v26 }
 0x72c   :  { %4448 = vmatpush1.bf16.msra.mxu1 %v5226_v27  ;;  %4367 = vmatprep.subr.bf16.mxu0 %v5241_v28  ;;  %v5288_v28 = vcombine.low %v1206_v63, %v1214_v0  ;;  %v1254_v63 = vld [vmem:[#allocation20 + $0xd20] sm:$0xff] }
 0x72d   :  { %4449 = vmatprep.subr.bf16.mxu1 %v5243_v29  ;;  %v1262_v0 = vld [vmem:[#allocation20 + $0xd60] sm:$0xff] }
 0x72f   :  { %4368 = vmatpush1.bf16.msra.mxu0 %v5240_v36 }
 0x730   :  { %4450 = vmatpush1.bf16.msra.mxu1 %v5242_v44  ;;  %4369 = vmatprep.subr.bf16.mxu0 %v5257_v45  ;;  %v5307_v44 = vcombine.high %v1223_v24, %v1231_v25  ;;  %v1238_v45 = vld [vmem:[#allocation20 + $0xca0] sm:$0xff] }
 0x731   :  { %v4065_v43 = vpop.f32.mrb[8].mxu0  ;;  %v4147_v61 = vpop.f32.mrb[8].mxu1  ;;  %4451 = vmatprep.subr.bf16.mxu1 %v5259_v52  ;;  %v1246_v52 = vld [vmem:[#allocation20 + $0xce0] sm:$0xff] }
 0x732   :  { %v6423_v1 = vadd.f32 %v4065_v43, %v1353_v56  ;;  %v6425_v2 = vadd.f32 %v4147_v61, %v1361_v57  ;;  %v4067_v3 = vpop.f32.mrb[9].mxu0  ;;  %v4149_v4 = vpop.f32.mrb[9].mxu1  ;;  %v1239_v56 = vld [vmem:[#allocation20 + $0xca8] sm:$0xff]  ;;  %v5320_v6 = vcombine.low %v1238_v45, %v1246_v52 }
 0x733   :  { %v6427_v8 = vadd.f32 %v4067_v3, %v1357_v60  ;;  %v6429_v10 = vadd.f32 %v4149_v4, %v1365_v38  ;;  %v4069_v9 = vpop.f32.mrb[10].mxu0  ;;  %v4151_v11 = vpop.f32.mrb[10].mxu1  ;;  %4370 = vmatpush1.bf16.msra.mxu0 %v5256_v39  ;;  %v1247_v57 = vld [vmem:[#allocation20 + $0xce8] sm:$0xff]  ;;  %v5304_v60 = vcombine.low %v1222_v20, %v1230_v21 }
 0x734   :  { %v4646_v13 = vmul.f32 %v6423_v1, %v6423_v1  ;;  %v4648_v14 = vmul.f32 %v6425_v2, %v6425_v2  ;;  %4452 = vmatpush1.bf16.msra.mxu1 %v5258_v41  ;;  %v4070_v15 = vpop.f32.mrb[11].mxu0  ;;  %v4152_v16 = vpop.f32.mrb[11].mxu1  ;;  %4371 = vmatprep.subr.bf16.mxu0 %v5273_v42  ;;  %v5306_v41 = vcombine.low %v1223_v24, %v1231_v25  ;;  %v1255_v3 = vld [vmem:[#allocation20 + $0xd28] sm:$0xff] }
 0x735   :  { %v4647_v18 = vmul.f32 %v6427_v8, %v6427_v8  ;;  %v4649_v55 = vmul.f32 %v6429_v10, %v6429_v10  ;;  %4453 = vmatprep.subr.bf16.mxu1 %v5275_v62  ;;  %v5321_v42 = vcombine.high %v1238_v45, %v1246_v52  ;;  %v5323_v62 = vcombine.high %v1239_v56, %v1247_v57  ;;  %v1263_v4 = vld [vmem:[#allocation20 + $0xd68] sm:$0xff] }
 0x736   :  { %v4662_v22 = vmul.f32 %v6423_v1, %v4646_v13  ;;  %v4664_v23 = vmul.f32 %v6425_v2, %v4648_v14  ;;  %v5322_v7 = vcombine.low %v1239_v56, %v1247_v57  ;;  %v5337_v9 = vcombine.high %v1254_v63, %v1262_v0  ;;  %v1271_v13 = vld [vmem:[#allocation20 + $0xda8] sm:$0xff] }
 0x737   :  { %v4663_v26 = vmul.f32 %v6427_v8, %v4647_v18  ;;  %v4665_v27 = vmul.f32 %v6429_v10, %v4649_v55  ;;  %4372 = vmatpush1.bf16.msra.mxu0 %v5272_v48  ;;  %v5339_v11 = vcombine.high %v1255_v3, %v1263_v4  ;;  %v1270_v48 = vld [vmem:[#allocation20 + $0xda0] sm:$0xff]  ;;  %v1279_v14 = vld [vmem:[#allocation20 + $0xde8] sm:$0xff]  ;;  %v5336_v15 = vcombine.low %v1254_v63, %v1262_v0 }
 0x738   :  { %v4678_v29 = vmul.f32 0.044715, %v4662_v22  ;;  %v4680_v30 = vmul.f32 0.044715, %v4664_v23  ;;  %4454 = vmatpush1.bf16.msra.mxu1 %v5274_v12  ;;  %4373 = vmatprep.subr.bf16.mxu0 %v5289_v17  ;;  %v1278_v12 = vld [vmem:[#allocation20 + $0xde0] sm:$0xff]  ;;  %v5338_v16 = vcombine.low %v1255_v3, %v1263_v4  ;;  %v5355_v18 = vcombine.high %v1271_v13, %v1279_v14  ;;  %v1287_v20 = vld [vmem:[#allocation20 + $0xe28] sm:$0xff] }
 0x739   :  { %v4679_v35 = vmul.f32 0.044715, %v4663_v26  ;;  %v4681_v36 = vmul.f32 0.044715, %v4665_v27  ;;  %4455 = vmatprep.subr.bf16.mxu1 %v5291_v19  ;;  %v5353_v17 = vcombine.high %v1270_v48, %v1278_v12  ;;  %v1286_v55 = vld [vmem:[#allocation20 + $0xe20] sm:$0xff]  ;;  %v1295_v21 = vld [vmem:[#allocation20 + $0xe68] sm:$0xff]  ;;  %v5352_v22 = vcombine.low %v1270_v48, %v1278_v12 }
 0x73a   :  { %v4694_v53 = vadd.f32 %v6423_v1, %v4678_v29  ;;  %v4696_v54 = vadd.f32 %v6425_v2, %v4680_v30  ;;  %v1294_v19 = vld [vmem:[#allocation20 + $0xe60] sm:$0xff]  ;;  %v5354_v24 = vcombine.low %v1271_v13, %v1279_v14  ;;  %v5370_v57 = vcombine.low %v1287_v20, %v1295_v21 }
 0x73b   :  { %v4695_v58 = vadd.f32 %v6427_v8, %v4679_v35  ;;  %v4697_v59 = vadd.f32 %v6429_v10, %v4681_v36  ;;  %4374 = vmatpush1.bf16.msra.mxu0 %v5288_v28  ;;  %v5369_v25 = vcombine.high %v1286_v55, %v1294_v19  ;;  %v5371_v28 = vcombine.high %v1287_v20, %v1295_v21  ;;  %v1302_v29 = vld [vmem:[#allocation20 + $0xea0] sm:$0xff]  ;;  %v1303_v35 = vld [vmem:[#allocation20 + $0xea8] sm:$0xff]  ;;  %v840_v20 = vld [vmem:[#allocation20 + $0x30] sm:$0xff] }
 0x73c   :  { %v4710_v38 = vmul.f32 0.7978846, %v4694_v53  ;;  %v4712_v39 = vmul.f32 0.7978846, %v4696_v54  ;;  %4456 = vmatpush1.bf16.msra.mxu1 %v5290_v31  ;;  %4375 = vmatprep.subr.bf16.mxu0 %v5305_v34  ;;  %v1310_v30 = vld [vmem:[#allocation20 + $0xee0] sm:$0xff]  ;;  %v1311_v36 = vld [vmem:[#allocation20 + $0xee8] sm:$0xff]  ;;  %v5368_v53 = vcombine.low %v1286_v55, %v1294_v19 }
 0x73d   :  { %v4711_v43 = vmul.f32 0.7978846, %v4695_v58  ;;  %v4713_v61 = vmul.f32 0.7978846, %v4697_v59  ;;  %4457 = vmatprep.subr.bf16.mxu1 %v5307_v44  ;;  %v5385_v58 = vcombine.high %v1302_v29, %v1310_v30  ;;  %v5384_v3 = vcombine.low %v1302_v29, %v1310_v30  ;;  %v1342_v12 = vld [vmem:[#allocation20 + $0xfe0] sm:$0xff]  ;;  %v848_v21 = vld [vmem:[#allocation20 + $0x70] sm:$0xff] }
 0x73e   :  { %5663 = vtanh.f32 %v4710_v38  ;;  %v5387_v38 = vcombine.high %v1303_v35, %v1311_v36  ;;  %v864_v29 = vld [vmem:[#allocation20 + $0xf0] sm:$0xff]  ;;  %v4924_v30 = vcombine.low %v840_v20, %v848_v21 }
 0x73f   :  { %5665 = vtanh.f32 %v4712_v39  ;;  %4376 = vmatpush1.bf16.msra.mxu0 %v5304_v60  ;;  %v1318_v39 = vld [vmem:[#allocation20 + $0xf20] sm:$0xff] }
 0x740   :  { %5667 = vtanh.f32 %v4711_v43  ;;  %4458 = vmatpush1.bf16.msra.mxu1 %v5306_v41  ;;  %4377 = vmatprep.subr.bf16.mxu0 %v5321_v42  ;;  %v1326_v41 = vld [vmem:[#allocation20 + $0xf60] sm:$0xff] }
 0x741   :  { %5669 = vtanh.f32 %v4713_v61  ;;  %4459 = vmatprep.subr.bf16.mxu1 %v5323_v62  ;;  %v1319_v61 = vld [vmem:[#allocation20 + $0xf28] sm:$0xff] }
 0x742   :  { %v1327_v62 = vld [vmem:[#allocation20 + $0xf68] sm:$0xff] }
 0x743   :  { %4378 = vmatpush1.bf16.msra.mxu0 %v5320_v6  ;;  %v5403_v48 = vcombine.high %v1319_v61, %v1327_v62 }
 0x744   :  { %4460 = vmatpush1.bf16.msra.mxu1 %v5322_v7  ;;  %4379 = vmatprep.subr.bf16.mxu0 %v5337_v9  ;;  %v5401_v7 = vcombine.high %v1318_v39, %v1326_v41 }
 0x745   :  { %4461 = vmatprep.subr.bf16.mxu1 %v5339_v11 }
 0x747   :  { %4380 = vmatpush1.bf16.msra.mxu0 %v5336_v15  ;;  %v1335_v15 = vld [vmem:[#allocation20 + $0xfa8] sm:$0xff] }
 0x748   :  { %v5664_v23 = vpop.eup %5663  ;;  %4462 = vmatpush1.bf16.msra.mxu1 %v5338_v16  ;;  %4381 = vmatprep.subr.bf16.mxu0 %v5353_v17  ;;  %v1343_v16 = vld [vmem:[#allocation20 + $0xfe8] sm:$0xff]  ;;  %v5400_v17 = vcombine.low %v1318_v39, %v1326_v41  ;;  %v889_v39 = vld [vmem:[#allocation20 + $0x1b8] sm:$0xff] }
 0x749   :  { %v5666_v26 = vpop.eup %5665  ;;  %v4742_v27 = vadd.f32 1.0, %v5664_v23  ;;  %4463 = vmatprep.subr.bf16.mxu1 %v5355_v18  ;;  %v5402_v18 = vcombine.low %v1319_v61, %v1327_v62  ;;  %v5419_v19 = vcombine.high %v1335_v15, %v1343_v16  ;;  %v849_v23 = vld [vmem:[#allocation20 + $0x78] sm:$0xff] }
 0x74a   :  { %v5668_v31 = vpop.eup %5667  ;;  %v4744_v34 = vadd.f32 1.0, %v5666_v26  ;;  %v4925_v26 = vcombine.high %v840_v20, %v848_v21  ;;  %v897_v41 = vld [vmem:[#allocation20 + $0x1f8] sm:$0xff]  ;;  %v952_v21 = vld [vmem:[#allocation20 + $0x3b0] sm:$0xff] }
 0x74b   :  { %v5670_v44 = vpop.eup %5669  ;;  %v4758_v45 = vmul.f32 0.5, %v4742_v27  ;;  %v4743_v52 = vadd.f32 1.0, %v5668_v31  ;;  %4382 = vmatpush1.bf16.msra.mxu0 %v5352_v22  ;;  %v841_v22 = vld [vmem:[#allocation20 + $0x38] sm:$0xff]  ;;  %v4975_v62 = vcombine.high %v889_v39, %v897_v41 }
 0x74c   :  { %v4760_v54 = vmul.f32 0.5, %v4744_v34  ;;  %v4745_v56 = vadd.f32 1.0, %v5670_v44  ;;  %4464 = vmatpush1.bf16.msra.mxu1 %v5354_v24  ;;  %4383 = vmatprep.subr.bf16.mxu0 %v5369_v25  ;;  %v5418_v25 = vcombine.low %v1335_v15, %v1343_v16  ;;  %v4927_v27 = vcombine.high %v841_v22, %v849_v23  ;;  %v857_v31 = vld [vmem:[#allocation20 + $0xb8] sm:$0xff]  ;;  %v872_v44 = vld [vmem:[#allocation20 + $0x130] sm:$0xff] }
 0x74d   :  { %v4774_v59 = vmul.f32 %v6423_v1, %v4758_v45  ;;  %v4759_v60 = vmul.f32 0.5, %v4743_v52  ;;  %4465 = vmatprep.subr.bf16.mxu1 %v5371_v28  ;;  %v5386_v1 = vcombine.low %v1303_v35, %v1311_v36  ;;  %v856_v28 = vld [vmem:[#allocation20 + $0xb0] sm:$0xff]  ;;  %v865_v34 = vld [vmem:[#allocation20 + $0xf8] sm:$0xff]  ;;  %v4926_v35 = vcombine.low %v841_v22, %v849_v23 }
 0x74e   :  { %v4776_v42 = vmul.f32 %v6425_v2, %v4760_v54  ;;  %v4761_v43 = vmul.f32 0.5, %v4745_v56  ;;  %v1334_v2 = vld [vmem:[#allocation20 + $0xfa0] sm:$0xff]  ;;  %v4941_v36 = vcombine.high %v856_v28, %v864_v29  ;;  %v880_v45 = vld [vmem:[#allocation20 + $0x170] sm:$0xff]  ;;  %v4943_v52 = vcombine.high %v857_v31, %v865_v34  ;;  %v881_v54 = vld [vmem:[#allocation20 + $0x178] sm:$0xff] }
 0x74f   :  { %v5530_v63 = vtrunc.f32 %v4774_v59  ;;  %v4775_v0 = vmul.f32 %v6427_v8, %v4759_v60  ;;  %4384 = vmatpush1.bf16.msra.mxu0 %v5368_v53  ;;  %v5417_v55 = vcombine.high %v1334_v2, %v1342_v12  ;;  %v5416_v24 = vcombine.low %v1334_v2, %v1342_v12  ;;  %v873_v53 = vld [vmem:[#allocation20 + $0x138] sm:$0xff]  ;;  %v888_v60 = vld [vmem:[#allocation20 + $0x1b0] sm:$0xff] }
 0x750   :  { %v5534_v4 = vtrunc.f32 %v4776_v42  ;;  %v4777_v6 = vmul.f32 %v6429_v10, %v4761_v43  ;;  %4466 = vmatpush1.bf16.msra.mxu1 %v5370_v57  ;;  %4385 = vmatprep.subr.bf16.mxu0 %v5385_v58  ;;  %v4940_v56 = vcombine.low %v856_v28, %v864_v29  ;;  %v4942_v57 = vcombine.low %v857_v31, %v865_v34  ;;  %v929_v2 = vld [vmem:[#allocation20 + $0x2f8] sm:$0xff]  ;;  %v936_v16 = vld [vmem:[#allocation20 + $0x330] sm:$0xff] }
 0x751   :  { %v5531_v9 = vcvt.f32.s32 %v5530_v63  ;;  %v5532_v11 = vtrunc.f32 %v4775_v0  ;;  %4467 = vmatprep.subr.bf16.mxu1 %v5387_v38  ;;  %v4957_v58 = vcombine.high %v872_v44, %v880_v45  ;;  %v4959_v59 = vcombine.high %v873_v53, %v881_v54  ;;  %v896_v38 = vld [vmem:[#allocation20 + $0x1f0] sm:$0xff]  ;;  %v953_v23 = vld [vmem:[#allocation20 + $0x3b8] sm:$0xff] }
 0x752   :  { %v5535_v13 = vcvt.f32.s32 %v5534_v4  ;;  %v5536_v14 = vtrunc.f32 %v4777_v6  ;;  %v4956_v42 = vcombine.low %v872_v44, %v880_v45  ;;  %v4958_v43 = vcombine.low %v873_v53, %v881_v54  ;;  %v904_v63 = vld [vmem:[#allocation20 + $0x230] sm:$0xff]  ;;  %v913_v4 = vld [vmem:[#allocation20 + $0x278] sm:$0xff] }
 0x753   :  { %4806 = vst [vmem:[#allocation24] sm:$0xff] %v5531_v9  ;;  %v5533_v8 = vcvt.f32.s32 %v5532_v11  ;;  %4386 = vmatpush1.bf16.msra.mxu0 %v5384_v3  ;;  %v4973_v61 = vcombine.high %v888_v60, %v896_v38  ;;  %v912_v0 = vld [vmem:[#allocation20 + $0x270] sm:$0xff]  ;;  %v905_v3 = vld [vmem:[#allocation20 + $0x238] sm:$0xff]  ;;  %v4974_v6 = vcombine.low %v889_v39, %v897_v41 }
 0x754   :  { %4808 = vst [vmem:[#allocation24 + $0x10] sm:$0xff] %v5535_v13  ;;  %v5537_v10 = vcvt.f32.s32 %v5536_v14  ;;  %4468 = vmatpush1.bf16.msra.mxu1 %v5386_v1  ;;  %4387 = vmatprep.subr.bf16.mxu0 %v5401_v7  ;;  %v4989_v1 = vcombine.high %v904_v63, %v912_v0  ;;  %v4991_v7 = vcombine.high %v905_v3, %v913_v4  ;;  %v920_v9 = vld [vmem:[#allocation20 + $0x2b0] sm:$0xff]  ;;  %v969_v31 = vld [vmem:[#allocation20 + $0x438] sm:$0xff] }
 0x755   :  { %4807 = vst [vmem:[#allocation24 + $0x8] sm:$0xff] %v5533_v8  ;;  %4469 = vmatprep.subr.bf16.mxu1 %v5403_v48  ;;  %v928_v11 = vld [vmem:[#allocation20 + $0x2f0] sm:$0xff]  ;;  %v921_v48 = vld [vmem:[#allocation20 + $0x2b8] sm:$0xff]  ;;  %v4988_v12 = vcombine.low %v904_v63, %v912_v0  ;;  %v4990_v13 = vcombine.low %v905_v3, %v913_v4 }
 0x756   :  { %4809 = vst [vmem:[#allocation24 + $0x18] sm:$0xff] %v5537_v10  ;;  %v5005_v14 = vcombine.high %v920_v9, %v928_v11  ;;  %v5007_v15 = vcombine.high %v921_v48, %v929_v2  ;;  %v944_v8 = vld [vmem:[#allocation20 + $0x370] sm:$0xff]  ;;  %v945_v10 = vld [vmem:[#allocation20 + $0x378] sm:$0xff] }
 0x757   :  { %4388 = vmatpush1.bf16.msra.mxu0 %v5400_v17  ;;  %v937_v17 = vld [vmem:[#allocation20 + $0x338] sm:$0xff]  ;;  %v960_v22 = vld [vmem:[#allocation20 + $0x3f0] sm:$0xff] }
 0x758   :  { %4470 = vmatpush1.bf16.msra.mxu1 %v5402_v18  ;;  %4389 = vmatprep.subr.bf16.mxu0 %v5417_v55  ;;  %v5004_v18 = vcombine.low %v920_v9, %v928_v11  ;;  %v5006_v55 = vcombine.low %v921_v48, %v929_v2  ;;  %v5023_v20 = vcombine.high %v937_v17, %v945_v10  ;;  %v968_v29 = vld [vmem:[#allocation20 + $0x430] sm:$0xff]  ;;  %v977_v34 = vld [vmem:[#allocation20 + $0x478] sm:$0xff] }
 0x759   :  { %4471 = vmatprep.subr.bf16.mxu1 %v5419_v19  ;;  %v5021_v19 = vcombine.high %v936_v16, %v944_v8  ;;  %v5055_v45 = vcombine.high %v969_v31, %v977_v34  ;;  %v992_v53 = vld [vmem:[#allocation20 + $0x4f0] sm:$0xff]  ;;  %v985_v54 = vld [vmem:[#allocation20 + $0x4b8] sm:$0xff] }
 0x75a   :  { %v1008_v39 = vld [vmem:[#allocation20 + $0x570] sm:$0xff]  ;;  %v1001_v41 = vld [vmem:[#allocation20 + $0x538] sm:$0xff] }
 0x75b   :  { %4390 = vmatpush1.bf16.msra.mxu0 %v5416_v24  ;;  %v961_v24 = vld [vmem:[#allocation20 + $0x3f8] sm:$0xff]  ;;  %v1016_v0 = vld [vmem:[#allocation20 + $0x5b0] sm:$0xff] }
 0x75c   :  { %4472 = vmatpush1.bf16.msra.mxu1 %v5418_v25  ;;  %4482 = vmatprep.subr.bf16.mxu0 %v4925_v26  ;;  %v5020_v25 = vcombine.low %v936_v16, %v944_v8  ;;  %v5022_v26 = vcombine.low %v937_v17, %v945_v10  ;;  %v5039_v28 = vcombine.high %v953_v23, %v961_v24  ;;  %v1024_v3 = vld [vmem:[#allocation20 + $0x5f0] sm:$0xff]  ;;  %v1017_v4 = vld [vmem:[#allocation20 + $0x5b8] sm:$0xff] }
 0x75d   :  { %4564 = vmatprep.subr.bf16.mxu1 %v4927_v27  ;;  %v5037_v27 = vcombine.high %v952_v21, %v960_v22  ;;  %v1032_v11 = vld [vmem:[#allocation20 + $0x630] sm:$0xff]  ;;  %v1033_v2 = vld [vmem:[#allocation20 + $0x638] sm:$0xff] }
 0x75e   :  { %4392 = vmatmul.mubr.bf16.vlgmr.msra.gmra.mrb[16].mxu0 %v6395_v5  ;;  %v1040_v48 = vld [vmem:[#allocation20 + $0x670] sm:$0xff]  ;;  %v1049_v10 = vld [vmem:[#allocation20 + $0x6b8] sm:$0xff] }
 0x75f   :  { %4474 = vmatmul.mubr.bf16.vlgmr.msra.gmra.mrb[16].mxu1 %v6395_v5  ;;  %4483 = vmatpush1.bf16.msra.mxu0 %v4924_v30  ;;  %v976_v30 = vld [vmem:[#allocation20 + $0x470] sm:$0xff] }
 0x760   :  { %4514 = vmatprep.mubr.bf16.mxu0 %v6364_v32  ;;  %4565 = vmatpush1.bf16.msra.mxu1 %v4926_v35  ;;  %v5036_v35 = vcombine.low %v952_v21, %v960_v22  ;;  %v5053_v44 = vcombine.high %v968_v29, %v976_v30  ;;  %v1048_v8 = vld [vmem:[#allocation20 + $0x6b0] sm:$0xff] }
 0x761   :  { %4596 = vmatprep.mubr.bf16.mxu1 %v6364_v32  ;;  %4484 = vmatprep.subr.bf16.mxu0 %v4941_v36  ;;  %v4972_v32 = vcombine.low %v888_v60, %v896_v38  ;;  %v5038_v36 = vcombine.low %v953_v23, %v961_v24  ;;  %v1000_v38 = vld [vmem:[#allocation20 + $0x530] sm:$0xff]  ;;  %v1065_v24 = vld [vmem:[#allocation20 + $0x738] sm:$0xff] }
 0x762   :  { %4566 = vmatprep.subr.bf16.mxu1 %v4943_v52  ;;  %v984_v52 = vld [vmem:[#allocation20 + $0x4b0] sm:$0xff] }
 0x763   :  { %4485 = vmatpush1.bf16.msra.mxu0 %v4940_v56  ;;  %v993_v56 = vld [vmem:[#allocation20 + $0x4f8] sm:$0xff]  ;;  %v1056_v17 = vld [vmem:[#allocation20 + $0x6f0] sm:$0xff] }
 0x764   :  { %4567 = vmatpush1.bf16.msra.mxu1 %v4942_v57  ;;  %4486 = vmatprep.subr.bf16.mxu0 %v4957_v58  ;;  %v5052_v57 = vcombine.low %v968_v29, %v976_v30  ;;  %v5054_v58 = vcombine.low %v969_v31, %v977_v34  ;;  %v5071_v60 = vcombine.high %v985_v54, %v993_v56  ;;  %v1064_v22 = vld [vmem:[#allocation20 + $0x730] sm:$0xff]  ;;  %v1081_v34 = vld [vmem:[#allocation20 + $0x7b8] sm:$0xff] }
 0x765   :  { %4568 = vmatprep.subr.bf16.mxu1 %v4959_v59  ;;  %v5069_v59 = vcombine.high %v984_v52, %v992_v53  ;;  %v1072_v23 = vld [vmem:[#allocation20 + $0x770] sm:$0xff] }
 0x766   :  { %v1080_v30 = vld [vmem:[#allocation20 + $0x7b0] sm:$0xff] }
 0x767   :  { %4487 = vmatpush1.bf16.msra.mxu0 %v4956_v42  ;;  %v1009_v42 = vld [vmem:[#allocation20 + $0x578] sm:$0xff]  ;;  %v1088_v31 = vld [vmem:[#allocation20 + $0x7f0] sm:$0xff] }
 0x768   :  { %4569 = vmatpush1.bf16.msra.mxu1 %v4958_v43  ;;  %4488 = vmatprep.subr.bf16.mxu0 %v4973_v61  ;;  %v5068_v43 = vcombine.low %v984_v52, %v992_v53  ;;  %v5070_v61 = vcombine.low %v985_v54, %v993_v56  ;;  %v5087_v63 = vcombine.high %v1001_v41, %v1009_v42  ;;  %v1096_v53 = vld [vmem:[#allocation20 + $0x830] sm:$0xff]  ;;  %v1097_v56 = vld [vmem:[#allocation20 + $0x838] sm:$0xff] }
 0x769   :  { %4570 = vmatprep.subr.bf16.mxu1 %v4975_v62  ;;  %v5085_v62 = vcombine.high %v1000_v38, %v1008_v39  ;;  %v1104_v54 = vld [vmem:[#allocation20 + $0x870] sm:$0xff] }
 0x76b   :  { %4489 = vmatpush1.bf16.msra.mxu0 %v4972_v32  ;;  %v1025_v32 = vld [vmem:[#allocation20 + $0x5f8] sm:$0xff] }
 0x76c   :  { %4571 = vmatpush1.bf16.msra.mxu1 %v4974_v6  ;;  %4490 = vmatprep.subr.bf16.mxu0 %v4989_v1  ;;  %v5084_v6 = vcombine.low %v1000_v38, %v1008_v39  ;;  %v5086_v1 = vcombine.low %v1001_v41, %v1009_v42  ;;  %v5103_v9 = vcombine.high %v1017_v4, %v1025_v32  ;;  %v1112_v39 = vld [vmem:[#allocation20 + $0x8b0] sm:$0xff] }
 0x76d   :  { %4572 = vmatprep.subr.bf16.mxu1 %v4991_v7  ;;  %v5101_v7 = vcombine.high %v1016_v0, %v1024_v3  ;;  %v1120_v41 = vld [vmem:[#allocation20 + $0x8f0] sm:$0xff]  ;;  %v5180_v42 = vcombine.low %v1096_v53, %v1104_v54 }
 0x76f   :  { %4491 = vmatpush1.bf16.msra.mxu0 %v4988_v12  ;;  %v1041_v12 = vld [vmem:[#allocation20 + $0x678] sm:$0xff] }
 0x770   :  { %4573 = vmatpush1.bf16.msra.mxu1 %v4990_v13  ;;  %4492 = vmatprep.subr.bf16.mxu0 %v5005_v14  ;;  %v5100_v13 = vcombine.low %v1016_v0, %v1024_v3  ;;  %v5102_v14 = vcombine.low %v1017_v4, %v1025_v32  ;;  %v5119_v16 = vcombine.high %v1033_v2, %v1041_v12  ;;  %v1128_v0 = vld [vmem:[#allocation20 + $0x930] sm:$0xff]  ;;  %v1129_v32 = vld [vmem:[#allocation20 + $0x938] sm:$0xff] }
 0x771   :  { %4574 = vmatprep.subr.bf16.mxu1 %v5007_v15  ;;  %v5117_v15 = vcombine.high %v1032_v11, %v1040_v48  ;;  %v1136_v3 = vld [vmem:[#allocation20 + $0x970] sm:$0xff] }
 0x773   :  { %4493 = vmatpush1.bf16.msra.mxu0 %v5004_v18  ;;  %v1057_v18 = vld [vmem:[#allocation20 + $0x6f8] sm:$0xff] }
 0x774   :  { %4575 = vmatpush1.bf16.msra.mxu1 %v5006_v55  ;;  %4494 = vmatprep.subr.bf16.mxu0 %v5021_v19  ;;  %v5116_v55 = vcombine.low %v1032_v11, %v1040_v48  ;;  %v5118_v19 = vcombine.low %v1033_v2, %v1041_v12  ;;  %v5135_v21 = vcombine.high %v1049_v10, %v1057_v18  ;;  %v1144_v48 = vld [vmem:[#allocation20 + $0x9b0] sm:$0xff]  ;;  %v1145_v12 = vld [vmem:[#allocation20 + $0x9b8] sm:$0xff] }
 0x775   :  { %4576 = vmatprep.subr.bf16.mxu1 %v5023_v20  ;;  %v5133_v20 = vcombine.high %v1048_v8, %v1056_v17  ;;  %v1152_v2 = vld [vmem:[#allocation20 + $0x9f0] sm:$0xff] }
 0x777   :  { %4495 = vmatpush1.bf16.msra.mxu0 %v5020_v25  ;;  %v1073_v25 = vld [vmem:[#allocation20 + $0x778] sm:$0xff] }
 0x778   :  { %4577 = vmatpush1.bf16.msra.mxu1 %v5022_v26  ;;  %4496 = vmatprep.subr.bf16.mxu0 %v5037_v27  ;;  %v5132_v26 = vcombine.low %v1048_v8, %v1056_v17  ;;  %v5134_v27 = vcombine.low %v1049_v10, %v1057_v18  ;;  %v5151_v29 = vcombine.high %v1065_v24, %v1073_v25  ;;  %v1160_v8 = vld [vmem:[#allocation20 + $0xa30] sm:$0xff]  ;;  %v1161_v10 = vld [vmem:[#allocation20 + $0xa38] sm:$0xff] }
 0x779   :  { %4578 = vmatprep.subr.bf16.mxu1 %v5039_v28  ;;  %v5149_v28 = vcombine.high %v1064_v22, %v1072_v23  ;;  %v1168_v17 = vld [vmem:[#allocation20 + $0xa70] sm:$0xff]  ;;  %v1169_v18 = vld [vmem:[#allocation20 + $0xa78] sm:$0xff] }
 0x77b   :  { %4497 = vmatpush1.bf16.msra.mxu0 %v5036_v35  ;;  %v1089_v35 = vld [vmem:[#allocation20 + $0x7f8] sm:$0xff] }
 0x77c   :  { %4579 = vmatpush1.bf16.msra.mxu1 %v5038_v36  ;;  %4498 = vmatprep.subr.bf16.mxu0 %v5053_v44  ;;  %v5148_v36 = vcombine.low %v1064_v22, %v1072_v23  ;;  %v5150_v44 = vcombine.low %v1065_v24, %v1073_v25  ;;  %v5167_v52 = vcombine.high %v1081_v34, %v1089_v35  ;;  %v1184_v22 = vld [vmem:[#allocation20 + $0xaf0] sm:$0xff]  ;;  %v1368_v23 = vsub.s32 4, %v6343_v46  ;;  %v1177_v24 = vld [vmem:[#allocation20 + $0xab8] sm:$0xff] }
 0x77d   :  { %4580 = vmatprep.subr.bf16.mxu1 %v5055_v45  ;;  %v5165_v45 = vcombine.high %v1080_v30, %v1088_v31  ;;  %v1185_v25 = vld [vmem:[#allocation20 + $0xaf8] sm:$0xff] }
 0x77f   :  { %4499 = vmatpush1.bf16.msra.mxu0 %v5052_v57  ;;  %v1105_v57 = vld [vmem:[#allocation20 + $0x878] sm:$0xff] }
 0x780   :  { %4581 = vmatpush1.bf16.msra.mxu1 %v5054_v58  ;;  %4500 = vmatprep.subr.bf16.mxu0 %v5069_v59  ;;  %v5164_v58 = vcombine.low %v1080_v30, %v1088_v31  ;;  %v5166_v59 = vcombine.low %v1081_v34, %v1089_v35  ;;  %v5183_v38 = vcombine.high %v1097_v56, %v1105_v57  ;;  %v1380_v30 = vsub.s32 7, %v6343_v46  ;;  %v1192_v35 = vld [vmem:[#allocation20 + $0xb30] sm:$0xff] }
 0x781   :  { %4582 = vmatprep.subr.bf16.mxu1 %v5071_v60  ;;  %v5181_v60 = vcombine.high %v1096_v53, %v1104_v54  ;;  %v5263_v34 = vcombine.high %v1177_v24, %v1185_v25 }
 0x783   :  { %4501 = vmatpush1.bf16.msra.mxu0 %v5068_v43  ;;  %v1113_v43 = vld [vmem:[#allocation20 + $0x8b8] sm:$0xff] }
 0x784   :  { %4583 = vmatpush1.bf16.msra.mxu1 %v5070_v61  ;;  %4502 = vmatprep.subr.bf16.mxu0 %v5085_v62  ;;  %v1121_v61 = vld [vmem:[#allocation20 + $0x8f8] sm:$0xff]  ;;  %v5182_v62 = vcombine.low %v1097_v56, %v1105_v57  ;;  %v1381_v57 = vrot.slane %v6413_v40, %v1380_v30 }
 0x785   :  { %4584 = vmatprep.subr.bf16.mxu1 %v5087_v63  ;;  %v5197_v63 = vcombine.high %v1112_v39, %v1120_v41  ;;  %v5199_v4 = vcombine.high %v1113_v43, %v1121_v61 }
 0x787   :  { %4503 = vmatpush1.bf16.msra.mxu0 %v5084_v6  ;;  %v1137_v6 = vld [vmem:[#allocation20 + $0x978] sm:$0xff] }
 0x788   :  { %4585 = vmatpush1.bf16.msra.mxu1 %v5086_v1  ;;  %4504 = vmatprep.subr.bf16.mxu0 %v5101_v7  ;;  %v5196_v1 = vcombine.low %v1112_v39, %v1120_v41  ;;  %v5198_v7 = vcombine.low %v1113_v43, %v1121_v61  ;;  %v5215_v11 = vcombine.high %v1129_v32, %v1137_v6  ;;  %v1208_v39 = vld [vmem:[#allocation20 + $0xbb0] sm:$0xff] }
 0x789   :  { %4586 = vmatprep.subr.bf16.mxu1 %v5103_v9  ;;  %v5213_v9 = vcombine.high %v1128_v0, %v1136_v3  ;;  %v1216_v41 = vld [vmem:[#allocation20 + $0xbf0] sm:$0xff] }
 0x78b   :  { %4505 = vmatpush1.bf16.msra.mxu0 %v5100_v13  ;;  %v1153_v13 = vld [vmem:[#allocation20 + $0x9f8] sm:$0xff] }
 0x78c   :  { %4587 = vmatpush1.bf16.msra.mxu1 %v5102_v14  ;;  %4506 = vmatprep.subr.bf16.mxu0 %v5117_v15  ;;  %v5212_v14 = vcombine.low %v1128_v0, %v1136_v3  ;;  %v5229_v15 = vcombine.high %v1144_v48, %v1152_v2 }
 0x78d   :  { %4588 = vmatprep.subr.bf16.mxu1 %v5119_v16  ;;  %v5231_v16 = vcombine.high %v1145_v12, %v1153_v13 }
 0x78f   :  { %4507 = vmatpush1.bf16.msra.mxu0 %v5116_v55  ;;  %v5230_v55 = vcombine.low %v1145_v12, %v1153_v13 }
 0x790   :  { %4589 = vmatpush1.bf16.msra.mxu1 %v5118_v19  ;;  %4508 = vmatprep.subr.bf16.mxu0 %v5133_v20  ;;  %v5245_v19 = vcombine.high %v1160_v8, %v1168_v17  ;;  %v5247_v20 = vcombine.high %v1161_v10, %v1169_v18 }
 0x791   :  { %4590 = vmatprep.subr.bf16.mxu1 %v5135_v21  ;;  %v1176_v21 = vld [vmem:[#allocation20 + $0xab0] sm:$0xff] }
 0x792   :  { %v5261_v31 = vcombine.high %v1176_v21, %v1184_v22  ;;  %v5260_v56 = vcombine.low %v1176_v21, %v1184_v22 }
 0x793   :  { %4509 = vmatpush1.bf16.msra.mxu0 %v5132_v26  ;;  %v5244_v26 = vcombine.low %v1160_v8, %v1168_v17  ;;  %v1225_v17 = vld [vmem:[#allocation20 + $0xc38] sm:$0xff] }
 0x794   :  { %4591 = vmatpush1.bf16.msra.mxu1 %v5134_v27  ;;  %4510 = vmatprep.subr.bf16.mxu0 %v5149_v28  ;;  %v1376_v27 = vsub.s32 6, %v6343_v46  ;;  %v1372_v28 = vsub.s32 5, %v6343_v46 }
 0x795   :  { %4592 = vmatprep.subr.bf16.mxu1 %v5151_v29  ;;  %v5246_v29 = vcombine.low %v1161_v10, %v1169_v18  ;;  %v1233_v10 = vld [vmem:[#allocation20 + $0xc78] sm:$0xff] }
 0x796   :  { %v1377_v53 = vrot.slane %v6413_v40, %v1376_v27  ;;  %v1373_v54 = vrot.slane %v6413_v40, %v1372_v28 }
 0x797   :  { %4511 = vmatpush1.bf16.msra.mxu0 %v5148_v36  ;;  %v1200_v36 = vld [vmem:[#allocation20 + $0xb70] sm:$0xff] }
 0x798   :  { %4593 = vmatpush1.bf16.msra.mxu1 %v5150_v44  ;;  %4512 = vmatprep.subr.bf16.mxu0 %v5165_v45  ;;  %v1369_v44 = vrot.slane %v6413_v40, %v1368_v23  ;;  %v1193_v45 = vld [vmem:[#allocation20 + $0xb38] sm:$0xff] }
 0x799   :  { %4594 = vmatprep.subr.bf16.mxu1 %v5167_v52  ;;  %v1201_v52 = vld [vmem:[#allocation20 + $0xb78] sm:$0xff] }
 0x79b   :  { %4513 = vmatpush1.bf16.msra.mxu0 %v5164_v58  ;;  %v5262_v58 = vcombine.low %v1177_v24, %v1185_v25 }
 0x79c   :  { %4595 = vmatpush1.bf16.msra.mxu1 %v5166_v59  ;;  %4523 = vmatprep.subr.bf16.mxu0 %v5181_v60  ;;  %v5277_v59 = vcombine.high %v1192_v35, %v1200_v36 }
 0x79d   :  { %4605 = vmatprep.subr.bf16.mxu1 %v5183_v38  ;;  %v5279_v38 = vcombine.high %v1193_v45, %v1201_v52 }
 0x79e   :  { %4515 = vmatmul.mubr.bf16.vlgmr.msra.gmra.mrb[20].mxu0 %v6366_v33 }
 0x79f   :  { %4597 = vmatmul.mubr.bf16.vlgmr.msra.gmra.mrb[20].mxu1 %v6366_v33  ;;  %4524 = vmatpush1.bf16.msra.mxu0 %v5180_v42  ;;  %v5214_v33 = vcombine.low %v1129_v32, %v1137_v6  ;;  %v5276_v32 = vcombine.low %v1192_v35, %v1200_v36  ;;  %v5278_v6 = vcombine.low %v1193_v45, %v1201_v52  ;;  %v1241_v36 = vld [vmem:[#allocation20 + $0xcb8] sm:$0xff] }
 0x7a0   :  { %4555 = vmatprep.mubr.bf16.mxu0 %v6370_v51  ;;  %4606 = vmatpush1.bf16.msra.mxu1 %v5182_v62  ;;  %v1209_v62 = vld [vmem:[#allocation20 + $0xbb8] sm:$0xff] }
 0x7a1   :  { %4637 = vmatprep.mubr.bf16.mxu1 %v6370_v51  ;;  %4525 = vmatprep.subr.bf16.mxu0 %v5197_v63  ;;  %v5228_v51 = vcombine.low %v1144_v48, %v1152_v2  ;;  %v1217_v63 = vld [vmem:[#allocation20 + $0xbf8] sm:$0xff]  ;;  %v5293_v48 = vcombine.high %v1208_v39, %v1216_v41 }
 0x7a2   :  { %4607 = vmatprep.subr.bf16.mxu1 %v5199_v4  ;;  %v5294_v21 = vcombine.low %v1209_v62, %v1217_v63 }
 0x7a3   :  { %4526 = vmatpush1.bf16.msra.mxu0 %v5196_v1 }
 0x7a4   :  { %4608 = vmatpush1.bf16.msra.mxu1 %v5198_v7  ;;  %4527 = vmatprep.subr.bf16.mxu0 %v5213_v9 }
 0x7a5   :  { %4609 = vmatprep.subr.bf16.mxu1 %v5215_v11 }
 0x7a7   :  { %4528 = vmatpush1.bf16.msra.mxu0 %v5212_v14  ;;  %v5295_v14 = vcombine.high %v1209_v62, %v1217_v63  ;;  %v1265_v62 = vld [vmem:[#allocation20 + $0xd78] sm:$0xff] }
 0x7a8   :  { %4610 = vmatpush1.bf16.msra.mxu1 %v5214_v33  ;;  %4529 = vmatprep.subr.bf16.mxu0 %v5229_v15  ;;  %v1224_v33 = vld [vmem:[#allocation20 + $0xc30] sm:$0xff] }
 0x7a9   :  { %4611 = vmatprep.subr.bf16.mxu1 %v5231_v16  ;;  %v1232_v15 = vld [vmem:[#allocation20 + $0xc70] sm:$0xff] }
 0x7aa   :  { %v5309_v22 = vcombine.high %v1224_v33, %v1232_v15 }
 0x7ab   :  { %4530 = vmatpush1.bf16.msra.mxu0 %v5228_v51 }
 0x7ac   :  { %4612 = vmatpush1.bf16.msra.mxu1 %v5230_v55  ;;  %4531 = vmatprep.subr.bf16.mxu0 %v5245_v19  ;;  %v5292_v55 = vcombine.low %v1208_v39, %v1216_v41  ;;  %v1256_v39 = vld [vmem:[#allocation20 + $0xd30] sm:$0xff] }
 0x7ad   :  { %4613 = vmatprep.subr.bf16.mxu1 %v5247_v20  ;;  %v1264_v41 = vld [vmem:[#allocation20 + $0xd70] sm:$0xff] }
 0x7af   :  { %4532 = vmatpush1.bf16.msra.mxu0 %v5244_v26  ;;  %v5311_v26 = vcombine.high %v1225_v17, %v1233_v10 }
 0x7b0   :  { %4614 = vmatpush1.bf16.msra.mxu1 %v5246_v29  ;;  %4533 = vmatprep.subr.bf16.mxu0 %v5261_v31  ;;  %v1240_v29 = vld [vmem:[#allocation20 + $0xcb0] sm:$0xff] }
 0x7b1   :  { %v4229_v60 = vpop.f32.mrb[12].mxu0  ;;  %4615 = vmatprep.subr.bf16.mxu1 %v5263_v34  ;;  %v1248_v31 = vld [vmem:[#allocation20 + $0xcf0] sm:$0xff] }
 0x7b2   :  { %v6475_v42 = vadd.f32 %v4229_v60, %v1369_v44  ;;  %v4311_v43 = vpop.f32.mrb[12].mxu1  ;;  %v4231_v61 = vpop.f32.mrb[13].mxu0  ;;  %v1249_v44 = vld [vmem:[#allocation20 + $0xcf8] sm:$0xff]  ;;  %v5324_v63 = vcombine.low %v1240_v29, %v1248_v31 }
 0x7b3   :  { %v6477_v0 = vadd.f32 %v4311_v43, %v1377_v53  ;;  %v6479_v3 = vadd.f32 %v4231_v61, %v1373_v54  ;;  %v4313_v4 = vpop.f32.mrb[13].mxu1  ;;  %v4233_v40 = vpop.f32.mrb[14].mxu0  ;;  %4534 = vmatpush1.bf16.msra.mxu0 %v5260_v56  ;;  %v5308_v53 = vcombine.low %v1224_v33, %v1232_v15  ;;  %v1257_v61 = vld [vmem:[#allocation20 + $0xd38] sm:$0xff]  ;;  %v1296_v33 = vld [vmem:[#allocation20 + $0xe70] sm:$0xff] }
 0x7b4   :  { %v4650_v1 = vmul.f32 %v6475_v42, %v6475_v42  ;;  %v6483_v7 = vadd.f32 %v4313_v4, %v1381_v57  ;;  %v4315_v9 = vpop.f32.mrb[14].mxu1  ;;  %4616 = vmatpush1.bf16.msra.mxu1 %v5262_v58  ;;  %v4234_v11 = vpop.f32.mrb[15].mxu0  ;;  %4535 = vmatprep.subr.bf16.mxu0 %v5277_v59  ;;  %v5310_v57 = vcombine.low %v1225_v17, %v1233_v10  ;;  %v1289_v15 = vld [vmem:[#allocation20 + $0xe38] sm:$0xff] }
 0x7b5   :  { %v4652_v2 = vmul.f32 %v6477_v0, %v6477_v0  ;;  %v4651_v12 = vmul.f32 %v6479_v3, %v6479_v3  ;;  %v4316_v13 = vpop.f32.mrb[15].mxu1  ;;  %4617 = vmatprep.subr.bf16.mxu1 %v5279_v38  ;;  %v5325_v58 = vcombine.high %v1240_v29, %v1248_v31  ;;  %v5327_v38 = vcombine.high %v1241_v36, %v1249_v44  ;;  %v1273_v9 = vld [vmem:[#allocation20 + $0xdb8] sm:$0xff] }
 0x7b6   :  { %v4666_v16 = vmul.f32 %v6475_v42, %v4650_v1  ;;  %v4653_v8 = vmul.f32 %v6483_v7, %v6483_v7  ;;  %v5326_v4 = vcombine.low %v1241_v36, %v1249_v44  ;;  %v5341_v40 = vcombine.high %v1256_v39, %v1264_v41  ;;  %v1280_v1 = vld [vmem:[#allocation20 + $0xdf0] sm:$0xff]  ;;  %v1281_v11 = vld [vmem:[#allocation20 + $0xdf8] sm:$0xff] }
 0x7b7   :  { %v4668_v18 = vmul.f32 %v6477_v0, %v4652_v2  ;;  %v4667_v51 = vmul.f32 %v6479_v3, %v4651_v12  ;;  %4536 = vmatpush1.bf16.msra.mxu0 %v5276_v32  ;;  %v5343_v32 = vcombine.high %v1257_v61, %v1265_v62  ;;  %v5342_v2 = vcombine.low %v1257_v61, %v1265_v62 }
 0x7b8   :  { %v4682_v19 = vmul.f32 0.044715, %v4666_v16  ;;  %v4669_v20 = vmul.f32 %v6483_v7, %v4653_v8  ;;  %4618 = vmatpush1.bf16.msra.mxu1 %v5278_v6  ;;  %4537 = vmatprep.subr.bf16.mxu0 %v5293_v48  ;;  %v1272_v6 = vld [vmem:[#allocation20 + $0xdb0] sm:$0xff]  ;;  %v5340_v48 = vcombine.low %v1256_v39, %v1264_v41  ;;  %v5359_v13 = vcombine.high %v1273_v9, %v1281_v11  ;;  %v1297_v16 = vld [vmem:[#allocation20 + $0xe78] sm:$0xff] }
 0x7b9   :  { %v4684_v24 = vmul.f32 0.044715, %v4668_v18  ;;  %v4683_v25 = vmul.f32 0.044715, %v4667_v51  ;;  %4619 = vmatprep.subr.bf16.mxu1 %v5295_v14  ;;  %v5357_v12 = vcombine.high %v1272_v6, %v1280_v1  ;;  %v1288_v14 = vld [vmem:[#allocation20 + $0xe30] sm:$0xff]  ;;  %v5356_v8 = vcombine.low %v1272_v6, %v1280_v1  ;;  %v1329_v39 = vld [vmem:[#allocation20 + $0xf78] sm:$0xff] }
 0x7ba   :  { %v4698_v34 = vadd.f32 %v6475_v42, %v4682_v19  ;;  %v4685_v35 = vmul.f32 0.044715, %v4669_v20  ;;  %v5358_v10 = vcombine.low %v1273_v9, %v1281_v11  ;;  %v5373_v18 = vcombine.high %v1288_v14, %v1296_v33  ;;  %v1304_v20 = vld [vmem:[#allocation20 + $0xeb0] sm:$0xff] }
 0x7bb   :  { %v4700_v45 = vadd.f32 %v6477_v0, %v4684_v24  ;;  %v4699_v52 = vadd.f32 %v6479_v3, %v4683_v25  ;;  %4538 = vmatpush1.bf16.msra.mxu0 %v5292_v55  ;;  %v5375_v19 = vcombine.high %v1289_v15, %v1297_v16  ;;  %v1305_v25 = vld [vmem:[#allocation20 + $0xeb8] sm:$0xff]  ;;  %v1344_v1 = vld [vmem:[#allocation20 + $0xff0] sm:$0xff] }
 0x7bc   :  { %v4714_v54 = vmul.f32 0.7978846, %v4698_v34  ;;  %v4701_v56 = vadd.f32 %v6483_v7, %v4685_v35  ;;  %4620 = vmatpush1.bf16.msra.mxu1 %v5294_v21  ;;  %4539 = vmatprep.subr.bf16.mxu0 %v5309_v22  ;;  %v1312_v21 = vld [vmem:[#allocation20 + $0xef0] sm:$0xff]  ;;  %v5372_v35 = vcombine.low %v1288_v14, %v1296_v33 }
 0x7bd   :  { %v4716_v59 = vmul.f32 0.7978846, %v4700_v45  ;;  %v4715_v60 = vmul.f32 0.7978846, %v4699_v52  ;;  %4621 = vmatprep.subr.bf16.mxu1 %v5311_v26  ;;  %v1313_v26 = vld [vmem:[#allocation20 + $0xef8] sm:$0xff]  ;;  %v5374_v45 = vcombine.low %v1289_v15, %v1297_v16  ;;  %v5389_v52 = vcombine.high %v1304_v20, %v1312_v21 }
 0x7be   :  { %5671 = vtanh.f32 %v4714_v54  ;;  %v4717_v43 = vmul.f32 0.7978846, %v4701_v56  ;;  %v5391_v56 = vcombine.high %v1305_v25, %v1313_v26  ;;  %v5388_v61 = vcombine.low %v1304_v20, %v1312_v21 }
 0x7bf   :  { %5673 = vtanh.f32 %v4716_v59  ;;  %4540 = vmatpush1.bf16.msra.mxu0 %v5308_v53 }
 0x7c0   :  { %5675 = vtanh.f32 %v4715_v60  ;;  %4622 = vmatpush1.bf16.msra.mxu1 %v5310_v57  ;;  %4541 = vmatprep.subr.bf16.mxu0 %v5325_v58  ;;  %v1320_v57 = vld [vmem:[#allocation20 + $0xf30] sm:$0xff] }
 0x7c1   :  { %5677 = vtanh.f32 %v4717_v43  ;;  %4623 = vmatprep.subr.bf16.mxu1 %v5327_v38  ;;  %v1328_v58 = vld [vmem:[#allocation20 + $0xf70] sm:$0xff]  ;;  %v1321_v38 = vld [vmem:[#allocation20 + $0xf38] sm:$0xff] }
 0x7c2   :  { %v5407_v6 = vcombine.high %v1321_v38, %v1329_v39 }
 0x7c3   :  { %4542 = vmatpush1.bf16.msra.mxu0 %v5324_v63 }
 0x7c4   :  { %4624 = vmatpush1.bf16.msra.mxu1 %v5326_v4  ;;  %4543 = vmatprep.subr.bf16.mxu0 %v5341_v40  ;;  %v5405_v4 = vcombine.high %v1320_v57, %v1328_v58 }
 0x7c5   :  { %4625 = vmatprep.subr.bf16.mxu1 %v5343_v32 }
 0x7c7   :  { %4544 = vmatpush1.bf16.msra.mxu0 %v5340_v48  ;;  %v1337_v48 = vld [vmem:[#allocation20 + $0xfb8] sm:$0xff] }
 0x7c8   :  { %v5672_v17 = vpop.eup %5671  ;;  %4626 = vmatpush1.bf16.msra.mxu1 %v5342_v2  ;;  %4545 = vmatprep.subr.bf16.mxu0 %v5357_v12  ;;  %v1345_v2 = vld [vmem:[#allocation20 + $0xff8] sm:$0xff]  ;;  %v5404_v12 = vcombine.low %v1320_v57, %v1328_v58 }
 0x7c9   :  { %v5674_v51 = vpop.eup %5673  ;;  %v4746_v55 = vadd.f32 1.0, %v5672_v17  ;;  %4627 = vmatprep.subr.bf16.mxu1 %v5359_v13  ;;  %v5406_v13 = vcombine.low %v1321_v38, %v1329_v39  ;;  %v5423_v33 = vcombine.high %v1337_v48, %v1345_v2  ;;  %v5422_v16 = vcombine.low %v1337_v48, %v1345_v2 }
 0x7ca   :  { %v5676_v22 = vpop.eup %5675  ;;  %v4748_v24 = vadd.f32 1.0, %v5674_v51 }
 0x7cb   :  { %v5678_v29 = vpop.eup %5677  ;;  %v4762_v31 = vmul.f32 0.5, %v4746_v55  ;;  %v4747_v34 = vadd.f32 1.0, %v5676_v22  ;;  %4546 = vmatpush1.bf16.msra.mxu0 %v5356_v8  ;;  %v6505_v8 = vld [vmem:[#allocation22 + $0x8] sm:$0xff] }
 0x7cc   :  { %v4764_v36 = vmul.f32 0.5, %v4748_v24  ;;  %v4749_v44 = vadd.f32 1.0, %v5678_v29  ;;  %4628 = vmatpush1.bf16.msra.mxu1 %v5358_v10  ;;  %4547 = vmatprep.subr.bf16.mxu0 %v5373_v18  ;;  %v1385_v17 = vrot.slane %v6505_v8, %v6346_v47  ;;  %v1393_v10 = vrot.slane %v6505_v8, %v6383_v37 }
 0x7cd   :  { %v4778_v53 = vmul.f32 %v6475_v42, %v4762_v31  ;;  %v4763_v54 = vmul.f32 0.5, %v4747_v34  ;;  %4629 = vmatprep.subr.bf16.mxu1 %v5375_v19  ;;  %v5390_v42 = vcombine.low %v1305_v25, %v1313_v26  ;;  %v1389_v18 = vrot.slane %v6505_v8, %v6351_v49 }
 0x7ce   :  { %v4780_v59 = vmul.f32 %v6477_v0, %v4764_v36  ;;  %v4765_v60 = vmul.f32 0.5, %v4749_v44  ;;  %v1336_v0 = vld [vmem:[#allocation20 + $0xfb0] sm:$0xff]  ;;  %v1397_v51 = vrot.slane %v6505_v8, %v6354_v50 }
 0x7cf   :  { %v5538_v41 = vtrunc.f32 %v4778_v53  ;;  %v4779_v43 = vmul.f32 %v6479_v3, %v4763_v54  ;;  %4548 = vmatpush1.bf16.msra.mxu0 %v5372_v35  ;;  %v5421_v14 = vcombine.high %v1336_v0, %v1344_v1  ;;  %v5420_v15 = vcombine.low %v1336_v0, %v1344_v1 }
 0x7d0   :  { %v5542_v62 = vtrunc.f32 %v4780_v59  ;;  %v4781_v63 = vmul.f32 %v6483_v7, %v4765_v60  ;;  %4630 = vmatpush1.bf16.msra.mxu1 %v5374_v45  ;;  %4549 = vmatprep.subr.bf16.mxu0 %v5389_v52 }
 0x7d1   :  { %v5539_v40 = vcvt.f32.s32 %v5538_v41  ;;  %v5540_v32 = vtrunc.f32 %v4779_v43  ;;  %4631 = vmatprep.subr.bf16.mxu1 %v5391_v56 }
 0x7d2   :  { %v5543_v9 = vcvt.f32.s32 %v5542_v62  ;;  %v5544_v11 = vtrunc.f32 %v4781_v63 }
 0x7d3   :  { %4810 = vst [vmem:[#allocation24 + $0x20] sm:$0xff] %v5539_v40  ;;  %v5541_v3 = vcvt.f32.s32 %v5540_v32  ;;  %4550 = vmatpush1.bf16.msra.mxu0 %v5388_v61 }
 0x7d4   :  { %4812 = vst [vmem:[#allocation24 + $0x30] sm:$0xff] %v5543_v9  ;;  %v5545_v7 = vcvt.f32.s32 %v5544_v11  ;;  %4632 = vmatpush1.bf16.msra.mxu1 %v5390_v42  ;;  %4551 = vmatprep.subr.bf16.mxu0 %v5405_v4 }
 0x7d5   :  { %4811 = vst [vmem:[#allocation24 + $0x28] sm:$0xff] %v5541_v3  ;;  %4633 = vmatprep.subr.bf16.mxu1 %v5407_v6 }
 0x7d6   :  { %4813 = vst [vmem:[#allocation24 + $0x38] sm:$0xff] %v5545_v7 }
 0x7d7   :  { %4552 = vmatpush1.bf16.msra.mxu0 %v5404_v12 }
 0x7d8   :  { %4634 = vmatpush1.bf16.msra.mxu1 %v5406_v13  ;;  %4553 = vmatprep.subr.bf16.mxu0 %v5421_v14 }
 0x7d9   :  { %4635 = vmatprep.subr.bf16.mxu1 %v5423_v33 }
 0x7db   :  { %4554 = vmatpush1.bf16.msra.mxu0 %v5420_v15 }
 0x7dc   :  { %4636 = vmatpush1.bf16.msra.mxu1 %v5422_v16 }
 0x7de   :  { %4556 = vmatmul.mubr.bf16.vlgmr.msra.gmra.mrb[20].mxu0 %v6395_v5 }
 0x7df   :  { %4638 = vmatmul.mubr.bf16.vlgmr.msra.gmra.mrb[20].mxu1 %v6395_v5 }
 0x831   :  { %v4393_v55 = vpop.f32.mrb[16].mxu0 }
 0x832   :  { %v5490_v19 = vadd.f32 %v4393_v55, %v1385_v17  ;;  %v4475_v20 = vpop.f32.mrb[16].mxu1  ;;  %v4395_v21 = vpop.f32.mrb[17].mxu0 }
 0x833   :  { %v5492_v22 = vadd.f32 %v4475_v20, %v1393_v10  ;;  %v5491_v5 = vadd.f32 %v4395_v21, %v1389_v18  ;;  %v4477_v24 = vpop.f32.mrb[17].mxu1  ;;  %v4397_v25 = vpop.f32.mrb[18].mxu0 }
 0x834   :  { %v4654_v26 = vmul.f32 %v5490_v19, %v5490_v19  ;;  %v5493_v29 = vadd.f32 %v4477_v24, %v1397_v51  ;;  %v4479_v47 = vpop.f32.mrb[18].mxu1  ;;  %v4398_v31 = vpop.f32.mrb[19].mxu0 }
 0x835   :  { %v4656_v34 = vmul.f32 %v5492_v22, %v5492_v22  ;;  %v4655_v37 = vmul.f32 %v5491_v5, %v5491_v5  ;;  %v4480_v35 = vpop.f32.mrb[19].mxu1 }
 0x836   :  { %v4670_v36 = vmul.f32 %v5490_v19, %v4654_v26  ;;  %v4657_v49 = vmul.f32 %v5493_v29, %v5493_v29 }
 0x837   :  { %v4672_v44 = vmul.f32 %v5492_v22, %v4656_v34  ;;  %v4671_v45 = vmul.f32 %v5491_v5, %v4655_v37 }
 0x838   :  { %v4686_v50 = vmul.f32 0.044715, %v4670_v36  ;;  %v4673_v52 = vmul.f32 %v5493_v29, %v4657_v49 }
 0x839   :  { %v4688_v53 = vmul.f32 0.044715, %v4672_v44  ;;  %v4687_v54 = vmul.f32 0.044715, %v4671_v45 }
 0x83a   :  { %v4702_v56 = vadd.f32 %v5490_v19, %v4686_v50  ;;  %v4689_v57 = vmul.f32 0.044715, %v4673_v52 }
 0x83b   :  { %v4704_v58 = vadd.f32 %v5492_v22, %v4688_v53  ;;  %v4703_v59 = vadd.f32 %v5491_v5, %v4687_v54 }
 0x83c   :  { %v4718_v60 = vmul.f32 0.7978846, %v4702_v56  ;;  %v4705_v38 = vadd.f32 %v5493_v29, %v4689_v57 }
 0x83d   :  { %v4720_v39 = vmul.f32 0.7978846, %v4704_v58  ;;  %v4719_v41 = vmul.f32 0.7978846, %v4703_v59 }
 0x83e   :  { %5679 = vtanh.f32 %v4718_v60  ;;  %v4721_v43 = vmul.f32 0.7978846, %v4705_v38 }
 0x83f   :  { %5681 = vtanh.f32 %v4720_v39 }
 0x840   :  { %5683 = vtanh.f32 %v4719_v41 }
 0x841   :  { %5685 = vtanh.f32 %v4721_v43 }
 0x848   :  { %v5680_v61 = vpop.eup %5679 }
 0x849   :  { %v5682_v62 = vpop.eup %5681  ;;  %v4750_v63 = vadd.f32 1.0, %v5680_v61 }
 0x84a   :  { %v5684_v42 = vpop.eup %5683  ;;  %v4752_v4 = vadd.f32 1.0, %v5682_v62 }
 0x84b   :  { %v5686_v40 = vpop.eup %5685  ;;  %v4766_v32 = vmul.f32 0.5, %v4750_v63  ;;  %v4751_v6 = vadd.f32 1.0, %v5684_v42 }
 0x84c   :  { %v4768_v0 = vmul.f32 0.5, %v4752_v4  ;;  %v4753_v1 = vadd.f32 1.0, %v5686_v40 }
 0x84d   :  { %v4782_v9 = vmul.f32 %v5490_v19, %v4766_v32  ;;  %v4767_v11 = vmul.f32 0.5, %v4751_v6 }
 0x84e   :  { %v4784_v48 = vmul.f32 %v5492_v22, %v4768_v0  ;;  %v4769_v2 = vmul.f32 0.5, %v4753_v1 }
 0x84f   :  { %v5546_v3 = vtrunc.f32 %v4782_v9  ;;  %v4783_v12 = vmul.f32 %v5491_v5, %v4767_v11 }
 0x850   :  { %v5550_v7 = vtrunc.f32 %v4784_v48  ;;  %v4785_v13 = vmul.f32 %v5493_v29, %v4769_v2 }
 0x851   :  { %v5547_v14 = vcvt.f32.s32 %v5546_v3  ;;  %v5548_v33 = vtrunc.f32 %v4783_v12 }
 0x852   :  { %v5551_v15 = vcvt.f32.s32 %v5550_v7  ;;  %v5552_v16 = vtrunc.f32 %v4785_v13 }
 0x853   :  { %4814 = vst [vmem:[#allocation24 + $0x40] sm:$0xff] %v5547_v14  ;;  %v5549_v17 = vcvt.f32.s32 %v5548_v33 }
 0x854   :  { %4816 = vst [vmem:[#allocation24 + $0x50] sm:$0xff] %v5551_v15  ;;  %v5553_v10 = vcvt.f32.s32 %v5552_v16 }
 0x855   :  { %4815 = vst [vmem:[#allocation24 + $0x48] sm:$0xff] %v5549_v17 }
 0x856   :  { %4817 = vst [vmem:[#allocation24 + $0x58] sm:$0xff] %v5553_v10 }
 0x857   :  { %5992 = shalt.err (!%p5989_p10)
}
 0x858   :  { %s5993_s25 = scalar_lea.hbm %s6564_s13, 128 }
 0x859   :  { %p5994_p11 = scmp.ne.s32.totalorder %s6564_s13, %s5993_s25  ;;  %p5997_p12 = scmp.lt.u32.totalorder %s5993_s25, %s6564_s13 }
 0x85b   :  { %p5999_p13 = pnand %p5997_p12, %p5994_p11 }
 0x85d   :  { %6002 = shalt.err (!%p5999_p13)
}
 0x85e   :  { %4832 = dma.vmem_to_hbm [thread:$0]  %s4830_s2, 128, %s6564_s13, [#allocation4]   ;;  %v1401_v18 = vrot.slane %v6505_v8, %v1368_v23  ;;  %v1409_v51 = vrot.slane %v6505_v8, %v1376_v27  ;;  %v1405_v55 = vrot.slane %v6505_v8, %v1372_v28  ;;  %v1413_v19 = vrot.slane %v6505_v8, %v1380_v30 }
 0x85f   :  { %s6065_s13 = smov [#allocation24]   ;;  %vm4821_vm1 = vcmask 654336  }
 0x860   :  { %s4839_s22 = sshll.u32 %s6065_s13, 4  ;;  %s4840_s22 = int_to_ptr.vmem [resolvable:$true] %s4839_s22 }
 0x861   :  { %s6003_s23 = scalar_lea.vmem %s4840_s22, 2048  ;;  %p6008_p1 = scmp.lt.s32.totalorder %s4840_s22, %s4840_s22 }
 0x862   :  { %p6004_p0 = scmp.ne.s32.totalorder %s4840_s22, %s6003_s23  ;;  %p6009_p2 = scmp.lt.s32.totalorder %s6003_s23, %s6003_s23 }
 0x864   :  { %p6010_p3 = por %p6009_p2, %p6008_p1 }
 0x866   :  { %p6011_p4 = pnand %p6010_p3, %p6004_p0 }
 0x8b1   :  { %v4557_v20 = vpop.f32.mrb[20].mxu0 }
 0x8b2   :  { %v5494_v21 = vadd.f32 %v4557_v20, %v1401_v18  ;;  %v4639_v22 = vpop.f32.mrb[20].mxu1  ;;  %v4559_v5 = vpop.f32.mrb[21].mxu0 }
 0x8b3   :  { %v5496_v24 = vadd.f32 %v4639_v22, %v1409_v51  ;;  %v5495_v25 = vadd.f32 %v4559_v5, %v1405_v55  ;;  %v4641_v26 = vpop.f32.mrb[21].mxu1  ;;  %v4561_v23 = vpop.f32.mrb[22].mxu0 }
 0x8b4   :  { %v4658_v29 = vmul.f32 %v5494_v21, %v5494_v21  ;;  %v5497_v47 = vadd.f32 %v4641_v26, %v1413_v19  ;;  %v4643_v31 = vpop.f32.mrb[22].mxu1  ;;  %v4562_v27 = vpop.f32.mrb[23].mxu0 }
 0x8b5   :  { %v4660_v34 = vmul.f32 %v5496_v24, %v5496_v24  ;;  %v4659_v37 = vmul.f32 %v5495_v25, %v5495_v25  ;;  %v4644_v35 = vpop.f32.mrb[23].mxu1 }
 0x8b6   :  { %v4674_v28 = vmul.f32 %v5494_v21, %v4658_v29  ;;  %v4661_v36 = vmul.f32 %v5497_v47, %v5497_v47 }
 0x8b7   :  { %v4676_v46 = vmul.f32 %v5496_v24, %v4660_v34  ;;  %v4675_v49 = vmul.f32 %v5495_v25, %v4659_v37 }
 0x8b8   :  { %v4690_v30 = vmul.f32 0.044715, %v4674_v28  ;;  %v4677_v8 = vmul.f32 %v5497_v47, %v4661_v36 }
 0x8b9   :  { %v4692_v44 = vmul.f32 0.044715, %v4676_v46  ;;  %v4691_v45 = vmul.f32 0.044715, %v4675_v49 }
 0x8ba   :  { %v4706_v50 = vadd.f32 %v5494_v21, %v4690_v30  ;;  %v4693_v52 = vmul.f32 0.044715, %v4677_v8 }
 0x8bb   :  { %v4708_v53 = vadd.f32 %v5496_v24, %v4692_v44  ;;  %v4707_v54 = vadd.f32 %v5495_v25, %v4691_v45 }
 0x8bc   :  { %v4722_v56 = vmul.f32 0.7978846, %v4706_v50  ;;  %v4709_v57 = vadd.f32 %v5497_v47, %v4693_v52 }
 0x8bd   :  { %v4724_v58 = vmul.f32 0.7978846, %v4708_v53  ;;  %v4723_v59 = vmul.f32 0.7978846, %v4707_v54 }
 0x8be   :  { %5687 = vtanh.f32 %v4722_v56  ;;  %v4725_v60 = vmul.f32 0.7978846, %v4709_v57 }
 0x8bf   :  { %5689 = vtanh.f32 %v4724_v58 }
 0x8c0   :  { %5691 = vtanh.f32 %v4723_v59 }
 0x8c1   :  { %5693 = vtanh.f32 %v4725_v60 }
 0x8c8   :  { %v5688_v38 = vpop.eup %5687 }
 0x8c9   :  { %v5690_v39 = vpop.eup %5689  ;;  %v4754_v41 = vadd.f32 1.0, %v5688_v38 }
 0x8ca   :  { %v5692_v43 = vpop.eup %5691  ;;  %v4756_v61 = vadd.f32 1.0, %v5690_v39 }
 0x8cb   :  { %v5694_v62 = vpop.eup %5693  ;;  %v4770_v63 = vmul.f32 0.5, %v4754_v41  ;;  %v4755_v42 = vadd.f32 1.0, %v5692_v43 }
 0x8cc   :  { %v4772_v4 = vmul.f32 0.5, %v4756_v61  ;;  %v4757_v40 = vadd.f32 1.0, %v5694_v62 }
 0x8cd   :  { %v4786_v32 = vmul.f32 %v5494_v21, %v4770_v63  ;;  %v4771_v6 = vmul.f32 0.5, %v4755_v42 }
 0x8ce   :  { %v4788_v0 = vmul.f32 %v5496_v24, %v4772_v4  ;;  %v4773_v1 = vmul.f32 0.5, %v4757_v40 }
 0x8cf   :  { %v5554_v9 = vtrunc.f32 %v4786_v32  ;;  %v4787_v11 = vmul.f32 %v5495_v25, %v4771_v6 }
 0x8d0   :  { %v5558_v48 = vtrunc.f32 %v4788_v0  ;;  %v4789_v2 = vmul.f32 %v5497_v47, %v4773_v1 }
 0x8d1   :  { %v5555_v3 = vcvt.f32.s32 %v5554_v9  ;;  %v5556_v12 = vtrunc.f32 %v4787_v11 }
 0x8d2   :  { %v5559_v7 = vcvt.f32.s32 %v5558_v48  ;;  %v5560_v13 = vtrunc.f32 %v4789_v2 }
 0x8d3   :  { %4818 = vst [vmem:[#allocation24 + $0x60] sm:$0xff] %v5555_v3  ;;  %v5557_v14 = vcvt.f32.s32 %v5556_v12 }
 0x8d4   :  { %4820 = vst [vmem:[#allocation24 + $0x70] sm:$0xff] %v5559_v7  ;;  %v5561_v33 = vcvt.f32.s32 %v5560_v13 }
 0x8d5   :  { %4819 = vst [vmem:[#allocation24 + $0x68] sm:$0xff] %v5557_v14 }
 0x8d6   :  { %4822 = vst.msk [vmem:[#allocation24 + $0x78] sm:$0xff] %vm4821_vm1, %v5561_v33 }
 0x8d7   :  { %6014 = shalt.err (!%p6011_p4)
}
 0x8d8   :  { %s6015_s24 = scalar_lea.hbm %s6565_s14, 2048 }
 0x8d9   :  { %p6016_p5 = scmp.ne.s32.totalorder %s6565_s14, %s6015_s24  ;;  %p6019_p6 = scmp.lt.u32.totalorder %s6015_s24, %s6565_s14 }
 0x8db   :  { %p6021_p7 = pnand %p6019_p6, %p6016_p5 }
 0x8dd   :  { %6024 = shalt.err (!%p6021_p7)
}
 0x8de   :  { %4842 = dma.vmem_to_hbm [thread:$0]  %s4840_s22, 2048, %s6565_s14, [#allocation25]  }
 0x8df   :  { %6039 = dma.done.wait [#allocation4], 128  }
 0x8e0   :  { %6040 = vsyncadd [#allocation4], 4294967168 }
 0x8e1   :  { %6041 = dma.done.wait [#allocation25], 2048  }
 0x8e2   :  { %6042 = vsyncadd [#allocation25], 4294965248 }
 0x8e3   :  { %4849 = vsyncpa [#allocation3], 1 }
 0x8e4   :  { %4850 = vsyncpa [#allocation6], 1 }
 0x8e5   :  { %4851 = vsyncpa [#allocation9], 1 }
 0x8e6   :  { %4852 = vsyncpa [#allocation12], 1 }
 0x8e7   :  { %4853 = vsyncpa [#allocation15], 1 }
 0x8e8   :  { %4854 = vsyncpa [#allocation18], 1 }
 0x8e9   :  { %4855 = vsyncpa [#allocation21], 1 }
 0x8ea   :  { %4856 = vsyncpa [#allocation4], 1 }
 0x8eb   :  { %4857 = vsyncpa [#allocation25], 1 }

</bundles_post_ra>
